<compile_context>
chip_gen: v7x
topology: tpu7x:2x2x1
jax: 0.10.0
libtpu: 0.0.40
codegen_flags: <defaults>
</compile_context>

<pallas_src>
import jax
import jax.numpy as jnp
from jax.experimental import pallas as pl
from jax.experimental.pallas import tpu as pltpu

HIDDEN_PAD = 640   # fc1 hidden 600 padded to a lane multiple
OUT_PAD = 128      # final output padded to one full lane register


# ===========================================================================
# Kernel 1: fused conv stack (conv0 -> conv1 -> conv2 + pools + spatial sums)
# ===========================================================================
def _conv_stack_kernel(
    x_ref,
    w00_ref, b00_ref, w01_ref, b01_ref,
    w10a_ref, w10b_ref, b10_ref, w11_ref, b11_ref,
    w20a_ref, w20b_ref, b20_ref, w21_ref, b21_ref,
    s16_ref, s32_ref, s64_ref, s128_ref,
    pA, pB, pC, pD, pE, pF, pG, pH,
):
    # Padded-buffer convention: the (h, w, c) activation interior is stored at
    # rows [1, h] and sublanes [8, 8 + w) of a zero-filled (h+2, w+16, c)
    # VMEM scratch (sublane offset 8 keeps the interior store tile-aligned).
    # Tap (dy, dx) of the 3x3 stencil is then the static slice
    # [dy:dy+h, 7+dx:7+dx+w, :].

    def store_padded(val, pref):
        h, w, _ = val.shape
        pref[...] = jnp.zeros_like(pref)
        pref[1:h + 1, 8:8 + w, :] = val

    def pool2x2_into(val, pref):
        # 2x2 / stride-2 max pool of `val`, written (padded) into `pref`.
        h, w, c = val.shape
        ho, wo = h // 2, w // 2
        rm = jnp.max(val.reshape(ho, 2, w, c), axis=1)          # row pairs
        pref[...] = jnp.zeros_like(pref)
        for j in range(wo):                                     # column pairs
            pref[1:ho + 1, 8 + j, :] = jnp.maximum(rm[:, 2 * j, :],
                                                   rm[:, 2 * j + 1, :])

    def conv3x3(srcs, b_ref, h, w, relu):
        # 3x3 "same" conv; `srcs` is a list of (padded_ref, weight_ref) pairs
        # whose Cin blocks are summed (channel concat folded into K).
        cout = b_ref.shape[1]
        acc = jnp.zeros((h * w, cout), jnp.float32)
        for pref, wref in srcs:
            cin = wref.shape[2]
            for dy in range(3):
                for dx in range(3):
                    tap = pref[dy:dy + h, 7 + dx:7 + dx + w, :]
                    acc = acc + jnp.dot(tap.reshape(h * w, cin), wref[dy, dx],
                                        preferred_element_type=jnp.float32)
        acc = acc + b_ref[...]
        if relu:
            acc = jnp.maximum(acc, 0.0)
        return acc.reshape(h, w, cout)

    def spatial_sum(val):
        h, w, c = val.shape
        return jnp.sum(val.reshape(h * w, c), axis=0)

    # ---- stage 0: x -> conv0 -> y ---------------------------------------
    x = x_ref[0]                                    # (16, 16, 16)
    s16_ref[0, 0, :] = spatial_sum(x)
    store_padded(x, pA)
    a0 = conv3x3([(pA, w00_ref)], b00_ref, 16, 16, relu=False)
    store_padded(a0, pB)
    y = conv3x3([(pB, w01_ref)], b01_ref, 16, 16, relu=True)    # (16, 16, 32)
    s32_ref[0, 0, :] = spatial_sum(y)

    # ---- stage 1: pool(cat[x, y]) -> conv1 -> x1 ------------------------
    pool2x2_into(x, pC)                             # (8, 8, 16)
    pool2x2_into(y, pD)                             # z = pool(y): (8, 8, 32)
    a1 = conv3x3([(pC, w10a_ref), (pD, w10b_ref)], b10_ref, 8, 8, relu=False)
    store_padded(a1, pE)
    x1 = conv3x3([(pE, w11_ref)], b11_ref, 8, 8, relu=True)     # (8, 8, 64)
    s64_ref[0, 0, :] = spatial_sum(x1)

    # ---- stage 2: pool(cat[x1, z]) -> conv2 -> y1 -----------------------
    pool2x2_into(x1, pF)                            # (4, 4, 64)
    z = pD[1:9, 8:16, :]                            # re-read z from its buffer
    pool2x2_into(z, pG)                             # (4, 4, 32)
    a2 = conv3x3([(pF, w20a_ref), (pG, w20b_ref)], b20_ref, 4, 4, relu=False)
    store_padded(a2, pH)
    y1 = conv3x3([(pH, w21_ref)], b21_ref, 4, 4, relu=True)     # (4, 4, 128)
    s128_ref[0, 0, :] = spatial_sum(y1)


def conv_stack(x_nhwc, p):
    B, H, W, C = x_nhwc.shape                       # (B, 16, 16, 16)

    def const_spec(a):
        zeros = (0,) * a.ndim
        return pl.BlockSpec(a.shape, lambda i: zeros)

    weights = (p["w00"], p["b00"], p["w01"], p["b01"],
               p["w10a"], p["w10b"], p["b10"], p["w11"], p["b11"],
               p["w20a"], p["w20b"], p["b20"], p["w21"], p["b21"])

    sum_widths = (16, 32, 64, 128)
    out_shape = tuple(jax.ShapeDtypeStruct((B, 1, c), jnp.float32)
                      for c in sum_widths)
    out_specs = tuple(pl.BlockSpec((1, 1, c), lambda i: (i, 0, 0))
                      for c in sum_widths)

    f32 = jnp.float32
    scratch = [
        pltpu.VMEM((18, 32, 16), f32),    # pad(x)
        pltpu.VMEM((18, 32, 32), f32),    # pad(conv0_0 out)
        pltpu.VMEM((10, 24, 16), f32),    # pad(pool(x))
        pltpu.VMEM((10, 24, 32), f32),    # pad(pool(y)) == pad(z)
        pltpu.VMEM((10, 24, 64), f32),    # pad(conv1_0 out)
        pltpu.VMEM((6, 20, 64), f32),     # pad(pool(x1))
        pltpu.VMEM((6, 20, 32), f32),     # pad(pool(z))
        pltpu.VMEM((6, 20, 128), f32),    # pad(conv2_0 out)
    ]

    return pl.pallas_call(
        _conv_stack_kernel,
        out_shape=out_shape,
        grid=(B,),
        in_specs=[pl.BlockSpec((1, H, W, C), lambda i: (i, 0, 0, 0))]
                 + [const_spec(w) for w in weights],
        out_specs=out_specs,
        scratch_shapes=scratch,
        compiler_params=pltpu.CompilerParams(
            dimension_semantics=("parallel",)),
    )(x_nhwc, *weights)


# ===========================================================================
# Kernel 2: MLP head  Linear(277,600) -> ReLU -> Linear(600,1)  (padded)
# ===========================================================================
def _mlp_kernel(s16_ref, s32_ref, s64_ref, s128_ref, col_ref,
                w1a_ref, w1b_ref, w1c_ref, w1d_ref, w1e_ref, b1_ref,
                w2_ref, b2_ref, o_ref):
    def dot(a, b):
        return jnp.dot(a, b, preferred_element_type=jnp.float32)

    h = (dot(s16_ref[:, 0, :], w1a_ref[...])
         + dot(s32_ref[:, 0, :], w1b_ref[...])
         + dot(s64_ref[:, 0, :], w1c_ref[...])
         + dot(s128_ref[:, 0, :], w1d_ref[...])
         + dot(col_ref[...], w1e_ref[...])
         + b1_ref[...])
    h = jnp.maximum(h, 0.0)
    o_ref[...] = dot(h, w2_ref[...]) + b2_ref[...]


def mlp_head(s16, s32, s64, s128, col, p):
    # Tiny (~0.5 MFLOP) single call; fc1 row-split replaces the c_all concat.
    B = s16.shape[0]
    return pl.pallas_call(
        _mlp_kernel,
        out_shape=jax.ShapeDtypeStruct((B, OUT_PAD), jnp.float32),
    )(s16, s32, s64, s128, col,
      p["w1a"], p["w1b"], p["w1c"], p["w1d"], p["w1e"], p["b1"],
      p["w2"], p["b2"])


# ===========================================================================
# Parameters (deterministic, PyTorch-like fan-in uniform init)
# ===========================================================================
def _uniform(key, shape, bound):
    return jax.random.uniform(key, shape, jnp.float32, -bound, bound)


def init_params(key):
    """Logical (unsplit, unpadded) parameters mirroring the PyTorch module."""
    conv_specs = {
        "conv0_0": (16, 32), "conv0_1": (32, 32),
        "conv1_0": (48, 64), "conv1_1": (64, 64),
        "conv2_0": (96, 128), "conv2_1": (128, 128),
    }
    keys = jax.random.split(key, 2 * len(conv_specs) + 4)
    p, i = {}, 0
    for name, (cin, cout) in conv_specs.items():
        bound = 1.0 / float(cin * 9) ** 0.5
        w = _uniform(keys[i], (3, 3, cin, cout), bound); i += 1
        b = _uniform(keys[i], (1, cout), bound); i += 1
        p[name] = (w, b)
    d_in = 16 + 32 + 64 + 128 + 37            # = 277
    b1 = 1.0 / float(d_in) ** 0.5
    p["fc1_w"] = _uniform(keys[i], (d_in, 600), b1); i += 1
    p["fc1_b"] = _uniform(keys[i], (1, 600), b1); i += 1
    b2 = 1.0 / 600.0 ** 0.5
    p["fc2_w"] = _uniform(keys[i], (600, 1), b2); i += 1
    p["fc2_b"] = _uniform(keys[i], (1, 1), b2); i += 1
    return p


def prepare_params(p):
    """Split / zero-pad params into the kernel-friendly layout (one-time).

    * conv1_0 / conv2_0 weights are split along Cin so the channel concat in
      the reference becomes a sum of matmuls.
    * fc1 is row-split per c_all segment ([x-sum, conv0-sum, conv1-sum,
      conv2-sum, col]); hidden dim padded 600 -> 640, fc2 padded to (640, 128)
      for lane-dense MLP tiles (numerically a no-op).
    """
    q = {}
    q["w00"], q["b00"] = p["conv0_0"]
    q["w01"], q["b01"] = p["conv0_1"]
    w10, q["b10"] = p["conv1_0"]
    q["w10a"], q["w10b"] = w10[:, :, :16, :], w10[:, :, 16:, :]
    q["w11"], q["b11"] = p["conv1_1"]
    w20, q["b20"] = p["conv2_0"]
    q["w20a"], q["w20b"] = w20[:, :, :64, :], w20[:, :, 64:, :]
    q["w21"], q["b21"] = p["conv2_1"]

    w1 = jnp.pad(p["fc1_w"], ((0, 0), (0, HIDDEN_PAD - 600)))
    q["b1"] = jnp.pad(p["fc1_b"], ((0, 0), (0, HIDDEN_PAD - 600)))
    q["w1a"], q["w1b"], q["w1c"], q["w1d"], q["w1e"] = (
        w1[0:16], w1[16:48], w1[48:112], w1[112:240], w1[240:277])
    q["w2"] = jnp.pad(p["fc2_w"], ((0, HIDDEN_PAD - 600), (0, OUT_PAD - 1)))
    q["b2"] = jnp.pad(p["fc2_b"], ((0, 0), (0, OUT_PAD - 1)))
    return q


# ===========================================================================
# Forward pass (mirrors CNN2D.forward)
# ===========================================================================
def cnn2d_forward(prepared, x_nchw, col):
    x = jnp.transpose(x_nchw, (0, 2, 3, 1)).astype(jnp.float32)   # NHWC
    s16, s32, s64, s128 = conv_stack(x, prepared)                 # 1 fused call
    out = mlp_head(s16, s32, s64, s128, col.astype(jnp.float32), prepared)
    return out[:, :1]                                             # (B, 1)


if __name__ == "__main__":
    key = jax.random.PRNGKey(0)
    k_p, k_x, k_c = jax.random.split(key, 3)
    prepared = prepare_params(init_params(k_p))

    B, C, H, W = 2, 16, 16, 16            # NCHW input like the PyTorch module
    x = jax.random.normal(k_x, (B, C, H, W), jnp.float32)
    col = jax.random.normal(k_c, (B, 37), jnp.float32)

    out = jax.jit(cnn2d_forward)(prepared, x, col)
    out = jax.block_until_ready(out)
    assert out.shape == (B, 1) and out.dtype == jnp.float32
    print("KERNEL_OK")
</pallas_src>

<mosaic_0001>
module attributes {stable_mosaic.version = 11 : i64} {
  func.func @_mlp_kernel(%arg0: memref<2x1x16xf32, #tpu.memory_space<vmem>>, %arg1: memref<2x1x32xf32, #tpu.memory_space<vmem>>, %arg2: memref<2x1x64xf32, #tpu.memory_space<vmem>>, %arg3: memref<2x1x128xf32, #tpu.memory_space<vmem>>, %arg4: memref<2x37xf32, #tpu.memory_space<vmem>>, %arg5: memref<16x640xf32, #tpu.memory_space<vmem>>, %arg6: memref<32x640xf32, #tpu.memory_space<vmem>>, %arg7: memref<64x640xf32, #tpu.memory_space<vmem>>, %arg8: memref<128x640xf32, #tpu.memory_space<vmem>>, %arg9: memref<37x640xf32, #tpu.memory_space<vmem>>, %arg10: memref<1x640xf32, #tpu.memory_space<vmem>>, %arg11: memref<640x128xf32, #tpu.memory_space<vmem>>, %arg12: memref<1x128xf32, #tpu.memory_space<vmem>>, %arg13: memref<2x128xf32, #tpu.memory_space<vmem>>) attributes {dimension_semantics = [], scalar_prefetch = 0 : i64, scratch_operands = 0 : i64, tpu.core_type = #tpu.core_type<tc>} {
    %c0 = arith.constant 0 : index
    %c0_0 = arith.constant 0 : index
    %c0_1 = arith.constant 0 : index
    %0 = vector.load %arg0[%c0, %c0_0, %c0_1] : memref<2x1x16xf32, #tpu.memory_space<vmem>>, vector<2x1x16xf32>
    %1 = vector.shape_cast %0 : vector<2x1x16xf32> to vector<2x16xf32>
    %c0_2 = arith.constant 0 : index
    %c0_3 = arith.constant 0 : index
    %2 = vector.load %arg5[%c0_2, %c0_3] : memref<16x640xf32, #tpu.memory_space<vmem>>, vector<16x640xf32>
    %cst = arith.constant dense<0.000000e+00> : vector<2x640xf32>
    %3 = tpu.matmul %1, %2, %cst {dimension_numbers = #tpu.dot_dimension_numbers<[1], [0], [0], [1], [0, 0, 1, 1], [], []>} : vector<2x16xf32>, vector<16x640xf32>, vector<2x640xf32> -> vector<2x640xf32>
    %c0_4 = arith.constant 0 : index
    %c0_5 = arith.constant 0 : index
    %c0_6 = arith.constant 0 : index
    %4 = vector.load %arg1[%c0_4, %c0_5, %c0_6] : memref<2x1x32xf32, #tpu.memory_space<vmem>>, vector<2x1x32xf32>
    %5 = vector.shape_cast %4 : vector<2x1x32xf32> to vector<2x32xf32>
    %c0_7 = arith.constant 0 : index
    %c0_8 = arith.constant 0 : index
    %6 = vector.load %arg6[%c0_7, %c0_8] : memref<32x640xf32, #tpu.memory_space<vmem>>, vector<32x640xf32>
    %cst_9 = arith.constant dense<0.000000e+00> : vector<2x640xf32>
    %7 = tpu.matmul %5, %6, %cst_9 {dimension_numbers = #tpu.dot_dimension_numbers<[1], [0], [0], [1], [0, 0, 1, 1], [], []>} : vector<2x32xf32>, vector<32x640xf32>, vector<2x640xf32> -> vector<2x640xf32>
    %8 = arith.addf %3, %7 : vector<2x640xf32>
    %c0_10 = arith.constant 0 : index
    %c0_11 = arith.constant 0 : index
    %c0_12 = arith.constant 0 : index
    %9 = vector.load %arg2[%c0_10, %c0_11, %c0_12] : memref<2x1x64xf32, #tpu.memory_space<vmem>>, vector<2x1x64xf32>
    %10 = vector.shape_cast %9 : vector<2x1x64xf32> to vector<2x64xf32>
    %c0_13 = arith.constant 0 : index
    %c0_14 = arith.constant 0 : index
    %11 = vector.load %arg7[%c0_13, %c0_14] : memref<64x640xf32, #tpu.memory_space<vmem>>, vector<64x640xf32>
    %cst_15 = arith.constant dense<0.000000e+00> : vector<2x640xf32>
    %12 = tpu.matmul %10, %11, %cst_15 {dimension_numbers = #tpu.dot_dimension_numbers<[1], [0], [0], [1], [0, 0, 1, 1], [], []>} : vector<2x64xf32>, vector<64x640xf32>, vector<2x640xf32> -> vector<2x640xf32>
    %13 = arith.addf %8, %12 : vector<2x640xf32>
    %c0_16 = arith.constant 0 : index
    %c0_17 = arith.constant 0 : index
    %c0_18 = arith.constant 0 : index
    %14 = vector.load %arg3[%c0_16, %c0_17, %c0_18] : memref<2x1x128xf32, #tpu.memory_space<vmem>>, vector<2x1x128xf32>
    %15 = vector.shape_cast %14 : vector<2x1x128xf32> to vector<2x128xf32>
    %c0_19 = arith.constant 0 : index
    %c0_20 = arith.constant 0 : index
    %16 = vector.load %arg8[%c0_19, %c0_20] : memref<128x640xf32, #tpu.memory_space<vmem>>, vector<128x640xf32>
    %cst_21 = arith.constant dense<0.000000e+00> : vector<2x640xf32>
    %17 = tpu.matmul %15, %16, %cst_21 {dimension_numbers = #tpu.dot_dimension_numbers<[1], [0], [0], [1], [0, 0, 1, 1], [], []>} : vector<2x128xf32>, vector<128x640xf32>, vector<2x640xf32> -> vector<2x640xf32>
    %18 = arith.addf %13, %17 : vector<2x640xf32>
    %c0_22 = arith.constant 0 : index
    %c0_23 = arith.constant 0 : index
    %19 = vector.load %arg4[%c0_22, %c0_23] : memref<2x37xf32, #tpu.memory_space<vmem>>, vector<2x37xf32>
    %c0_24 = arith.constant 0 : index
    %c0_25 = arith.constant 0 : index
    %20 = vector.load %arg9[%c0_24, %c0_25] : memref<37x640xf32, #tpu.memory_space<vmem>>, vector<37x640xf32>
    %cst_26 = arith.constant dense<0.000000e+00> : vector<2x640xf32>
    %21 = tpu.matmul %19, %20, %cst_26 {dimension_numbers = #tpu.dot_dimension_numbers<[1], [0], [0], [1], [0, 0, 1, 1], [], []>} : vector<2x37xf32>, vector<37x640xf32>, vector<2x640xf32> -> vector<2x640xf32>
    %22 = arith.addf %18, %21 : vector<2x640xf32>
    %c0_27 = arith.constant 0 : index
    %c0_28 = arith.constant 0 : index
    %23 = vector.load %arg10[%c0_27, %c0_28] : memref<1x640xf32, #tpu.memory_space<vmem>>, vector<1x640xf32>
    %24 = vector.broadcast %23 : vector<1x640xf32> to vector<2x640xf32>
    %25 = arith.addf %22, %24 : vector<2x640xf32>
    %cst_29 = arith.constant 0.000000e+00 : f32
    %26 = vector.broadcast %cst_29 : f32 to vector<2x640xf32>
    %27 = arith.maximumf %25, %26 : vector<2x640xf32>
    %c0_30 = arith.constant 0 : index
    %c0_31 = arith.constant 0 : index
    %28 = vector.load %arg11[%c0_30, %c0_31] : memref<640x128xf32, #tpu.memory_space<vmem>>, vector<640x128xf32>
    %cst_32 = arith.constant dense<0.000000e+00> : vector<2x128xf32>
    %29 = tpu.matmul %27, %28, %cst_32 {dimension_numbers = #tpu.dot_dimension_numbers<[1], [0], [0], [1], [0, 0, 1, 1], [], []>} : vector<2x640xf32>, vector<640x128xf32>, vector<2x128xf32> -> vector<2x128xf32>
    %c0_33 = arith.constant 0 : index
    %c0_34 = arith.constant 0 : index
    %30 = vector.load %arg12[%c0_33, %c0_34] : memref<1x128xf32, #tpu.memory_space<vmem>>, vector<1x128xf32>
    %31 = vector.broadcast %30 : vector<1x128xf32> to vector<2x128xf32>
    %32 = arith.addf %29, %31 : vector<2x128xf32>
    %c0_35 = arith.constant 0 : index
    %c0_36 = arith.constant 0 : index
    %33 = vector.load %arg13[%c0_35, %c0_36] : memref<2x128xf32, #tpu.memory_space<vmem>>, vector<2x128xf32>
    tpu.vector_store %arg13[%c0_35, %c0_36], %32 {strides = array<i32>} : memref<2x128xf32, #tpu.memory_space<vmem>>, vector<2x128xf32>,
    return
  }
}

module attributes {stable_mosaic.version = 11 : i64} {
  func.func @_conv_stack_kernel(%arg0: i32, %arg1: memref<1x16x16x16xf32, #tpu.memory_space<vmem>>, %arg2: memref<3x3x16x32xf32, #tpu.memory_space<vmem>>, %arg3: memref<1x32xf32, #tpu.memory_space<vmem>>, %arg4: memref<3x3x32x32xf32, #tpu.memory_space<vmem>>, %arg5: memref<1x32xf32, #tpu.memory_space<vmem>>, %arg6: memref<3x3x16x64xf32, #tpu.memory_space<vmem>>, %arg7: memref<3x3x32x64xf32, #tpu.memory_space<vmem>>, %arg8: memref<1x64xf32, #tpu.memory_space<vmem>>, %arg9: memref<3x3x64x64xf32, #tpu.memory_space<vmem>>, %arg10: memref<1x64xf32, #tpu.memory_space<vmem>>, %arg11: memref<3x3x64x128xf32, #tpu.memory_space<vmem>>, %arg12: memref<3x3x32x128xf32, #tpu.memory_space<vmem>>, %arg13: memref<1x128xf32, #tpu.memory_space<vmem>>, %arg14: memref<3x3x128x128xf32, #tpu.memory_space<vmem>>, %arg15: memref<1x128xf32, #tpu.memory_space<vmem>>, %arg16: memref<1x1x16xf32, #tpu.memory_space<vmem>>, %arg17: memref<1x1x32xf32, #tpu.memory_space<vmem>>, %arg18: memref<1x1x64xf32, #tpu.memory_space<vmem>>, %arg19: memref<1x1x128xf32, #tpu.memory_space<vmem>>, %arg20: memref<18x32x16xf32, #tpu.memory_space<vmem>>, %arg21: memref<18x32x32xf32, #tpu.memory_space<vmem>>, %arg22: memref<10x24x16xf32, #tpu.memory_space<vmem>>, %arg23: memref<10x24x32xf32, #tpu.memory_space<vmem>>, %arg24: memref<10x24x64xf32, #tpu.memory_space<vmem>>, %arg25: memref<6x20x64xf32, #tpu.memory_space<vmem>>, %arg26: memref<6x20x32xf32, #tpu.memory_space<vmem>>, %arg27: memref<6x20x128xf32, #tpu.memory_space<vmem>>) attributes {dimension_semantics = [#tpu.dimension_semantics<parallel>], iteration_bounds = array<i64: 2>, scalar_prefetch = 0 : i64, scratch_operands = 8 : i64, tpu.core_type = #tpu.core_type<tc>, window_params = [{transform_indices = @transform_0, window_bounds = array<i64: 1, 16, 16, 16>}, {pipeline_mode = #tpu.pipeline_mode<synchronous>, transform_indices = @transform_1, window_bounds = array<i64: 3, 3, 16, 32>}, {pipeline_mode = #tpu.pipeline_mode<synchronous>, transform_indices = @transform_2, window_bounds = array<i64: 1, 32>}, {pipeline_mode = #tpu.pipeline_mode<synchronous>, transform_indices = @transform_3, window_bounds = array<i64: 3, 3, 32, 32>}, {pipeline_mode = #tpu.pipeline_mode<synchronous>, transform_indices = @transform_4, window_bounds = array<i64: 1, 32>}, {pipeline_mode = #tpu.pipeline_mode<synchronous>, transform_indices = @transform_5, window_bounds = array<i64: 3, 3, 16, 64>}, {pipeline_mode = #tpu.pipeline_mode<synchronous>, transform_indices = @transform_6, window_bounds = array<i64: 3, 3, 32, 64>}, {pipeline_mode = #tpu.pipeline_mode<synchronous>, transform_indices = @transform_7, window_bounds = array<i64: 1, 64>}, {pipeline_mode = #tpu.pipeline_mode<synchronous>, transform_indices = @transform_8, window_bounds = array<i64: 3, 3, 64, 64>}, {pipeline_mode = #tpu.pipeline_mode<synchronous>, transform_indices = @transform_9, window_bounds = array<i64: 1, 64>}, {pipeline_mode = #tpu.pipeline_mode<synchronous>, transform_indices = @transform_10, window_bounds = array<i64: 3, 3, 64, 128>}, {pipeline_mode = #tpu.pipeline_mode<synchronous>, transform_indices = @transform_11, window_bounds = array<i64: 3, 3, 32, 128>}, {pipeline_mode = #tpu.pipeline_mode<synchronous>, transform_indices = @transform_12, window_bounds = array<i64: 1, 128>}, {pipeline_mode = #tpu.pipeline_mode<synchronous>, transform_indices = @transform_13, window_bounds = array<i64: 3, 3, 128, 128>}, {pipeline_mode = #tpu.pipeline_mode<synchronous>, transform_indices = @transform_14, window_bounds = array<i64: 1, 128>}, {transform_indices = @transform_15, window_bounds = array<i64: 1, 1, 16>}, {transform_indices = @transform_16, window_bounds = array<i64: 1, 1, 32>}, {transform_indices = @transform_17, window_bounds = array<i64: 1, 1, 64>}, {transform_indices = @transform_18, window_bounds = array<i64: 1, 1, 128>}]} {
    %c0 = arith.constant 0 : index
    %c0_0 = arith.constant 0 : index
    %c0_1 = arith.constant 0 : index
    %c0_2 = arith.constant 0 : index
    %0 = vector.load %arg1[%c0, %c0_0, %c0_1, %c0_2] : memref<1x16x16x16xf32, #tpu.memory_space<vmem>>, vector<1x16x16x16xf32>
    %1 = vector.shape_cast %0 : vector<1x16x16x16xf32> to vector<16x16x16xf32>
    %2 = vector.shape_cast %1 : vector<16x16x16xf32> to vector<256x16xf32>
    %cst = arith.constant dense<0.000000e+00> : vector<16xf32>
    %3 = vector.multi_reduction <add>, %2, %cst [0] : vector<256x16xf32> to vector<16xf32>
    %c0_3 = arith.constant 0 : index
    %c0_4 = arith.constant 0 : index
    %c0_5 = arith.constant 0 : index
    %4 = vector.load %arg16[%c0_3, %c0_4, %c0_5] : memref<1x1x16xf32, #tpu.memory_space<vmem>>, vector<1x1x16xf32>
    %5 = vector.shape_cast %4 : vector<1x1x16xf32> to vector<16xf32>
    %6 = vector.shape_cast %3 : vector<16xf32> to vector<1x1x16xf32>
    tpu.vector_store %arg16[%c0_3, %c0_4, %c0_5], %6 {strides = array<i32>} : memref<1x1x16xf32, #tpu.memory_space<vmem>>, vector<1x1x16xf32>,
    %cst_6 = arith.constant 0.000000e+00 : f32
    %7 = vector.broadcast %cst_6 : f32 to vector<18x32x16xf32>
    %c0_7 = arith.constant 0 : index
    %c0_8 = arith.constant 0 : index
    %c0_9 = arith.constant 0 : index
    %8 = vector.load %arg20[%c0_7, %c0_8, %c0_9] : memref<18x32x16xf32, #tpu.memory_space<vmem>>, vector<18x32x16xf32>
    tpu.vector_store %arg20[%c0_7, %c0_8, %c0_9], %7 {strides = array<i32>} : memref<18x32x16xf32, #tpu.memory_space<vmem>>, vector<18x32x16xf32>,
    %c1 = arith.constant 1 : index
    %c8 = arith.constant 8 : index
    %c0_10 = arith.constant 0 : index
    %9 = vector.load %arg20[%c1, %c8, %c0_10] : memref<18x32x16xf32, #tpu.memory_space<vmem>>, vector<16x16x16xf32>
    tpu.vector_store %arg20[%c1, %c8, %c0_10], %1 {strides = array<i32>} : memref<18x32x16xf32, #tpu.memory_space<vmem>>, vector<16x16x16xf32>,
    %cst_11 = arith.constant 0.000000e+00 : f32
    %10 = vector.broadcast %cst_11 : f32 to vector<256x32xf32>
    %c0_12 = arith.constant 0 : index
    %c7 = arith.constant 7 : index
    %c0_13 = arith.constant 0 : index
    %11 = vector.load %arg20[%c0_12, %c7, %c0_13] : memref<18x32x16xf32, #tpu.memory_space<vmem>>, vector<16x16x16xf32>
    %12 = vector.shape_cast %11 : vector<16x16x16xf32> to vector<256x16xf32>
    %c0_14 = arith.constant 0 : index
    %c0_15 = arith.constant 0 : index
    %c0_16 = arith.constant 0 : index
    %c0_17 = arith.constant 0 : index
    %13 = vector.load %arg2[%c0_14, %c0_15, %c0_16, %c0_17] : memref<3x3x16x32xf32, #tpu.memory_space<vmem>>, vector<1x1x16x32xf32>
    %14 = vector.shape_cast %13 : vector<1x1x16x32xf32> to vector<16x32xf32>
    %cst_18 = arith.constant dense<0.000000e+00> : vector<256x32xf32>
    %15 = tpu.matmul %12, %14, %cst_18 {dimension_numbers = #tpu.dot_dimension_numbers<[1], [0], [0], [1], [0, 0, 1, 1], [], []>} : vector<256x16xf32>, vector<16x32xf32>, vector<256x32xf32> -> vector<256x32xf32>
    %16 = arith.addf %10, %15 : vector<256x32xf32>
    %c0_19 = arith.constant 0 : index
    %c8_20 = arith.constant 8 : index
    %c0_21 = arith.constant 0 : index
    %17 = vector.load %arg20[%c0_19, %c8_20, %c0_21] : memref<18x32x16xf32, #tpu.memory_space<vmem>>, vector<16x16x16xf32>
    %18 = vector.shape_cast %17 : vector<16x16x16xf32> to vector<256x16xf32>
    %c0_22 = arith.constant 0 : index
    %c1_23 = arith.constant 1 : index
    %c0_24 = arith.constant 0 : index
    %c0_25 = arith.constant 0 : index
    %19 = vector.load %arg2[%c0_22, %c1_23, %c0_24, %c0_25] : memref<3x3x16x32xf32, #tpu.memory_space<vmem>>, vector<1x1x16x32xf32>
    %20 = vector.shape_cast %19 : vector<1x1x16x32xf32> to vector<16x32xf32>
    %cst_26 = arith.constant dense<0.000000e+00> : vector<256x32xf32>
    %21 = tpu.matmul %18, %20, %cst_26 {dimension_numbers = #tpu.dot_dimension_numbers<[1], [0], [0], [1], [0, 0, 1, 1], [], []>} : vector<256x16xf32>, vector<16x32xf32>, vector<256x32xf32> -> vector<256x32xf32>
    %22 = arith.addf %16, %21 : vector<256x32xf32>
    %c0_27 = arith.constant 0 : index
    %c9 = arith.constant 9 : index
    %c0_28 = arith.constant 0 : index
    %23 = vector.load %arg20[%c0_27, %c9, %c0_28] : memref<18x32x16xf32, #tpu.memory_space<vmem>>, vector<16x16x16xf32>
    %24 = vector.shape_cast %23 : vector<16x16x16xf32> to vector<256x16xf32>
    %c0_29 = arith.constant 0 : index
    %c2 = arith.constant 2 : index
    %c0_30 = arith.constant 0 : index
    %c0_31 = arith.constant 0 : index
    %25 = vector.load %arg2[%c0_29, %c2, %c0_30, %c0_31] : memref<3x3x16x32xf32, #tpu.memory_space<vmem>>, vector<1x1x16x32xf32>
    %26 = vector.shape_cast %25 : vector<1x1x16x32xf32> to vector<16x32xf32>
    %cst_32 = arith.constant dense<0.000000e+00> : vector<256x32xf32>
    %27 = tpu.matmul %24, %26, %cst_32 {dimension_numbers = #tpu.dot_dimension_numbers<[1], [0], [0], [1], [0, 0, 1, 1], [], []>} : vector<256x16xf32>, vector<16x32xf32>, vector<256x32xf32> -> vector<256x32xf32>
    %28 = arith.addf %22, %27 : vector<256x32xf32>
    %c1_33 = arith.constant 1 : index
    %c7_34 = arith.constant 7 : index
    %c0_35 = arith.constant 0 : index
    %29 = vector.load %arg20[%c1_33, %c7_34, %c0_35] : memref<18x32x16xf32, #tpu.memory_space<vmem>>, vector<16x16x16xf32>
    %30 = vector.shape_cast %29 : vector<16x16x16xf32> to vector<256x16xf32>
    %c1_36 = arith.constant 1 : index
    %c0_37 = arith.constant 0 : index
    %c0_38 = arith.constant 0 : index
    %c0_39 = arith.constant 0 : index
    %31 = vector.load %arg2[%c1_36, %c0_37, %c0_38, %c0_39] : memref<3x3x16x32xf32, #tpu.memory_space<vmem>>, vector<1x1x16x32xf32>
    %32 = vector.shape_cast %31 : vector<1x1x16x32xf32> to vector<16x32xf32>
    %cst_40 = arith.constant dense<0.000000e+00> : vector<256x32xf32>
    %33 = tpu.matmul %30, %32, %cst_40 {dimension_numbers = #tpu.dot_dimension_numbers<[1], [0], [0], [1], [0, 0, 1, 1], [], []>} : vector<256x16xf32>, vector<16x32xf32>, vector<256x32xf32> -> vector<256x32xf32>
    %34 = arith.addf %28, %33 : vector<256x32xf32>
    %c1_41 = arith.constant 1 : index
    %c8_42 = arith.constant 8 : index
    %c0_43 = arith.constant 0 : index
    %35 = vector.load %arg20[%c1_41, %c8_42, %c0_43] : memref<18x32x16xf32, #tpu.memory_space<vmem>>, vector<16x16x16xf32>
    %36 = vector.shape_cast %35 : vector<16x16x16xf32> to vector<256x16xf32>
    %c1_44 = arith.constant 1 : index
    %c1_45 = arith.constant 1 : index
    %c0_46 = arith.constant 0 : index
    %c0_47 = arith.constant 0 : index
    %37 = vector.load %arg2[%c1_44, %c1_45, %c0_46, %c0_47] : memref<3x3x16x32xf32, #tpu.memory_space<vmem>>, vector<1x1x16x32xf32>
    %38 = vector.shape_cast %37 : vector<1x1x16x32xf32> to vector<16x32xf32>
    %cst_48 = arith.constant dense<0.000000e+00> : vector<256x32xf32>
    %39 = tpu.matmul %36, %38, %cst_48 {dimension_numbers = #tpu.dot_dimension_numbers<[1], [0], [0], [1], [0, 0, 1, 1], [], []>} : vector<256x16xf32>, vector<16x32xf32>, vector<256x32xf32> -> vector<256x32xf32>
    %40 = arith.addf %34, %39 : vector<256x32xf32>
    %c1_49 = arith.constant 1 : index
    %c9_50 = arith.constant 9 : index
    %c0_51 = arith.constant 0 : index
    %41 = vector.load %arg20[%c1_49, %c9_50, %c0_51] : memref<18x32x16xf32, #tpu.memory_space<vmem>>, vector<16x16x16xf32>
    %42 = vector.shape_cast %41 : vector<16x16x16xf32> to vector<256x16xf32>
    %c1_52 = arith.constant 1 : index
    %c2_53 = arith.constant 2 : index
    %c0_54 = arith.constant 0 : index
    %c0_55 = arith.constant 0 : index
    %43 = vector.load %arg2[%c1_52, %c2_53, %c0_54, %c0_55] : memref<3x3x16x32xf32, #tpu.memory_space<vmem>>, vector<1x1x16x32xf32>
    %44 = vector.shape_cast %43 : vector<1x1x16x32xf32> to vector<16x32xf32>
    %cst_56 = arith.constant dense<0.000000e+00> : vector<256x32xf32>
    %45 = tpu.matmul %42, %44, %cst_56 {dimension_numbers = #tpu.dot_dimension_numbers<[1], [0], [0], [1], [0, 0, 1, 1], [], []>} : vector<256x16xf32>, vector<16x32xf32>, vector<256x32xf32> -> vector<256x32xf32>
    %46 = arith.addf %40, %45 : vector<256x32xf32>
    %c2_57 = arith.constant 2 : index
    %c7_58 = arith.constant 7 : index
    %c0_59 = arith.constant 0 : index
    %47 = vector.load %arg20[%c2_57, %c7_58, %c0_59] : memref<18x32x16xf32, #tpu.memory_space<vmem>>, vector<16x16x16xf32>
    %48 = vector.shape_cast %47 : vector<16x16x16xf32> to vector<256x16xf32>
    %c2_60 = arith.constant 2 : index
    %c0_61 = arith.constant 0 : index
    %c0_62 = arith.constant 0 : index
    %c0_63 = arith.constant 0 : index
    %49 = vector.load %arg2[%c2_60, %c0_61, %c0_62, %c0_63] : memref<3x3x16x32xf32, #tpu.memory_space<vmem>>, vector<1x1x16x32xf32>
    %50 = vector.shape_cast %49 : vector<1x1x16x32xf32> to vector<16x32xf32>
    %cst_64 = arith.constant dense<0.000000e+00> : vector<256x32xf32>
    %51 = tpu.matmul %48, %50, %cst_64 {dimension_numbers = #tpu.dot_dimension_numbers<[1], [0], [0], [1], [0, 0, 1, 1], [], []>} : vector<256x16xf32>, vector<16x32xf32>, vector<256x32xf32> -> vector<256x32xf32>
    %52 = arith.addf %46, %51 : vector<256x32xf32>
    %c2_65 = arith.constant 2 : index
    %c8_66 = arith.constant 8 : index
    %c0_67 = arith.constant 0 : index
    %53 = vector.load %arg20[%c2_65, %c8_66, %c0_67] : memref<18x32x16xf32, #tpu.memory_space<vmem>>, vector<16x16x16xf32>
    %54 = vector.shape_cast %53 : vector<16x16x16xf32> to vector<256x16xf32>
    %c2_68 = arith.constant 2 : index
    %c1_69 = arith.constant 1 : index
    %c0_70 = arith.constant 0 : index
    %c0_71 = arith.constant 0 : index
    %55 = vector.load %arg2[%c2_68, %c1_69, %c0_70, %c0_71] : memref<3x3x16x32xf32, #tpu.memory_space<vmem>>, vector<1x1x16x32xf32>
    %56 = vector.shape_cast %55 : vector<1x1x16x32xf32> to vector<16x32xf32>
    %cst_72 = arith.constant dense<0.000000e+00> : vector<256x32xf32>
    %57 = tpu.matmul %54, %56, %cst_72 {dimension_numbers = #tpu.dot_dimension_numbers<[1], [0], [0], [1], [0, 0, 1, 1], [], []>} : vector<256x16xf32>, vector<16x32xf32>, vector<256x32xf32> -> vector<256x32xf32>
    %58 = arith.addf %52, %57 : vector<256x32xf32>
    %c2_73 = arith.constant 2 : index
    %c9_74 = arith.constant 9 : index
    %c0_75 = arith.constant 0 : index
    %59 = vector.load %arg20[%c2_73, %c9_74, %c0_75] : memref<18x32x16xf32, #tpu.memory_space<vmem>>, vector<16x16x16xf32>
    %60 = vector.shape_cast %59 : vector<16x16x16xf32> to vector<256x16xf32>
    %c2_76 = arith.constant 2 : index
    %c2_77 = arith.constant 2 : index
    %c0_78 = arith.constant 0 : index
    %c0_79 = arith.constant 0 : index
    %61 = vector.load %arg2[%c2_76, %c2_77, %c0_78, %c0_79] : memref<3x3x16x32xf32, #tpu.memory_space<vmem>>, vector<1x1x16x32xf32>
    %62 = vector.shape_cast %61 : vector<1x1x16x32xf32> to vector<16x32xf32>
    %cst_80 = arith.constant dense<0.000000e+00> : vector<256x32xf32>
    %63 = tpu.matmul %60, %62, %cst_80 {dimension_numbers = #tpu.dot_dimension_numbers<[1], [0], [0], [1], [0, 0, 1, 1], [], []>} : vector<256x16xf32>, vector<16x32xf32>, vector<256x32xf32> -> vector<256x32xf32>
    %64 = arith.addf %58, %63 : vector<256x32xf32>
    %c0_81 = arith.constant 0 : index
    %c0_82 = arith.constant 0 : index
    %65 = vector.load %arg3[%c0_81, %c0_82] : memref<1x32xf32, #tpu.memory_space<vmem>>, vector<1x32xf32>
    %66 = vector.broadcast %65 : vector<1x32xf32> to vector<256x32xf32>
    %67 = arith.addf %64, %66 : vector<256x32xf32>
    %68 = vector.shape_cast %67 : vector<256x32xf32> to vector<16x16x32xf32>
    %cst_83 = arith.constant 0.000000e+00 : f32
    %69 = vector.broadcast %cst_83 : f32 to vector<18x32x32xf32>
    %c0_84 = arith.constant 0 : index
    %c0_85 = arith.constant 0 : index
    %c0_86 = arith.constant 0 : index
    %70 = vector.load %arg21[%c0_84, %c0_85, %c0_86] : memref<18x32x32xf32, #tpu.memory_space<vmem>>, vector<18x32x32xf32>
    tpu.vector_store %arg21[%c0_84, %c0_85, %c0_86], %69 {strides = array<i32>} : memref<18x32x32xf32, #tpu.memory_space<vmem>>, vector<18x32x32xf32>,
    %c1_87 = arith.constant 1 : index
    %c8_88 = arith.constant 8 : index
    %c0_89 = arith.constant 0 : index
    %71 = vector.load %arg21[%c1_87, %c8_88, %c0_89] : memref<18x32x32xf32, #tpu.memory_space<vmem>>, vector<16x16x32xf32>
    tpu.vector_store %arg21[%c1_87, %c8_88, %c0_89], %68 {strides = array<i32>} : memref<18x32x32xf32, #tpu.memory_space<vmem>>, vector<16x16x32xf32>,
    %cst_90 = arith.constant 0.000000e+00 : f32
    %72 = vector.broadcast %cst_90 : f32 to vector<256x32xf32>
    %c0_91 = arith.constant 0 : index
    %c7_92 = arith.constant 7 : index
    %c0_93 = arith.constant 0 : index
    %73 = vector.load %arg21[%c0_91, %c7_92, %c0_93] : memref<18x32x32xf32, #tpu.memory_space<vmem>>, vector<16x16x32xf32>
    %74 = vector.shape_cast %73 : vector<16x16x32xf32> to vector<256x32xf32>
    %c0_94 = arith.constant 0 : index
    %c0_95 = arith.constant 0 : index
    %c0_96 = arith.constant 0 : index
    %c0_97 = arith.constant 0 : index
    %75 = vector.load %arg4[%c0_94, %c0_95, %c0_96, %c0_97] : memref<3x3x32x32xf32, #tpu.memory_space<vmem>>, vector<1x1x32x32xf32>
    %76 = vector.shape_cast %75 : vector<1x1x32x32xf32> to vector<32x32xf32>
    %cst_98 = arith.constant dense<0.000000e+00> : vector<256x32xf32>
    %77 = tpu.matmul %74, %76, %cst_98 {dimension_numbers = #tpu.dot_dimension_numbers<[1], [0], [0], [1], [0, 0, 1, 1], [], []>} : vector<256x32xf32>, vector<32x32xf32>, vector<256x32xf32> -> vector<256x32xf32>
    %78 = arith.addf %72, %77 : vector<256x32xf32>
    %c0_99 = arith.constant 0 : index
    %c8_100 = arith.constant 8 : index
    %c0_101 = arith.constant 0 : index
    %79 = vector.load %arg21[%c0_99, %c8_100, %c0_101] : memref<18x32x32xf32, #tpu.memory_space<vmem>>, vector<16x16x32xf32>
    %80 = vector.shape_cast %79 : vector<16x16x32xf32> to vector<256x32xf32>
    %c0_102 = arith.constant 0 : index
    %c1_103 = arith.constant 1 : index
    %c0_104 = arith.constant 0 : index
    %c0_105 = arith.constant 0 : index
    %81 = vector.load %arg4[%c0_102, %c1_103, %c0_104, %c0_105] : memref<3x3x32x32xf32, #tpu.memory_space<vmem>>, vector<1x1x32x32xf32>
    %82 = vector.shape_cast %81 : vector<1x1x32x32xf32> to vector<32x32xf32>
    %cst_106 = arith.constant dense<0.000000e+00> : vector<256x32xf32>
    %83 = tpu.matmul %80, %82, %cst_106 {dimension_numbers = #tpu.dot_dimension_numbers<[1], [0], [0], [1], [0, 0, 1, 1], [], []>} : vector<256x32xf32>, vector<32x32xf32>, vector<256x32xf32> -> vector<256x32xf32>
    %84 = arith.addf %78, %83 : vector<256x32xf32>
    %c0_107 = arith.constant 0 : index
    %c9_108 = arith.constant 9 : index
    %c0_109 = arith.constant 0 : index
    %85 = vector.load %arg21[%c0_107, %c9_108, %c0_109] : memref<18x32x32xf32, #tpu.memory_space<vmem>>, vector<16x16x32xf32>
    %86 = vector.shape_cast %85 : vector<16x16x32xf32> to vector<256x32xf32>
    %c0_110 = arith.constant 0 : index
    %c2_111 = arith.constant 2 : index
    %c0_112 = arith.constant 0 : index
    %c0_113 = arith.constant 0 : index
    %87 = vector.load %arg4[%c0_110, %c2_111, %c0_112, %c0_113] : memref<3x3x32x32xf32, #tpu.memory_space<vmem>>, vector<1x1x32x32xf32>
    %88 = vector.shape_cast %87 : vector<1x1x32x32xf32> to vector<32x32xf32>
    %cst_114 = arith.constant dense<0.000000e+00> : vector<256x32xf32>
    %89 = tpu.matmul %86, %88, %cst_114 {dimension_numbers = #tpu.dot_dimension_numbers<[1], [0], [0], [1], [0, 0, 1, 1], [], []>} : vector<256x32xf32>, vector<32x32xf32>, vector<256x32xf32> -> vector<256x32xf32>
    %90 = arith.addf %84, %89 : vector<256x32xf32>
    %c1_115 = arith.constant 1 : index
    %c7_116 = arith.constant 7 : index
    %c0_117 = arith.constant 0 : index
    %91 = vector.load %arg21[%c1_115, %c7_116, %c0_117] : memref<18x32x32xf32, #tpu.memory_space<vmem>>, vector<16x16x32xf32>
    %92 = vector.shape_cast %91 : vector<16x16x32xf32> to vector<256x32xf32>
    %c1_118 = arith.constant 1 : index
    %c0_119 = arith.constant 0 : index
    %c0_120 = arith.constant 0 : index
    %c0_121 = arith.constant 0 : index
    %93 = vector.load %arg4[%c1_118, %c0_119, %c0_120, %c0_121] : memref<3x3x32x32xf32, #tpu.memory_space<vmem>>, vector<1x1x32x32xf32>
    %94 = vector.shape_cast %93 : vector<1x1x32x32xf32> to vector<32x32xf32>
    %cst_122 = arith.constant dense<0.000000e+00> : vector<256x32xf32>
    %95 = tpu.matmul %92, %94, %cst_122 {dimension_numbers = #tpu.dot_dimension_numbers<[1], [0], [0], [1], [0, 0, 1, 1], [], []>} : vector<256x32xf32>, vector<32x32xf32>, vector<256x32xf32> -> vector<256x32xf32>
    %96 = arith.addf %90, %95 : vector<256x32xf32>
    %c1_123 = arith.constant 1 : index
    %c8_124 = arith.constant 8 : index
    %c0_125 = arith.constant 0 : index
    %97 = vector.load %arg21[%c1_123, %c8_124, %c0_125] : memref<18x32x32xf32, #tpu.memory_space<vmem>>, vector<16x16x32xf32>
    %98 = vector.shape_cast %97 : vector<16x16x32xf32> to vector<256x32xf32>
    %c1_126 = arith.constant 1 : index
    %c1_127 = arith.constant 1 : index
    %c0_128 = arith.constant 0 : index
    %c0_129 = arith.constant 0 : index
    %99 = vector.load %arg4[%c1_126, %c1_127, %c0_128, %c0_129] : memref<3x3x32x32xf32, #tpu.memory_space<vmem>>, vector<1x1x32x32xf32>
    %100 = vector.shape_cast %99 : vector<1x1x32x32xf32> to vector<32x32xf32>
    %cst_130 = arith.constant dense<0.000000e+00> : vector<256x32xf32>
    %101 = tpu.matmul %98, %100, %cst_130 {dimension_numbers = #tpu.dot_dimension_numbers<[1], [0], [0], [1], [0, 0, 1, 1], [], []>} : vector<256x32xf32>, vector<32x32xf32>, vector<256x32xf32> -> vector<256x32xf32>
    %102 = arith.addf %96, %101 : vector<256x32xf32>
    %c1_131 = arith.constant 1 : index
    %c9_132 = arith.constant 9 : index
    %c0_133 = arith.constant 0 : index
    %103 = vector.load %arg21[%c1_131, %c9_132, %c0_133] : memref<18x32x32xf32, #tpu.memory_space<vmem>>, vector<16x16x32xf32>
    %104 = vector.shape_cast %103 : vector<16x16x32xf32> to vector<256x32xf32>
    %c1_134 = arith.constant 1 : index
    %c2_135 = arith.constant 2 : index
    %c0_136 = arith.constant 0 : index
    %c0_137 = arith.constant 0 : index
    %105 = vector.load %arg4[%c1_134, %c2_135, %c0_136, %c0_137] : memref<3x3x32x32xf32, #tpu.memory_space<vmem>>, vector<1x1x32x32xf32>
    %106 = vector.shape_cast %105 : vector<1x1x32x32xf32> to vector<32x32xf32>
    %cst_138 = arith.constant dense<0.000000e+00> : vector<256x32xf32>
    %107 = tpu.matmul %104, %106, %cst_138 {dimension_numbers = #tpu.dot_dimension_numbers<[1], [0], [0], [1], [0, 0, 1, 1], [], []>} : vector<256x32xf32>, vector<32x32xf32>, vector<256x32xf32> -> vector<256x32xf32>
    %108 = arith.addf %102, %107 : vector<256x32xf32>
    %c2_139 = arith.constant 2 : index
    %c7_140 = arith.constant 7 : index
    %c0_141 = arith.constant 0 : index
    %109 = vector.load %arg21[%c2_139, %c7_140, %c0_141] : memref<18x32x32xf32, #tpu.memory_space<vmem>>, vector<16x16x32xf32>
    %110 = vector.shape_cast %109 : vector<16x16x32xf32> to vector<256x32xf32>
    %c2_142 = arith.constant 2 : index
    %c0_143 = arith.constant 0 : index
    %c0_144 = arith.constant 0 : index
    %c0_145 = arith.constant 0 : index
    %111 = vector.load %arg4[%c2_142, %c0_143, %c0_144, %c0_145] : memref<3x3x32x32xf32, #tpu.memory_space<vmem>>, vector<1x1x32x32xf32>
    %112 = vector.shape_cast %111 : vector<1x1x32x32xf32> to vector<32x32xf32>
    %cst_146 = arith.constant dense<0.000000e+00> : vector<256x32xf32>
    %113 = tpu.matmul %110, %112, %cst_146 {dimension_numbers = #tpu.dot_dimension_numbers<[1], [0], [0], [1], [0, 0, 1, 1], [], []>} : vector<256x32xf32>, vector<32x32xf32>, vector<256x32xf32> -> vector<256x32xf32>
    %114 = arith.addf %108, %113 : vector<256x32xf32>
    %c2_147 = arith.constant 2 : index
    %c8_148 = arith.constant 8 : index
    %c0_149 = arith.constant 0 : index
    %115 = vector.load %arg21[%c2_147, %c8_148, %c0_149] : memref<18x32x32xf32, #tpu.memory_space<vmem>>, vector<16x16x32xf32>
    %116 = vector.shape_cast %115 : vector<16x16x32xf32> to vector<256x32xf32>
    %c2_150 = arith.constant 2 : index
    %c1_151 = arith.constant 1 : index
    %c0_152 = arith.constant 0 : index
    %c0_153 = arith.constant 0 : index
    %117 = vector.load %arg4[%c2_150, %c1_151, %c0_152, %c0_153] : memref<3x3x32x32xf32, #tpu.memory_space<vmem>>, vector<1x1x32x32xf32>
    %118 = vector.shape_cast %117 : vector<1x1x32x32xf32> to vector<32x32xf32>
    %cst_154 = arith.constant dense<0.000000e+00> : vector<256x32xf32>
    %119 = tpu.matmul %116, %118, %cst_154 {dimension_numbers = #tpu.dot_dimension_numbers<[1], [0], [0], [1], [0, 0, 1, 1], [], []>} : vector<256x32xf32>, vector<32x32xf32>, vector<256x32xf32> -> vector<256x32xf32>
    %120 = arith.addf %114, %119 : vector<256x32xf32>
    %c2_155 = arith.constant 2 : index
    %c9_156 = arith.constant 9 : index
    %c0_157 = arith.constant 0 : index
    %121 = vector.load %arg21[%c2_155, %c9_156, %c0_157] : memref<18x32x32xf32, #tpu.memory_space<vmem>>, vector<16x16x32xf32>
    %122 = vector.shape_cast %121 : vector<16x16x32xf32> to vector<256x32xf32>
    %c2_158 = arith.constant 2 : index
    %c2_159 = arith.constant 2 : index
    %c0_160 = arith.constant 0 : index
    %c0_161 = arith.constant 0 : index
    %123 = vector.load %arg4[%c2_158, %c2_159, %c0_160, %c0_161] : memref<3x3x32x32xf32, #tpu.memory_space<vmem>>, vector<1x1x32x32xf32>
    %124 = vector.shape_cast %123 : vector<1x1x32x32xf32> to vector<32x32xf32>
    %cst_162 = arith.constant dense<0.000000e+00> : vector<256x32xf32>
    %125 = tpu.matmul %122, %124, %cst_162 {dimension_numbers = #tpu.dot_dimension_numbers<[1], [0], [0], [1], [0, 0, 1, 1], [], []>} : vector<256x32xf32>, vector<32x32xf32>, vector<256x32xf32> -> vector<256x32xf32>
    %126 = arith.addf %120, %125 : vector<256x32xf32>
    %c0_163 = arith.constant 0 : index
    %c0_164 = arith.constant 0 : index
    %127 = vector.load %arg5[%c0_163, %c0_164] : memref<1x32xf32, #tpu.memory_space<vmem>>, vector<1x32xf32>
    %128 = vector.broadcast %127 : vector<1x32xf32> to vector<256x32xf32>
    %129 = arith.addf %126, %128 : vector<256x32xf32>
    %cst_165 = arith.constant 0.000000e+00 : f32
    %130 = vector.broadcast %cst_165 : f32 to vector<256x32xf32>
    %131 = arith.maximumf %129, %130 : vector<256x32xf32>
    %132 = vector.shape_cast %131 : vector<256x32xf32> to vector<16x16x32xf32>
    %133 = vector.shape_cast %132 : vector<16x16x32xf32> to vector<256x32xf32>
    %cst_166 = arith.constant dense<0.000000e+00> : vector<32xf32>
    %134 = vector.multi_reduction <add>, %133, %cst_166 [0] : vector<256x32xf32> to vector<32xf32>
    %c0_167 = arith.constant 0 : index
    %c0_168 = arith.constant 0 : index
    %c0_169 = arith.constant 0 : index
    %135 = vector.load %arg17[%c0_167, %c0_168, %c0_169] : memref<1x1x32xf32, #tpu.memory_space<vmem>>, vector<1x1x32xf32>
    %136 = vector.shape_cast %135 : vector<1x1x32xf32> to vector<32xf32>
    %137 = vector.shape_cast %134 : vector<32xf32> to vector<1x1x32xf32>
    tpu.vector_store %arg17[%c0_167, %c0_168, %c0_169], %137 {strides = array<i32>} : memref<1x1x32xf32, #tpu.memory_space<vmem>>, vector<1x1x32xf32>,
    %138 = vector.shape_cast %1 : vector<16x16x16xf32> to vector<8x2x16x16xf32>
    %cst_170 = arith.constant dense<0xFF800000> : vector<8x16x16xf32>
    %139 = vector.multi_reduction <maximumf>, %138, %cst_170 [1] : vector<8x2x16x16xf32> to vector<8x16x16xf32>
    %cst_171 = arith.constant 0.000000e+00 : f32
    %140 = vector.broadcast %cst_171 : f32 to vector<10x24x16xf32>
    %c0_172 = arith.constant 0 : index
    %c0_173 = arith.constant 0 : index
    %c0_174 = arith.constant 0 : index
    %141 = vector.load %arg22[%c0_172, %c0_173, %c0_174] : memref<10x24x16xf32, #tpu.memory_space<vmem>>, vector<10x24x16xf32>
    tpu.vector_store %arg22[%c0_172, %c0_173, %c0_174], %140 {strides = array<i32>} : memref<10x24x16xf32, #tpu.memory_space<vmem>>, vector<10x24x16xf32>,
    %142 = vector.extract_strided_slice %139 {offsets = [0, 0, 0], sizes = [8, 1, 16], strides = [1, 1, 1]} : vector<8x16x16xf32> to vector<8x1x16xf32>
    %143 = vector.shape_cast %142 : vector<8x1x16xf32> to vector<8x16xf32>
    %144 = vector.extract_strided_slice %139 {offsets = [0, 1, 0], sizes = [8, 1, 16], strides = [1, 1, 1]} : vector<8x16x16xf32> to vector<8x1x16xf32>
    %145 = vector.shape_cast %144 : vector<8x1x16xf32> to vector<8x16xf32>
    %146 = arith.maximumf %143, %145 : vector<8x16xf32>
    %c1_175 = arith.constant 1 : index
    %c8_176 = arith.constant 8 : index
    %c0_177 = arith.constant 0 : index
    %147 = vector.load %arg22[%c1_175, %c8_176, %c0_177] : memref<10x24x16xf32, #tpu.memory_space<vmem>>, vector<8x1x16xf32>
    %148 = vector.shape_cast %147 : vector<8x1x16xf32> to vector<8x16xf32>
    %149 = vector.shape_cast %146 : vector<8x16xf32> to vector<8x1x16xf32>
    tpu.vector_store %arg22[%c1_175, %c8_176, %c0_177], %149 {strides = array<i32>} : memref<10x24x16xf32, #tpu.memory_space<vmem>>, vector<8x1x16xf32>,
    %150 = vector.extract_strided_slice %139 {offsets = [0, 2, 0], sizes = [8, 1, 16], strides = [1, 1, 1]} : vector<8x16x16xf32> to vector<8x1x16xf32>
    %151 = vector.shape_cast %150 : vector<8x1x16xf32> to vector<8x16xf32>
    %152 = vector.extract_strided_slice %139 {offsets = [0, 3, 0], sizes = [8, 1, 16], strides = [1, 1, 1]} : vector<8x16x16xf32> to vector<8x1x16xf32>
    %153 = vector.shape_cast %152 : vector<8x1x16xf32> to vector<8x16xf32>
    %154 = arith.maximumf %151, %153 : vector<8x16xf32>
    %c1_178 = arith.constant 1 : index
    %c9_179 = arith.constant 9 : index
    %c0_180 = arith.constant 0 : index
    %155 = vector.load %arg22[%c1_178, %c9_179, %c0_180] : memref<10x24x16xf32, #tpu.memory_space<vmem>>, vector<8x1x16xf32>
    %156 = vector.shape_cast %155 : vector<8x1x16xf32> to vector<8x16xf32>
    %157 = vector.shape_cast %154 : vector<8x16xf32> to vector<8x1x16xf32>
    tpu.vector_store %arg22[%c1_178, %c9_179, %c0_180], %157 {strides = array<i32>} : memref<10x24x16xf32, #tpu.memory_space<vmem>>, vector<8x1x16xf32>,
    %158 = vector.extract_strided_slice %139 {offsets = [0, 4, 0], sizes = [8, 1, 16], strides = [1, 1, 1]} : vector<8x16x16xf32> to vector<8x1x16xf32>
    %159 = vector.shape_cast %158 : vector<8x1x16xf32> to vector<8x16xf32>
    %160 = vector.extract_strided_slice %139 {offsets = [0, 5, 0], sizes = [8, 1, 16], strides = [1, 1, 1]} : vector<8x16x16xf32> to vector<8x1x16xf32>
    %161 = vector.shape_cast %160 : vector<8x1x16xf32> to vector<8x16xf32>
    %162 = arith.maximumf %159, %161 : vector<8x16xf32>
    %c1_181 = arith.constant 1 : index
    %c10 = arith.constant 10 : index
    %c0_182 = arith.constant 0 : index
    %163 = vector.load %arg22[%c1_181, %c10, %c0_182] : memref<10x24x16xf32, #tpu.memory_space<vmem>>, vector<8x1x16xf32>
    %164 = vector.shape_cast %163 : vector<8x1x16xf32> to vector<8x16xf32>
    %165 = vector.shape_cast %162 : vector<8x16xf32> to vector<8x1x16xf32>
    tpu.vector_store %arg22[%c1_181, %c10, %c0_182], %165 {strides = array<i32>} : memref<10x24x16xf32, #tpu.memory_space<vmem>>, vector<8x1x16xf32>,
    %166 = vector.extract_strided_slice %139 {offsets = [0, 6, 0], sizes = [8, 1, 16], strides = [1, 1, 1]} : vector<8x16x16xf32> to vector<8x1x16xf32>
    %167 = vector.shape_cast %166 : vector<8x1x16xf32> to vector<8x16xf32>
    %168 = vector.extract_strided_slice %139 {offsets = [0, 7, 0], sizes = [8, 1, 16], strides = [1, 1, 1]} : vector<8x16x16xf32> to vector<8x1x16xf32>
    %169 = vector.shape_cast %168 : vector<8x1x16xf32> to vector<8x16xf32>
    %170 = arith.maximumf %167, %169 : vector<8x16xf32>
    %c1_183 = arith.constant 1 : index
    %c11 = arith.constant 11 : index
    %c0_184 = arith.constant 0 : index
    %171 = vector.load %arg22[%c1_183, %c11, %c0_184] : memref<10x24x16xf32, #tpu.memory_space<vmem>>, vector<8x1x16xf32>
    %172 = vector.shape_cast %171 : vector<8x1x16xf32> to vector<8x16xf32>
    %173 = vector.shape_cast %170 : vector<8x16xf32> to vector<8x1x16xf32>
    tpu.vector_store %arg22[%c1_183, %c11, %c0_184], %173 {strides = array<i32>} : memref<10x24x16xf32, #tpu.memory_space<vmem>>, vector<8x1x16xf32>,
    %174 = vector.extract_strided_slice %139 {offsets = [0, 8, 0], sizes = [8, 1, 16], strides = [1, 1, 1]} : vector<8x16x16xf32> to vector<8x1x16xf32>
    %175 = vector.shape_cast %174 : vector<8x1x16xf32> to vector<8x16xf32>
    %176 = vector.extract_strided_slice %139 {offsets = [0, 9, 0], sizes = [8, 1, 16], strides = [1, 1, 1]} : vector<8x16x16xf32> to vector<8x1x16xf32>
    %177 = vector.shape_cast %176 : vector<8x1x16xf32> to vector<8x16xf32>
    %178 = arith.maximumf %175, %177 : vector<8x16xf32>
    %c1_185 = arith.constant 1 : index
    %c12 = arith.constant 12 : index
    %c0_186 = arith.constant 0 : index
    %179 = vector.load %arg22[%c1_185, %c12, %c0_186] : memref<10x24x16xf32, #tpu.memory_space<vmem>>, vector<8x1x16xf32>
    %180 = vector.shape_cast %179 : vector<8x1x16xf32> to vector<8x16xf32>
    %181 = vector.shape_cast %178 : vector<8x16xf32> to vector<8x1x16xf32>
    tpu.vector_store %arg22[%c1_185, %c12, %c0_186], %181 {strides = array<i32>} : memref<10x24x16xf32, #tpu.memory_space<vmem>>, vector<8x1x16xf32>,
    %182 = vector.extract_strided_slice %139 {offsets = [0, 10, 0], sizes = [8, 1, 16], strides = [1, 1, 1]} : vector<8x16x16xf32> to vector<8x1x16xf32>
    %183 = vector.shape_cast %182 : vector<8x1x16xf32> to vector<8x16xf32>
    %184 = vector.extract_strided_slice %139 {offsets = [0, 11, 0], sizes = [8, 1, 16], strides = [1, 1, 1]} : vector<8x16x16xf32> to vector<8x1x16xf32>
    %185 = vector.shape_cast %184 : vector<8x1x16xf32> to vector<8x16xf32>
    %186 = arith.maximumf %183, %185 : vector<8x16xf32>
    %c1_187 = arith.constant 1 : index
    %c13 = arith.constant 13 : index
    %c0_188 = arith.constant 0 : index
    %187 = vector.load %arg22[%c1_187, %c13, %c0_188] : memref<10x24x16xf32, #tpu.memory_space<vmem>>, vector<8x1x16xf32>
    %188 = vector.shape_cast %187 : vector<8x1x16xf32> to vector<8x16xf32>
    %189 = vector.shape_cast %186 : vector<8x16xf32> to vector<8x1x16xf32>
    tpu.vector_store %arg22[%c1_187, %c13, %c0_188], %189 {strides = array<i32>} : memref<10x24x16xf32, #tpu.memory_space<vmem>>, vector<8x1x16xf32>,
    %190 = vector.extract_strided_slice %139 {offsets = [0, 12, 0], sizes = [8, 1, 16], strides = [1, 1, 1]} : vector<8x16x16xf32> to vector<8x1x16xf32>
    %191 = vector.shape_cast %190 : vector<8x1x16xf32> to vector<8x16xf32>
    %192 = vector.extract_strided_slice %139 {offsets = [0, 13, 0], sizes = [8, 1, 16], strides = [1, 1, 1]} : vector<8x16x16xf32> to vector<8x1x16xf32>
    %193 = vector.shape_cast %192 : vector<8x1x16xf32> to vector<8x16xf32>
    %194 = arith.maximumf %191, %193 : vector<8x16xf32>
    %c1_189 = arith.constant 1 : index
    %c14 = arith.constant 14 : index
    %c0_190 = arith.constant 0 : index
    %195 = vector.load %arg22[%c1_189, %c14, %c0_190] : memref<10x24x16xf32, #tpu.memory_space<vmem>>, vector<8x1x16xf32>
    %196 = vector.shape_cast %195 : vector<8x1x16xf32> to vector<8x16xf32>
    %197 = vector.shape_cast %194 : vector<8x16xf32> to vector<8x1x16xf32>
    tpu.vector_store %arg22[%c1_189, %c14, %c0_190], %197 {strides = array<i32>} : memref<10x24x16xf32, #tpu.memory_space<vmem>>, vector<8x1x16xf32>,
    %198 = vector.extract_strided_slice %139 {offsets = [0, 14, 0], sizes = [8, 1, 16], strides = [1, 1, 1]} : vector<8x16x16xf32> to vector<8x1x16xf32>
    %199 = vector.shape_cast %198 : vector<8x1x16xf32> to vector<8x16xf32>
    %200 = vector.extract_strided_slice %139 {offsets = [0, 15, 0], sizes = [8, 1, 16], strides = [1, 1, 1]} : vector<8x16x16xf32> to vector<8x1x16xf32>
    %201 = vector.shape_cast %200 : vector<8x1x16xf32> to vector<8x16xf32>
    %202 = arith.maximumf %199, %201 : vector<8x16xf32>
    %c1_191 = arith.constant 1 : index
    %c15 = arith.constant 15 : index
    %c0_192 = arith.constant 0 : index
    %203 = vector.load %arg22[%c1_191, %c15, %c0_192] : memref<10x24x16xf32, #tpu.memory_space<vmem>>, vector<8x1x16xf32>
    %204 = vector.shape_cast %203 : vector<8x1x16xf32> to vector<8x16xf32>
    %205 = vector.shape_cast %202 : vector<8x16xf32> to vector<8x1x16xf32>
    tpu.vector_store %arg22[%c1_191, %c15, %c0_192], %205 {strides = array<i32>} : memref<10x24x16xf32, #tpu.memory_space<vmem>>, vector<8x1x16xf32>,
    %206 = vector.shape_cast %132 : vector<16x16x32xf32> to vector<8x2x16x32xf32>
    %cst_193 = arith.constant dense<0xFF800000> : vector<8x16x32xf32>
    %207 = vector.multi_reduction <maximumf>, %206, %cst_193 [1] : vector<8x2x16x32xf32> to vector<8x16x32xf32>
    %cst_194 = arith.constant 0.000000e+00 : f32
    %208 = vector.broadcast %cst_194 : f32 to vector<10x24x32xf32>
    %c0_195 = arith.constant 0 : index
    %c0_196 = arith.constant 0 : index
    %c0_197 = arith.constant 0 : index
    %209 = vector.load %arg23[%c0_195, %c0_196, %c0_197] : memref<10x24x32xf32, #tpu.memory_space<vmem>>, vector<10x24x32xf32>
    tpu.vector_store %arg23[%c0_195, %c0_196, %c0_197], %208 {strides = array<i32>} : memref<10x24x32xf32, #tpu.memory_space<vmem>>, vector<10x24x32xf32>,
    %210 = vector.extract_strided_slice %207 {offsets = [0, 0, 0], sizes = [8, 1, 32], strides = [1, 1, 1]} : vector<8x16x32xf32> to vector<8x1x32xf32>
    %211 = vector.shape_cast %210 : vector<8x1x32xf32> to vector<8x32xf32>
    %212 = vector.extract_strided_slice %207 {offsets = [0, 1, 0], sizes = [8, 1, 32], strides = [1, 1, 1]} : vector<8x16x32xf32> to vector<8x1x32xf32>
    %213 = vector.shape_cast %212 : vector<8x1x32xf32> to vector<8x32xf32>
    %214 = arith.maximumf %211, %213 : vector<8x32xf32>
    %c1_198 = arith.constant 1 : index
    %c8_199 = arith.constant 8 : index
    %c0_200 = arith.constant 0 : index
    %215 = vector.load %arg23[%c1_198, %c8_199, %c0_200] : memref<10x24x32xf32, #tpu.memory_space<vmem>>, vector<8x1x32xf32>
    %216 = vector.shape_cast %215 : vector<8x1x32xf32> to vector<8x32xf32>
    %217 = vector.shape_cast %214 : vector<8x32xf32> to vector<8x1x32xf32>
    tpu.vector_store %arg23[%c1_198, %c8_199, %c0_200], %217 {strides = array<i32>} : memref<10x24x32xf32, #tpu.memory_space<vmem>>, vector<8x1x32xf32>,
    %218 = vector.extract_strided_slice %207 {offsets = [0, 2, 0], sizes = [8, 1, 32], strides = [1, 1, 1]} : vector<8x16x32xf32> to vector<8x1x32xf32>
    %219 = vector.shape_cast %218 : vector<8x1x32xf32> to vector<8x32xf32>
    %220 = vector.extract_strided_slice %207 {offsets = [0, 3, 0], sizes = [8, 1, 32], strides = [1, 1, 1]} : vector<8x16x32xf32> to vector<8x1x32xf32>
    %221 = vector.shape_cast %220 : vector<8x1x32xf32> to vector<8x32xf32>
    %222 = arith.maximumf %219, %221 : vector<8x32xf32>
    %c1_201 = arith.constant 1 : index
    %c9_202 = arith.constant 9 : index
    %c0_203 = arith.constant 0 : index
    %223 = vector.load %arg23[%c1_201, %c9_202, %c0_203] : memref<10x24x32xf32, #tpu.memory_space<vmem>>, vector<8x1x32xf32>
    %224 = vector.shape_cast %223 : vector<8x1x32xf32> to vector<8x32xf32>
    %225 = vector.shape_cast %222 : vector<8x32xf32> to vector<8x1x32xf32>
    tpu.vector_store %arg23[%c1_201, %c9_202, %c0_203], %225 {strides = array<i32>} : memref<10x24x32xf32, #tpu.memory_space<vmem>>, vector<8x1x32xf32>,
    %226 = vector.extract_strided_slice %207 {offsets = [0, 4, 0], sizes = [8, 1, 32], strides = [1, 1, 1]} : vector<8x16x32xf32> to vector<8x1x32xf32>
    %227 = vector.shape_cast %226 : vector<8x1x32xf32> to vector<8x32xf32>
    %228 = vector.extract_strided_slice %207 {offsets = [0, 5, 0], sizes = [8, 1, 32], strides = [1, 1, 1]} : vector<8x16x32xf32> to vector<8x1x32xf32>
    %229 = vector.shape_cast %228 : vector<8x1x32xf32> to vector<8x32xf32>
    %230 = arith.maximumf %227, %229 : vector<8x32xf32>
    %c1_204 = arith.constant 1 : index
    %c10_205 = arith.constant 10 : index
    %c0_206 = arith.constant 0 : index
    %231 = vector.load %arg23[%c1_204, %c10_205, %c0_206] : memref<10x24x32xf32, #tpu.memory_space<vmem>>, vector<8x1x32xf32>
    %232 = vector.shape_cast %231 : vector<8x1x32xf32> to vector<8x32xf32>
    %233 = vector.shape_cast %230 : vector<8x32xf32> to vector<8x1x32xf32>
    tpu.vector_store %arg23[%c1_204, %c10_205, %c0_206], %233 {strides = array<i32>} : memref<10x24x32xf32, #tpu.memory_space<vmem>>, vector<8x1x32xf32>,
    %234 = vector.extract_strided_slice %207 {offsets = [0, 6, 0], sizes = [8, 1, 32], strides = [1, 1, 1]} : vector<8x16x32xf32> to vector<8x1x32xf32>
    %235 = vector.shape_cast %234 : vector<8x1x32xf32> to vector<8x32xf32>
    %236 = vector.extract_strided_slice %207 {offsets = [0, 7, 0], sizes = [8, 1, 32], strides = [1, 1, 1]} : vector<8x16x32xf32> to vector<8x1x32xf32>
    %237 = vector.shape_cast %236 : vector<8x1x32xf32> to vector<8x32xf32>
    %238 = arith.maximumf %235, %237 : vector<8x32xf32>
    %c1_207 = arith.constant 1 : index
    %c11_208 = arith.constant 11 : index
    %c0_209 = arith.constant 0 : index
    %239 = vector.load %arg23[%c1_207, %c11_208, %c0_209] : memref<10x24x32xf32, #tpu.memory_space<vmem>>, vector<8x1x32xf32>
    %240 = vector.shape_cast %239 : vector<8x1x32xf32> to vector<8x32xf32>
    %241 = vector.shape_cast %238 : vector<8x32xf32> to vector<8x1x32xf32>
    tpu.vector_store %arg23[%c1_207, %c11_208, %c0_209], %241 {strides = array<i32>} : memref<10x24x32xf32, #tpu.memory_space<vmem>>, vector<8x1x32xf32>,
    %242 = vector.extract_strided_slice %207 {offsets = [0, 8, 0], sizes = [8, 1, 32], strides = [1, 1, 1]} : vector<8x16x32xf32> to vector<8x1x32xf32>
    %243 = vector.shape_cast %242 : vector<8x1x32xf32> to vector<8x32xf32>
    %244 = vector.extract_strided_slice %207 {offsets = [0, 9, 0], sizes = [8, 1, 32], strides = [1, 1, 1]} : vector<8x16x32xf32> to vector<8x1x32xf32>
    %245 = vector.shape_cast %244 : vector<8x1x32xf32> to vector<8x32xf32>
    %246 = arith.maximumf %243, %245 : vector<8x32xf32>
    %c1_210 = arith.constant 1 : index
    %c12_211 = arith.constant 12 : index
    %c0_212 = arith.constant 0 : index
    %247 = vector.load %arg23[%c1_210, %c12_211, %c0_212] : memref<10x24x32xf32, #tpu.memory_space<vmem>>, vector<8x1x32xf32>
    %248 = vector.shape_cast %247 : vector<8x1x32xf32> to vector<8x32xf32>
    %249 = vector.shape_cast %246 : vector<8x32xf32> to vector<8x1x32xf32>
    tpu.vector_store %arg23[%c1_210, %c12_211, %c0_212], %249 {strides = array<i32>} : memref<10x24x32xf32, #tpu.memory_space<vmem>>, vector<8x1x32xf32>,
    %250 = vector.extract_strided_slice %207 {offsets = [0, 10, 0], sizes = [8, 1, 32], strides = [1, 1, 1]} : vector<8x16x32xf32> to vector<8x1x32xf32>
    %251 = vector.shape_cast %250 : vector<8x1x32xf32> to vector<8x32xf32>
    %252 = vector.extract_strided_slice %207 {offsets = [0, 11, 0], sizes = [8, 1, 32], strides = [1, 1, 1]} : vector<8x16x32xf32> to vector<8x1x32xf32>
    %253 = vector.shape_cast %252 : vector<8x1x32xf32> to vector<8x32xf32>
    %254 = arith.maximumf %251, %253 : vector<8x32xf32>
    %c1_213 = arith.constant 1 : index
    %c13_214 = arith.constant 13 : index
    %c0_215 = arith.constant 0 : index
    %255 = vector.load %arg23[%c1_213, %c13_214, %c0_215] : memref<10x24x32xf32, #tpu.memory_space<vmem>>, vector<8x1x32xf32>
    %256 = vector.shape_cast %255 : vector<8x1x32xf32> to vector<8x32xf32>
    %257 = vector.shape_cast %254 : vector<8x32xf32> to vector<8x1x32xf32>
    tpu.vector_store %arg23[%c1_213, %c13_214, %c0_215], %257 {strides = array<i32>} : memref<10x24x32xf32, #tpu.memory_space<vmem>>, vector<8x1x32xf32>,
    %258 = vector.extract_strided_slice %207 {offsets = [0, 12, 0], sizes = [8, 1, 32], strides = [1, 1, 1]} : vector<8x16x32xf32> to vector<8x1x32xf32>
    %259 = vector.shape_cast %258 : vector<8x1x32xf32> to vector<8x32xf32>
    %260 = vector.extract_strided_slice %207 {offsets = [0, 13, 0], sizes = [8, 1, 32], strides = [1, 1, 1]} : vector<8x16x32xf32> to vector<8x1x32xf32>
    %261 = vector.shape_cast %260 : vector<8x1x32xf32> to vector<8x32xf32>
    %262 = arith.maximumf %259, %261 : vector<8x32xf32>
    %c1_216 = arith.constant 1 : index
    %c14_217 = arith.constant 14 : index
    %c0_218 = arith.constant 0 : index
    %263 = vector.load %arg23[%c1_216, %c14_217, %c0_218] : memref<10x24x32xf32, #tpu.memory_space<vmem>>, vector<8x1x32xf32>
    %264 = vector.shape_cast %263 : vector<8x1x32xf32> to vector<8x32xf32>
    %265 = vector.shape_cast %262 : vector<8x32xf32> to vector<8x1x32xf32>
    tpu.vector_store %arg23[%c1_216, %c14_217, %c0_218], %265 {strides = array<i32>} : memref<10x24x32xf32, #tpu.memory_space<vmem>>, vector<8x1x32xf32>,
    %266 = vector.extract_strided_slice %207 {offsets = [0, 14, 0], sizes = [8, 1, 32], strides = [1, 1, 1]} : vector<8x16x32xf32> to vector<8x1x32xf32>
    %267 = vector.shape_cast %266 : vector<8x1x32xf32> to vector<8x32xf32>
    %268 = vector.extract_strided_slice %207 {offsets = [0, 15, 0], sizes = [8, 1, 32], strides = [1, 1, 1]} : vector<8x16x32xf32> to vector<8x1x32xf32>
    %269 = vector.shape_cast %268 : vector<8x1x32xf32> to vector<8x32xf32>
    %270 = arith.maximumf %267, %269 : vector<8x32xf32>
    %c1_219 = arith.constant 1 : index
    %c15_220 = arith.constant 15 : index
    %c0_221 = arith.constant 0 : index
    %271 = vector.load %arg23[%c1_219, %c15_220, %c0_221] : memref<10x24x32xf32, #tpu.memory_space<vmem>>, vector<8x1x32xf32>
    %272 = vector.shape_cast %271 : vector<8x1x32xf32> to vector<8x32xf32>
    %273 = vector.shape_cast %270 : vector<8x32xf32> to vector<8x1x32xf32>
    tpu.vector_store %arg23[%c1_219, %c15_220, %c0_221], %273 {strides = array<i32>} : memref<10x24x32xf32, #tpu.memory_space<vmem>>, vector<8x1x32xf32>,
    %cst_222 = arith.constant 0.000000e+00 : f32
    %274 = vector.broadcast %cst_222 : f32 to vector<64x64xf32>
    %c0_223 = arith.constant 0 : index
    %c7_224 = arith.constant 7 : index
    %c0_225 = arith.constant 0 : index
    %275 = vector.load %arg22[%c0_223, %c7_224, %c0_225] : memref<10x24x16xf32, #tpu.memory_space<vmem>>, vector<8x8x16xf32>
    %276 = vector.shape_cast %275 : vector<8x8x16xf32> to vector<64x16xf32>
    %c0_226 = arith.constant 0 : index
    %c0_227 = arith.constant 0 : index
    %c0_228 = arith.constant 0 : index
    %c0_229 = arith.constant 0 : index
    %277 = vector.load %arg6[%c0_226, %c0_227, %c0_228, %c0_229] : memref<3x3x16x64xf32, #tpu.memory_space<vmem>>, vector<1x1x16x64xf32>
    %278 = vector.shape_cast %277 : vector<1x1x16x64xf32> to vector<16x64xf32>
    %cst_230 = arith.constant dense<0.000000e+00> : vector<64x64xf32>
    %279 = tpu.matmul %276, %278, %cst_230 {dimension_numbers = #tpu.dot_dimension_numbers<[1], [0], [0], [1], [0, 0, 1, 1], [], []>} : vector<64x16xf32>, vector<16x64xf32>, vector<64x64xf32> -> vector<64x64xf32>
    %280 = arith.addf %274, %279 : vector<64x64xf32>
    %c0_231 = arith.constant 0 : index
    %c8_232 = arith.constant 8 : index
    %c0_233 = arith.constant 0 : index
    %281 = vector.load %arg22[%c0_231, %c8_232, %c0_233] : memref<10x24x16xf32, #tpu.memory_space<vmem>>, vector<8x8x16xf32>
    %282 = vector.shape_cast %281 : vector<8x8x16xf32> to vector<64x16xf32>
    %c0_234 = arith.constant 0 : index
    %c1_235 = arith.constant 1 : index
    %c0_236 = arith.constant 0 : index
    %c0_237 = arith.constant 0 : index
    %283 = vector.load %arg6[%c0_234, %c1_235, %c0_236, %c0_237] : memref<3x3x16x64xf32, #tpu.memory_space<vmem>>, vector<1x1x16x64xf32>
    %284 = vector.shape_cast %283 : vector<1x1x16x64xf32> to vector<16x64xf32>
    %cst_238 = arith.constant dense<0.000000e+00> : vector<64x64xf32>
    %285 = tpu.matmul %282, %284, %cst_238 {dimension_numbers = #tpu.dot_dimension_numbers<[1], [0], [0], [1], [0, 0, 1, 1], [], []>} : vector<64x16xf32>, vector<16x64xf32>, vector<64x64xf32> -> vector<64x64xf32>
    %286 = arith.addf %280, %285 : vector<64x64xf32>
    %c0_239 = arith.constant 0 : index
    %c9_240 = arith.constant 9 : index
    %c0_241 = arith.constant 0 : index
    %287 = vector.load %arg22[%c0_239, %c9_240, %c0_241] : memref<10x24x16xf32, #tpu.memory_space<vmem>>, vector<8x8x16xf32>
    %288 = vector.shape_cast %287 : vector<8x8x16xf32> to vector<64x16xf32>
    %c0_242 = arith.constant 0 : index
    %c2_243 = arith.constant 2 : index
    %c0_244 = arith.constant 0 : index
    %c0_245 = arith.constant 0 : index
    %289 = vector.load %arg6[%c0_242, %c2_243, %c0_244, %c0_245] : memref<3x3x16x64xf32, #tpu.memory_space<vmem>>, vector<1x1x16x64xf32>
    %290 = vector.shape_cast %289 : vector<1x1x16x64xf32> to vector<16x64xf32>
    %cst_246 = arith.constant dense<0.000000e+00> : vector<64x64xf32>
    %291 = tpu.matmul %288, %290, %cst_246 {dimension_numbers = #tpu.dot_dimension_numbers<[1], [0], [0], [1], [0, 0, 1, 1], [], []>} : vector<64x16xf32>, vector<16x64xf32>, vector<64x64xf32> -> vector<64x64xf32>
    %292 = arith.addf %286, %291 : vector<64x64xf32>
    %c1_247 = arith.constant 1 : index
    %c7_248 = arith.constant 7 : index
    %c0_249 = arith.constant 0 : index
    %293 = vector.load %arg22[%c1_247, %c7_248, %c0_249] : memref<10x24x16xf32, #tpu.memory_space<vmem>>, vector<8x8x16xf32>
    %294 = vector.shape_cast %293 : vector<8x8x16xf32> to vector<64x16xf32>
    %c1_250 = arith.constant 1 : index
    %c0_251 = arith.constant 0 : index
    %c0_252 = arith.constant 0 : index
    %c0_253 = arith.constant 0 : index
    %295 = vector.load %arg6[%c1_250, %c0_251, %c0_252, %c0_253] : memref<3x3x16x64xf32, #tpu.memory_space<vmem>>, vector<1x1x16x64xf32>
    %296 = vector.shape_cast %295 : vector<1x1x16x64xf32> to vector<16x64xf32>
    %cst_254 = arith.constant dense<0.000000e+00> : vector<64x64xf32>
    %297 = tpu.matmul %294, %296, %cst_254 {dimension_numbers = #tpu.dot_dimension_numbers<[1], [0], [0], [1], [0, 0, 1, 1], [], []>} : vector<64x16xf32>, vector<16x64xf32>, vector<64x64xf32> -> vector<64x64xf32>
    %298 = arith.addf %292, %297 : vector<64x64xf32>
    %c1_255 = arith.constant 1 : index
    %c8_256 = arith.constant 8 : index
    %c0_257 = arith.constant 0 : index
    %299 = vector.load %arg22[%c1_255, %c8_256, %c0_257] : memref<10x24x16xf32, #tpu.memory_space<vmem>>, vector<8x8x16xf32>
    %300 = vector.shape_cast %299 : vector<8x8x16xf32> to vector<64x16xf32>
    %c1_258 = arith.constant 1 : index
    %c1_259 = arith.constant 1 : index
    %c0_260 = arith.constant 0 : index
    %c0_261 = arith.constant 0 : index
    %301 = vector.load %arg6[%c1_258, %c1_259, %c0_260, %c0_261] : memref<3x3x16x64xf32, #tpu.memory_space<vmem>>, vector<1x1x16x64xf32>
    %302 = vector.shape_cast %301 : vector<1x1x16x64xf32> to vector<16x64xf32>
    %cst_262 = arith.constant dense<0.000000e+00> : vector<64x64xf32>
    %303 = tpu.matmul %300, %302, %cst_262 {dimension_numbers = #tpu.dot_dimension_numbers<[1], [0], [0], [1], [0, 0, 1, 1], [], []>} : vector<64x16xf32>, vector<16x64xf32>, vector<64x64xf32> -> vector<64x64xf32>
    %304 = arith.addf %298, %303 : vector<64x64xf32>
    %c1_263 = arith.constant 1 : index
    %c9_264 = arith.constant 9 : index
    %c0_265 = arith.constant 0 : index
    %305 = vector.load %arg22[%c1_263, %c9_264, %c0_265] : memref<10x24x16xf32, #tpu.memory_space<vmem>>, vector<8x8x16xf32>
    %306 = vector.shape_cast %305 : vector<8x8x16xf32> to vector<64x16xf32>
    %c1_266 = arith.constant 1 : index
    %c2_267 = arith.constant 2 : index
    %c0_268 = arith.constant 0 : index
    %c0_269 = arith.constant 0 : index
    %307 = vector.load %arg6[%c1_266, %c2_267, %c0_268, %c0_269] : memref<3x3x16x64xf32, #tpu.memory_space<vmem>>, vector<1x1x16x64xf32>
    %308 = vector.shape_cast %307 : vector<1x1x16x64xf32> to vector<16x64xf32>
    %cst_270 = arith.constant dense<0.000000e+00> : vector<64x64xf32>
    %309 = tpu.matmul %306, %308, %cst_270 {dimension_numbers = #tpu.dot_dimension_numbers<[1], [0], [0], [1], [0, 0, 1, 1], [], []>} : vector<64x16xf32>, vector<16x64xf32>, vector<64x64xf32> -> vector<64x64xf32>
    %310 = arith.addf %304, %309 : vector<64x64xf32>
    %c2_271 = arith.constant 2 : index
    %c7_272 = arith.constant 7 : index
    %c0_273 = arith.constant 0 : index
    %311 = vector.load %arg22[%c2_271, %c7_272, %c0_273] : memref<10x24x16xf32, #tpu.memory_space<vmem>>, vector<8x8x16xf32>
    %312 = vector.shape_cast %311 : vector<8x8x16xf32> to vector<64x16xf32>
    %c2_274 = arith.constant 2 : index
    %c0_275 = arith.constant 0 : index
    %c0_276 = arith.constant 0 : index
    %c0_277 = arith.constant 0 : index
    %313 = vector.load %arg6[%c2_274, %c0_275, %c0_276, %c0_277] : memref<3x3x16x64xf32, #tpu.memory_space<vmem>>, vector<1x1x16x64xf32>
    %314 = vector.shape_cast %313 : vector<1x1x16x64xf32> to vector<16x64xf32>
    %cst_278 = arith.constant dense<0.000000e+00> : vector<64x64xf32>
    %315 = tpu.matmul %312, %314, %cst_278 {dimension_numbers = #tpu.dot_dimension_numbers<[1], [0], [0], [1], [0, 0, 1, 1], [], []>} : vector<64x16xf32>, vector<16x64xf32>, vector<64x64xf32> -> vector<64x64xf32>
    %316 = arith.addf %310, %315 : vector<64x64xf32>
    %c2_279 = arith.constant 2 : index
    %c8_280 = arith.constant 8 : index
    %c0_281 = arith.constant 0 : index
    %317 = vector.load %arg22[%c2_279, %c8_280, %c0_281] : memref<10x24x16xf32, #tpu.memory_space<vmem>>, vector<8x8x16xf32>
    %318 = vector.shape_cast %317 : vector<8x8x16xf32> to vector<64x16xf32>
    %c2_282 = arith.constant 2 : index
    %c1_283 = arith.constant 1 : index
    %c0_284 = arith.constant 0 : index
    %c0_285 = arith.constant 0 : index
    %319 = vector.load %arg6[%c2_282, %c1_283, %c0_284, %c0_285] : memref<3x3x16x64xf32, #tpu.memory_space<vmem>>, vector<1x1x16x64xf32>
    %320 = vector.shape_cast %319 : vector<1x1x16x64xf32> to vector<16x64xf32>
    %cst_286 = arith.constant dense<0.000000e+00> : vector<64x64xf32>
    %321 = tpu.matmul %318, %320, %cst_286 {dimension_numbers = #tpu.dot_dimension_numbers<[1], [0], [0], [1], [0, 0, 1, 1], [], []>} : vector<64x16xf32>, vector<16x64xf32>, vector<64x64xf32> -> vector<64x64xf32>
    %322 = arith.addf %316, %321 : vector<64x64xf32>
    %c2_287 = arith.constant 2 : index
    %c9_288 = arith.constant 9 : index
    %c0_289 = arith.constant 0 : index
    %323 = vector.load %arg22[%c2_287, %c9_288, %c0_289] : memref<10x24x16xf32, #tpu.memory_space<vmem>>, vector<8x8x16xf32>
    %324 = vector.shape_cast %323 : vector<8x8x16xf32> to vector<64x16xf32>
    %c2_290 = arith.constant 2 : index
    %c2_291 = arith.constant 2 : index
    %c0_292 = arith.constant 0 : index
    %c0_293 = arith.constant 0 : index
    %325 = vector.load %arg6[%c2_290, %c2_291, %c0_292, %c0_293] : memref<3x3x16x64xf32, #tpu.memory_space<vmem>>, vector<1x1x16x64xf32>
    %326 = vector.shape_cast %325 : vector<1x1x16x64xf32> to vector<16x64xf32>
    %cst_294 = arith.constant dense<0.000000e+00> : vector<64x64xf32>
    %327 = tpu.matmul %324, %326, %cst_294 {dimension_numbers = #tpu.dot_dimension_numbers<[1], [0], [0], [1], [0, 0, 1, 1], [], []>} : vector<64x16xf32>, vector<16x64xf32>, vector<64x64xf32> -> vector<64x64xf32>
    %328 = arith.addf %322, %327 : vector<64x64xf32>
    %c0_295 = arith.constant 0 : index
    %c7_296 = arith.constant 7 : index
    %c0_297 = arith.constant 0 : index
    %329 = vector.load %arg23[%c0_295, %c7_296, %c0_297] : memref<10x24x32xf32, #tpu.memory_space<vmem>>, vector<8x8x32xf32>
    %330 = vector.shape_cast %329 : vector<8x8x32xf32> to vector<64x32xf32>
    %c0_298 = arith.constant 0 : index
    %c0_299 = arith.constant 0 : index
    %c0_300 = arith.constant 0 : index
    %c0_301 = arith.constant 0 : index
    %331 = vector.load %arg7[%c0_298, %c0_299, %c0_300, %c0_301] : memref<3x3x32x64xf32, #tpu.memory_space<vmem>>, vector<1x1x32x64xf32>
    %332 = vector.shape_cast %331 : vector<1x1x32x64xf32> to vector<32x64xf32>
    %cst_302 = arith.constant dense<0.000000e+00> : vector<64x64xf32>
    %333 = tpu.matmul %330, %332, %cst_302 {dimension_numbers = #tpu.dot_dimension_numbers<[1], [0], [0], [1], [0, 0, 1, 1], [], []>} : vector<64x32xf32>, vector<32x64xf32>, vector<64x64xf32> -> vector<64x64xf32>
    %334 = arith.addf %328, %333 : vector<64x64xf32>
    %c0_303 = arith.constant 0 : index
    %c8_304 = arith.constant 8 : index
    %c0_305 = arith.constant 0 : index
    %335 = vector.load %arg23[%c0_303, %c8_304, %c0_305] : memref<10x24x32xf32, #tpu.memory_space<vmem>>, vector<8x8x32xf32>
    %336 = vector.shape_cast %335 : vector<8x8x32xf32> to vector<64x32xf32>
    %c0_306 = arith.constant 0 : index
    %c1_307 = arith.constant 1 : index
    %c0_308 = arith.constant 0 : index
    %c0_309 = arith.constant 0 : index
    %337 = vector.load %arg7[%c0_306, %c1_307, %c0_308, %c0_309] : memref<3x3x32x64xf32, #tpu.memory_space<vmem>>, vector<1x1x32x64xf32>
    %338 = vector.shape_cast %337 : vector<1x1x32x64xf32> to vector<32x64xf32>
    %cst_310 = arith.constant dense<0.000000e+00> : vector<64x64xf32>
    %339 = tpu.matmul %336, %338, %cst_310 {dimension_numbers = #tpu.dot_dimension_numbers<[1], [0], [0], [1], [0, 0, 1, 1], [], []>} : vector<64x32xf32>, vector<32x64xf32>, vector<64x64xf32> -> vector<64x64xf32>
    %340 = arith.addf %334, %339 : vector<64x64xf32>
    %c0_311 = arith.constant 0 : index
    %c9_312 = arith.constant 9 : index
    %c0_313 = arith.constant 0 : index
    %341 = vector.load %arg23[%c0_311, %c9_312, %c0_313] : memref<10x24x32xf32, #tpu.memory_space<vmem>>, vector<8x8x32xf32>
    %342 = vector.shape_cast %341 : vector<8x8x32xf32> to vector<64x32xf32>
    %c0_314 = arith.constant 0 : index
    %c2_315 = arith.constant 2 : index
    %c0_316 = arith.constant 0 : index
    %c0_317 = arith.constant 0 : index
    %343 = vector.load %arg7[%c0_314, %c2_315, %c0_316, %c0_317] : memref<3x3x32x64xf32, #tpu.memory_space<vmem>>, vector<1x1x32x64xf32>
    %344 = vector.shape_cast %343 : vector<1x1x32x64xf32> to vector<32x64xf32>
    %cst_318 = arith.constant dense<0.000000e+00> : vector<64x64xf32>
    %345 = tpu.matmul %342, %344, %cst_318 {dimension_numbers = #tpu.dot_dimension_numbers<[1], [0], [0], [1], [0, 0, 1, 1], [], []>} : vector<64x32xf32>, vector<32x64xf32>, vector<64x64xf32> -> vector<64x64xf32>
    %346 = arith.addf %340, %345 : vector<64x64xf32>
    %c1_319 = arith.constant 1 : index
    %c7_320 = arith.constant 7 : index
    %c0_321 = arith.constant 0 : index
    %347 = vector.load %arg23[%c1_319, %c7_320, %c0_321] : memref<10x24x32xf32, #tpu.memory_space<vmem>>, vector<8x8x32xf32>
    %348 = vector.shape_cast %347 : vector<8x8x32xf32> to vector<64x32xf32>
    %c1_322 = arith.constant 1 : index
    %c0_323 = arith.constant 0 : index
    %c0_324 = arith.constant 0 : index
    %c0_325 = arith.constant 0 : index
    %349 = vector.load %arg7[%c1_322, %c0_323, %c0_324, %c0_325] : memref<3x3x32x64xf32, #tpu.memory_space<vmem>>, vector<1x1x32x64xf32>
    %350 = vector.shape_cast %349 : vector<1x1x32x64xf32> to vector<32x64xf32>
    %cst_326 = arith.constant dense<0.000000e+00> : vector<64x64xf32>
    %351 = tpu.matmul %348, %350, %cst_326 {dimension_numbers = #tpu.dot_dimension_numbers<[1], [0], [0], [1], [0, 0, 1, 1], [], []>} : vector<64x32xf32>, vector<32x64xf32>, vector<64x64xf32> -> vector<64x64xf32>
    %352 = arith.addf %346, %351 : vector<64x64xf32>
    %c1_327 = arith.constant 1 : index
    %c8_328 = arith.constant 8 : index
    %c0_329 = arith.constant 0 : index
    %353 = vector.load %arg23[%c1_327, %c8_328, %c0_329] : memref<10x24x32xf32, #tpu.memory_space<vmem>>, vector<8x8x32xf32>
    %354 = vector.shape_cast %353 : vector<8x8x32xf32> to vector<64x32xf32>
    %c1_330 = arith.constant 1 : index
    %c1_331 = arith.constant 1 : index
    %c0_332 = arith.constant 0 : index
    %c0_333 = arith.constant 0 : index
    %355 = vector.load %arg7[%c1_330, %c1_331, %c0_332, %c0_333] : memref<3x3x32x64xf32, #tpu.memory_space<vmem>>, vector<1x1x32x64xf32>
    %356 = vector.shape_cast %355 : vector<1x1x32x64xf32> to vector<32x64xf32>
    %cst_334 = arith.constant dense<0.000000e+00> : vector<64x64xf32>
    %357 = tpu.matmul %354, %356, %cst_334 {dimension_numbers = #tpu.dot_dimension_numbers<[1], [0], [0], [1], [0, 0, 1, 1], [], []>} : vector<64x32xf32>, vector<32x64xf32>, vector<64x64xf32> -> vector<64x64xf32>
    %358 = arith.addf %352, %357 : vector<64x64xf32>
    %c1_335 = arith.constant 1 : index
    %c9_336 = arith.constant 9 : index
    %c0_337 = arith.constant 0 : index
    %359 = vector.load %arg23[%c1_335, %c9_336, %c0_337] : memref<10x24x32xf32, #tpu.memory_space<vmem>>, vector<8x8x32xf32>
    %360 = vector.shape_cast %359 : vector<8x8x32xf32> to vector<64x32xf32>
    %c1_338 = arith.constant 1 : index
    %c2_339 = arith.constant 2 : index
    %c0_340 = arith.constant 0 : index
    %c0_341 = arith.constant 0 : index
    %361 = vector.load %arg7[%c1_338, %c2_339, %c0_340, %c0_341] : memref<3x3x32x64xf32, #tpu.memory_space<vmem>>, vector<1x1x32x64xf32>
    %362 = vector.shape_cast %361 : vector<1x1x32x64xf32> to vector<32x64xf32>
    %cst_342 = arith.constant dense<0.000000e+00> : vector<64x64xf32>
    %363 = tpu.matmul %360, %362, %cst_342 {dimension_numbers = #tpu.dot_dimension_numbers<[1], [0], [0], [1], [0, 0, 1, 1], [], []>} : vector<64x32xf32>, vector<32x64xf32>, vector<64x64xf32> -> vector<64x64xf32>
    %364 = arith.addf %358, %363 : vector<64x64xf32>
    %c2_343 = arith.constant 2 : index
    %c7_344 = arith.constant 7 : index
    %c0_345 = arith.constant 0 : index
    %365 = vector.load %arg23[%c2_343, %c7_344, %c0_345] : memref<10x24x32xf32, #tpu.memory_space<vmem>>, vector<8x8x32xf32>
    %366 = vector.shape_cast %365 : vector<8x8x32xf32> to vector<64x32xf32>
    %c2_346 = arith.constant 2 : index
    %c0_347 = arith.constant 0 : index
    %c0_348 = arith.constant 0 : index
    %c0_349 = arith.constant 0 : index
    %367 = vector.load %arg7[%c2_346, %c0_347, %c0_348, %c0_349] : memref<3x3x32x64xf32, #tpu.memory_space<vmem>>, vector<1x1x32x64xf32>
    %368 = vector.shape_cast %367 : vector<1x1x32x64xf32> to vector<32x64xf32>
    %cst_350 = arith.constant dense<0.000000e+00> : vector<64x64xf32>
    %369 = tpu.matmul %366, %368, %cst_350 {dimension_numbers = #tpu.dot_dimension_numbers<[1], [0], [0], [1], [0, 0, 1, 1], [], []>} : vector<64x32xf32>, vector<32x64xf32>, vector<64x64xf32> -> vector<64x64xf32>
    %370 = arith.addf %364, %369 : vector<64x64xf32>
    %c2_351 = arith.constant 2 : index
    %c8_352 = arith.constant 8 : index
    %c0_353 = arith.constant 0 : index
    %371 = vector.load %arg23[%c2_351, %c8_352, %c0_353] : memref<10x24x32xf32, #tpu.memory_space<vmem>>, vector<8x8x32xf32>
    %372 = vector.shape_cast %371 : vector<8x8x32xf32> to vector<64x32xf32>
    %c2_354 = arith.constant 2 : index
    %c1_355 = arith.constant 1 : index
    %c0_356 = arith.constant 0 : index
    %c0_357 = arith.constant 0 : index
    %373 = vector.load %arg7[%c2_354, %c1_355, %c0_356, %c0_357] : memref<3x3x32x64xf32, #tpu.memory_space<vmem>>, vector<1x1x32x64xf32>
    %374 = vector.shape_cast %373 : vector<1x1x32x64xf32> to vector<32x64xf32>
    %cst_358 = arith.constant dense<0.000000e+00> : vector<64x64xf32>
    %375 = tpu.matmul %372, %374, %cst_358 {dimension_numbers = #tpu.dot_dimension_numbers<[1], [0], [0], [1], [0, 0, 1, 1], [], []>} : vector<64x32xf32>, vector<32x64xf32>, vector<64x64xf32> -> vector<64x64xf32>
    %376 = arith.addf %370, %375 : vector<64x64xf32>
    %c2_359 = arith.constant 2 : index
    %c9_360 = arith.constant 9 : index
    %c0_361 = arith.constant 0 : index
    %377 = vector.load %arg23[%c2_359, %c9_360, %c0_361] : memref<10x24x32xf32, #tpu.memory_space<vmem>>, vector<8x8x32xf32>
    %378 = vector.shape_cast %377 : vector<8x8x32xf32> to vector<64x32xf32>
    %c2_362 = arith.constant 2 : index
    %c2_363 = arith.constant 2 : index
    %c0_364 = arith.constant 0 : index
    %c0_365 = arith.constant 0 : index
    %379 = vector.load %arg7[%c2_362, %c2_363, %c0_364, %c0_365] : memref<3x3x32x64xf32, #tpu.memory_space<vmem>>, vector<1x1x32x64xf32>
    %380 = vector.shape_cast %379 : vector<1x1x32x64xf32> to vector<32x64xf32>
    %cst_366 = arith.constant dense<0.000000e+00> : vector<64x64xf32>
    %381 = tpu.matmul %378, %380, %cst_366 {dimension_numbers = #tpu.dot_dimension_numbers<[1], [0], [0], [1], [0, 0, 1, 1], [], []>} : vector<64x32xf32>, vector<32x64xf32>, vector<64x64xf32> -> vector<64x64xf32>
    %382 = arith.addf %376, %381 : vector<64x64xf32>
    %c0_367 = arith.constant 0 : index
    %c0_368 = arith.constant 0 : index
    %383 = vector.load %arg8[%c0_367, %c0_368] : memref<1x64xf32, #tpu.memory_space<vmem>>, vector<1x64xf32>
    %384 = vector.broadcast %383 : vector<1x64xf32> to vector<64x64xf32>
    %385 = arith.addf %382, %384 : vector<64x64xf32>
    %386 = vector.shape_cast %385 : vector<64x64xf32> to vector<8x8x64xf32>
    %cst_369 = arith.constant 0.000000e+00 : f32
    %387 = vector.broadcast %cst_369 : f32 to vector<10x24x64xf32>
    %c0_370 = arith.constant 0 : index
    %c0_371 = arith.constant 0 : index
    %c0_372 = arith.constant 0 : index
    %388 = vector.load %arg24[%c0_370, %c0_371, %c0_372] : memref<10x24x64xf32, #tpu.memory_space<vmem>>, vector<10x24x64xf32>
    tpu.vector_store %arg24[%c0_370, %c0_371, %c0_372], %387 {strides = array<i32>} : memref<10x24x64xf32, #tpu.memory_space<vmem>>, vector<10x24x64xf32>,
    %c1_373 = arith.constant 1 : index
    %c8_374 = arith.constant 8 : index
    %c0_375 = arith.constant 0 : index
    %389 = vector.load %arg24[%c1_373, %c8_374, %c0_375] : memref<10x24x64xf32, #tpu.memory_space<vmem>>, vector<8x8x64xf32>
    tpu.vector_store %arg24[%c1_373, %c8_374, %c0_375], %386 {strides = array<i32>} : memref<10x24x64xf32, #tpu.memory_space<vmem>>, vector<8x8x64xf32>,
    %cst_376 = arith.constant 0.000000e+00 : f32
    %390 = vector.broadcast %cst_376 : f32 to vector<64x64xf32>
    %c0_377 = arith.constant 0 : index
    %c7_378 = arith.constant 7 : index
    %c0_379 = arith.constant 0 : index
    %391 = vector.load %arg24[%c0_377, %c7_378, %c0_379] : memref<10x24x64xf32, #tpu.memory_space<vmem>>, vector<8x8x64xf32>
    %392 = vector.shape_cast %391 : vector<8x8x64xf32> to vector<64x64xf32>
    %c0_380 = arith.constant 0 : index
    %c0_381 = arith.constant 0 : index
    %c0_382 = arith.constant 0 : index
    %c0_383 = arith.constant 0 : index
    %393 = vector.load %arg9[%c0_380, %c0_381, %c0_382, %c0_383] : memref<3x3x64x64xf32, #tpu.memory_space<vmem>>, vector<1x1x64x64xf32>
    %394 = vector.shape_cast %393 : vector<1x1x64x64xf32> to vector<64x64xf32>
    %cst_384 = arith.constant dense<0.000000e+00> : vector<64x64xf32>
    %395 = tpu.matmul %392, %394, %cst_384 {dimension_numbers = #tpu.dot_dimension_numbers<[1], [0], [0], [1], [0, 0, 1, 1], [], []>} : vector<64x64xf32>, vector<64x64xf32>, vector<64x64xf32> -> vector<64x64xf32>
    %396 = arith.addf %390, %395 : vector<64x64xf32>
    %c0_385 = arith.constant 0 : index
    %c8_386 = arith.constant 8 : index
    %c0_387 = arith.constant 0 : index
    %397 = vector.load %arg24[%c0_385, %c8_386, %c0_387] : memref<10x24x64xf32, #tpu.memory_space<vmem>>, vector<8x8x64xf32>
    %398 = vector.shape_cast %397 : vector<8x8x64xf32> to vector<64x64xf32>
    %c0_388 = arith.constant 0 : index
    %c1_389 = arith.constant 1 : index
    %c0_390 = arith.constant 0 : index
    %c0_391 = arith.constant 0 : index
    %399 = vector.load %arg9[%c0_388, %c1_389, %c0_390, %c0_391] : memref<3x3x64x64xf32, #tpu.memory_space<vmem>>, vector<1x1x64x64xf32>
    %400 = vector.shape_cast %399 : vector<1x1x64x64xf32> to vector<64x64xf32>
    %cst_392 = arith.constant dense<0.000000e+00> : vector<64x64xf32>
    %401 = tpu.matmul %398, %400, %cst_392 {dimension_numbers = #tpu.dot_dimension_numbers<[1], [0], [0], [1], [0, 0, 1, 1], [], []>} : vector<64x64xf32>, vector<64x64xf32>, vector<64x64xf32> -> vector<64x64xf32>
    %402 = arith.addf %396, %401 : vector<64x64xf32>
    %c0_393 = arith.constant 0 : index
    %c9_394 = arith.constant 9 : index
    %c0_395 = arith.constant 0 : index
    %403 = vector.load %arg24[%c0_393, %c9_394, %c0_395] : memref<10x24x64xf32, #tpu.memory_space<vmem>>, vector<8x8x64xf32>
    %404 = vector.shape_cast %403 : vector<8x8x64xf32> to vector<64x64xf32>
    %c0_396 = arith.constant 0 : index
    %c2_397 = arith.constant 2 : index
    %c0_398 = arith.constant 0 : index
    %c0_399 = arith.constant 0 : index
    %405 = vector.load %arg9[%c0_396, %c2_397, %c0_398, %c0_399] : memref<3x3x64x64xf32, #tpu.memory_space<vmem>>, vector<1x1x64x64xf32>
    %406 = vector.shape_cast %405 : vector<1x1x64x64xf32> to vector<64x64xf32>
    %cst_400 = arith.constant dense<0.000000e+00> : vector<64x64xf32>
    %407 = tpu.matmul %404, %406, %cst_400 {dimension_numbers = #tpu.dot_dimension_numbers<[1], [0], [0], [1], [0, 0, 1, 1], [], []>} : vector<64x64xf32>, vector<64x64xf32>, vector<64x64xf32> -> vector<64x64xf32>
    %408 = arith.addf %402, %407 : vector<64x64xf32>
    %c1_401 = arith.constant 1 : index
    %c7_402 = arith.constant 7 : index
    %c0_403 = arith.constant 0 : index
    %409 = vector.load %arg24[%c1_401, %c7_402, %c0_403] : memref<10x24x64xf32, #tpu.memory_space<vmem>>, vector<8x8x64xf32>
    %410 = vector.shape_cast %409 : vector<8x8x64xf32> to vector<64x64xf32>
    %c1_404 = arith.constant 1 : index
    %c0_405 = arith.constant 0 : index
    %c0_406 = arith.constant 0 : index
    %c0_407 = arith.constant 0 : index
    %411 = vector.load %arg9[%c1_404, %c0_405, %c0_406, %c0_407] : memref<3x3x64x64xf32, #tpu.memory_space<vmem>>, vector<1x1x64x64xf32>
    %412 = vector.shape_cast %411 : vector<1x1x64x64xf32> to vector<64x64xf32>
    %cst_408 = arith.constant dense<0.000000e+00> : vector<64x64xf32>
    %413 = tpu.matmul %410, %412, %cst_408 {dimension_numbers = #tpu.dot_dimension_numbers<[1], [0], [0], [1], [0, 0, 1, 1], [], []>} : vector<64x64xf32>, vector<64x64xf32>, vector<64x64xf32> -> vector<64x64xf32>
    %414 = arith.addf %408, %413 : vector<64x64xf32>
    %c1_409 = arith.constant 1 : index
    %c8_410 = arith.constant 8 : index
    %c0_411 = arith.constant 0 : index
    %415 = vector.load %arg24[%c1_409, %c8_410, %c0_411] : memref<10x24x64xf32, #tpu.memory_space<vmem>>, vector<8x8x64xf32>
    %416 = vector.shape_cast %415 : vector<8x8x64xf32> to vector<64x64xf32>
    %c1_412 = arith.constant 1 : index
    %c1_413 = arith.constant 1 : index
    %c0_414 = arith.constant 0 : index
    %c0_415 = arith.constant 0 : index
    %417 = vector.load %arg9[%c1_412, %c1_413, %c0_414, %c0_415] : memref<3x3x64x64xf32, #tpu.memory_space<vmem>>, vector<1x1x64x64xf32>
    %418 = vector.shape_cast %417 : vector<1x1x64x64xf32> to vector<64x64xf32>
    %cst_416 = arith.constant dense<0.000000e+00> : vector<64x64xf32>
    %419 = tpu.matmul %416, %418, %cst_416 {dimension_numbers = #tpu.dot_dimension_numbers<[1], [0], [0], [1], [0, 0, 1, 1], [], []>} : vector<64x64xf32>, vector<64x64xf32>, vector<64x64xf32> -> vector<64x64xf32>
    %420 = arith.addf %414, %419 : vector<64x64xf32>
    %c1_417 = arith.constant 1 : index
    %c9_418 = arith.constant 9 : index
    %c0_419 = arith.constant 0 : index
    %421 = vector.load %arg24[%c1_417, %c9_418, %c0_419] : memref<10x24x64xf32, #tpu.memory_space<vmem>>, vector<8x8x64xf32>
    %422 = vector.shape_cast %421 : vector<8x8x64xf32> to vector<64x64xf32>
    %c1_420 = arith.constant 1 : index
    %c2_421 = arith.constant 2 : index
    %c0_422 = arith.constant 0 : index
    %c0_423 = arith.constant 0 : index
    %423 = vector.load %arg9[%c1_420, %c2_421, %c0_422, %c0_423] : memref<3x3x64x64xf32, #tpu.memory_space<vmem>>, vector<1x1x64x64xf32>
    %424 = vector.shape_cast %423 : vector<1x1x64x64xf32> to vector<64x64xf32>
    %cst_424 = arith.constant dense<0.000000e+00> : vector<64x64xf32>
    %425 = tpu.matmul %422, %424, %cst_424 {dimension_numbers = #tpu.dot_dimension_numbers<[1], [0], [0], [1], [0, 0, 1, 1], [], []>} : vector<64x64xf32>, vector<64x64xf32>, vector<64x64xf32> -> vector<64x64xf32>
    %426 = arith.addf %420, %425 : vector<64x64xf32>
    %c2_425 = arith.constant 2 : index
    %c7_426 = arith.constant 7 : index
    %c0_427 = arith.constant 0 : index
    %427 = vector.load %arg24[%c2_425, %c7_426, %c0_427] : memref<10x24x64xf32, #tpu.memory_space<vmem>>, vector<8x8x64xf32>
    %428 = vector.shape_cast %427 : vector<8x8x64xf32> to vector<64x64xf32>
    %c2_428 = arith.constant 2 : index
    %c0_429 = arith.constant 0 : index
    %c0_430 = arith.constant 0 : index
    %c0_431 = arith.constant 0 : index
    %429 = vector.load %arg9[%c2_428, %c0_429, %c0_430, %c0_431] : memref<3x3x64x64xf32, #tpu.memory_space<vmem>>, vector<1x1x64x64xf32>
    %430 = vector.shape_cast %429 : vector<1x1x64x64xf32> to vector<64x64xf32>
    %cst_432 = arith.constant dense<0.000000e+00> : vector<64x64xf32>
    %431 = tpu.matmul %428, %430, %cst_432 {dimension_numbers = #tpu.dot_dimension_numbers<[1], [0], [0], [1], [0, 0, 1, 1], [], []>} : vector<64x64xf32>, vector<64x64xf32>, vector<64x64xf32> -> vector<64x64xf32>
    %432 = arith.addf %426, %431 : vector<64x64xf32>
    %c2_433 = arith.constant 2 : index
    %c8_434 = arith.constant 8 : index
    %c0_435 = arith.constant 0 : index
    %433 = vector.load %arg24[%c2_433, %c8_434, %c0_435] : memref<10x24x64xf32, #tpu.memory_space<vmem>>, vector<8x8x64xf32>
    %434 = vector.shape_cast %433 : vector<8x8x64xf32> to vector<64x64xf32>
    %c2_436 = arith.constant 2 : index
    %c1_437 = arith.constant 1 : index
    %c0_438 = arith.constant 0 : index
    %c0_439 = arith.constant 0 : index
    %435 = vector.load %arg9[%c2_436, %c1_437, %c0_438, %c0_439] : memref<3x3x64x64xf32, #tpu.memory_space<vmem>>, vector<1x1x64x64xf32>
    %436 = vector.shape_cast %435 : vector<1x1x64x64xf32> to vector<64x64xf32>
    %cst_440 = arith.constant dense<0.000000e+00> : vector<64x64xf32>
    %437 = tpu.matmul %434, %436, %cst_440 {dimension_numbers = #tpu.dot_dimension_numbers<[1], [0], [0], [1], [0, 0, 1, 1], [], []>} : vector<64x64xf32>, vector<64x64xf32>, vector<64x64xf32> -> vector<64x64xf32>
    %438 = arith.addf %432, %437 : vector<64x64xf32>
    %c2_441 = arith.constant 2 : index
    %c9_442 = arith.constant 9 : index
    %c0_443 = arith.constant 0 : index
    %439 = vector.load %arg24[%c2_441, %c9_442, %c0_443] : memref<10x24x64xf32, #tpu.memory_space<vmem>>, vector<8x8x64xf32>
    %440 = vector.shape_cast %439 : vector<8x8x64xf32> to vector<64x64xf32>
    %c2_444 = arith.constant 2 : index
    %c2_445 = arith.constant 2 : index
    %c0_446 = arith.constant 0 : index
    %c0_447 = arith.constant 0 : index
    %441 = vector.load %arg9[%c2_444, %c2_445, %c0_446, %c0_447] : memref<3x3x64x64xf32, #tpu.memory_space<vmem>>, vector<1x1x64x64xf32>
    %442 = vector.shape_cast %441 : vector<1x1x64x64xf32> to vector<64x64xf32>
    %cst_448 = arith.constant dense<0.000000e+00> : vector<64x64xf32>
    %443 = tpu.matmul %440, %442, %cst_448 {dimension_numbers = #tpu.dot_dimension_numbers<[1], [0], [0], [1], [0, 0, 1, 1], [], []>} : vector<64x64xf32>, vector<64x64xf32>, vector<64x64xf32> -> vector<64x64xf32>
    %444 = arith.addf %438, %443 : vector<64x64xf32>
    %c0_449 = arith.constant 0 : index
    %c0_450 = arith.constant 0 : index
    %445 = vector.load %arg10[%c0_449, %c0_450] : memref<1x64xf32, #tpu.memory_space<vmem>>, vector<1x64xf32>
    %446 = vector.broadcast %445 : vector<1x64xf32> to vector<64x64xf32>
    %447 = arith.addf %444, %446 : vector<64x64xf32>
    %cst_451 = arith.constant 0.000000e+00 : f32
    %448 = vector.broadcast %cst_451 : f32 to vector<64x64xf32>
    %449 = arith.maximumf %447, %448 : vector<64x64xf32>
    %450 = vector.shape_cast %449 : vector<64x64xf32> to vector<8x8x64xf32>
    %451 = vector.shape_cast %450 : vector<8x8x64xf32> to vector<64x64xf32>
    %cst_452 = arith.constant dense<0.000000e+00> : vector<64xf32>
    %452 = vector.multi_reduction <add>, %451, %cst_452 [0] : vector<64x64xf32> to vector<64xf32>
    %c0_453 = arith.constant 0 : index
    %c0_454 = arith.constant 0 : index
    %c0_455 = arith.constant 0 : index
    %453 = vector.load %arg18[%c0_453, %c0_454, %c0_455] : memref<1x1x64xf32, #tpu.memory_space<vmem>>, vector<1x1x64xf32>
    %454 = vector.shape_cast %453 : vector<1x1x64xf32> to vector<64xf32>
    %455 = vector.shape_cast %452 : vector<64xf32> to vector<1x1x64xf32>
    tpu.vector_store %arg18[%c0_453, %c0_454, %c0_455], %455 {strides = array<i32>} : memref<1x1x64xf32, #tpu.memory_space<vmem>>, vector<1x1x64xf32>,
    %456 = vector.shape_cast %450 : vector<8x8x64xf32> to vector<4x2x8x64xf32>
    %cst_456 = arith.constant dense<0xFF800000> : vector<4x8x64xf32>
    %457 = vector.multi_reduction <maximumf>, %456, %cst_456 [1] : vector<4x2x8x64xf32> to vector<4x8x64xf32>
    %cst_457 = arith.constant 0.000000e+00 : f32
    %458 = vector.broadcast %cst_457 : f32 to vector<6x20x64xf32>
    %c0_458 = arith.constant 0 : index
    %c0_459 = arith.constant 0 : index
    %c0_460 = arith.constant 0 : index
    %459 = vector.load %arg25[%c0_458, %c0_459, %c0_460] : memref<6x20x64xf32, #tpu.memory_space<vmem>>, vector<6x20x64xf32>
    tpu.vector_store %arg25[%c0_458, %c0_459, %c0_460], %458 {strides = array<i32>} : memref<6x20x64xf32, #tpu.memory_space<vmem>>, vector<6x20x64xf32>,
    %460 = vector.extract_strided_slice %457 {offsets = [0, 0, 0], sizes = [4, 1, 64], strides = [1, 1, 1]} : vector<4x8x64xf32> to vector<4x1x64xf32>
    %461 = vector.shape_cast %460 : vector<4x1x64xf32> to vector<4x64xf32>
    %462 = vector.extract_strided_slice %457 {offsets = [0, 1, 0], sizes = [4, 1, 64], strides = [1, 1, 1]} : vector<4x8x64xf32> to vector<4x1x64xf32>
    %463 = vector.shape_cast %462 : vector<4x1x64xf32> to vector<4x64xf32>
    %464 = arith.maximumf %461, %463 : vector<4x64xf32>
    %c1_461 = arith.constant 1 : index
    %c8_462 = arith.constant 8 : index
    %c0_463 = arith.constant 0 : index
    %465 = vector.load %arg25[%c1_461, %c8_462, %c0_463] : memref<6x20x64xf32, #tpu.memory_space<vmem>>, vector<4x1x64xf32>
    %466 = vector.shape_cast %465 : vector<4x1x64xf32> to vector<4x64xf32>
    %467 = vector.shape_cast %464 : vector<4x64xf32> to vector<4x1x64xf32>
    tpu.vector_store %arg25[%c1_461, %c8_462, %c0_463], %467 {strides = array<i32>} : memref<6x20x64xf32, #tpu.memory_space<vmem>>, vector<4x1x64xf32>,
    %468 = vector.extract_strided_slice %457 {offsets = [0, 2, 0], sizes = [4, 1, 64], strides = [1, 1, 1]} : vector<4x8x64xf32> to vector<4x1x64xf32>
    %469 = vector.shape_cast %468 : vector<4x1x64xf32> to vector<4x64xf32>
    %470 = vector.extract_strided_slice %457 {offsets = [0, 3, 0], sizes = [4, 1, 64], strides = [1, 1, 1]} : vector<4x8x64xf32> to vector<4x1x64xf32>
    %471 = vector.shape_cast %470 : vector<4x1x64xf32> to vector<4x64xf32>
    %472 = arith.maximumf %469, %471 : vector<4x64xf32>
    %c1_464 = arith.constant 1 : index
    %c9_465 = arith.constant 9 : index
    %c0_466 = arith.constant 0 : index
    %473 = vector.load %arg25[%c1_464, %c9_465, %c0_466] : memref<6x20x64xf32, #tpu.memory_space<vmem>>, vector<4x1x64xf32>
    %474 = vector.shape_cast %473 : vector<4x1x64xf32> to vector<4x64xf32>
    %475 = vector.shape_cast %472 : vector<4x64xf32> to vector<4x1x64xf32>
    tpu.vector_store %arg25[%c1_464, %c9_465, %c0_466], %475 {strides = array<i32>} : memref<6x20x64xf32, #tpu.memory_space<vmem>>, vector<4x1x64xf32>,
    %476 = vector.extract_strided_slice %457 {offsets = [0, 4, 0], sizes = [4, 1, 64], strides = [1, 1, 1]} : vector<4x8x64xf32> to vector<4x1x64xf32>
    %477 = vector.shape_cast %476 : vector<4x1x64xf32> to vector<4x64xf32>
    %478 = vector.extract_strided_slice %457 {offsets = [0, 5, 0], sizes = [4, 1, 64], strides = [1, 1, 1]} : vector<4x8x64xf32> to vector<4x1x64xf32>
    %479 = vector.shape_cast %478 : vector<4x1x64xf32> to vector<4x64xf32>
    %480 = arith.maximumf %477, %479 : vector<4x64xf32>
    %c1_467 = arith.constant 1 : index
    %c10_468 = arith.constant 10 : index
    %c0_469 = arith.constant 0 : index
    %481 = vector.load %arg25[%c1_467, %c10_468, %c0_469] : memref<6x20x64xf32, #tpu.memory_space<vmem>>, vector<4x1x64xf32>
    %482 = vector.shape_cast %481 : vector<4x1x64xf32> to vector<4x64xf32>
    %483 = vector.shape_cast %480 : vector<4x64xf32> to vector<4x1x64xf32>
    tpu.vector_store %arg25[%c1_467, %c10_468, %c0_469], %483 {strides = array<i32>} : memref<6x20x64xf32, #tpu.memory_space<vmem>>, vector<4x1x64xf32>,
    %484 = vector.extract_strided_slice %457 {offsets = [0, 6, 0], sizes = [4, 1, 64], strides = [1, 1, 1]} : vector<4x8x64xf32> to vector<4x1x64xf32>
    %485 = vector.shape_cast %484 : vector<4x1x64xf32> to vector<4x64xf32>
    %486 = vector.extract_strided_slice %457 {offsets = [0, 7, 0], sizes = [4, 1, 64], strides = [1, 1, 1]} : vector<4x8x64xf32> to vector<4x1x64xf32>
    %487 = vector.shape_cast %486 : vector<4x1x64xf32> to vector<4x64xf32>
    %488 = arith.maximumf %485, %487 : vector<4x64xf32>
    %c1_470 = arith.constant 1 : index
    %c11_471 = arith.constant 11 : index
    %c0_472 = arith.constant 0 : index
    %489 = vector.load %arg25[%c1_470, %c11_471, %c0_472] : memref<6x20x64xf32, #tpu.memory_space<vmem>>, vector<4x1x64xf32>
    %490 = vector.shape_cast %489 : vector<4x1x64xf32> to vector<4x64xf32>
    %491 = vector.shape_cast %488 : vector<4x64xf32> to vector<4x1x64xf32>
    tpu.vector_store %arg25[%c1_470, %c11_471, %c0_472], %491 {strides = array<i32>} : memref<6x20x64xf32, #tpu.memory_space<vmem>>, vector<4x1x64xf32>,
    %c1_473 = arith.constant 1 : index
    %c8_474 = arith.constant 8 : index
    %c0_475 = arith.constant 0 : index
    %492 = vector.load %arg23[%c1_473, %c8_474, %c0_475] : memref<10x24x32xf32, #tpu.memory_space<vmem>>, vector<8x8x32xf32>
    %493 = vector.shape_cast %492 : vector<8x8x32xf32> to vector<4x2x8x32xf32>
    %cst_476 = arith.constant dense<0xFF800000> : vector<4x8x32xf32>
    %494 = vector.multi_reduction <maximumf>, %493, %cst_476 [1] : vector<4x2x8x32xf32> to vector<4x8x32xf32>
    %cst_477 = arith.constant 0.000000e+00 : f32
    %495 = vector.broadcast %cst_477 : f32 to vector<6x20x32xf32>
    %c0_478 = arith.constant 0 : index
    %c0_479 = arith.constant 0 : index
    %c0_480 = arith.constant 0 : index
    %496 = vector.load %arg26[%c0_478, %c0_479, %c0_480] : memref<6x20x32xf32, #tpu.memory_space<vmem>>, vector<6x20x32xf32>
    tpu.vector_store %arg26[%c0_478, %c0_479, %c0_480], %495 {strides = array<i32>} : memref<6x20x32xf32, #tpu.memory_space<vmem>>, vector<6x20x32xf32>,
    %497 = vector.extract_strided_slice %494 {offsets = [0, 0, 0], sizes = [4, 1, 32], strides = [1, 1, 1]} : vector<4x8x32xf32> to vector<4x1x32xf32>
    %498 = vector.shape_cast %497 : vector<4x1x32xf32> to vector<4x32xf32>
    %499 = vector.extract_strided_slice %494 {offsets = [0, 1, 0], sizes = [4, 1, 32], strides = [1, 1, 1]} : vector<4x8x32xf32> to vector<4x1x32xf32>
    %500 = vector.shape_cast %499 : vector<4x1x32xf32> to vector<4x32xf32>
    %501 = arith.maximumf %498, %500 : vector<4x32xf32>
    %c1_481 = arith.constant 1 : index
    %c8_482 = arith.constant 8 : index
    %c0_483 = arith.constant 0 : index
    %502 = vector.load %arg26[%c1_481, %c8_482, %c0_483] : memref<6x20x32xf32, #tpu.memory_space<vmem>>, vector<4x1x32xf32>
    %503 = vector.shape_cast %502 : vector<4x1x32xf32> to vector<4x32xf32>
    %504 = vector.shape_cast %501 : vector<4x32xf32> to vector<4x1x32xf32>
    tpu.vector_store %arg26[%c1_481, %c8_482, %c0_483], %504 {strides = array<i32>} : memref<6x20x32xf32, #tpu.memory_space<vmem>>, vector<4x1x32xf32>,
    %505 = vector.extract_strided_slice %494 {offsets = [0, 2, 0], sizes = [4, 1, 32], strides = [1, 1, 1]} : vector<4x8x32xf32> to vector<4x1x32xf32>
    %506 = vector.shape_cast %505 : vector<4x1x32xf32> to vector<4x32xf32>
    %507 = vector.extract_strided_slice %494 {offsets = [0, 3, 0], sizes = [4, 1, 32], strides = [1, 1, 1]} : vector<4x8x32xf32> to vector<4x1x32xf32>
    %508 = vector.shape_cast %507 : vector<4x1x32xf32> to vector<4x32xf32>
    %509 = arith.maximumf %506, %508 : vector<4x32xf32>
    %c1_484 = arith.constant 1 : index
    %c9_485 = arith.constant 9 : index
    %c0_486 = arith.constant 0 : index
    %510 = vector.load %arg26[%c1_484, %c9_485, %c0_486] : memref<6x20x32xf32, #tpu.memory_space<vmem>>, vector<4x1x32xf32>
    %511 = vector.shape_cast %510 : vector<4x1x32xf32> to vector<4x32xf32>
    %512 = vector.shape_cast %509 : vector<4x32xf32> to vector<4x1x32xf32>
    tpu.vector_store %arg26[%c1_484, %c9_485, %c0_486], %512 {strides = array<i32>} : memref<6x20x32xf32, #tpu.memory_space<vmem>>, vector<4x1x32xf32>,
    %513 = vector.extract_strided_slice %494 {offsets = [0, 4, 0], sizes = [4, 1, 32], strides = [1, 1, 1]} : vector<4x8x32xf32> to vector<4x1x32xf32>
    %514 = vector.shape_cast %513 : vector<4x1x32xf32> to vector<4x32xf32>
    %515 = vector.extract_strided_slice %494 {offsets = [0, 5, 0], sizes = [4, 1, 32], strides = [1, 1, 1]} : vector<4x8x32xf32> to vector<4x1x32xf32>
    %516 = vector.shape_cast %515 : vector<4x1x32xf32> to vector<4x32xf32>
    %517 = arith.maximumf %514, %516 : vector<4x32xf32>
    %c1_487 = arith.constant 1 : index
    %c10_488 = arith.constant 10 : index
    %c0_489 = arith.constant 0 : index
    %518 = vector.load %arg26[%c1_487, %c10_488, %c0_489] : memref<6x20x32xf32, #tpu.memory_space<vmem>>, vector<4x1x32xf32>
    %519 = vector.shape_cast %518 : vector<4x1x32xf32> to vector<4x32xf32>
    %520 = vector.shape_cast %517 : vector<4x32xf32> to vector<4x1x32xf32>
    tpu.vector_store %arg26[%c1_487, %c10_488, %c0_489], %520 {strides = array<i32>} : memref<6x20x32xf32, #tpu.memory_space<vmem>>, vector<4x1x32xf32>,
    %521 = vector.extract_strided_slice %494 {offsets = [0, 6, 0], sizes = [4, 1, 32], strides = [1, 1, 1]} : vector<4x8x32xf32> to vector<4x1x32xf32>
    %522 = vector.shape_cast %521 : vector<4x1x32xf32> to vector<4x32xf32>
    %523 = vector.extract_strided_slice %494 {offsets = [0, 7, 0], sizes = [4, 1, 32], strides = [1, 1, 1]} : vector<4x8x32xf32> to vector<4x1x32xf32>
    %524 = vector.shape_cast %523 : vector<4x1x32xf32> to vector<4x32xf32>
    %525 = arith.maximumf %522, %524 : vector<4x32xf32>
    %c1_490 = arith.constant 1 : index
    %c11_491 = arith.constant 11 : index
    %c0_492 = arith.constant 0 : index
    %526 = vector.load %arg26[%c1_490, %c11_491, %c0_492] : memref<6x20x32xf32, #tpu.memory_space<vmem>>, vector<4x1x32xf32>
    %527 = vector.shape_cast %526 : vector<4x1x32xf32> to vector<4x32xf32>
    %528 = vector.shape_cast %525 : vector<4x32xf32> to vector<4x1x32xf32>
    tpu.vector_store %arg26[%c1_490, %c11_491, %c0_492], %528 {strides = array<i32>} : memref<6x20x32xf32, #tpu.memory_space<vmem>>, vector<4x1x32xf32>,
    %cst_493 = arith.constant 0.000000e+00 : f32
    %529 = vector.broadcast %cst_493 : f32 to vector<16x128xf32>
    %c0_494 = arith.constant 0 : index
    %c7_495 = arith.constant 7 : index
    %c0_496 = arith.constant 0 : index
    %530 = vector.load %arg25[%c0_494, %c7_495, %c0_496] : memref<6x20x64xf32, #tpu.memory_space<vmem>>, vector<4x4x64xf32>
    %531 = vector.shape_cast %530 : vector<4x4x64xf32> to vector<16x64xf32>
    %c0_497 = arith.constant 0 : index
    %c0_498 = arith.constant 0 : index
    %c0_499 = arith.constant 0 : index
    %c0_500 = arith.constant 0 : index
    %532 = vector.load %arg11[%c0_497, %c0_498, %c0_499, %c0_500] : memref<3x3x64x128xf32, #tpu.memory_space<vmem>>, vector<1x1x64x128xf32>
    %533 = vector.shape_cast %532 : vector<1x1x64x128xf32> to vector<64x128xf32>
    %cst_501 = arith.constant dense<0.000000e+00> : vector<16x128xf32>
    %534 = tpu.matmul %531, %533, %cst_501 {dimension_numbers = #tpu.dot_dimension_numbers<[1], [0], [0], [1], [0, 0, 1, 1], [], []>} : vector<16x64xf32>, vector<64x128xf32>, vector<16x128xf32> -> vector<16x128xf32>
    %535 = arith.addf %529, %534 : vector<16x128xf32>
    %c0_502 = arith.constant 0 : index
    %c8_503 = arith.constant 8 : index
    %c0_504 = arith.constant 0 : index
    %536 = vector.load %arg25[%c0_502, %c8_503, %c0_504] : memref<6x20x64xf32, #tpu.memory_space<vmem>>, vector<4x4x64xf32>
    %537 = vector.shape_cast %536 : vector<4x4x64xf32> to vector<16x64xf32>
    %c0_505 = arith.constant 0 : index
    %c1_506 = arith.constant 1 : index
    %c0_507 = arith.constant 0 : index
    %c0_508 = arith.constant 0 : index
    %538 = vector.load %arg11[%c0_505, %c1_506, %c0_507, %c0_508] : memref<3x3x64x128xf32, #tpu.memory_space<vmem>>, vector<1x1x64x128xf32>
    %539 = vector.shape_cast %538 : vector<1x1x64x128xf32> to vector<64x128xf32>
    %cst_509 = arith.constant dense<0.000000e+00> : vector<16x128xf32>
    %540 = tpu.matmul %537, %539, %cst_509 {dimension_numbers = #tpu.dot_dimension_numbers<[1], [0], [0], [1], [0, 0, 1, 1], [], []>} : vector<16x64xf32>, vector<64x128xf32>, vector<16x128xf32> -> vector<16x128xf32>
    %541 = arith.addf %535, %540 : vector<16x128xf32>
    %c0_510 = arith.constant 0 : index
    %c9_511 = arith.constant 9 : index
    %c0_512 = arith.constant 0 : index
    %542 = vector.load %arg25[%c0_510, %c9_511, %c0_512] : memref<6x20x64xf32, #tpu.memory_space<vmem>>, vector<4x4x64xf32>
    %543 = vector.shape_cast %542 : vector<4x4x64xf32> to vector<16x64xf32>
    %c0_513 = arith.constant 0 : index
    %c2_514 = arith.constant 2 : index
    %c0_515 = arith.constant 0 : index
    %c0_516 = arith.constant 0 : index
    %544 = vector.load %arg11[%c0_513, %c2_514, %c0_515, %c0_516] : memref<3x3x64x128xf32, #tpu.memory_space<vmem>>, vector<1x1x64x128xf32>
    %545 = vector.shape_cast %544 : vector<1x1x64x128xf32> to vector<64x128xf32>
    %cst_517 = arith.constant dense<0.000000e+00> : vector<16x128xf32>
    %546 = tpu.matmul %543, %545, %cst_517 {dimension_numbers = #tpu.dot_dimension_numbers<[1], [0], [0], [1], [0, 0, 1, 1], [], []>} : vector<16x64xf32>, vector<64x128xf32>, vector<16x128xf32> -> vector<16x128xf32>
    %547 = arith.addf %541, %546 : vector<16x128xf32>
    %c1_518 = arith.constant 1 : index
    %c7_519 = arith.constant 7 : index
    %c0_520 = arith.constant 0 : index
    %548 = vector.load %arg25[%c1_518, %c7_519, %c0_520] : memref<6x20x64xf32, #tpu.memory_space<vmem>>, vector<4x4x64xf32>
    %549 = vector.shape_cast %548 : vector<4x4x64xf32> to vector<16x64xf32>
    %c1_521 = arith.constant 1 : index
    %c0_522 = arith.constant 0 : index
    %c0_523 = arith.constant 0 : index
    %c0_524 = arith.constant 0 : index
    %550 = vector.load %arg11[%c1_521, %c0_522, %c0_523, %c0_524] : memref<3x3x64x128xf32, #tpu.memory_space<vmem>>, vector<1x1x64x128xf32>
    %551 = vector.shape_cast %550 : vector<1x1x64x128xf32> to vector<64x128xf32>
    %cst_525 = arith.constant dense<0.000000e+00> : vector<16x128xf32>
    %552 = tpu.matmul %549, %551, %cst_525 {dimension_numbers = #tpu.dot_dimension_numbers<[1], [0], [0], [1], [0, 0, 1, 1], [], []>} : vector<16x64xf32>, vector<64x128xf32>, vector<16x128xf32> -> vector<16x128xf32>
    %553 = arith.addf %547, %552 : vector<16x128xf32>
    %c1_526 = arith.constant 1 : index
    %c8_527 = arith.constant 8 : index
    %c0_528 = arith.constant 0 : index
    %554 = vector.load %arg25[%c1_526, %c8_527, %c0_528] : memref<6x20x64xf32, #tpu.memory_space<vmem>>, vector<4x4x64xf32>
    %555 = vector.shape_cast %554 : vector<4x4x64xf32> to vector<16x64xf32>
    %c1_529 = arith.constant 1 : index
    %c1_530 = arith.constant 1 : index
    %c0_531 = arith.constant 0 : index
    %c0_532 = arith.constant 0 : index
    %556 = vector.load %arg11[%c1_529, %c1_530, %c0_531, %c0_532] : memref<3x3x64x128xf32, #tpu.memory_space<vmem>>, vector<1x1x64x128xf32>
    %557 = vector.shape_cast %556 : vector<1x1x64x128xf32> to vector<64x128xf32>
    %cst_533 = arith.constant dense<0.000000e+00> : vector<16x128xf32>
    %558 = tpu.matmul %555, %557, %cst_533 {dimension_numbers = #tpu.dot_dimension_numbers<[1], [0], [0], [1], [0, 0, 1, 1], [], []>} : vector<16x64xf32>, vector<64x128xf32>, vector<16x128xf32> -> vector<16x128xf32>
    %559 = arith.addf %553, %558 : vector<16x128xf32>
    %c1_534 = arith.constant 1 : index
    %c9_535 = arith.constant 9 : index
    %c0_536 = arith.constant 0 : index
    %560 = vector.load %arg25[%c1_534, %c9_535, %c0_536] : memref<6x20x64xf32, #tpu.memory_space<vmem>>, vector<4x4x64xf32>
    %561 = vector.shape_cast %560 : vector<4x4x64xf32> to vector<16x64xf32>
    %c1_537 = arith.constant 1 : index
    %c2_538 = arith.constant 2 : index
    %c0_539 = arith.constant 0 : index
    %c0_540 = arith.constant 0 : index
    %562 = vector.load %arg11[%c1_537, %c2_538, %c0_539, %c0_540] : memref<3x3x64x128xf32, #tpu.memory_space<vmem>>, vector<1x1x64x128xf32>
    %563 = vector.shape_cast %562 : vector<1x1x64x128xf32> to vector<64x128xf32>
    %cst_541 = arith.constant dense<0.000000e+00> : vector<16x128xf32>
    %564 = tpu.matmul %561, %563, %cst_541 {dimension_numbers = #tpu.dot_dimension_numbers<[1], [0], [0], [1], [0, 0, 1, 1], [], []>} : vector<16x64xf32>, vector<64x128xf32>, vector<16x128xf32> -> vector<16x128xf32>
    %565 = arith.addf %559, %564 : vector<16x128xf32>
    %c2_542 = arith.constant 2 : index
    %c7_543 = arith.constant 7 : index
    %c0_544 = arith.constant 0 : index
    %566 = vector.load %arg25[%c2_542, %c7_543, %c0_544] : memref<6x20x64xf32, #tpu.memory_space<vmem>>, vector<4x4x64xf32>
    %567 = vector.shape_cast %566 : vector<4x4x64xf32> to vector<16x64xf32>
    %c2_545 = arith.constant 2 : index
    %c0_546 = arith.constant 0 : index
    %c0_547 = arith.constant 0 : index
    %c0_548 = arith.constant 0 : index
    %568 = vector.load %arg11[%c2_545, %c0_546, %c0_547, %c0_548] : memref<3x3x64x128xf32, #tpu.memory_space<vmem>>, vector<1x1x64x128xf32>
    %569 = vector.shape_cast %568 : vector<1x1x64x128xf32> to vector<64x128xf32>
    %cst_549 = arith.constant dense<0.000000e+00> : vector<16x128xf32>
    %570 = tpu.matmul %567, %569, %cst_549 {dimension_numbers = #tpu.dot_dimension_numbers<[1], [0], [0], [1], [0, 0, 1, 1], [], []>} : vector<16x64xf32>, vector<64x128xf32>, vector<16x128xf32> -> vector<16x128xf32>
    %571 = arith.addf %565, %570 : vector<16x128xf32>
    %c2_550 = arith.constant 2 : index
    %c8_551 = arith.constant 8 : index
    %c0_552 = arith.constant 0 : index
    %572 = vector.load %arg25[%c2_550, %c8_551, %c0_552] : memref<6x20x64xf32, #tpu.memory_space<vmem>>, vector<4x4x64xf32>
    %573 = vector.shape_cast %572 : vector<4x4x64xf32> to vector<16x64xf32>
    %c2_553 = arith.constant 2 : index
    %c1_554 = arith.constant 1 : index
    %c0_555 = arith.constant 0 : index
    %c0_556 = arith.constant 0 : index
    %574 = vector.load %arg11[%c2_553, %c1_554, %c0_555, %c0_556] : memref<3x3x64x128xf32, #tpu.memory_space<vmem>>, vector<1x1x64x128xf32>
    %575 = vector.shape_cast %574 : vector<1x1x64x128xf32> to vector<64x128xf32>
    %cst_557 = arith.constant dense<0.000000e+00> : vector<16x128xf32>
    %576 = tpu.matmul %573, %575, %cst_557 {dimension_numbers = #tpu.dot_dimension_numbers<[1], [0], [0], [1], [0, 0, 1, 1], [], []>} : vector<16x64xf32>, vector<64x128xf32>, vector<16x128xf32> -> vector<16x128xf32>
    %577 = arith.addf %571, %576 : vector<16x128xf32>
    %c2_558 = arith.constant 2 : index
    %c9_559 = arith.constant 9 : index
    %c0_560 = arith.constant 0 : index
    %578 = vector.load %arg25[%c2_558, %c9_559, %c0_560] : memref<6x20x64xf32, #tpu.memory_space<vmem>>, vector<4x4x64xf32>
    %579 = vector.shape_cast %578 : vector<4x4x64xf32> to vector<16x64xf32>
    %c2_561 = arith.constant 2 : index
    %c2_562 = arith.constant 2 : index
    %c0_563 = arith.constant 0 : index
    %c0_564 = arith.constant 0 : index
    %580 = vector.load %arg11[%c2_561, %c2_562, %c0_563, %c0_564] : memref<3x3x64x128xf32, #tpu.memory_space<vmem>>, vector<1x1x64x128xf32>
    %581 = vector.shape_cast %580 : vector<1x1x64x128xf32> to vector<64x128xf32>
    %cst_565 = arith.constant dense<0.000000e+00> : vector<16x128xf32>
    %582 = tpu.matmul %579, %581, %cst_565 {dimension_numbers = #tpu.dot_dimension_numbers<[1], [0], [0], [1], [0, 0, 1, 1], [], []>} : vector<16x64xf32>, vector<64x128xf32>, vector<16x128xf32> -> vector<16x128xf32>
    %583 = arith.addf %577, %582 : vector<16x128xf32>
    %c0_566 = arith.constant 0 : index
    %c7_567 = arith.constant 7 : index
    %c0_568 = arith.constant 0 : index
    %584 = vector.load %arg26[%c0_566, %c7_567, %c0_568] : memref<6x20x32xf32, #tpu.memory_space<vmem>>, vector<4x4x32xf32>
    %585 = vector.shape_cast %584 : vector<4x4x32xf32> to vector<16x32xf32>
    %c0_569 = arith.constant 0 : index
    %c0_570 = arith.constant 0 : index
    %c0_571 = arith.constant 0 : index
    %c0_572 = arith.constant 0 : index
    %586 = vector.load %arg12[%c0_569, %c0_570, %c0_571, %c0_572] : memref<3x3x32x128xf32, #tpu.memory_space<vmem>>, vector<1x1x32x128xf32>
    %587 = vector.shape_cast %586 : vector<1x1x32x128xf32> to vector<32x128xf32>
    %cst_573 = arith.constant dense<0.000000e+00> : vector<16x128xf32>
    %588 = tpu.matmul %585, %587, %cst_573 {dimension_numbers = #tpu.dot_dimension_numbers<[1], [0], [0], [1], [0, 0, 1, 1], [], []>} : vector<16x32xf32>, vector<32x128xf32>, vector<16x128xf32> -> vector<16x128xf32>
    %589 = arith.addf %583, %588 : vector<16x128xf32>
    %c0_574 = arith.constant 0 : index
    %c8_575 = arith.constant 8 : index
    %c0_576 = arith.constant 0 : index
    %590 = vector.load %arg26[%c0_574, %c8_575, %c0_576] : memref<6x20x32xf32, #tpu.memory_space<vmem>>, vector<4x4x32xf32>
    %591 = vector.shape_cast %590 : vector<4x4x32xf32> to vector<16x32xf32>
    %c0_577 = arith.constant 0 : index
    %c1_578 = arith.constant 1 : index
    %c0_579 = arith.constant 0 : index
    %c0_580 = arith.constant 0 : index
    %592 = vector.load %arg12[%c0_577, %c1_578, %c0_579, %c0_580] : memref<3x3x32x128xf32, #tpu.memory_space<vmem>>, vector<1x1x32x128xf32>
    %593 = vector.shape_cast %592 : vector<1x1x32x128xf32> to vector<32x128xf32>
    %cst_581 = arith.constant dense<0.000000e+00> : vector<16x128xf32>
    %594 = tpu.matmul %591, %593, %cst_581 {dimension_numbers = #tpu.dot_dimension_numbers<[1], [0], [0], [1], [0, 0, 1, 1], [], []>} : vector<16x32xf32>, vector<32x128xf32>, vector<16x128xf32> -> vector<16x128xf32>
    %595 = arith.addf %589, %594 : vector<16x128xf32>
    %c0_582 = arith.constant 0 : index
    %c9_583 = arith.constant 9 : index
    %c0_584 = arith.constant 0 : index
    %596 = vector.load %arg26[%c0_582, %c9_583, %c0_584] : memref<6x20x32xf32, #tpu.memory_space<vmem>>, vector<4x4x32xf32>
    %597 = vector.shape_cast %596 : vector<4x4x32xf32> to vector<16x32xf32>
    %c0_585 = arith.constant 0 : index
    %c2_586 = arith.constant 2 : index
    %c0_587 = arith.constant 0 : index
    %c0_588 = arith.constant 0 : index
    %598 = vector.load %arg12[%c0_585, %c2_586, %c0_587, %c0_588] : memref<3x3x32x128xf32, #tpu.memory_space<vmem>>, vector<1x1x32x128xf32>
    %599 = vector.shape_cast %598 : vector<1x1x32x128xf32> to vector<32x128xf32>
    %cst_589 = arith.constant dense<0.000000e+00> : vector<16x128xf32>
    %600 = tpu.matmul %597, %599, %cst_589 {dimension_numbers = #tpu.dot_dimension_numbers<[1], [0], [0], [1], [0, 0, 1, 1], [], []>} : vector<16x32xf32>, vector<32x128xf32>, vector<16x128xf32> -> vector<16x128xf32>
    %601 = arith.addf %595, %600 : vector<16x128xf32>
    %c1_590 = arith.constant 1 : index
    %c7_591 = arith.constant 7 : index
    %c0_592 = arith.constant 0 : index
    %602 = vector.load %arg26[%c1_590, %c7_591, %c0_592] : memref<6x20x32xf32, #tpu.memory_space<vmem>>, vector<4x4x32xf32>
    %603 = vector.shape_cast %602 : vector<4x4x32xf32> to vector<16x32xf32>
    %c1_593 = arith.constant 1 : index
    %c0_594 = arith.constant 0 : index
    %c0_595 = arith.constant 0 : index
    %c0_596 = arith.constant 0 : index
    %604 = vector.load %arg12[%c1_593, %c0_594, %c0_595, %c0_596] : memref<3x3x32x128xf32, #tpu.memory_space<vmem>>, vector<1x1x32x128xf32>
    %605 = vector.shape_cast %604 : vector<1x1x32x128xf32> to vector<32x128xf32>
    %cst_597 = arith.constant dense<0.000000e+00> : vector<16x128xf32>
    %606 = tpu.matmul %603, %605, %cst_597 {dimension_numbers = #tpu.dot_dimension_numbers<[1], [0], [0], [1], [0, 0, 1, 1], [], []>} : vector<16x32xf32>, vector<32x128xf32>, vector<16x128xf32> -> vector<16x128xf32>
    %607 = arith.addf %601, %606 : vector<16x128xf32>
    %c1_598 = arith.constant 1 : index
    %c8_599 = arith.constant 8 : index
    %c0_600 = arith.constant 0 : index
    %608 = vector.load %arg26[%c1_598, %c8_599, %c0_600] : memref<6x20x32xf32, #tpu.memory_space<vmem>>, vector<4x4x32xf32>
    %609 = vector.shape_cast %608 : vector<4x4x32xf32> to vector<16x32xf32>
    %c1_601 = arith.constant 1 : index
    %c1_602 = arith.constant 1 : index
    %c0_603 = arith.constant 0 : index
    %c0_604 = arith.constant 0 : index
    %610 = vector.load %arg12[%c1_601, %c1_602, %c0_603, %c0_604] : memref<3x3x32x128xf32, #tpu.memory_space<vmem>>, vector<1x1x32x128xf32>
    %611 = vector.shape_cast %610 : vector<1x1x32x128xf32> to vector<32x128xf32>
    %cst_605 = arith.constant dense<0.000000e+00> : vector<16x128xf32>
    %612 = tpu.matmul %609, %611, %cst_605 {dimension_numbers = #tpu.dot_dimension_numbers<[1], [0], [0], [1], [0, 0, 1, 1], [], []>} : vector<16x32xf32>, vector<32x128xf32>, vector<16x128xf32> -> vector<16x128xf32>
    %613 = arith.addf %607, %612 : vector<16x128xf32>
    %c1_606 = arith.constant 1 : index
    %c9_607 = arith.constant 9 : index
    %c0_608 = arith.constant 0 : index
    %614 = vector.load %arg26[%c1_606, %c9_607, %c0_608] : memref<6x20x32xf32, #tpu.memory_space<vmem>>, vector<4x4x32xf32>
    %615 = vector.shape_cast %614 : vector<4x4x32xf32> to vector<16x32xf32>
    %c1_609 = arith.constant 1 : index
    %c2_610 = arith.constant 2 : index
    %c0_611 = arith.constant 0 : index
    %c0_612 = arith.constant 0 : index
    %616 = vector.load %arg12[%c1_609, %c2_610, %c0_611, %c0_612] : memref<3x3x32x128xf32, #tpu.memory_space<vmem>>, vector<1x1x32x128xf32>
    %617 = vector.shape_cast %616 : vector<1x1x32x128xf32> to vector<32x128xf32>
    %cst_613 = arith.constant dense<0.000000e+00> : vector<16x128xf32>
    %618 = tpu.matmul %615, %617, %cst_613 {dimension_numbers = #tpu.dot_dimension_numbers<[1], [0], [0], [1], [0, 0, 1, 1], [], []>} : vector<16x32xf32>, vector<32x128xf32>, vector<16x128xf32> -> vector<16x128xf32>
    %619 = arith.addf %613, %618 : vector<16x128xf32>
    %c2_614 = arith.constant 2 : index
    %c7_615 = arith.constant 7 : index
    %c0_616 = arith.constant 0 : index
    %620 = vector.load %arg26[%c2_614, %c7_615, %c0_616] : memref<6x20x32xf32, #tpu.memory_space<vmem>>, vector<4x4x32xf32>
    %621 = vector.shape_cast %620 : vector<4x4x32xf32> to vector<16x32xf32>
    %c2_617 = arith.constant 2 : index
    %c0_618 = arith.constant 0 : index
    %c0_619 = arith.constant 0 : index
    %c0_620 = arith.constant 0 : index
    %622 = vector.load %arg12[%c2_617, %c0_618, %c0_619, %c0_620] : memref<3x3x32x128xf32, #tpu.memory_space<vmem>>, vector<1x1x32x128xf32>
    %623 = vector.shape_cast %622 : vector<1x1x32x128xf32> to vector<32x128xf32>
    %cst_621 = arith.constant dense<0.000000e+00> : vector<16x128xf32>
    %624 = tpu.matmul %621, %623, %cst_621 {dimension_numbers = #tpu.dot_dimension_numbers<[1], [0], [0], [1], [0, 0, 1, 1], [], []>} : vector<16x32xf32>, vector<32x128xf32>, vector<16x128xf32> -> vector<16x128xf32>
    %625 = arith.addf %619, %624 : vector<16x128xf32>
    %c2_622 = arith.constant 2 : index
    %c8_623 = arith.constant 8 : index
    %c0_624 = arith.constant 0 : index
    %626 = vector.load %arg26[%c2_622, %c8_623, %c0_624] : memref<6x20x32xf32, #tpu.memory_space<vmem>>, vector<4x4x32xf32>
    %627 = vector.shape_cast %626 : vector<4x4x32xf32> to vector<16x32xf32>
    %c2_625 = arith.constant 2 : index
    %c1_626 = arith.constant 1 : index
    %c0_627 = arith.constant 0 : index
    %c0_628 = arith.constant 0 : index
    %628 = vector.load %arg12[%c2_625, %c1_626, %c0_627, %c0_628] : memref<3x3x32x128xf32, #tpu.memory_space<vmem>>, vector<1x1x32x128xf32>
    %629 = vector.shape_cast %628 : vector<1x1x32x128xf32> to vector<32x128xf32>
    %cst_629 = arith.constant dense<0.000000e+00> : vector<16x128xf32>
    %630 = tpu.matmul %627, %629, %cst_629 {dimension_numbers = #tpu.dot_dimension_numbers<[1], [0], [0], [1], [0, 0, 1, 1], [], []>} : vector<16x32xf32>, vector<32x128xf32>, vector<16x128xf32> -> vector<16x128xf32>
    %631 = arith.addf %625, %630 : vector<16x128xf32>
    %c2_630 = arith.constant 2 : index
    %c9_631 = arith.constant 9 : index
    %c0_632 = arith.constant 0 : index
    %632 = vector.load %arg26[%c2_630, %c9_631, %c0_632] : memref<6x20x32xf32, #tpu.memory_space<vmem>>, vector<4x4x32xf32>
    %633 = vector.shape_cast %632 : vector<4x4x32xf32> to vector<16x32xf32>
    %c2_633 = arith.constant 2 : index
    %c2_634 = arith.constant 2 : index
    %c0_635 = arith.constant 0 : index
    %c0_636 = arith.constant 0 : index
    %634 = vector.load %arg12[%c2_633, %c2_634, %c0_635, %c0_636] : memref<3x3x32x128xf32, #tpu.memory_space<vmem>>, vector<1x1x32x128xf32>
    %635 = vector.shape_cast %634 : vector<1x1x32x128xf32> to vector<32x128xf32>
    %cst_637 = arith.constant dense<0.000000e+00> : vector<16x128xf32>
    %636 = tpu.matmul %633, %635, %cst_637 {dimension_numbers = #tpu.dot_dimension_numbers<[1], [0], [0], [1], [0, 0, 1, 1], [], []>} : vector<16x32xf32>, vector<32x128xf32>, vector<16x128xf32> -> vector<16x128xf32>
    %637 = arith.addf %631, %636 : vector<16x128xf32>
    %c0_638 = arith.constant 0 : index
    %c0_639 = arith.constant 0 : index
    %638 = vector.load %arg13[%c0_638, %c0_639] : memref<1x128xf32, #tpu.memory_space<vmem>>, vector<1x128xf32>
    %639 = vector.broadcast %638 : vector<1x128xf32> to vector<16x128xf32>
    %640 = arith.addf %637, %639 : vector<16x128xf32>
    %641 = vector.shape_cast %640 : vector<16x128xf32> to vector<4x4x128xf32>
    %cst_640 = arith.constant 0.000000e+00 : f32
    %642 = vector.broadcast %cst_640 : f32 to vector<6x20x128xf32>
    %c0_641 = arith.constant 0 : index
    %c0_642 = arith.constant 0 : index
    %c0_643 = arith.constant 0 : index
    %643 = vector.load %arg27[%c0_641, %c0_642, %c0_643] : memref<6x20x128xf32, #tpu.memory_space<vmem>>, vector<6x20x128xf32>
    tpu.vector_store %arg27[%c0_641, %c0_642, %c0_643], %642 {strides = array<i32>} : memref<6x20x128xf32, #tpu.memory_space<vmem>>, vector<6x20x128xf32>,
    %c1_644 = arith.constant 1 : index
    %c8_645 = arith.constant 8 : index
    %c0_646 = arith.constant 0 : index
    %644 = vector.load %arg27[%c1_644, %c8_645, %c0_646] : memref<6x20x128xf32, #tpu.memory_space<vmem>>, vector<4x4x128xf32>
    tpu.vector_store %arg27[%c1_644, %c8_645, %c0_646], %641 {strides = array<i32>} : memref<6x20x128xf32, #tpu.memory_space<vmem>>, vector<4x4x128xf32>,
    %cst_647 = arith.constant 0.000000e+00 : f32
    %645 = vector.broadcast %cst_647 : f32 to vector<16x128xf32>
    %c0_648 = arith.constant 0 : index
    %c7_649 = arith.constant 7 : index
    %c0_650 = arith.constant 0 : index
    %646 = vector.load %arg27[%c0_648, %c7_649, %c0_650] : memref<6x20x128xf32, #tpu.memory_space<vmem>>, vector<4x4x128xf32>
    %647 = vector.shape_cast %646 : vector<4x4x128xf32> to vector<16x128xf32>
    %c0_651 = arith.constant 0 : index
    %c0_652 = arith.constant 0 : index
    %c0_653 = arith.constant 0 : index
    %c0_654 = arith.constant 0 : index
    %648 = vector.load %arg14[%c0_651, %c0_652, %c0_653, %c0_654] : memref<3x3x128x128xf32, #tpu.memory_space<vmem>>, vector<1x1x128x128xf32>
    %649 = vector.shape_cast %648 : vector<1x1x128x128xf32> to vector<128x128xf32>
    %cst_655 = arith.constant dense<0.000000e+00> : vector<16x128xf32>
    %650 = tpu.matmul %647, %649, %cst_655 {dimension_numbers = #tpu.dot_dimension_numbers<[1], [0], [0], [1], [0, 0, 1, 1], [], []>} : vector<16x128xf32>, vector<128x128xf32>, vector<16x128xf32> -> vector<16x128xf32>
    %651 = arith.addf %645, %650 : vector<16x128xf32>
    %c0_656 = arith.constant 0 : index
    %c8_657 = arith.constant 8 : index
    %c0_658 = arith.constant 0 : index
    %652 = vector.load %arg27[%c0_656, %c8_657, %c0_658] : memref<6x20x128xf32, #tpu.memory_space<vmem>>, vector<4x4x128xf32>
    %653 = vector.shape_cast %652 : vector<4x4x128xf32> to vector<16x128xf32>
    %c0_659 = arith.constant 0 : index
    %c1_660 = arith.constant 1 : index
    %c0_661 = arith.constant 0 : index
    %c0_662 = arith.constant 0 : index
    %654 = vector.load %arg14[%c0_659, %c1_660, %c0_661, %c0_662] : memref<3x3x128x128xf32, #tpu.memory_space<vmem>>, vector<1x1x128x128xf32>
    %655 = vector.shape_cast %654 : vector<1x1x128x128xf32> to vector<128x128xf32>
    %cst_663 = arith.constant dense<0.000000e+00> : vector<16x128xf32>
    %656 = tpu.matmul %653, %655, %cst_663 {dimension_numbers = #tpu.dot_dimension_numbers<[1], [0], [0], [1], [0, 0, 1, 1], [], []>} : vector<16x128xf32>, vector<128x128xf32>, vector<16x128xf32> -> vector<16x128xf32>
    %657 = arith.addf %651, %656 : vector<16x128xf32>
    %c0_664 = arith.constant 0 : index
    %c9_665 = arith.constant 9 : index
    %c0_666 = arith.constant 0 : index
    %658 = vector.load %arg27[%c0_664, %c9_665, %c0_666] : memref<6x20x128xf32, #tpu.memory_space<vmem>>, vector<4x4x128xf32>
    %659 = vector.shape_cast %658 : vector<4x4x128xf32> to vector<16x128xf32>
    %c0_667 = arith.constant 0 : index
    %c2_668 = arith.constant 2 : index
    %c0_669 = arith.constant 0 : index
    %c0_670 = arith.constant 0 : index
    %660 = vector.load %arg14[%c0_667, %c2_668, %c0_669, %c0_670] : memref<3x3x128x128xf32, #tpu.memory_space<vmem>>, vector<1x1x128x128xf32>
    %661 = vector.shape_cast %660 : vector<1x1x128x128xf32> to vector<128x128xf32>
    %cst_671 = arith.constant dense<0.000000e+00> : vector<16x128xf32>
    %662 = tpu.matmul %659, %661, %cst_671 {dimension_numbers = #tpu.dot_dimension_numbers<[1], [0], [0], [1], [0, 0, 1, 1], [], []>} : vector<16x128xf32>, vector<128x128xf32>, vector<16x128xf32> -> vector<16x128xf32>
    %663 = arith.addf %657, %662 : vector<16x128xf32>
    %c1_672 = arith.constant 1 : index
    %c7_673 = arith.constant 7 : index
    %c0_674 = arith.constant 0 : index
    %664 = vector.load %arg27[%c1_672, %c7_673, %c0_674] : memref<6x20x128xf32, #tpu.memory_space<vmem>>, vector<4x4x128xf32>
    %665 = vector.shape_cast %664 : vector<4x4x128xf32> to vector<16x128xf32>
    %c1_675 = arith.constant 1 : index
    %c0_676 = arith.constant 0 : index
    %c0_677 = arith.constant 0 : index
    %c0_678 = arith.constant 0 : index
    %666 = vector.load %arg14[%c1_675, %c0_676, %c0_677, %c0_678] : memref<3x3x128x128xf32, #tpu.memory_space<vmem>>, vector<1x1x128x128xf32>
    %667 = vector.shape_cast %666 : vector<1x1x128x128xf32> to vector<128x128xf32>
    %cst_679 = arith.constant dense<0.000000e+00> : vector<16x128xf32>
    %668 = tpu.matmul %665, %667, %cst_679 {dimension_numbers = #tpu.dot_dimension_numbers<[1], [0], [0], [1], [0, 0, 1, 1], [], []>} : vector<16x128xf32>, vector<128x128xf32>, vector<16x128xf32> -> vector<16x128xf32>
    %669 = arith.addf %663, %668 : vector<16x128xf32>
    %c1_680 = arith.constant 1 : index
    %c8_681 = arith.constant 8 : index
    %c0_682 = arith.constant 0 : index
    %670 = vector.load %arg27[%c1_680, %c8_681, %c0_682] : memref<6x20x128xf32, #tpu.memory_space<vmem>>, vector<4x4x128xf32>
    %671 = vector.shape_cast %670 : vector<4x4x128xf32> to vector<16x128xf32>
    %c1_683 = arith.constant 1 : index
    %c1_684 = arith.constant 1 : index
    %c0_685 = arith.constant 0 : index
    %c0_686 = arith.constant 0 : index
    %672 = vector.load %arg14[%c1_683, %c1_684, %c0_685, %c0_686] : memref<3x3x128x128xf32, #tpu.memory_space<vmem>>, vector<1x1x128x128xf32>
    %673 = vector.shape_cast %672 : vector<1x1x128x128xf32> to vector<128x128xf32>
    %cst_687 = arith.constant dense<0.000000e+00> : vector<16x128xf32>
    %674 = tpu.matmul %671, %673, %cst_687 {dimension_numbers = #tpu.dot_dimension_numbers<[1], [0], [0], [1], [0, 0, 1, 1], [], []>} : vector<16x128xf32>, vector<128x128xf32>, vector<16x128xf32> -> vector<16x128xf32>
    %675 = arith.addf %669, %674 : vector<16x128xf32>
    %c1_688 = arith.constant 1 : index
    %c9_689 = arith.constant 9 : index
    %c0_690 = arith.constant 0 : index
    %676 = vector.load %arg27[%c1_688, %c9_689, %c0_690] : memref<6x20x128xf32, #tpu.memory_space<vmem>>, vector<4x4x128xf32>
    %677 = vector.shape_cast %676 : vector<4x4x128xf32> to vector<16x128xf32>
    %c1_691 = arith.constant 1 : index
    %c2_692 = arith.constant 2 : index
    %c0_693 = arith.constant 0 : index
    %c0_694 = arith.constant 0 : index
    %678 = vector.load %arg14[%c1_691, %c2_692, %c0_693, %c0_694] : memref<3x3x128x128xf32, #tpu.memory_space<vmem>>, vector<1x1x128x128xf32>
    %679 = vector.shape_cast %678 : vector<1x1x128x128xf32> to vector<128x128xf32>
    %cst_695 = arith.constant dense<0.000000e+00> : vector<16x128xf32>
    %680 = tpu.matmul %677, %679, %cst_695 {dimension_numbers = #tpu.dot_dimension_numbers<[1], [0], [0], [1], [0, 0, 1, 1], [], []>} : vector<16x128xf32>, vector<128x128xf32>, vector<16x128xf32> -> vector<16x128xf32>
    %681 = arith.addf %675, %680 : vector<16x128xf32>
    %c2_696 = arith.constant 2 : index
    %c7_697 = arith.constant 7 : index
    %c0_698 = arith.constant 0 : index
    %682 = vector.load %arg27[%c2_696, %c7_697, %c0_698] : memref<6x20x128xf32, #tpu.memory_space<vmem>>, vector<4x4x128xf32>
    %683 = vector.shape_cast %682 : vector<4x4x128xf32> to vector<16x128xf32>
    %c2_699 = arith.constant 2 : index
    %c0_700 = arith.constant 0 : index
    %c0_701 = arith.constant 0 : index
    %c0_702 = arith.constant 0 : index
    %684 = vector.load %arg14[%c2_699, %c0_700, %c0_701, %c0_702] : memref<3x3x128x128xf32, #tpu.memory_space<vmem>>, vector<1x1x128x128xf32>
    %685 = vector.shape_cast %684 : vector<1x1x128x128xf32> to vector<128x128xf32>
    %cst_703 = arith.constant dense<0.000000e+00> : vector<16x128xf32>
    %686 = tpu.matmul %683, %685, %cst_703 {dimension_numbers = #tpu.dot_dimension_numbers<[1], [0], [0], [1], [0, 0, 1, 1], [], []>} : vector<16x128xf32>, vector<128x128xf32>, vector<16x128xf32> -> vector<16x128xf32>
    %687 = arith.addf %681, %686 : vector<16x128xf32>
    %c2_704 = arith.constant 2 : index
    %c8_705 = arith.constant 8 : index
    %c0_706 = arith.constant 0 : index
    %688 = vector.load %arg27[%c2_704, %c8_705, %c0_706] : memref<6x20x128xf32, #tpu.memory_space<vmem>>, vector<4x4x128xf32>
    %689 = vector.shape_cast %688 : vector<4x4x128xf32> to vector<16x128xf32>
    %c2_707 = arith.constant 2 : index
    %c1_708 = arith.constant 1 : index
    %c0_709 = arith.constant 0 : index
    %c0_710 = arith.constant 0 : index
    %690 = vector.load %arg14[%c2_707, %c1_708, %c0_709, %c0_710] : memref<3x3x128x128xf32, #tpu.memory_space<vmem>>, vector<1x1x128x128xf32>
    %691 = vector.shape_cast %690 : vector<1x1x128x128xf32> to vector<128x128xf32>
    %cst_711 = arith.constant dense<0.000000e+00> : vector<16x128xf32>
    %692 = tpu.matmul %689, %691, %cst_711 {dimension_numbers = #tpu.dot_dimension_numbers<[1], [0], [0], [1], [0, 0, 1, 1], [], []>} : vector<16x128xf32>, vector<128x128xf32>, vector<16x128xf32> -> vector<16x128xf32>
    %693 = arith.addf %687, %692 : vector<16x128xf32>
    %c2_712 = arith.constant 2 : index
    %c9_713 = arith.constant 9 : index
    %c0_714 = arith.constant 0 : index
    %694 = vector.load %arg27[%c2_712, %c9_713, %c0_714] : memref<6x20x128xf32, #tpu.memory_space<vmem>>, vector<4x4x128xf32>
    %695 = vector.shape_cast %694 : vector<4x4x128xf32> to vector<16x128xf32>
    %c2_715 = arith.constant 2 : index
    %c2_716 = arith.constant 2 : index
    %c0_717 = arith.constant 0 : index
    %c0_718 = arith.constant 0 : index
    %696 = vector.load %arg14[%c2_715, %c2_716, %c0_717, %c0_718] : memref<3x3x128x128xf32, #tpu.memory_space<vmem>>, vector<1x1x128x128xf32>
    %697 = vector.shape_cast %696 : vector<1x1x128x128xf32> to vector<128x128xf32>
    %cst_719 = arith.constant dense<0.000000e+00> : vector<16x128xf32>
    %698 = tpu.matmul %695, %697, %cst_719 {dimension_numbers = #tpu.dot_dimension_numbers<[1], [0], [0], [1], [0, 0, 1, 1], [], []>} : vector<16x128xf32>, vector<128x128xf32>, vector<16x128xf32> -> vector<16x128xf32>
    %699 = arith.addf %693, %698 : vector<16x128xf32>
    %c0_720 = arith.constant 0 : index
    %c0_721 = arith.constant 0 : index
    %700 = vector.load %arg15[%c0_720, %c0_721] : memref<1x128xf32, #tpu.memory_space<vmem>>, vector<1x128xf32>
    %701 = vector.broadcast %700 : vector<1x128xf32> to vector<16x128xf32>
    %702 = arith.addf %699, %701 : vector<16x128xf32>
    %cst_722 = arith.constant 0.000000e+00 : f32
    %703 = vector.broadcast %cst_722 : f32 to vector<16x128xf32>
    %704 = arith.maximumf %702, %703 : vector<16x128xf32>
    %705 = vector.shape_cast %704 : vector<16x128xf32> to vector<4x4x128xf32>
    %706 = vector.shape_cast %705 : vector<4x4x128xf32> to vector<16x128xf32>
    %cst_723 = arith.constant dense<0.000000e+00> : vector<128xf32>
    %707 = vector.multi_reduction <add>, %706, %cst_723 [0] : vector<16x128xf32> to vector<128xf32>
    %c0_724 = arith.constant 0 : index
    %c0_725 = arith.constant 0 : index
    %c0_726 = arith.constant 0 : index
    %708 = vector.load %arg19[%c0_724, %c0_725, %c0_726] : memref<1x1x128xf32, #tpu.memory_space<vmem>>, vector<1x1x128xf32>
    %709 = vector.shape_cast %708 : vector<1x1x128xf32> to vector<128xf32>
    %710 = vector.shape_cast %707 : vector<128xf32> to vector<1x1x128xf32>
    tpu.vector_store %arg19[%c0_724, %c0_725, %c0_726], %710 {strides = array<i32>} : memref<1x1x128xf32, #tpu.memory_space<vmem>>, vector<1x1x128xf32>,
    return
  }
  func.func @transform_0(%arg0: i32) -> (i32, i32, i32, i32) {
    %c0_i32 = arith.constant 0 : i32
    %c0_i32_0 = arith.constant 0 : i32
    %c0_i32_1 = arith.constant 0 : i32
    %c0_i32_2 = arith.constant 0 : i32
    return %arg0, %c0_i32, %c0_i32_0, %c0_i32_1 : i32, i32, i32, i32
  }
  func.func @transform_1(%arg0: i32) -> (i32, i32, i32, i32) {
    %c0_i32 = arith.constant 0 : i32
    %c0_i32_0 = arith.constant 0 : i32
    %c0_i32_1 = arith.constant 0 : i32
    %c0_i32_2 = arith.constant 0 : i32
    %c0_i32_3 = arith.constant 0 : i32
    return %c0_i32, %c0_i32_0, %c0_i32_1, %c0_i32_2 : i32, i32, i32, i32
  }
  func.func @transform_2(%arg0: i32) -> (i32, i32) {
    %c0_i32 = arith.constant 0 : i32
    %c0_i32_0 = arith.constant 0 : i32
    %c0_i32_1 = arith.constant 0 : i32
    return %c0_i32, %c0_i32_0 : i32, i32
  }
  func.func @transform_3(%arg0: i32) -> (i32, i32, i32, i32) {
    %c0_i32 = arith.constant 0 : i32
    %c0_i32_0 = arith.constant 0 : i32
    %c0_i32_1 = arith.constant 0 : i32
    %c0_i32_2 = arith.constant 0 : i32
    %c0_i32_3 = arith.constant 0 : i32
    return %c0_i32, %c0_i32_0, %c0_i32_1, %c0_i32_2 : i32, i32, i32, i32
  }
  func.func @transform_4(%arg0: i32) -> (i32, i32) {
    %c0_i32 = arith.constant 0 : i32
    %c0_i32_0 = arith.constant 0 : i32
    %c0_i32_1 = arith.constant 0 : i32
    return %c0_i32, %c0_i32_0 : i32, i32
  }
  func.func @transform_5(%arg0: i32) -> (i32, i32, i32, i32) {
    %c0_i32 = arith.constant 0 : i32
    %c0_i32_0 = arith.constant 0 : i32
    %c0_i32_1 = arith.constant 0 : i32
    %c0_i32_2 = arith.constant 0 : i32
    %c0_i32_3 = arith.constant 0 : i32
    return %c0_i32, %c0_i32_0, %c0_i32_1, %c0_i32_2 : i32, i32, i32, i32
  }
  func.func @transform_6(%arg0: i32) -> (i32, i32, i32, i32) {
    %c0_i32 = arith.constant 0 : i32
    %c0_i32_0 = arith.constant 0 : i32
    %c0_i32_1 = arith.constant 0 : i32
    %c0_i32_2 = arith.constant 0 : i32
    %c0_i32_3 = arith.constant 0 : i32
    return %c0_i32, %c0_i32_0, %c0_i32_1, %c0_i32_2 : i32, i32, i32, i32
  }
  func.func @transform_7(%arg0: i32) -> (i32, i32) {
    %c0_i32 = arith.constant 0 : i32
    %c0_i32_0 = arith.constant 0 : i32
    %c0_i32_1 = arith.constant 0 : i32
    return %c0_i32, %c0_i32_0 : i32, i32
  }
  func.func @transform_8(%arg0: i32) -> (i32, i32, i32, i32) {
    %c0_i32 = arith.constant 0 : i32
    %c0_i32_0 = arith.constant 0 : i32
    %c0_i32_1 = arith.constant 0 : i32
    %c0_i32_2 = arith.constant 0 : i32
    %c0_i32_3 = arith.constant 0 : i32
    return %c0_i32, %c0_i32_0, %c0_i32_1, %c0_i32_2 : i32, i32, i32, i32
  }
  func.func @transform_9(%arg0: i32) -> (i32, i32) {
    %c0_i32 = arith.constant 0 : i32
    %c0_i32_0 = arith.constant 0 : i32
    %c0_i32_1 = arith.constant 0 : i32
    return %c0_i32, %c0_i32_0 : i32, i32
  }
  func.func @transform_10(%arg0: i32) -> (i32, i32, i32, i32) {
    %c0_i32 = arith.constant 0 : i32
    %c0_i32_0 = arith.constant 0 : i32
    %c0_i32_1 = arith.constant 0 : i32
    %c0_i32_2 = arith.constant 0 : i32
    %c0_i32_3 = arith.constant 0 : i32
    return %c0_i32, %c0_i32_0, %c0_i32_1, %c0_i32_2 : i32, i32, i32, i32
  }
  func.func @transform_11(%arg0: i32) -> (i32, i32, i32, i32) {
    %c0_i32 = arith.constant 0 : i32
    %c0_i32_0 = arith.constant 0 : i32
    %c0_i32_1 = arith.constant 0 : i32
    %c0_i32_2 = arith.constant 0 : i32
    %c0_i32_3 = arith.constant 0 : i32
    return %c0_i32, %c0_i32_0, %c0_i32_1, %c0_i32_2 : i32, i32, i32, i32
  }
  func.func @transform_12(%arg0: i32) -> (i32, i32) {
    %c0_i32 = arith.constant 0 : i32
    %c0_i32_0 = arith.constant 0 : i32
    %c0_i32_1 = arith.constant 0 : i32
    return %c0_i32, %c0_i32_0 : i32, i32
  }
  func.func @transform_13(%arg0: i32) -> (i32, i32, i32, i32) {
    %c0_i32 = arith.constant 0 : i32
    %c0_i32_0 = arith.constant 0 : i32
    %c0_i32_1 = arith.constant 0 : i32
    %c0_i32_2 = arith.constant 0 : i32
    %c0_i32_3 = arith.constant 0 : i32
    return %c0_i32, %c0_i32_0, %c0_i32_1, %c0_i32_2 : i32, i32, i32, i32
  }
  func.func @transform_14(%arg0: i32) -> (i32, i32) {
    %c0_i32 = arith.constant 0 : i32
    %c0_i32_0 = arith.constant 0 : i32
    %c0_i32_1 = arith.constant 0 : i32
    return %c0_i32, %c0_i32_0 : i32, i32
  }
  func.func @transform_15(%arg0: i32) -> (i32, i32, i32) {
    %c0_i32 = arith.constant 0 : i32
    %c0_i32_0 = arith.constant 0 : i32
    %c0_i32_1 = arith.constant 0 : i32
    return %arg0, %c0_i32, %c0_i32_0 : i32, i32, i32
  }
  func.func @transform_16(%arg0: i32) -> (i32, i32, i32) {
    %c0_i32 = arith.constant 0 : i32
    %c0_i32_0 = arith.constant 0 : i32
    %c0_i32_1 = arith.constant 0 : i32
    return %arg0, %c0_i32, %c0_i32_0 : i32, i32, i32
  }
  func.func @transform_17(%arg0: i32) -> (i32, i32, i32) {
    %c0_i32 = arith.constant 0 : i32
    %c0_i32_0 = arith.constant 0 : i32
    %c0_i32_1 = arith.constant 0 : i32
    return %arg0, %c0_i32, %c0_i32_0 : i32, i32, i32
  }
  func.func @transform_18(%arg0: i32) -> (i32, i32, i32) {
    %c0_i32 = arith.constant 0 : i32
    %c0_i32_0 = arith.constant 0 : i32
    %c0_i32_1 = arith.constant 0 : i32
    return %arg0, %c0_i32, %c0_i32_0 : i32, i32, i32
  }
}

</mosaic_0001>

<bundles_post_ra>
// kernel: cnn2d_forward.3
= control target key start
LH: loop header
LB: loop body
LE: loop exit
PB: predicated region body
PF: predicated region fallthrough
CT: control target
= control target key end

     0   :  { %v84_v0 = vlaneseq  ;;  %v2300_v4 = vmov 0.0   ;;  %v2301_v5 = vmov 1966171168   ;;  %vm95_vm0 = vcmask 261120   ;;  %s3271_s6 = inlined_call_operand.vmem [shape: f32[32,640], index: 6, kind: input, shape index: {}]   ;;  %s3272_s1 = inlined_call_operand.vmem [shape: f32[2,1,32], index: 1, kind: input, shape index: {}]   ;;  %s3273_s5 = inlined_call_operand.vmem [shape: f32[16,640], index: 5, kind: input, shape index: {}]   ;;  %s3274_s0 = inlined_call_operand.vmem [shape: f32[2,1,16], index: 0, kind: input, shape index: {}]   ;;  %s3275_s7 = inlined_call_operand.vmem [shape: f32[64,640], index: 7, kind: input, shape index: {}]   ;;  %s3276_s2 = inlined_call_operand.vmem [shape: f32[2,1,64], index: 2, kind: input, shape index: {}]   ;;  %s3277_s8 = inlined_call_operand.vmem [shape: f32[128,640], index: 8, kind: input, shape index: {}]   ;;  %s3278_s3 = inlined_call_operand.vmem [shape: f32[2,1,128], index: 3, kind: input, shape index: {}]   ;;  %s3279_s9 = inlined_call_operand.vmem [shape: f32[37,640], index: 9, kind: input, shape index: {}]   ;;  %s3280_s4 = inlined_call_operand.vmem [shape: f32[2,37], index: 4, kind: input, shape index: {}]   ;;  %s3281_s11 = inlined_call_operand.vmem [shape: f32[640,128], index: 11, kind: input, shape index: {}]   ;;  %s3282_s10 = inlined_call_operand.vmem [shape: f32[1,640], index: 10, kind: input, shape index: {}]   ;;  %s3283_s12 = inlined_call_operand.vmem [shape: f32[1,128], index: 12, kind: input, shape index: {}]   ;;  %s3284_s13 = inlined_call_operand.vmem [shape: f32[2,128], index: 13, kind: output, shape index: {}]  }
   0x1   :  { %v59_v1 = vld [vmem:[%s3271_s6 + $0x8] sm:$0xff]  ;;  %v64_v2 = vld [vmem:[%s3271_s6 + $0x30] sm:$0xff]  ;;  %v61_v3 = vld [vmem:[%s3271_s6 + $0x18] sm:$0xff]  ;;  %233 = vmatprep.mubr.f32.mxu1 %v2300_v4  ;;  %162 = vmatprep.mubr.f32.mxu0 %v2300_v4  ;;  %v82_v6 = vunpack.c.l.s4 %v2301_v5  ;;  %v2302_v42 = vmov 0.0|0.0   ;;  %vm2303_vm1 = vmmov 0   ;;  %vm327_vm2 = vcmask 130048  }
   0x2   :  { %v2005_v7 = vpack.c.bf16 %v64_v2, %v59_v1  ;;  %v66_v8 = vld [vmem:[%s3271_s6 + $0x40] sm:$0xff]  ;;  %v63_v10 = vld [vmem:[%s3271_s6 + $0x28] sm:$0xff]  ;;  %v2394_v11 = vshrl.u32 %v84_v0, 7  ;;  %v60_v14 = vld [vmem:[%s3271_s6 + $0x10] sm:$0xff]  ;;  %vm601_vm3 = vcmask 523264   ;;  %vm1168_vm4 = vcmask 1044480  }
   0x3   :  { %v58_v9 = vld [vmem:[%s3271_s6] sm:$0xff]  ;;  %v2013_v12 = vpack.c.bf16 %v66_v8, %v61_v3  ;;  %v65_v15 = vld [vmem:[%s3271_s6 + $0x38] sm:$0xff]  ;;  %v83_v17 = vunpack.c.0.s8 %v82_v6  ;;  %v71_v20 = vld [vmem:[%s3271_s6 + $0x68] sm:$0xff]  ;;  %vm1164_vm5 = vcmask 302080  }
   0x4   :  { %v2007_v13 = vpack.c.bf16 %v63_v10, %v58_v9  ;;  %v69_v16 = vld [vmem:[%s3271_s6 + $0x58] sm:$0xff]  ;;  %2006 = vmatprep.subr.bf16.mxu0 %v2005_v7  ;;  %v2015_v18 = vpack.c.bf16 %v65_v15, %v60_v14  ;;  %v74_v19 = vld [vmem:[%s3271_s6 + $0x80] sm:$0xff]  ;;  %v76_v21 = vld [vmem:[%s3271_s6 + $0x90] sm:$0xff] }
   0x5   :  { %2014 = vmatprep.subr.bf16.mxu1 %v2013_v12  ;;  %v2009_v22 = vpack.c.bf16 %v74_v19, %v69_v16  ;;  %v2017_v23 = vpack.c.bf16 %v76_v21, %v71_v20  ;;  %v68_v24 = vld [vmem:[%s3271_s6 + $0x50] sm:$0xff]  ;;  %v73_v25 = vld [vmem:[%s3271_s6 + $0x78] sm:$0xff]  ;;  %v70_v26 = vld [vmem:[%s3271_s6 + $0x60] sm:$0xff]  ;;  %v2424_v27 = vsub.s32 %v83_v17, %v2394_v11 }
   0x6   :  { %2008 = vmatpush1.bf16.msra.mxu0 %v2007_v13  ;;  %2016 = vmatpush1.bf16.msra.mxu1 %v2015_v18  ;;  %v2011_v28 = vpack.c.bf16 %v73_v25, %v68_v24  ;;  %v75_v29 = vld [vmem:[%s3271_s6 + $0x88] sm:$0xff]  ;;  %v56_v30 = vld [vmem:[%s3272_s1] sm:$0x1]  ;;  %v57_v31 = vld [vmem:[%s3272_s1 + $0x1] sm:$0x1] }
   0x7   :  { %2010 = vmatprep.subr.bf16.mxu0 %v2009_v22  ;;  %2018 = vmatprep.subr.bf16.mxu1 %v2017_v23  ;;  %v2019_v32 = vpack.c.bf16 %v75_v29, %v70_v26  ;;  %v80_v33 = vcombine.low %v56_v30, %v57_v31  ;;  %v62_v34 = vld [vmem:[%s3271_s6 + $0x20] sm:$0xff]  ;;  %v67_v35 = vld [vmem:[%s3271_s6 + $0x48] sm:$0xff]  ;;  %v49_v36 = vld [vmem:[%s3273_s5 + $0x18] sm:$0xff] }
   0x8   :  { %v54_v37 = vld [vmem:[%s3273_s5 + $0x40] sm:$0xff]  ;;  %v48_v38 = vld [vmem:[%s3273_s5 + $0x10] sm:$0xff]  ;;  %v53_v39 = vld [vmem:[%s3273_s5 + $0x38] sm:$0xff]  ;;  %v2022_v43 = vpack.c.bf16 %v67_v35, %v62_v34 }
   0x9   :  { %v87_v40 = vrot.slane %v80_v33, %v2424_v27  ;;  %v2031_v41 = vpack.c.bf16 %v54_v37, %v49_v36  ;;  %v2033_v44 = vpack.c.bf16 %v53_v39, %v48_v38  ;;  %v44_v45 = vld [vmem:[%s3274_s0] sm:$0x1]  ;;  %v45_v46 = vld [vmem:[%s3274_s0 + $0x1] sm:$0x1]  ;;  %v72_v48 = vld [vmem:[%s3271_s6 + $0x70] sm:$0xff] }
   0xa   :  { %2012 = vmatpush1.bf16.msra.mxu0 %v2011_v28  ;;  %2020 = vmatpush1.bf16.msra.mxu1 %v2019_v32  ;;  %v77_v49 = vld [vmem:[%s3271_s6 + $0x98] sm:$0xff]  ;;  %v312_v50 = vcombine.low %v44_v45, %v45_v46  ;;  %v47_v51 = vld [vmem:[%s3273_s5 + $0x8] sm:$0xff]  ;;  %v52_v52 = vld [vmem:[%s3273_s5 + $0x30] sm:$0xff] }
   0xb   :  { %2021 = vmatprep.subr.bf16.mxu0 %v2302_v42  ;;  %v94_v47 = vrot.slane %v87_v40, %v2424_v27  ;;  %2032 = vmatprep.subr.bf16.mxu1 %v2031_v41  ;;  %v2025_v54 = vpack.c.bf16 %v77_v49, %v72_v48  ;;  %v50_v55 = vld [vmem:[%s3273_s5 + $0x20] sm:$0xff]  ;;  %v2027_v56 = vpack.c.bf16 %v52_v52, %v47_v51  ;;  %v55_v57 = vld [vmem:[%s3273_s5 + $0x48] sm:$0xff]  ;;  %v547_v60 = vld [vmem:[%s3275_s7 + $0x18] sm:$0xff] }
   0xc   :  { %v319_v53 = vrot.slane %v312_v50, %v2424_v27  ;;  %v46_v58 = vld [vmem:[%s3273_s5] sm:$0xff]  ;;  %v51_v59 = vld [vmem:[%s3273_s5 + $0x28] sm:$0xff]  ;;  %v550_v0 = vld [vmem:[%s3275_s7 + $0x30] sm:$0xff]  ;;  %v2036_v1 = vpack.c.bf16 %v55_v57, %v50_v55 }
   0xd   :  { %1741 = vmatmul.mubr.msk.f32.vlgmr.msra.gmra.mrb[0].mxu1 %vm95_vm0, %v94_v47  ;;  %1740 = vmatmul.mubr.msk.f32.vlgmr.msra.gmra.mrb[0].mxu0 %vm95_vm0, %v94_v47  ;;  %v552_v61 = vld [vmem:[%s3275_s7 + $0x40] sm:$0xff]  ;;  %v545_v63 = vld [vmem:[%s3275_s7 + $0x8] sm:$0xff]  ;;  %v2029_v2 = vpack.c.bf16 %v51_v59, %v46_v58  ;;  %v546_v3 = vld [vmem:[%s3275_s7 + $0x10] sm:$0xff] }
   0xe   :  { %2023 = vmatpush3.bf16.msra.mxu0 %v2022_v43  ;;  %2034 = vmatpush1.bf16.msra.mxu1 %v2033_v44  ;;  %v326_v62 = vrot.slane %v319_v53, %v2424_v27  ;;  %v551_v5 = vld [vmem:[%s3275_s7 + $0x38] sm:$0xff]  ;;  %v2054_v6 = vpack.c.bf16 %v552_v61, %v547_v60  ;;  %v544_v7 = vld [vmem:[%s3275_s7] sm:$0xff]  ;;  %v549_v8 = vld [vmem:[%s3275_s7 + $0x28] sm:$0xff]  ;;  %v2038_v10 = vpack.c.bf16 %v550_v0, %v545_v63 }
   0xf   :  { %2024 = vmatprep.subr.bf16.mxu0 %v2302_v42  ;;  %1893 = vmatprep.mubr.msk.f32.mxu0 %vm2303_vm1, %v2300_v4  ;;  %v557_v9 = vld [vmem:[%s3275_s7 + $0x68] sm:$0xff]  ;;  %v562_v12 = vld [vmem:[%s3275_s7 + $0x90] sm:$0xff]  ;;  %v555_v13 = vld [vmem:[%s3275_s7 + $0x58] sm:$0xff]  ;;  %v2056_v15 = vpack.c.bf16 %v551_v5, %v546_v3  ;;  %v2040_v16 = vpack.c.bf16 %v549_v8, %v544_v7 }
  0x10   :  { %465 = vmatprep.mubr.f32.mxu1 %v2300_v4  ;;  %2035 = vmatprep.subr.bf16.mxu1 %v2302_v42  ;;  %v560_v14 = vld [vmem:[%s3275_s7 + $0x80] sm:$0xff]  ;;  %v561_v18 = vld [vmem:[%s3275_s7 + $0x88] sm:$0xff]  ;;  %v2058_v19 = vpack.c.bf16 %v562_v12, %v557_v9  ;;  %v554_v21 = vld [vmem:[%s3275_s7 + $0x50] sm:$0xff] }
  0x11   :  { %v556_v17 = vld [vmem:[%s3275_s7 + $0x60] sm:$0xff]  ;;  %v2042_v20 = vpack.c.bf16 %v560_v14, %v555_v13  ;;  %v559_v22 = vld [vmem:[%s3275_s7 + $0x78] sm:$0xff]  ;;  %v565_v25 = vld [vmem:[%s3275_s7 + $0xa8] sm:$0xff] }
  0x12   :  { %2026 = vmatpush3.bf16.msra.mxu0 %v2025_v54  ;;  %v567_v23 = vld [vmem:[%s3275_s7 + $0xb8] sm:$0xff]  ;;  %v572_v24 = vld [vmem:[%s3275_s7 + $0xe0] sm:$0xff]  ;;  %v570_v26 = vld [vmem:[%s3275_s7 + $0xd0] sm:$0xff]  ;;  %v2060_v29 = vpack.c.bf16 %v561_v18, %v556_v17  ;;  %v2044_v30 = vpack.c.bf16 %v559_v22, %v554_v21 }
  0x13   :  { %2028 = vmatprep.subr.bf16.mxu0 %v2027_v56  ;;  %v566_v28 = vld [vmem:[%s3275_s7 + $0xb0] sm:$0xff]  ;;  %v571_v31 = vld [vmem:[%s3275_s7 + $0xd8] sm:$0xff]  ;;  %v542_v32 = vld [vmem:[%s3276_s2] sm:$0x1]  ;;  %v2062_v34 = vpack.c.bf16 %v572_v24, %v567_v23  ;;  %v2046_v35 = vpack.c.bf16 %v570_v26, %v565_v25 }
  0x14   :  { %v543_v33 = vld [vmem:[%s3276_s2 + $0x1] sm:$0x1]  ;;  %v569_v37 = vld [vmem:[%s3275_s7 + $0xc8] sm:$0xff]  ;;  %v582_v39 = vld [vmem:[%s3275_s7 + $0x130] sm:$0xff]  ;;  %v2064_v44 = vpack.c.bf16 %v571_v31, %v566_v28 }
  0x15   :  { %1894 = vmatmul.mubr.msk.f32.vlgmr.msra.gmra.mrb[2].mxu0 %vm95_vm0, %v94_v47  ;;  %1744 = vmatmul.mubr.msk.f32.vlgmr.msra.gmra.mrb[0].mxu1 %vm327_vm2, %v326_v62  ;;  %v564_v36 = vld [vmem:[%s3275_s7 + $0xa0] sm:$0xff]  ;;  %v577_v38 = vld [vmem:[%s3275_s7 + $0x108] sm:$0xff]  ;;  %v575_v40 = vld [vmem:[%s3275_s7 + $0xf8] sm:$0xff]  ;;  %v586_v43 = vcombine.low %v542_v32, %v543_v33 }
  0x16   :  { %2037 = vmatpush3.bf16.msra.mxu1 %v2036_v1  ;;  %2030 = vmatpush1.bf16.msra.mxu0 %v2029_v2  ;;  %v580_v41 = vld [vmem:[%s3275_s7 + $0x120] sm:$0xff]  ;;  %v2048_v45 = vpack.c.bf16 %v569_v37, %v564_v36  ;;  %v2066_v47 = vpack.c.bf16 %v582_v39, %v577_v38  ;;  %v581_v49 = vld [vmem:[%s3275_s7 + $0x128] sm:$0xff]  ;;  %v574_v50 = vld [vmem:[%s3275_s7 + $0xf0] sm:$0xff] }
  0x17   :  { %1900 = vmatprep.mubr.msk.f32.mxu1 %vm2303_vm1, %v2300_v4  ;;  %2055 = vmatprep.subr.bf16.mxu1 %v2054_v6  ;;  %v576_v46 = vld [vmem:[%s3275_s7 + $0x100] sm:$0xff]  ;;  %v2050_v48 = vpack.c.bf16 %v580_v41, %v575_v40  ;;  %v579_v51 = vld [vmem:[%s3275_s7 + $0x118] sm:$0xff]  ;;  %v824_v52 = vld [vmem:[%s3277_s8 + $0x8] sm:$0xff]  ;;  %v593_v54 = vrot.slane %v586_v43, %v2424_v27 }
  0x18   :  { %394 = vmatprep.mubr.f32.mxu0 %v2300_v4  ;;  %2039 = vmatprep.subr.bf16.mxu0 %v2038_v10  ;;  %v829_v53 = vld [vmem:[%s3277_s8 + $0x30] sm:$0xff]  ;;  %v2068_v55 = vpack.c.bf16 %v581_v49, %v576_v46  ;;  %v2052_v56 = vpack.c.bf16 %v579_v51, %v574_v50  ;;  %v548_v57 = vld [vmem:[%s3275_s7 + $0x20] sm:$0xff]  ;;  %v553_v58 = vld [vmem:[%s3275_s7 + $0x48] sm:$0xff] }
  0x19   :  { %1901 = vmatmul.mubr.msk.f32.vlgmr.msra.gmra.mrb[2].mxu1 %vm327_vm2, %v326_v62  ;;  %1743 = vmatmul.mubr.msk.f32.vlgmr.msra.gmra.mrb[0].mxu0 %vm327_vm2, %v326_v62  ;;  %v2082_v59 = vpack.c.bf16 %v829_v53, %v824_v52  ;;  %v823_v60 = vld [vmem:[%s3277_s8] sm:$0xff]  ;;  %v828_v61 = vld [vmem:[%s3277_s8 + $0x28] sm:$0xff]  ;;  %v834_v62 = vld [vmem:[%s3277_s8 + $0x58] sm:$0xff]  ;;  %v2632_v0 = vrot.slane %v593_v54, %v2424_v27  ;;  %v2071_v1 = vpack.c.bf16 %v553_v58, %v548_v57 }
  0x1a   :  { %2057 = vmatpush1.bf16.msra.mxu1 %v2056_v15  ;;  %2041 = vmatpush1.bf16.msra.mxu0 %v2040_v16  ;;  %v839_v63 = vld [vmem:[%s3277_s8 + $0x80] sm:$0xff]  ;;  %v2084_v2 = vpack.c.bf16 %v828_v61, %v823_v60  ;;  %v558_v3 = vld [vmem:[%s3275_s7 + $0x70] sm:$0xff]  ;;  %v563_v5 = vld [vmem:[%s3275_s7 + $0x98] sm:$0xff] }
  0x1b   :  { %2059 = vmatprep.subr.bf16.mxu1 %v2058_v19  ;;  %2043 = vmatprep.subr.bf16.mxu0 %v2042_v20  ;;  %v2086_v6 = vpack.c.bf16 %v839_v63, %v834_v62  ;;  %v833_v7 = vld [vmem:[%s3277_s8 + $0x50] sm:$0xff]  ;;  %v838_v8 = vld [vmem:[%s3277_s8 + $0x78] sm:$0xff]  ;;  %v844_v9 = vld [vmem:[%s3277_s8 + $0xa8] sm:$0xff]  ;;  %v2074_v12 = vpack.c.bf16 %v563_v5, %v558_v3 }
  0x1c   :  { %739 = vmatprep.mubr.f32.mxu1 %v2300_v4  ;;  %668 = vmatprep.mubr.f32.mxu0 %v2300_v4  ;;  %v849_v10 = vld [vmem:[%s3277_s8 + $0xd0] sm:$0xff]  ;;  %v2088_v13 = vpack.c.bf16 %v838_v8, %v833_v7  ;;  %v568_v14 = vld [vmem:[%s3275_s7 + $0xc0] sm:$0xff]  ;;  %v573_v15 = vld [vmem:[%s3275_s7 + $0xe8] sm:$0xff] }
  0x1d   :  { %v2090_v16 = vpack.c.bf16 %v849_v10, %v844_v9  ;;  %v843_v17 = vld [vmem:[%s3277_s8 + $0xa0] sm:$0xff]  ;;  %v848_v18 = vld [vmem:[%s3277_s8 + $0xc8] sm:$0xff]  ;;  %v854_v19 = vld [vmem:[%s3277_s8 + $0xf8] sm:$0xff]  ;;  %v2077_v21 = vpack.c.bf16 %v573_v15, %v568_v14 }
  0x1e   :  { %2061 = vmatpush1.bf16.msra.mxu1 %v2060_v29  ;;  %2045 = vmatpush1.bf16.msra.mxu0 %v2044_v30  ;;  %v859_v20 = vld [vmem:[%s3277_s8 + $0x120] sm:$0xff]  ;;  %v2092_v22 = vpack.c.bf16 %v848_v18, %v843_v17  ;;  %v578_v23 = vld [vmem:[%s3275_s7 + $0x110] sm:$0xff]  ;;  %v583_v24 = vld [vmem:[%s3275_s7 + $0x138] sm:$0xff] }
  0x1f   :  { %2063 = vmatprep.subr.bf16.mxu1 %v2062_v34  ;;  %2047 = vmatprep.subr.bf16.mxu0 %v2046_v35  ;;  %v2094_v25 = vpack.c.bf16 %v859_v20, %v854_v19  ;;  %v853_v26 = vld [vmem:[%s3277_s8 + $0xf0] sm:$0xff]  ;;  %v858_v28 = vld [vmem:[%s3277_s8 + $0x118] sm:$0xff]  ;;  %v831_v30 = vld [vmem:[%s3277_s8 + $0x40] sm:$0xff]  ;;  %v2080_v33 = vpack.c.bf16 %v583_v24, %v578_v23 }
  0x20   :  { %v826_v29 = vld [vmem:[%s3277_s8 + $0x18] sm:$0xff]  ;;  %v864_v31 = vld [vmem:[%s3277_s8 + $0x148] sm:$0xff]  ;;  %v869_v32 = vld [vmem:[%s3277_s8 + $0x170] sm:$0xff]  ;;  %v2096_v34 = vpack.c.bf16 %v858_v28, %v853_v26 }
  0x21   :  { %v825_v35 = vld [vmem:[%s3277_s8 + $0x10] sm:$0xff]  ;;  %v830_v36 = vld [vmem:[%s3277_s8 + $0x38] sm:$0xff]  ;;  %v2114_v37 = vpack.c.bf16 %v831_v30, %v826_v29  ;;  %v2098_v38 = vpack.c.bf16 %v869_v32, %v864_v31  ;;  %v863_v39 = vld [vmem:[%s3277_s8 + $0x140] sm:$0xff] }
  0x22   :  { %2065 = vmatpush1.bf16.msra.mxu1 %v2064_v44  ;;  %2049 = vmatpush1.bf16.msra.mxu0 %v2048_v45  ;;  %v868_v40 = vld [vmem:[%s3277_s8 + $0x168] sm:$0xff]  ;;  %v841_v43 = vld [vmem:[%s3277_s8 + $0x90] sm:$0xff]  ;;  %v874_v44 = vld [vmem:[%s3277_s8 + $0x198] sm:$0xff]  ;;  %v2116_v46 = vpack.c.bf16 %v830_v36, %v825_v35 }
  0x23   :  { %2067 = vmatprep.subr.bf16.mxu1 %v2066_v47  ;;  %2051 = vmatprep.subr.bf16.mxu0 %v2050_v48  ;;  %v836_v41 = vld [vmem:[%s3277_s8 + $0x68] sm:$0xff]  ;;  %v879_v45 = vld [vmem:[%s3277_s8 + $0x1c0] sm:$0xff]  ;;  %v2100_v47 = vpack.c.bf16 %v868_v40, %v863_v39  ;;  %v873_v52 = vld [vmem:[%s3277_s8 + $0x190] sm:$0xff] }
  0x24   :  { %v835_v48 = vld [vmem:[%s3277_s8 + $0x60] sm:$0xff]  ;;  %v840_v49 = vld [vmem:[%s3277_s8 + $0x88] sm:$0xff]  ;;  %v2118_v50 = vpack.c.bf16 %v841_v43, %v836_v41  ;;  %v2102_v51 = vpack.c.bf16 %v879_v45, %v874_v44  ;;  %v878_v53 = vld [vmem:[%s3277_s8 + $0x1b8] sm:$0xff] }
  0x25   :  { %v846_v54 = vld [vmem:[%s3277_s8 + $0xb8] sm:$0xff]  ;;  %v889_v57 = vld [vmem:[%s3277_s8 + $0x210] sm:$0xff]  ;;  %v2104_v60 = vpack.c.bf16 %v878_v53, %v873_v52  ;;  %v821_v62 = vld [vmem:[%s3278_s3] sm:$0x1] }
  0x26   :  { %2069 = vmatpush1.bf16.msra.mxu1 %v2068_v55  ;;  %2053 = vmatpush1.bf16.msra.mxu0 %v2052_v56  ;;  %v851_v55 = vld [vmem:[%s3277_s8 + $0xe0] sm:$0xff]  ;;  %v884_v56 = vld [vmem:[%s3277_s8 + $0x1e8] sm:$0xff]  ;;  %v845_v58 = vld [vmem:[%s3277_s8 + $0xb0] sm:$0xff] }
  0x27   :  { %2070 = vmatprep.subr.bf16.mxu1 %v2302_v42  ;;  %2083 = vmatprep.subr.bf16.mxu0 %v2082_v59  ;;  %v2120_v59 = vpack.c.bf16 %v840_v49, %v835_v48  ;;  %v850_v61 = vld [vmem:[%s3277_s8 + $0xd8] sm:$0xff]  ;;  %v822_v63 = vld [vmem:[%s3278_s3 + $0x1] sm:$0x1]  ;;  %v888_v3 = vld [vmem:[%s3277_s8 + $0x208] sm:$0xff] }
  0x28   :  { %v856_v5 = vld [vmem:[%s3277_s8 + $0x108] sm:$0xff]  ;;  %v894_v7 = vld [vmem:[%s3277_s8 + $0x238] sm:$0xff]  ;;  %v899_v8 = vld [vmem:[%s3277_s8 + $0x260] sm:$0xff]  ;;  %v905_v9 = vcombine.low %v821_v62, %v822_v63  ;;  %v2124_v10 = vpack.c.bf16 %v850_v61, %v845_v58 }
  0x29   :  { %1747 = vmatmul.mubr.msk.f32.vlgmr.msra.gmra.mrb[0].mxu1 %vm601_vm3, %v2632_v0  ;;  %1746 = vmatmul.mubr.msk.f32.vlgmr.msra.gmra.mrb[0].mxu0 %vm601_vm3, %v2632_v0  ;;  %v2110_v15 = vpack.c.bf16 %v899_v8, %v894_v7  ;;  %v893_v17 = vld [vmem:[%s3277_s8 + $0x230] sm:$0xff]  ;;  %v898_v18 = vld [vmem:[%s3277_s8 + $0x258] sm:$0xff]  ;;  %v871_v20 = vld [vmem:[%s3277_s8 + $0x180] sm:$0xff] }
  0x2a   :  { %2072 = vmatpush3.bf16.msra.mxu1 %v2071_v1  ;;  %2085 = vmatpush1.bf16.msra.mxu0 %v2084_v2  ;;  %v2106_v1 = vpack.c.bf16 %v889_v57, %v884_v56  ;;  %v883_v2 = vld [vmem:[%s3277_s8 + $0x1e0] sm:$0xff]  ;;  %v866_v19 = vld [vmem:[%s3277_s8 + $0x158] sm:$0xff]  ;;  %v2112_v23 = vpack.c.bf16 %v898_v18, %v893_v17  ;;  %v865_v24 = vld [vmem:[%s3277_s8 + $0x150] sm:$0xff] }
  0x2b   :  { %2073 = vmatprep.subr.bf16.mxu1 %v2302_v42  ;;  %2087 = vmatprep.subr.bf16.mxu0 %v2086_v6  ;;  %v861_v6 = vld [vmem:[%s3277_s8 + $0x130] sm:$0xff]  ;;  %v870_v26 = vld [vmem:[%s3277_s8 + $0x178] sm:$0xff]  ;;  %v827_v28 = vld [vmem:[%s3277_s8 + $0x20] sm:$0xff] }
  0x2c   :  { %1919 = vmatprep.mubr.msk.f32.mxu1 %vm2303_vm1, %v2300_v4  ;;  %985 = vmatprep.mubr.f32.mxu0 %v2300_v4  ;;  %v2126_v14 = vpack.c.bf16 %v861_v6, %v856_v5  ;;  %v832_v29 = vld [vmem:[%s3277_s8 + $0x48] sm:$0xff]  ;;  %v881_v31 = vld [vmem:[%s3277_s8 + $0x1d0] sm:$0xff]  ;;  %v875_v35 = vld [vmem:[%s3277_s8 + $0x1a0] sm:$0xff] }
  0x2d   :  { %v876_v30 = vld [vmem:[%s3277_s8 + $0x1a8] sm:$0xff]  ;;  %v886_v39 = vld [vmem:[%s3277_s8 + $0x1f8] sm:$0xff]  ;;  %v891_v40 = vld [vmem:[%s3277_s8 + $0x220] sm:$0xff] }
  0x2e   :  { %2075 = vmatpush3.bf16.msra.mxu1 %v2074_v12  ;;  %2089 = vmatpush1.bf16.msra.mxu0 %v2088_v13  ;;  %v2108_v12 = vpack.c.bf16 %v888_v3, %v883_v2  ;;  %v855_v13 = vld [vmem:[%s3277_s8 + $0x100] sm:$0xff]  ;;  %v2134_v36 = vpack.c.bf16 %v881_v31, %v876_v30  ;;  %v885_v44 = vld [vmem:[%s3277_s8 + $0x1f0] sm:$0xff]  ;;  %v2138_v45 = vpack.c.bf16 %v891_v40, %v886_v39  ;;  %v852_v48 = vld [vmem:[%s3277_s8 + $0xe8] sm:$0xff] }
  0x2f   :  { %2076 = vmatprep.subr.bf16.mxu1 %v2302_v42  ;;  %2091 = vmatprep.subr.bf16.mxu0 %v2090_v16  ;;  %v860_v16 = vld [vmem:[%s3277_s8 + $0x128] sm:$0xff]  ;;  %v895_v53 = vld [vmem:[%s3277_s8 + $0x240] sm:$0xff]  ;;  %v857_v56 = vld [vmem:[%s3277_s8 + $0x110] sm:$0xff] }
  0x30   :  { %v896_v49 = vld [vmem:[%s3277_s8 + $0x248] sm:$0xff]  ;;  %v862_v57 = vld [vmem:[%s3277_s8 + $0x138] sm:$0xff]  ;;  %v1143_v62 = vld [vmem:[%s3279_s9 + $0x20] sm:$0xff] }
  0x31   :  { %v872_v61 = vld [vmem:[%s3277_s8 + $0x188] sm:$0xff]  ;;  %v882_v3 = vld [vmem:[%s3277_s8 + $0x1d8] sm:$0xff]  ;;  %v1153_v5 = vld [vmem:[%s3279_s9 + $0x70] sm:$0xff] }
  0x32   :  { %2078 = vmatpush3.bf16.msra.mxu1 %v2077_v21  ;;  %2093 = vmatpush1.bf16.msra.mxu0 %v2092_v22  ;;  %v912_v21 = vrot.slane %v905_v9, %v2424_v27  ;;  %v2128_v22 = vpack.c.bf16 %v860_v16, %v855_v13  ;;  %v1148_v63 = vld [vmem:[%s3279_s9 + $0x48] sm:$0xff]  ;;  %v1158_v6 = vld [vmem:[%s3279_s9 + $0x98] sm:$0xff]  ;;  %v887_v9 = vld [vmem:[%s3277_s8 + $0x200] sm:$0xff] }
  0x33   :  { %2079 = vmatprep.subr.bf16.mxu1 %v2302_v42  ;;  %2095 = vmatprep.subr.bf16.mxu0 %v2094_v25  ;;  %v2130_v25 = vpack.c.bf16 %v871_v20, %v866_v19  ;;  %v2187_v2 = vpack.c.bf16 %v1148_v63, %v1143_v62  ;;  %v2190_v8 = vpack.c.bf16 %v1158_v6, %v1153_v5  ;;  %v897_v13 = vld [vmem:[%s3277_s8 + $0x250] sm:$0xff]  ;;  %v1140_v16 = vld [vmem:[%s3279_s9 + $0x8] sm:$0xff]  ;;  %v1138_v18 = vld [vmem:[%s3280_s4] sm:$0x3] }
  0x34   :  { %v2824_v32 = vrot.slane %v912_v21, %v2424_v27  ;;  %v837_v27 = vld [vmem:[%s3277_s8 + $0x70] sm:$0xff]  ;;  %v1139_v21 = vld [vmem:[%s3279_s9] sm:$0xff]  ;;  %v1160_v31 = vld [vmem:[%s3279_s9 + $0xa8] sm:$0x1f] }
  0x35   :  { %v1145_v17 = vld [vmem:[%s3279_s9 + $0x30] sm:$0xff]  ;;  %v1442_v62 = vld [vmem:[%s3281_s11 + $0x20] sm:$0xff]  ;;  %v1443_v63 = vld [vmem:[%s3281_s11 + $0x28] sm:$0xff] }
  0x36   :  { %2081 = vmatpush3.bf16.msra.mxu1 %v2080_v33  ;;  %2097 = vmatpush1.bf16.msra.mxu0 %v2096_v34  ;;  %v2132_v33 = vpack.c.bf16 %v870_v26, %v865_v24  ;;  %v2147_v34 = vpack.c.bf16 %v832_v29, %v827_v28  ;;  %v2170_v20 = vpack.c.bf16 %v1145_v17, %v1140_v16  ;;  %v1155_v24 = vld [vmem:[%s3279_s9 + $0x80] sm:$0xff]  ;;  %v1149_v28 = vld [vmem:[%s3279_s9 + $0x50] sm:$0xff]  ;;  %v1154_v29 = vld [vmem:[%s3279_s9 + $0x78] sm:$0xff] }
  0x37   :  { %2115 = vmatprep.subr.bf16.mxu1 %v2114_v37  ;;  %2099 = vmatprep.subr.bf16.mxu0 %v2098_v38  ;;  %v880_v37 = vld [vmem:[%s3277_s8 + $0x1c8] sm:$0xff]  ;;  %v842_v38 = vld [vmem:[%s3277_s8 + $0x98] sm:$0xff]  ;;  %v2176_v30 = vpack.c.bf16 %v1154_v29, %v1149_v28  ;;  %v1470_v5 = vld [vmem:[%s3281_s11 + $0x100] sm:$0xff]  ;;  %v2202_v6 = vpack.c.bf16 %v1443_v63, %v1442_v62 }
  0x38   :  { %v2136_v41 = vpack.c.bf16 %v880_v37, %v875_v35  ;;  %v2150_v43 = vpack.c.bf16 %v842_v38, %v837_v27  ;;  %v1146_v35 = vld [vmem:[%s3279_s9 + $0x38] sm:$0xff]  ;;  %v1157_v37 = vld [vmem:[%s3279_s9 + $0x90] sm:$0xff]  ;;  %v1159_v27 = vld [vmem:[%s3279_s9 + $0xa0] sm:$0x1f] }
  0x39   :  { %1920 = vmatmul.mubr.msk.f32.vlgmr.msra.gmra.mrb[4].mxu1 %vm601_vm3, %v2632_v0  ;;  %v2122_v0 = vpack.c.bf16 %v851_v55, %v846_v54  ;;  %v900_v55 = vld [vmem:[%s3277_s8 + $0x268] sm:$0xff]  ;;  %v1464_v28 = vld [vmem:[%s3281_s11 + $0xd0] sm:$0xff]  ;;  %v1465_v29 = vld [vmem:[%s3281_s11 + $0xd8] sm:$0xff] }
  0x3a   :  { %2117 = vmatpush1.bf16.msra.mxu1 %v2116_v46  ;;  %2101 = vmatpush1.bf16.msra.mxu0 %v2100_v47  ;;  %v890_v46 = vld [vmem:[%s3277_s8 + $0x218] sm:$0xff]  ;;  %v847_v47 = vld [vmem:[%s3277_s8 + $0xc0] sm:$0xff]  ;;  %v2144_v58 = vpack.c.bf16 %v900_v55, %v895_v53  ;;  %v1456_v53 = vld [vmem:[%s3281_s11 + $0x90] sm:$0xff] }
  0x3b   :  { %2119 = vmatprep.subr.bf16.mxu1 %v2118_v50  ;;  %2103 = vmatprep.subr.bf16.mxu0 %v2102_v51  ;;  %v901_v50 = vld [vmem:[%s3277_s8 + $0x270] sm:$0xff]  ;;  %v2140_v51 = vpack.c.bf16 %v890_v46, %v885_v44  ;;  %v2153_v52 = vpack.c.bf16 %v852_v48, %v847_v47  ;;  %v1454_v47 = vld [vmem:[%s3281_s11 + $0x80] sm:$0xff]  ;;  %v1455_v48 = vld [vmem:[%s3281_s11 + $0x88] sm:$0xff] }
  0x3c   :  { %1056 = vmatprep.mubr.f32.mxu1 %v2300_v4  ;;  %v2142_v54 = vpack.c.bf16 %v901_v50, %v896_v49  ;;  %v1161_v46 = vld [vmem:[%s3279_s9 + $0xb0] sm:$0x1f]  ;;  %v2192_v49 = vpack.c.bf16 %v1455_v48, %v1454_v47  ;;  %v1438_v50 = vld [vmem:[%s3281_s11] sm:$0xff]  ;;  %v1463_v16 = vld [vmem:[%s3281_s11 + $0xc8] sm:$0xff] }
  0x3d   :  { %v1440_v55 = vld [vmem:[%s3281_s11 + $0x10] sm:$0xff]  ;;  %v1493_v47 = vld [vmem:[%s3281_s11 + $0x1b8] sm:$0xff] }
  0x3e   :  { %2121 = vmatpush1.bf16.msra.mxu1 %v2120_v59  ;;  %2105 = vmatpush1.bf16.msra.mxu0 %v2104_v60  ;;  %v2156_v59 = vpack.c.bf16 %v862_v57, %v857_v56  ;;  %v867_v60 = vld [vmem:[%s3277_s8 + $0x160] sm:$0xff]  ;;  %v1441_v57 = vld [vmem:[%s3281_s11 + $0x18] sm:$0xff]  ;;  %v1476_v48 = vld [vmem:[%s3281_s11 + $0x130] sm:$0xff] }
  0x3f   :  { %2123 = vmatprep.subr.bf16.mxu1 %v2122_v0  ;;  %2107 = vmatprep.subr.bf16.mxu0 %v2106_v1  ;;  %v2159_v0 = vpack.c.bf16 %v872_v61, %v867_v60  ;;  %v877_v1 = vld [vmem:[%s3277_s8 + $0x1b0] sm:$0xff]  ;;  %v2198_v60 = vpack.c.bf16 %v1441_v57, %v1440_v55  ;;  %v1494_v57 = vld [vmem:[%s3281_s11 + $0x1c0] sm:$0xff] }
  0x40   :  { %v2162_v7 = vpack.c.bf16 %v882_v3, %v877_v1  ;;  %v1461_v1 = vld [vmem:[%s3281_s11 + $0xb8] sm:$0xff]  ;;  %v1487_v3 = vld [vmem:[%s3281_s11 + $0x188] sm:$0xff]  ;;  %v1452_v55 = vld [vmem:[%s3281_s11 + $0x70] sm:$0xff] }
  0x42   :  { %2125 = vmatpush1.bf16.msra.mxu1 %v2124_v10  ;;  %2109 = vmatpush1.bf16.msra.mxu0 %v2108_v12  ;;  %v892_v10 = vld [vmem:[%s3277_s8 + $0x228] sm:$0xff] }
  0x43   :  { %2127 = vmatprep.subr.bf16.mxu1 %v2126_v14  ;;  %2111 = vmatprep.subr.bf16.mxu0 %v2110_v15  ;;  %v2165_v12 = vpack.c.bf16 %v892_v10, %v887_v9  ;;  %v902_v14 = vld [vmem:[%s3277_s8 + $0x278] sm:$0xff]  ;;  %v1163_v15 = vld [vmem:[%s3279_s9 + $0xc0] sm:$0x1f]  ;;  %v1444_v10 = vld [vmem:[%s3281_s11 + $0x30] sm:$0xff] }
  0x44   :  { %v2168_v19 = vpack.c.bf16 %v902_v14, %v897_v13 }
  0x46   :  { %2129 = vmatpush1.bf16.msra.mxu1 %v2128_v22  ;;  %2113 = vmatpush1.bf16.msra.mxu0 %v2112_v23  ;;  %v1144_v22 = vld [vmem:[%s3279_s9 + $0x28] sm:$0xff]  ;;  %v1150_v23 = vld [vmem:[%s3279_s9 + $0x58] sm:$0xff] }
  0x47   :  { %2131 = vmatprep.subr.bf16.mxu1 %v2130_v25  ;;  %2146 = vmatprep.subr.bf16.mxu0 %v2302_v42  ;;  %v2172_v25 = vpack.c.bf16 %v1144_v22, %v1139_v21  ;;  %v2174_v26 = vpack.c.bf16 %v1155_v24, %v1150_v23  ;;  %v1489_v22 = vld [vmem:[%s3281_s11 + $0x198] sm:$0xff]  ;;  %v1472_v23 = vld [vmem:[%s3281_s11 + $0x110] sm:$0xff] }
  0x48   :  { %v1473_v24 = vld [vmem:[%s3281_s11 + $0x118] sm:$0xff] }
  0x49   :  { %986 = vmatmul.mubr.f32.vlgmr.msra.gmra.mrb[0].mxu0 %v2824_v32 }
  0x4a   :  { %2133 = vmatpush1.bf16.msra.mxu1 %v2132_v33  ;;  %2148 = vmatpush3.bf16.msra.mxu0 %v2147_v34  ;;  %v1142_v33 = vld [vmem:[%s3279_s9 + $0x18] sm:$0xff]  ;;  %v1147_v34 = vld [vmem:[%s3279_s9 + $0x40] sm:$0xff] }
  0x4b   :  { %2135 = vmatprep.subr.bf16.mxu1 %v2134_v36  ;;  %2149 = vmatprep.subr.bf16.mxu0 %v2302_v42  ;;  %v1152_v36 = vld [vmem:[%s3279_s9 + $0x68] sm:$0xff]  ;;  %v2178_v38 = vpack.c.bf16 %v1147_v34, %v1142_v33  ;;  %v1449_v33 = vld [vmem:[%s3281_s11 + $0x58] sm:$0xff] }
  0x4c   :  { %1954 = vmatprep.mubr.msk.f32.mxu0 %vm2303_vm1, %v2300_v4  ;;  %v2182_v40 = vpack.c.bf16 %v1157_v37, %v1152_v36  ;;  %v1474_v36 = vld [vmem:[%s3281_s11 + $0x120] sm:$0xff] }
  0x4e   :  { %2137 = vmatpush1.bf16.msra.mxu1 %v2136_v41  ;;  %2151 = vmatpush3.bf16.msra.mxu0 %v2150_v43  ;;  %v1151_v41 = vld [vmem:[%s3279_s9 + $0x60] sm:$0xff]  ;;  %v1156_v43 = vld [vmem:[%s3279_s9 + $0x88] sm:$0xff] }
  0x4f   :  { %2139 = vmatprep.subr.bf16.mxu1 %v2138_v45  ;;  %2152 = vmatprep.subr.bf16.mxu0 %v2302_v42  ;;  %v2184_v44 = vpack.c.bf16 %v1156_v43, %v1151_v41  ;;  %v1162_v45 = vld [vmem:[%s3279_s9 + $0xb8] sm:$0x1f]  ;;  %v1450_v43 = vld [vmem:[%s3281_s11 + $0x60] sm:$0xff] }
  0x52   :  { %2141 = vmatpush1.bf16.msra.mxu1 %v2140_v51  ;;  %2154 = vmatpush3.bf16.msra.mxu0 %v2153_v52  ;;  %v1439_v51 = vld [vmem:[%s3281_s11 + $0x8] sm:$0xff] }
  0x53   :  { %2143 = vmatprep.subr.bf16.mxu1 %v2142_v54  ;;  %2155 = vmatprep.subr.bf16.mxu0 %v2302_v42  ;;  %v2194_v52 = vpack.c.bf16 %v1439_v51, %v1438_v50  ;;  %v1457_v54 = vld [vmem:[%s3281_s11 + $0x98] sm:$0xff] }
  0x54   :  { %v2196_v56 = vpack.c.bf16 %v1457_v54, %v1456_v53  ;;  %v1469_v53 = vld [vmem:[%s3281_s11 + $0xf8] sm:$0xff] }
  0x56   :  { %2145 = vmatpush1.bf16.msra.mxu1 %v2144_v58  ;;  %2157 = vmatpush3.bf16.msra.mxu0 %v2156_v59  ;;  %v1458_v58 = vld [vmem:[%s3281_s11 + $0xa0] sm:$0xff]  ;;  %v1459_v59 = vld [vmem:[%s3281_s11 + $0xa8] sm:$0xff] }
  0x57   :  { %2158 = vmatprep.subr.bf16.mxu0 %v2302_v42  ;;  %2186 = vmatprep.subr.bf16.mxu1 %v2302_v42  ;;  %v2200_v61 = vpack.c.bf16 %v1459_v59, %v1458_v58  ;;  %v1495_v59 = vld [vmem:[%s3281_s11 + $0x1c8] sm:$0xff] }
  0x58   :  { %v2240_v62 = vpack.c.bf16 %v1495_v59, %v1494_v57  ;;  %v1506_v57 = vld [vmem:[%s3281_s11 + $0x220] sm:$0xff] }
  0x59   :  { %1057 = vmatmul.mubr.f32.vlgmr.msra.gmra.mrb[0].mxu1 %v2824_v32 }
  0x5a   :  { %2160 = vmatpush3.bf16.msra.mxu0 %v2159_v0  ;;  %2188 = vmatpush3.bf16.msra.mxu1 %v2187_v2  ;;  %v1460_v0 = vld [vmem:[%s3281_s11 + $0xb0] sm:$0xff]  ;;  %v1486_v2 = vld [vmem:[%s3281_s11 + $0x180] sm:$0xff] }
  0x5b   :  { %2161 = vmatprep.subr.bf16.mxu0 %v2302_v42  ;;  %2189 = vmatprep.subr.bf16.mxu1 %v2302_v42  ;;  %v2204_v9 = vpack.c.bf16 %v1461_v1, %v1460_v0  ;;  %v1496_v0 = vld [vmem:[%s3281_s11 + $0x1d0] sm:$0xff]  ;;  %v1497_v1 = vld [vmem:[%s3281_s11 + $0x1d8] sm:$0xff] }
  0x5c   :  { %1967 = vmatprep.mubr.msk.f32.mxu1 %vm2303_vm1, %v2300_v4 }
  0x5e   :  { %2163 = vmatpush3.bf16.msra.mxu0 %v2162_v7  ;;  %2191 = vmatpush3.bf16.msra.mxu1 %v2190_v8  ;;  %v2224_v7 = vpack.c.bf16 %v1487_v3, %v1486_v2  ;;  %v1471_v8 = vld [vmem:[%s3281_s11 + $0x108] sm:$0xff]  ;;  %v2244_v2 = vpack.c.bf16 %v1497_v1, %v1496_v0  ;;  %v1480_v3 = vld [vmem:[%s3281_s11 + $0x150] sm:$0xff] }
  0x5f   :  { %2164 = vmatprep.subr.bf16.mxu0 %v2302_v42  ;;  %1965 = vmatprep.subr.mxu1 %v2300_v4  ;;  %v2226_v13 = vpack.c.bf16 %v1471_v8, %v1470_v5  ;;  %v1481_v5 = vld [vmem:[%s3281_s11 + $0x158] sm:$0xff]  ;;  %v1499_v8 = vld [vmem:[%s3281_s11 + $0x1e8] sm:$0xff] }
  0x62   :  { %2166 = vmatpush3.bf16.msra.mxu0 %v2165_v12  ;;  %1966 = vmatpush3.msk.msra.mxu1 %vm1168_vm4, %v1163_v15  ;;  %v1445_v12 = vld [vmem:[%s3281_s11 + $0x38] sm:$0xff]  ;;  %v1462_v15 = vld [vmem:[%s3281_s11 + $0xc0] sm:$0xff] }
  0x63   :  { %2167 = vmatprep.subr.bf16.mxu0 %v2302_v42  ;;  %1968 = vmatmul.mubr.msk.f32.vlgmr.msra.gmra.mrb[6].mxu1 %vm1164_vm5, %v1138_v18  ;;  %v2206_v14 = vpack.c.bf16 %v1445_v12, %v1444_v10  ;;  %v2208_v17 = vpack.c.bf16 %v1463_v16, %v1462_v15  ;;  %v1482_v10 = vld [vmem:[%s3281_s11 + $0x160] sm:$0xff]  ;;  %v1483_v12 = vld [vmem:[%s3281_s11 + $0x168] sm:$0xff]  ;;  %v1501_v15 = vld [vmem:[%s3281_s11 + $0x1f8] sm:$0xff] }
  0x64   :  { %2193 = vmatprep.subr.bf16.mxu1 %v2192_v49  ;;  %v1477_v49 = vld [vmem:[%s3281_s11 + $0x138] sm:$0xff] }
  0x65   :  { %2195 = vmatpush3.bf16.msra.mxu1 %v2194_v52  ;;  %v2238_v51 = vpack.c.bf16 %v1477_v49, %v1476_v48  ;;  %v1468_v52 = vld [vmem:[%s3281_s11 + $0xf0] sm:$0xff] }
  0x66   :  { %2169 = vmatpush3.bf16.msra.mxu0 %v2168_v19  ;;  %2197 = vmatprep.subr.bf16.mxu1 %v2196_v56  ;;  %v1447_v19 = vld [vmem:[%s3281_s11 + $0x48] sm:$0xff]  ;;  %v2220_v54 = vpack.c.bf16 %v1469_v53, %v1468_v52  ;;  %v1453_v56 = vld [vmem:[%s3281_s11 + $0x78] sm:$0xff]  ;;  %v1504_v52 = vld [vmem:[%s3281_s11 + $0x210] sm:$0xff] }
  0x67   :  { %2171 = vmatprep.subr.bf16.mxu0 %v2170_v20  ;;  %v1488_v20 = vld [vmem:[%s3281_s11 + $0x190] sm:$0xff]  ;;  %v2222_v58 = vpack.c.bf16 %v1453_v56, %v1452_v55  ;;  %v1505_v53 = vld [vmem:[%s3281_s11 + $0x218] sm:$0xff] }
  0x68   :  { %v2260_v55 = vpack.c.bf16 %v1505_v53, %v1504_v52 }
  0x69   :  { %1955 = vmatmul.mubr.f32.vlgmr.msra.gmra.mrb[4].mxu0 %v2824_v32  ;;  %v1141_v32 = vld [vmem:[%s3279_s9 + $0x10] sm:$0xff]  ;;  %2199 = vmatpush3.bf16.msra.mxu1 %v2198_v60  ;;  %v1478_v60 = vld [vmem:[%s3281_s11 + $0x140] sm:$0xff] }
  0x6a   :  { %2173 = vmatpush1.bf16.msra.mxu0 %v2172_v25  ;;  %1248 = vmatprep.mubr.f32.mxu0 %v2300_v4  ;;  %v2180_v39 = vpack.c.bf16 %v1146_v35, %v1141_v32  ;;  %v2228_v25 = vpack.c.bf16 %v1489_v22, %v1488_v20  ;;  %v1490_v32 = vld [vmem:[%s3281_s11 + $0x1a0] sm:$0xff]  ;;  %v1491_v35 = vld [vmem:[%s3281_s11 + $0x1a8] sm:$0xff] }
  0x6b   :  { %2175 = vmatprep.subr.bf16.mxu0 %v2174_v26  ;;  %2201 = vmatprep.subr.bf16.mxu1 %v2200_v61  ;;  %v2230_v26 = vpack.c.bf16 %v1473_v24, %v1472_v23  ;;  %v2232_v37 = vpack.c.bf16 %v1491_v35, %v1490_v32  ;;  %v1479_v61 = vld [vmem:[%s3281_s11 + $0x148] sm:$0xff] }
  0x6c   :  { %v2242_v63 = vpack.c.bf16 %v1479_v61, %v1478_v60 }
  0x6d   :  { %2203 = vmatpush3.bf16.msra.mxu1 %v2202_v6  ;;  %v2246_v6 = vpack.c.bf16 %v1481_v5, %v1480_v3 }
  0x6e   :  { %2177 = vmatpush1.bf16.msra.mxu0 %v2176_v30  ;;  %2205 = vmatprep.subr.bf16.mxu1 %v2204_v9  ;;  %v2212_v30 = vpack.c.bf16 %v1465_v29, %v1464_v28 }
  0x6f   :  { %1749 = vmatprep.subr.msk.mxu0 %vm1168_vm4, %v1160_v31  ;;  %v1448_v31 = vld [vmem:[%s3281_s11 + $0x50] sm:$0xff] }
  0x70   :  { %v2214_v34 = vpack.c.bf16 %v1449_v33, %v1448_v31 }
  0x71   :  { %2207 = vmatpush3.bf16.msra.mxu1 %v2206_v14  ;;  %v1500_v14 = vld [vmem:[%s3281_s11 + $0x1f0] sm:$0xff] }
  0x72   :  { %1750 = vmatpush1.msk.msra.mxu0 %vm1168_vm4, %v1159_v27  ;;  %2209 = vmatprep.subr.bf16.mxu1 %v2208_v17  ;;  %v1475_v27 = vld [vmem:[%s3281_s11 + $0x128] sm:$0xff]  ;;  %v2252_v16 = vpack.c.bf16 %v1501_v15, %v1500_v14  ;;  %v1484_v17 = vld [vmem:[%s3281_s11 + $0x170] sm:$0xff]  ;;  %v1421_v15 = vsub.s32 4, %v2394_v11 }
  0x73   :  { %1751 = vmatmul.mubr.msk.f32.vlgmr.msra.gmra.mrb[0].mxu0 %vm1164_vm5, %v1138_v18  ;;  %2179 = vmatprep.subr.bf16.mxu0 %v2178_v38  ;;  %v2234_v38 = vpack.c.bf16 %v1475_v27, %v1474_v36  ;;  %v1409_v27 = vsub.s32 1, %v2394_v11 }
  0x74   :  { %2181 = vmatpush1.bf16.msra.mxu0 %v2180_v39  ;;  %1319 = vmatprep.mubr.f32.mxu0 %v2300_v4  ;;  %v1466_v39 = vld [vmem:[%s3281_s11 + $0xe0] sm:$0xff] }
  0x75   :  { %2183 = vmatprep.subr.bf16.mxu0 %v2182_v40  ;;  %v1467_v40 = vld [vmem:[%s3281_s11 + $0xe8] sm:$0xff] }
  0x76   :  { %v2216_v41 = vpack.c.bf16 %v1467_v40, %v1466_v39 }
  0x78   :  { %2185 = vmatpush1.bf16.msra.mxu0 %v2184_v44  ;;  %v1451_v44 = vld [vmem:[%s3281_s11 + $0x68] sm:$0xff] }
  0x79   :  { %1752 = vmatprep.subr.msk.mxu0 %vm1168_vm4, %v1162_v45  ;;  %v1492_v45 = vld [vmem:[%s3281_s11 + $0x1b0] sm:$0xff] }
  0x7a   :  { %v2236_v50 = vpack.c.bf16 %v1493_v47, %v1492_v45  ;;  %v1502_v45 = vld [vmem:[%s3281_s11 + $0x200] sm:$0xff] }
  0x7c   :  { %1753 = vmatpush1.msk.msra.mxu0 %vm1168_vm4, %v1161_v46  ;;  %v2218_v46 = vpack.c.bf16 %v1451_v44, %v1450_v43 }
  0x7d   :  { %1754 = vmatmul.mubr.msk.f32.vlgmr.msra.gmra.mrb[6].mxu0 %vm1164_vm5, %v1138_v18  ;;  %2225 = vmatprep.subr.bf16.mxu0 %v2224_v7  ;;  %v1446_v18 = vld [vmem:[%s3281_s11 + $0x40] sm:$0xff] }
  0x7e   :  { %2227 = vmatpush3.bf16.msra.mxu0 %v2226_v13  ;;  %v2210_v21 = vpack.c.bf16 %v1447_v19, %v1446_v18  ;;  %v1498_v7 = vld [vmem:[%s3281_s11 + $0x1e0] sm:$0xff]  ;;  %v2250_v13 = vpack.c.bf16 %v1483_v12, %v1482_v10  ;;  %v1485_v18 = vld [vmem:[%s3281_s11 + $0x178] sm:$0xff]  ;;  %v1512_v12 = vld [vmem:[%s3281_s11 + $0x250] sm:$0xff] }
  0x7f   :  { %2229 = vmatprep.subr.bf16.mxu0 %v2228_v25  ;;  %v2248_v9 = vpack.c.bf16 %v1499_v8, %v1498_v7  ;;  %v2254_v19 = vpack.c.bf16 %v1485_v18, %v1484_v17  ;;  %v1510_v8 = vld [vmem:[%s3281_s11 + $0x240] sm:$0xff]  ;;  %v1515_v17 = vld [vmem:[%s3281_s11 + $0x268] sm:$0xff] }
  0x80   :  { %2211 = vmatpush3.bf16.msra.mxu1 %v2210_v21 }
  0x81   :  { %2213 = vmatprep.subr.bf16.mxu1 %v2212_v30 }
  0x82   :  { %2231 = vmatpush3.bf16.msra.mxu0 %v2230_v26 }
  0x83   :  { %2233 = vmatprep.subr.bf16.mxu0 %v2232_v37  ;;  %v1405_v37 = vsub.s32 0, %v2394_v11 }
  0x84   :  { %2215 = vmatpush3.bf16.msra.mxu1 %v2214_v34 }
  0x85   :  { %2217 = vmatprep.subr.bf16.mxu1 %v2216_v41 }
  0x86   :  { %2235 = vmatpush3.bf16.msra.mxu0 %v2234_v38  ;;  %v1401_v38 = vld [vmem:[%s3282_s10] sm:$0x1f] }
  0x87   :  { %2237 = vmatprep.subr.bf16.mxu0 %v2236_v50  ;;  %v1406_v39 = vrot.slane %v1401_v38, %v1405_v37  ;;  %v1410_v40 = vrot.slane %v1401_v38, %v1409_v27 }
  0x88   :  { %2219 = vmatpush3.bf16.msra.mxu1 %v2218_v46  ;;  %v1503_v46 = vld [vmem:[%s3281_s11 + $0x208] sm:$0xff] }
  0x89   :  { %2221 = vmatprep.subr.bf16.mxu1 %v2220_v54  ;;  %v2257_v49 = vpack.c.bf16 %v1503_v46, %v1502_v45  ;;  %v1417_v54 = vsub.s32 3, %v2394_v11 }
  0x8a   :  { %2239 = vmatpush3.bf16.msra.mxu0 %v2238_v51  ;;  %v1413_v51 = vsub.s32 2, %v2394_v11  ;;  %v1517_v11 = vld [vmem:[%s3281_s11 + $0x278] sm:$0xff] }
  0x8b   :  { %2241 = vmatprep.subr.bf16.mxu0 %v2240_v62  ;;  %v1418_v60 = vrot.slane %v1401_v38, %v1417_v54 }
  0x8c   :  { %2223 = vmatpush3.bf16.msra.mxu1 %v2222_v58  ;;  %v1414_v56 = vrot.slane %v1401_v38, %v1413_v51  ;;  %v1507_v58 = vld [vmem:[%s3281_s11 + $0x228] sm:$0xff] }
  0x8d   :  { %2256 = vmatprep.subr.bf16.mxu1 %v2302_v42  ;;  %v2263_v0 = vpack.c.bf16 %v1507_v58, %v1506_v57 }
  0x8e   :  { %2243 = vmatpush3.bf16.msra.mxu0 %v2242_v63 }
  0x8f   :  { %2245 = vmatprep.subr.bf16.mxu0 %v2244_v2  ;;  %v1509_v2 = vld [vmem:[%s3281_s11 + $0x238] sm:$0xff] }
  0x92   :  { %2247 = vmatpush3.bf16.msra.mxu0 %v2246_v6 }
  0x93   :  { %2249 = vmatprep.subr.bf16.mxu0 %v2248_v9  ;;  %v1511_v9 = vld [vmem:[%s3281_s11 + $0x248] sm:$0xff] }
  0x94   :  { %v2269_v10 = vpack.c.bf16 %v1511_v9, %v1510_v8 }
  0x96   :  { %2251 = vmatpush3.bf16.msra.mxu0 %v2250_v13  ;;  %v1513_v13 = vld [vmem:[%s3281_s11 + $0x258] sm:$0xff] }
  0x97   :  { %2253 = vmatprep.subr.bf16.mxu0 %v2252_v16  ;;  %v2272_v14 = vpack.c.bf16 %v1513_v13, %v1512_v12  ;;  %v1514_v16 = vld [vmem:[%s3281_s11 + $0x260] sm:$0xff] }
  0x98   :  { %v2275_v18 = vpack.c.bf16 %v1515_v17, %v1514_v16 }
  0x9a   :  { %2255 = vmatpush3.bf16.msra.mxu0 %v2254_v19  ;;  %v1422_v19 = vrot.slane %v1401_v38, %v1421_v15 }
  0xe8   :  { %v306_v20 = vpop.f32.mrb[2].mxu0 }
  0xe9   :  { %v1895_v21 = vpop.f32.mrb[3].mxu0 }
  0xec   :  { %v538_v22 = vpop.f32.mrb[2].mxu1 }
  0xed   :  { %v539_v23 = vadd.f32 %v538_v22, %v306_v20  ;;  %v1902_v24 = vpop.f32.mrb[3].mxu1  ;;  %v1516_v20 = vld [vmem:[%s3281_s11 + $0x270] sm:$0xff] }
  0xee   :  { %v2278_v21 = vpack.c.bf16 %v1517_v11, %v1516_v20 }
 0x10c   :  { %v812_v25 = vpop.f32.mrb[4].mxu1 }
 0x10d   :  { %v820_v26 = vadd.f32 %v812_v25, %v539_v23  ;;  %v1921_v28 = vpop.f32.mrb[5].mxu1 }
 0x10e   :  { %v1757_v28 = vld [vmem:[%s3283_s12] ss:$0 sm:$0xff] }
 0x12c   :  { %v1058_v29 = vpop.f32.mrb[0].mxu1 }
 0x12d   :  { %v1060_v30 = vpop.f32.mrb[1].mxu1 }
 0x136   :  { %v1392_v31 = vpop.f32.mrb[6].mxu1 }
 0x137   :  { %v1969_v33 = vpop.f32.mrb[7].mxu1 }
 0x13c   :  { %v1129_v34 = vpop.f32.mrb[4].mxu0 }
 0x13d   :  { %v1137_v32 = vadd.f32 %v1129_v34, %v820_v26  ;;  %v1956_v35 = vpop.f32.mrb[5].mxu0 }
 0x13f   :  { %v3197_v36 = vadd.f32 %v1392_v31, %v1137_v32 }
 0x141   :  { %v1432_v22 = vadd.f32 %v1422_v19, %v3197_v36 }
 0x143   :  { %v1437_v23 = vmax.f32 %v1432_v22, 0.0 }
 0x146   :  { %v1250_v41 = vpop.f32.mrb[0].mxu0 }
 0x147   :  { %v1428_v43 = vadd.f32 %v1406_v39, %v1250_v41  ;;  %v1252_v44 = vpop.f32.mrb[1].mxu0 }
 0x148   :  { %v1429_v47 = vadd.f32 %v1410_v40, %v1252_v44 }
 0x149   :  { %v1433_v50 = vmax.f32 %v1428_v43, 0.0 }
 0x14a   :  { %v1434_v48 = vmax.f32 %v1429_v47, 0.0 }
 0x14c   :  { %1589 = vmatprep.mubr.f32.mxu1 %v1434_v48 }
 0x14d   :  { %1590 = vmatmul.mubr.f32.vlgmr.msra.gmra.mrb[8].mxu1 %v1433_v50 }
 0x14e   :  { %2258 = vmatpush3.bf16.msra.mxu1 %v2257_v49  ;;  %2002 = vmatprep.mubr.msk.f32.mxu1 %vm2303_vm1, %v2300_v4  ;;  %v1508_v4 = vld [vmem:[%s3281_s11 + $0x230] sm:$0xff] }
 0x14f   :  { %2259 = vmatprep.subr.bf16.mxu1 %v2302_v42  ;;  %v2266_v6 = vpack.c.bf16 %v1509_v2, %v1508_v4 }
 0x150   :  { %v1321_v59 = vpop.f32.mrb[6].mxu0 }
 0x151   :  { %v2280_v61 = vadd.f32 %v1321_v59, %v1058_v29  ;;  %v1323_v62 = vpop.f32.mrb[7].mxu0 }
 0x152   :  { %v2281_v63 = vadd.f32 %v1323_v62, %v1060_v30  ;;  %2261 = vmatpush3.bf16.msra.mxu1 %v2260_v55 }
 0x153   :  { %v1430_v1 = vadd.f32 %v2280_v61, %v1414_v56  ;;  %2262 = vmatprep.subr.bf16.mxu1 %v2302_v42 }
 0x154   :  { %v1431_v3 = vadd.f32 %v2281_v63, %v1418_v60 }
 0x155   :  { %v1435_v7 = vmax.f32 %v1430_v1, 0.0 }
 0x156   :  { %v1436_v5 = vmax.f32 %v1431_v3, 0.0  ;;  %2264 = vmatpush3.bf16.msra.mxu1 %v2263_v0 }
 0x157   :  { %2265 = vmatprep.subr.bf16.mxu1 %v2302_v42 }
 0x158   :  { %1659 = vmatprep.mubr.f32.mxu0 %v1436_v5 }
 0x159   :  { %1660 = vmatmul.mubr.f32.vlgmr.msra.gmra.mrb[8].mxu0 %v1435_v7 }
 0x15a   :  { %2267 = vmatpush3.bf16.msra.mxu1 %v2266_v6 }
 0x15b   :  { %2268 = vmatprep.subr.bf16.mxu1 %v2302_v42 }
 0x15e   :  { %2270 = vmatpush3.bf16.msra.mxu1 %v2269_v10 }
 0x15f   :  { %2271 = vmatprep.subr.bf16.mxu1 %v2302_v42 }
 0x162   :  { %2273 = vmatpush3.bf16.msra.mxu1 %v2272_v14 }
 0x163   :  { %2274 = vmatprep.subr.bf16.mxu1 %v2302_v42 }
 0x166   :  { %2276 = vmatpush3.bf16.msra.mxu1 %v2275_v18 }
 0x167   :  { %2277 = vmatprep.subr.bf16.mxu1 %v2302_v42 }
 0x16a   :  { %2279 = vmatpush3.bf16.msra.mxu1 %v2278_v21 }
 0x16d   :  { %2003 = vmatmul.mubr.f32.vlgmr.msra.gmra.mrb[10].mxu1 %v1437_v23 }
 0x220   :  { %v1830_v24 = vpop.f32.mrb[8].mxu1 }
 0x221   :  { %v1831_v25 = vpop.f32.mrb[9].mxu1 }
 0x222   :  { %v1832_v26 = vadd.f32 %v1831_v25, %v1830_v24 }
 0x224   :  { %v1592_v31 = vadd.f32 %v1832_v26, %v1757_v28 }
 0x22c   :  { %v1865_v29 = vpop.f32.mrb[8].mxu0 }
 0x22d   :  { %v1866_v30 = vpop.f32.mrb[9].mxu0 }
 0x22e   :  { %v1867_v33 = vadd.f32 %v1866_v30, %v1865_v29 }
 0x230   :  { %v1662_v34 = vadd.f32 %v1867_v33, %v1592_v31 }
 0x240   :  { %v1731_v32 = vpop.f32.mrb[10].mxu1 }
 0x241   :  { %v1732_v35 = vadd.f32 %v1731_v32, %v1662_v34  ;;  %v2004_v36 = vpop.f32.mrb[11].mxu1 }
 0x243   :  { %1735 = vst [vmem:[%s3284_s13] sm:$0x3] %v1732_v35 }

// kernel: cnn2d_forward.2
= control target key start
LH: loop header
LB: loop body
LE: loop exit
PB: predicated region body
PF: predicated region fallthrough
CT: control target
= control target key end

     0   :  { %s26022_s0 = inlined_call_operand.vmem [shape: f32[2,16,16,16], index: 0, kind: input, shape index: {}]   ;;  %s26023_s1 = inlined_call_operand.vmem [shape: f32[3,3,16,32], index: 1, kind: input, shape index: {}]   ;;  %s26024_s2 = inlined_call_operand.vmem [shape: f32[1,32], index: 2, kind: input, shape index: {}]   ;;  %s26025_s3 = inlined_call_operand.vmem [shape: f32[3,3,32,32], index: 3, kind: input, shape index: {}]   ;;  %s26026_s4 = inlined_call_operand.vmem [shape: f32[1,32], index: 4, kind: input, shape index: {}]   ;;  %s26027_s5 = inlined_call_operand.hbm [shape: f32[3,3,16,64], index: 5, kind: input, shape index: {}]   ;;  %s26028_s6 = inlined_call_operand.hbm [shape: f32[3,3,32,64], index: 6, kind: input, shape index: {}]   ;;  %s26029_s7 = inlined_call_operand.vmem [shape: f32[1,64], index: 7, kind: input, shape index: {}]   ;;  %s26030_s8 = inlined_call_operand.vmem [shape: f32[3,3,64,64], index: 8, kind: input, shape index: {}]   ;;  %s26031_s9 = inlined_call_operand.vmem [shape: f32[1,64], index: 9, kind: input, shape index: {}]   ;;  %s26032_s10 = inlined_call_operand.hbm [shape: f32[3,3,64,128], index: 10, kind: input, shape index: {}]   ;;  %s26033_s11 = inlined_call_operand.hbm [shape: f32[3,3,32,128], index: 11, kind: input, shape index: {}]   ;;  %s26034_s12 = inlined_call_operand.vmem [shape: f32[1,128], index: 12, kind: input, shape index: {}]   ;;  %s26035_s13 = inlined_call_operand.hbm [shape: f32[3,3,128,128], index: 13, kind: input, shape index: {}]   ;;  %s26036_s14 = inlined_call_operand.vmem [shape: f32[1,128], index: 14, kind: input, shape index: {}]   ;;  %s26037_s15 = inlined_call_operand.vmem [shape: f32[2,1,16], index: 15, kind: output, shape index: {0}]   ;;  %s26038_s16 = inlined_call_operand.vmem [shape: f32[2,1,32], index: 16, kind: output, shape index: {1}]   ;;  %s26039_s17 = inlined_call_operand.vmem [shape: f32[2,1,64], index: 17, kind: output, shape index: {2}]   ;;  %s26040_s18 = inlined_call_operand.vmem [shape: f32[2,1,128], index: 18, kind: output, shape index: {3}]  }
   0x1   :  { %26171 = sst [smem:[#allocation71_spill]] %s26022_s0 }
   0x2   :  { %26172 = sst [smem:[#allocation72_spill]] %s26023_s1 }
   0x3   :  { %26173 = sst [smem:[#allocation73_spill]] %s26024_s2 }
   0x4   :  { %26174 = sst [smem:[#allocation74_spill]] %s26034_s12 }
   0x5   :  { %26175 = sst [smem:[#allocation75_spill]] %s26036_s14 }
   0x6   :  { %26176 = sst [smem:[#allocation76_spill]] %s26039_s17 }
   0x7   :  { %26177 = sst [smem:[#allocation77_spill]] %s26040_s18 }
   0x8   :  { %24 = vsyncpa [#allocation11], 0 }
   0x9   :  { %25 = vsyncpa [#allocation13], 0 }
   0xa   :  { %26 = vsyncpa [#allocation16], 0  ;;  %s22067_s27 = smov 0  }
   0xb LB: > { %26178 = sst [smem:[#allocation21_spill]] %s21962_s27  ;;  %s22073_s28 = sadd.s32 4294967295, %s21962_s27   ;;  %s21962_s27 = sphi %s22067_s27, %s32_s27  }
   0xc   : > { %p15677_p0 = scmp.ge.s32.totalorder %s21962_s27, 1  ;;  %p461_p1 = scmp.lt.s32.totalorder %s21962_s27, 3 }
   0xd   : > { %p26043_p2 = scmp.eq.s32.totalorder %s22073_s28, 0  ;;  %s21964_s30 = smov [#allocation12]  }
   0xe   : > { %p22078_p3 = pnand %p15677_p0, %p461_p1  ;;  %s498_s0 = sshll.u32 %s21964_s30, 4  ;;  %s22082_s0 = int_to_ptr.vmem [resolvable:$true] %s498_s0 }
   0xf   : > { %s21965_s19 = smov [#allocation15]   ;;  %s21966_s21 = smov [#allocation10]  }
  0x10   : > { %s26179_s29 = scalar_select %p22078_p3, 1, 0 }
  0x11   : > { %p21700_p4 = pneg %p22078_p3  ;;  %s533_s1 = sshll.u32 %s21965_s19, 4  ;;  %s22086_s1 = int_to_ptr.vmem [resolvable:$true] %s533_s1 }
  0x12   : > { %s485_s22 = sshll.u32 %s21966_s21, 4  ;;  %s21967_s2 = smov [#allocation14]   ;;  %s22094_s22 = int_to_ptr.vmem [resolvable:$true] %s485_s22 }
  0x13   : > { %p22090_p5 = pnand %p26043_p2, %p21700_p4  ;;  %s22096_s23 = sshll.u32 %s21967_s2, 4  ;;  %s521_s23 = int_to_ptr.vmem [resolvable:$true] %s22096_s23 }
  0x14   : > { %s21804_s26 = scalar_lea.hbm %s26028_s6, 4608 }
  0x15   : > { %p21805_p6 = scmp.ne.s32.totalorder %s26028_s6, %s21804_s26  ;;  %p22106_p7 = pneg %p22090_p5 }
  0x16   : > { %p21811_p10 = scmp.lt.u32.totalorder %s21804_s26, %s26028_s6 }
  0x17   : > { %p21807_p8 = pnand %p22106_p7, %p21805_p6 }
  0x19   : > { %p21808_p9 = pneg %p21807_p8 }
  0x1b   : > { %p21813_p11 = pnand %p21811_p10, %p21808_p9 }
  0x1d   : > { %21816 = shalt.err (!%p21813_p11)
}
  0x1e   : > { %s21817_s24 = scalar_lea.vmem %s22082_s0, 4608  ;;  %p21825_p1 = scmp.lt.s32.totalorder %s22082_s0, %s22082_s0 }
  0x1f   : > { %p21818_p12 = scmp.ne.s32.totalorder %s22082_s0, %s21817_s24  ;;  %p21826_p4 = scmp.lt.s32.totalorder %s21817_s24, %s21817_s24 }
  0x21   : > { %p21820_p13 = pnand %p21818_p12, %p22106_p7  ;;  %p21827_p6 = por %p21826_p4, %p21825_p1 }
  0x23   : > { %p21821_p0 = pneg %p21820_p13 }
  0x25   : > { %p21828_p8 = pnand %p21827_p6, %p21821_p0 }
  0x27   : > { %21831 = shalt.err (!%p21828_p8)
}
  0x28   : > { %s21968_s25 = smov 128   ;;  %s21969_s26 = smov 8  }
  0x29   : > { %21706 = dma.hbm_to_vmem [thread:$0]  (!%p22090_p5), %s26028_s6, 4608, %s22082_s0, [#allocation13], %s21968_s25, %s21968_s25, %s21969_s26  }
  0x2a   : > { %s21832_s24 = scalar_lea.hbm %s26033_s11, 4608 }
  0x2b   : > { %p21833_p9 = scmp.ne.s32.totalorder %s26033_s11, %s21832_s24  ;;  %p21839_p12 = scmp.lt.u32.totalorder %s21832_s24, %s26033_s11 }
  0x2d   : > { %p21835_p10 = pnand %p21833_p9, %p22106_p7 }
  0x2f   : > { %p21836_p11 = pneg %p21835_p10 }
  0x31   : > { %p21841_p13 = pnand %p21839_p12, %p21836_p11 }
  0x33   : > { %21844 = shalt.err (!%p21841_p13)
}
  0x34   : > { %s21845_s0 = scalar_lea.vmem %s22086_s1, 4608  ;;  %p21853_p6 = scmp.lt.s32.totalorder %s22086_s1, %s22086_s1 }
  0x35   : > { %p21846_p0 = scmp.ne.s32.totalorder %s22086_s1, %s21845_s0  ;;  %p21854_p8 = scmp.lt.s32.totalorder %s21845_s0, %s21845_s0 }
  0x37   : > { %p21848_p1 = pnand %p21846_p0, %p22106_p7  ;;  %p21855_p9 = por %p21854_p8, %p21853_p6 }
  0x39   : > { %p21849_p4 = pneg %p21848_p1 }
  0x3b   : > { %p21856_p10 = pnand %p21855_p9, %p21849_p4 }
  0x3d   : > { %21859 = shalt.err (!%p21856_p10)
}
  0x3e   : > { %21712 = dma.hbm_to_vmem [thread:$0]  (!%p22090_p5), %s26033_s11, 4608, %s22086_s1, [#allocation16], %s21968_s25, %s21968_s25, %s21969_s26  }
  0x3f   : > { %s21860_s30 = scalar_lea.hbm %s26027_s5, 2304 }
  0x40   : > { %p21861_p11 = scmp.ne.s32.totalorder %s26027_s5, %s21860_s30  ;;  %p21867_p0 = scmp.lt.u32.totalorder %s21860_s30, %s26027_s5 }
  0x42   : > { %p21863_p12 = pnand %p21861_p11, %p22106_p7 }
  0x44   : > { %p21864_p13 = pneg %p21863_p12 }
  0x46   : > { %p21869_p1 = pnand %p21867_p0, %p21864_p13 }
  0x48   : > { %21872 = shalt.err (!%p21869_p1)
}
  0x49   : > { %s21873_s1 = scalar_lea.vmem %s22094_s22, 2304  ;;  %p21881_p9 = scmp.lt.s32.totalorder %s22094_s22, %s22094_s22 }
  0x4a   : > { %p21874_p4 = scmp.ne.s32.totalorder %s22094_s22, %s21873_s1  ;;  %p21882_p10 = scmp.lt.s32.totalorder %s21873_s1, %s21873_s1 }
  0x4c   : > { %p21876_p6 = pnand %p21874_p4, %p22106_p7  ;;  %p21883_p11 = por %p21882_p10, %p21881_p9 }
  0x4e   : > { %p21877_p8 = pneg %p21876_p6 }
  0x50   : > { %p21884_p12 = pnand %p21883_p11, %p21877_p8 }
  0x52   : > { %21887 = shalt.err (!%p21884_p12)
}
  0x53   : > { %21703 = dma.hbm_to_vmem [thread:$0]  (!%p22090_p5), %s26027_s5, 2304, %s22094_s22, [#allocation11], %s21968_s25, %s21968_s25, %s21969_s26  }
  0x54   : > { %s21888_s18 = scalar_lea.hbm %s26032_s10, 9216 }
  0x55   : > { %p21889_p13 = scmp.ne.s32.totalorder %s26032_s10, %s21888_s18  ;;  %p21895_p4 = scmp.lt.u32.totalorder %s21888_s18, %s26032_s10 }
  0x57   : > { %p21891_p0 = pnand %p21889_p13, %p22106_p7 }
  0x59   : > { %p21892_p1 = pneg %p21891_p0 }
  0x5b   : > { %p21897_p6 = pnand %p21895_p4, %p21892_p1 }
  0x5d   : > { %21900 = shalt.err (!%p21897_p6)
}
  0x5e   : > { %s21901_s24 = scalar_lea.vmem %s521_s23, 9216  ;;  %p21909_p11 = scmp.lt.s32.totalorder %s521_s23, %s521_s23 }
  0x5f   : > { %p21902_p8 = scmp.ne.s32.totalorder %s521_s23, %s21901_s24  ;;  %p21910_p12 = scmp.lt.s32.totalorder %s21901_s24, %s21901_s24 }
  0x61   : > { %p21904_p9 = pnand %p21902_p8, %p22106_p7  ;;  %p21911_p2 = por %p21910_p12, %p21909_p11 }
  0x63   : > { %p21905_p10 = pneg %p21904_p9 }
  0x65   : > { %p21912_p3 = pnand %p21911_p2, %p21905_p10 }
  0x67   : > { %21915 = shalt.err (!%p21912_p3)
}
  0x68   : > { %21709 = dma.hbm_to_vmem [thread:$0]  (!%p22090_p5), %s26032_s10, 9216, %s521_s23, [#allocation13], %s21968_s25, %s21968_s25, %s21969_s26  }
  0x69   : > { %s21970_s0 = smov [#allocation17]   ;;  %s21916_s18 = scalar_lea.hbm %s26035_s13, 18432 }
  0x6a   : > { %s549_s12 = sshll.u32 %s21970_s0, 4  ;;  %p21917_p2 = scmp.ne.s32.totalorder %s26035_s13, %s21916_s18  ;;  %s550_s12 = int_to_ptr.vmem [resolvable:$true] %s549_s12 }
  0x6b   : > { %p21923_p0 = scmp.lt.u32.totalorder %s21916_s18, %s26035_s13 }
  0x6c   : > { %p21919_p3 = pnand %p21917_p2, %p22106_p7 }
  0x6e   : > { %p21920_p13 = pneg %p21919_p3 }
  0x70   : > { %p21925_p1 = pnand %p21923_p0, %p21920_p13 }
  0x72   : > { %21928 = shalt.err (!%p21925_p1)
}
  0x73   : > { %s21929_s23 = scalar_lea.vmem %s550_s12, 18432  ;;  %p21937_p9 = scmp.lt.s32.totalorder %s550_s12, %s550_s12 }
  0x74   : > { %p21930_p4 = scmp.ne.s32.totalorder %s550_s12, %s21929_s23  ;;  %p21938_p10 = scmp.lt.s32.totalorder %s21929_s23, %s21929_s23 }
  0x76   : > { %p21932_p6 = pnand %p21930_p4, %p22106_p7  ;;  %p21939_p11 = por %p21938_p10, %p21937_p9 }
  0x78   : > { %p21933_p8 = pneg %p21932_p6 }
  0x7a   : > { %p21940_p12 = pnand %p21939_p11, %p21933_p8 }
  0x7c   : > { %21943 = shalt.err (!%p21940_p12)
}
  0x7d   : > { %21715 = dma.hbm_to_vmem [thread:$0]  (!%p22090_p5), %s26035_s13, 18432, %s550_s12, [#allocation16], %s21968_s25, %s21968_s25, %s21969_s26  }
  0x7e   : > { %p26182_p2 = scmp.ne.s32.totalorder %s26179_s29, 0 }
  0x80   : > { %576 = sbr.rel (%p26182_p2) target bundleno = 3260 (0xcbc), region = 80 }
  0x87   : > { %p26183_p7 = scmp.eq.s32.totalorder %s22073_s28, 0 }
  0x89   : > { %21949 = dma.done.wait (%p26183_p7), [#allocation11], 2304   ;;  %p26184_p3 = pmov %p26183_p7 }
  0x8b   : > { %21951 = vsyncadd (%p26184_p3), [#allocation11], 4294964992  ;;  %p26185_p13 = pmov %p26184_p3 }
  0x8c   : > { %p26186_p0 = pmov %p26184_p3 }
  0x8d   : > { %21953 = dma.done.wait (%p26185_p13), [#allocation13], 13824  }
  0x8e   : > { %21955 = vsyncadd (%p26186_p0), [#allocation13], 4294953472  ;;  %p26187_p1 = pmov %p26186_p0 }
  0x8f   : > { %p26188_p5 = pmov %p26186_p0 }
  0x90   : > { %21957 = dma.done.wait (%p26187_p1), [#allocation16], 23040  }
  0x91   : > { %21959 = vsyncadd (%p26188_p5), [#allocation16], 4294944256  ;;  %vm702_vm0 = vcmask 130048   ;;  %v21971_v0 = vmov 0.0   ;;  %p653_p4 = scmp.lt.s32.totalorder %s22073_s28, 1  ;;  %s26189_s25 = sld [smem:[#allocation71_spill]] }
  0x92   : > { %14511 = vst [vmem:[#allocation9] sm:$0xff] %v21971_v0  ;;  %14512 = vst [vmem:[#allocation9 + $0x8] sm:$0xff] %v21971_v0  ;;  %s26190_s12 = sld [smem:[#allocation72_spill]]  ;;  %vm772_vm1 = vcmask 122880   ;;  %vm4346_vm2 = vcmask 261120   ;;  %s26267_s24 = sld [smem:[#allocation73_spill]] }
  0x93   : > { %14514 = vst [vmem:[#allocation9 + $0x18] sm:$0xff] %v21971_v0  ;;  %14515 = vst [vmem:[#allocation9 + $0x20] sm:$0xff] %v21971_v0  ;;  %s26366_s28 = smov (!%p653_p4, %s22073_s28), 1  ;;  %vm8159_vm3 = vcmask 124930   ;;  %vm8168_vm4 = vcmask 126980   ;;  %vm8177_vm5 = vcmask 129030  }
  0x94   : > { %14517 = vst [vmem:[#allocation9 + $0x30] sm:$0xff] %v21971_v0  ;;  %14518 = vst [vmem:[#allocation9 + $0x38] sm:$0xff] %v21971_v0  ;;  %s16640_s27 = sshll.u32 %s26366_s28, 8  ;;  %s660_s0 = scalar_lea.vmem %s26037_s15, %s26366_s28  ;;  %vm8038_vm6 = vcmask 253952   ;;  %vm8369_vm7 = vcmask 256002   ;;  %vm8378_vm8 = vcmask 258052  }
  0x95   : > { %14520 = vst [vmem:[#allocation9 + $0x48] sm:$0xff] %v21971_v0  ;;  %14521 = vst [vmem:[#allocation9 + $0x50] sm:$0xff] %v21971_v0  ;;  %vm8387_vm9 = vcmask 260102   ;;  %vm11141_vm10 = vcmask 523264   ;;  %vm12595_vm11 = vcmask 516096   ;;  %vm12649_vm12 = vcmask 518146  }
  0x96   : > { %14523 = vst [vmem:[#allocation9 + $0x60] sm:$0xff] %v21971_v0  ;;  %14524 = vst [vmem:[#allocation9 + $0x68] sm:$0xff] %v21971_v0  ;;  %vm12654_vm13 = vcmask 520196   ;;  %vm12659_vm14 = vcmask 522246   ;;  %s26360_s20 = sld [smem:[#allocation76_spill]]  ;;  %s26362_s18 = sld [smem:[#allocation75_spill]] }
  0x97   : > { %14526 = vst [vmem:[#allocation9 + $0x78] sm:$0xff] %v21971_v0  ;;  %14527 = vst [vmem:[#allocation9 + $0x80] sm:$0xff] %v21971_v0  ;;  %s22463_s26 = scalar_lea.vmem %s26189_s25, %s16640_s27  ;;  %s663_s25 = scalar_lea.vmem %s26038_s16, %s26366_s28 }
  0x98   : > { %774 = vst.msk [vmem:[#allocation2] sm:$0xff] %vm702_vm0, %v21971_v0  ;;  %775 = vst.msk [vmem:[#allocation2 + $0x8] sm:$0xff] %vm702_vm0, %v21971_v0  ;;  %v911_v1 = vld [vmem:[%s26190_s12] sm:$0xff]  ;;  %v912_v2 = vld [vmem:[%s26190_s12 + $0x8] sm:$0xff]  ;;  %s26363_s21 = sld [smem:[#allocation77_spill]] }
  0x99   : > { %776 = vst.msk [vmem:[#allocation2 + $0x10] sm:$0xff] %vm702_vm0, %v21971_v0  ;;  %777 = vst.msk [vmem:[#allocation2 + $0x18] sm:$0xff] %vm702_vm0, %v21971_v0  ;;  %v15758_v3 = vld [vmem:[%s26190_s12 + $0x20] sm:$0xff]  ;;  %v22474_v4 = vpack.c.bf16 %v912_v2, %v911_v1  ;;  %v15759_v6 = vld [vmem:[%s26190_s12 + $0x28] sm:$0xff] }
  0x9a   : > { %778 = vst.msk [vmem:[#allocation2 + $0x20] sm:$0xff] %vm702_vm0, %v21971_v0  ;;  %779 = vst.msk [vmem:[#allocation2 + $0x28] sm:$0xff] %vm702_vm0, %v21971_v0  ;;  %v20060_v7 = vpack.c.bf16 %v15759_v6, %v15758_v3  ;;  %v22481_v8 = vld [vmem:[%s22463_s26] sm:$0xff]  ;;  %v22484_v9 = vld [vmem:[%s22463_s26 + $0x8] sm:$0xff] }
  0x9b   : > { %780 = vst.msk [vmem:[#allocation2 + $0x30] sm:$0xff] %vm702_vm0, %v21971_v0  ;;  %781 = vst.msk [vmem:[#allocation2 + $0x38] sm:$0xff] %vm702_vm0, %v21971_v0  ;;  %v22487_v10 = vld [vmem:[%s22463_s26 + $0x10] sm:$0xff]  ;;  %20057 = vmatprep.subr.bf16.mxu0 %v22474_v4  ;;  %v703_v12 = vsel %vm702_vm0, %v22481_v8, 0.0  ;;  %v704_v13 = vsel %vm702_vm0, %v22484_v9, 0.0  ;;  %v22501_v14 = vld [vmem:[%s22463_s26 + $0x18] sm:$0xff] }
  0x9c   : > { %782 = vst.msk [vmem:[#allocation2 + $0x40] sm:$0xff] %vm702_vm0, %v21971_v0  ;;  %783 = vst.msk [vmem:[#allocation2 + $0x48] sm:$0xff] %vm702_vm0, %v21971_v0  ;;  %v674_v15 = vld [vmem:[%s22463_s26 + $0x20] sm:$0xff]  ;;  %20059 = vmatpush3.bf16.msra.mxu0 %v22474_v4  ;;  %v705_v16 = vadd.f32 %v704_v13, %v703_v12  ;;  %v706_v17 = vsel %vm702_vm0, %v22487_v10, 0.0  ;;  %v675_v18 = vld [vmem:[%s22463_s26 + $0x28] sm:$0xff]  ;;  %v708_v21 = vsel %vm702_vm0, %v22501_v14, 0.0 }
  0x9d   : > { %784 = vst.msk [vmem:[#allocation2 + $0x50] sm:$0xff] %vm702_vm0, %v21971_v0  ;;  %785 = vst.msk [vmem:[#allocation2 + $0x58] sm:$0xff] %vm702_vm0, %v21971_v0  ;;  %v676_v19 = vld [vmem:[%s22463_s26 + $0x30] sm:$0xff]  ;;  %v677_v20 = vld [vmem:[%s22463_s26 + $0x38] sm:$0xff]  ;;  %20061 = vmatprep.subr.bf16.mxu0 %v20060_v7  ;;  %v8046_v22 = vsel %vm702_vm0, %v674_v15, -inf  ;;  %v8049_v25 = vsel %vm702_vm0, %v675_v18, -inf }
  0x9e   : > { %786 = vst.msk [vmem:[#allocation2 + $0x60] sm:$0xff] %vm702_vm0, %v21971_v0  ;;  %787 = vst.msk [vmem:[#allocation2 + $0x68] sm:$0xff] %vm702_vm0, %v21971_v0  ;;  %v15792_v23 = vld [vmem:[%s26190_s12 + $0x30] sm:$0xff]  ;;  %v707_v24 = vadd.f32 %v706_v17, %v705_v16  ;;  %v15793_v26 = vld [vmem:[%s26190_s12 + $0x38] sm:$0xff]  ;;  %v710_v29 = vsel %vm702_vm0, %v674_v15, 0.0  ;;  %v8047_v30 = vsel %vm702_vm0, %v676_v19, -inf  ;;  %s669_s2 = scalar_lea.vmem %s26363_s21, %s26366_s28 }
  0x9f   : > { %788 = vst.msk [vmem:[#allocation2 + $0x70] sm:$0xff] %vm702_vm0, %v21971_v0  ;;  %789 = vst.msk [vmem:[#allocation2 + $0x78] sm:$0xff] %vm702_vm0, %v21971_v0  ;;  %v879_v5 = vld [vmem:[#allocation2 + $0x7] sm:$0xff]  ;;  %v22537_v31 = vld [vmem:[%s22463_s26 + $0x50] sm:$0xff]  ;;  %v22542_v34 = vmax.f32 %v8046_v22, %v8047_v30  ;;  %v8050_v35 = vsel %vm702_vm0, %v677_v20, -inf  ;;  %v712_v39 = vsel %vm702_vm0, %v675_v18, 0.0  ;;  %v22561_v41 = vpack.c.bf16 %v15793_v26, %v15792_v23 }
  0xa0   : > { %790 = vst.msk [vmem:[#allocation2 + $0x80] sm:$0xff] %vm702_vm0, %v21971_v0  ;;  %791 = vst.msk [vmem:[#allocation2 + $0x88] sm:$0xff] %vm702_vm0, %v21971_v0  ;;  %17975 = vmatprep.mubr.msk.f32.mxu0 %vm702_vm0, %v879_v5  ;;  %v880_v11 = vld [vmem:[#allocation2 + $0xf] sm:$0xff]  ;;  %v678_v27 = vld [vmem:[%s22463_s26 + $0x40] sm:$0xff]  ;;  %v709_v33 = vadd.f32 %v708_v21, %v707_v24  ;;  %v22559_v40 = vmax.f32 %v8049_v25, %v8050_v35  ;;  %v714_v49 = vsel %vm702_vm0, %v676_v19, 0.0  ;;  %v8040_v52 = vsel %vm702_vm0, %v22481_v8, -inf }
  0xa1   : > { %792 = vst.msk [vmem:[#allocation2 + $0x90] sm:$0xff] %vm702_vm0, %v21971_v0  ;;  %793 = vst.msk [vmem:[#allocation2 + $0x98] sm:$0xff] %vm702_vm0, %v21971_v0  ;;  %v22528_v28 = vld [vmem:[%s22463_s26 + $0x48] sm:$0xff]  ;;  %17976 = vmatmul.mubr.msk.f32.vlgmr.msra.gmra.mrb[0].mxu0 %vm702_vm0, %v880_v11  ;;  %v22540_v32 = vld [vmem:[%s22463_s26 + $0x58] sm:$0xff]  ;;  %v8052_v50 = vsel %vm702_vm0, %v678_v27, -inf  ;;  %v8053_v54 = vsel %vm702_vm0, %v22537_v31, -inf }
  0xa2   : > { %794 = vst.msk [vmem:[#allocation2 + $0xa0] sm:$0xff] %vm702_vm0, %v21971_v0  ;;  %795 = vst.msk [vmem:[#allocation2 + $0xa8] sm:$0xff] %vm702_vm0, %v21971_v0  ;;  %20063 = vmatpush3.bf16.msra.mxu0 %v20060_v7  ;;  %v22550_v36 = vld [vmem:[%s22463_s26 + $0x60] sm:$0xff]  ;;  %v22553_v37 = vld [vmem:[%s22463_s26 + $0x68] sm:$0xff]  ;;  %v711_v48 = vadd.f32 %v710_v29, %v709_v33  ;;  %v8055_v51 = vsel %vm702_vm0, %v22528_v28, -inf  ;;  %v8041_v55 = vsel %vm702_vm0, %v22487_v10, -inf  ;;  %v22610_v58 = vmax.f32 %v8052_v50, %v8053_v54 }
  0xa3   : > { %796 = vst.msk [vmem:[#allocation2 + $0xb0] sm:$0xff] %vm702_vm0, %v21971_v0  ;;  %797 = vst.msk [vmem:[#allocation2 + $0xb8] sm:$0xff] %vm702_vm0, %v21971_v0  ;;  %v22556_v38 = vld [vmem:[%s22463_s26 + $0x70] sm:$0xff]  ;;  %v22568_v42 = vld [vmem:[%s22463_s26 + $0x78] sm:$0xff]  ;;  %20065 = vmatprep.subr.bf16.mxu0 %v22561_v41  ;;  %v716_v57 = vsel %vm702_vm0, %v677_v20, 0.0  ;;  %v8056_v59 = vsel %vm702_vm0, %v22540_v32, -inf }
  0xa4   : > { %798 = vst.msk [vmem:[#allocation2 + $0xc0] sm:$0xff] %vm702_vm0, %v21971_v0  ;;  %799 = vst.msk [vmem:[#allocation2 + $0xc8] sm:$0xff] %vm702_vm0, %v21971_v0  ;;  %v22573_v43 = vld [vmem:[%s22463_s26 + $0x80] sm:$0xff]  ;;  %v22576_v44 = vld [vmem:[%s22463_s26 + $0x88] sm:$0xff]  ;;  %v713_v53 = vadd.f32 %v712_v39, %v711_v48  ;;  %v22616_v62 = vmax.f32 %v8055_v51, %v8056_v59  ;;  %v8058_v63 = vsel %vm702_vm0, %v22550_v36, -inf  ;;  %v8043_v1 = vsel %vm702_vm0, %v22484_v9, -inf }
  0xa5   : > { %800 = vst.msk [vmem:[#allocation2 + $0xd0] sm:$0xff] %vm702_vm0, %v21971_v0  ;;  %801 = vst.msk [vmem:[#allocation2 + $0xd8] sm:$0xff] %vm702_vm0, %v21971_v0  ;;  %v8044_v2 = vsel %vm702_vm0, %v22501_v14, -inf  ;;  %v718_v3 = vsel %vm702_vm0, %v678_v27, 0.0  ;;  %v8059_v6 = vsel %vm702_vm0, %v22556_v38, -inf  ;;  %v8062_v7 = vsel %vm702_vm0, %v22568_v42, -inf }
  0xa6   : > { %802 = vst.msk [vmem:[#allocation2 + $0xe0] sm:$0xff] %vm702_vm0, %v21971_v0  ;;  %803 = vst.msk [vmem:[#allocation2 + $0xe8] sm:$0xff] %vm702_vm0, %v21971_v0  ;;  %v715_v61 = vadd.f32 %v714_v49, %v713_v53  ;;  %v22641_v11 = vmax.f32 %v8058_v63, %v8059_v6  ;;  %v8045_v13 = vmax.f32 %v8043_v1, %v8044_v2  ;;  %v8064_v16 = vsel %vm702_vm0, %v22573_v43, -inf  ;;  %v22659_v21 = vld [vmem:[%s22463_s26 + $0x98] sm:$0xff]  ;;  %v22666_v23 = vld [vmem:[%s22463_s26 + $0xa0] sm:$0xff] }
  0xa7   : > { %804 = vst.msk [vmem:[#allocation2 + $0xf0] sm:$0xff] %vm702_vm0, %v21971_v0  ;;  %805 = vst.msk [vmem:[#allocation2 + $0xf8] sm:$0xff] %vm702_vm0, %v21971_v0  ;;  %v8067_v17 = vsel %vm702_vm0, %v22576_v44, -inf  ;;  %v1590_v24 = vld [vmem:[#allocation2 + $0x9] sm:$0xff]  ;;  %v22685_v30 = vld [vmem:[%s22463_s26 + $0xb8] sm:$0xff]  ;;  %v8070_v35 = vsel %vm702_vm0, %v22666_v23, -inf }
  0xa8   : > { %806 = vst.msk [vmem:[#allocation2 + $0x100] sm:$0xff] %vm702_vm0, %v21971_v0  ;;  %807 = vst.msk [vmem:[#allocation2 + $0x108] sm:$0xff] %vm702_vm0, %v21971_v0  ;;  %v717_v5 = vadd.f32 %v716_v57, %v715_v61  ;;  %v22682_v29 = vld [vmem:[%s22463_s26 + $0xb0] sm:$0xff]  ;;  %v22702_v39 = vld [vmem:[%s22463_s26 + $0xc0] sm:$0xff]  ;;  %v8194_v50 = vrot.slane %v8045_v13, 1  ;;  %v726_v57 = vsel %vm702_vm0, %v22550_v36, 0.0 }
  0xa9   : > { %808 = vst.msk [vmem:[#allocation2 + $0x110] sm:$0xff] %vm702_vm0, %v21971_v0  ;;  %809 = vst.msk [vmem:[#allocation2 + $0x118] sm:$0xff] %vm702_vm0, %v21971_v0  ;;  %v22705_v48 = vld [vmem:[%s22463_s26 + $0xc8] sm:$0xff]  ;;  %v22718_v53 = vld [vmem:[%s22463_s26 + $0xd8] sm:$0xff]  ;;  %v8071_v59 = vsel %vm702_vm0, %v22682_v29, -inf  ;;  %v8074_v61 = vsel %vm702_vm0, %v22685_v30, -inf }
  0xaa   : > { %810 = vst.msk [vmem:[#allocation2 + $0x120] sm:$0xff] %vm702_vm0, %v21971_v0  ;;  %811 = vst.msk [vmem:[#allocation2 + $0x128] sm:$0xff] %vm702_vm0, %v21971_v0  ;;  %v22723_v54 = vld [vmem:[%s22463_s26 + $0xe0] sm:$0xff]  ;;  %v1591_v1 = vld [vmem:[#allocation2 + $0x11] sm:$0xff]  ;;  %v728_v2 = vsel %vm702_vm0, %v22553_v37, 0.0 }
  0xab   : > { %812 = vst.msk [vmem:[#allocation2 + $0x130] sm:$0xff] %vm702_vm0, %v21971_v0  ;;  %813 = vst.msk [vmem:[#allocation2 + $0x138] sm:$0xff] %vm702_vm0, %v21971_v0 }
  0xac   : > { %814 = vst.msk [vmem:[#allocation2 + $0x140] sm:$0xff] %vm702_vm0, %v21971_v0  ;;  %815 = vst.msk [vmem:[#allocation2 + $0x148] sm:$0xff] %vm702_vm0, %v21971_v0 }
  0xad   : > { %816 = vst.msk [vmem:[#allocation2 + $0x150] sm:$0xff] %vm702_vm0, %v21971_v0  ;;  %817 = vst.msk [vmem:[#allocation2 + $0x158] sm:$0xff] %vm702_vm0, %v21971_v0 }
  0xae   : > { %818 = vst.msk [vmem:[#allocation2 + $0x160] sm:$0xff] %vm702_vm0, %v21971_v0  ;;  %819 = vst.msk [vmem:[#allocation2 + $0x168] sm:$0xff] %vm702_vm0, %v21971_v0 }
  0xaf   : > { %820 = vst.msk [vmem:[#allocation2 + $0x170] sm:$0xff] %vm702_vm0, %v21971_v0  ;;  %821 = vst.msk [vmem:[#allocation2 + $0x178] sm:$0xff] %vm702_vm0, %v21971_v0 }
  0xb0   : > { %822 = vst.msk [vmem:[#allocation2 + $0x180] sm:$0xff] %vm702_vm0, %v21971_v0  ;;  %823 = vst.msk [vmem:[#allocation2 + $0x188] sm:$0xff] %vm702_vm0, %v21971_v0 }
  0xb1   : > { %824 = vst.msk [vmem:[#allocation2 + $0x190] sm:$0xff] %vm702_vm0, %v21971_v0  ;;  %825 = vst.msk [vmem:[#allocation2 + $0x198] sm:$0xff] %vm702_vm0, %v21971_v0 }
  0xb2   : > { %826 = vst.msk [vmem:[#allocation2 + $0x1a0] sm:$0xff] %vm702_vm0, %v21971_v0  ;;  %827 = vst.msk [vmem:[#allocation2 + $0x1a8] sm:$0xff] %vm702_vm0, %v21971_v0 }
  0xb3   : > { %828 = vst.msk [vmem:[#allocation2 + $0x1b0] sm:$0xff] %vm702_vm0, %v21971_v0  ;;  %829 = vst.msk [vmem:[#allocation2 + $0x1b8] sm:$0xff] %vm702_vm0, %v21971_v0 }
  0xb4   : > { %830 = vst.msk [vmem:[#allocation2 + $0x1c0] sm:$0xff] %vm702_vm0, %v21971_v0  ;;  %831 = vst.msk [vmem:[#allocation2 + $0x1c8] sm:$0xff] %vm702_vm0, %v21971_v0 }
  0xb5   : > { %832 = vst.msk [vmem:[#allocation2 + $0x1d0] sm:$0xff] %vm702_vm0, %v21971_v0  ;;  %833 = vst.msk [vmem:[#allocation2 + $0x1d8] sm:$0xff] %vm702_vm0, %v21971_v0 }
  0xb6   : > { %834 = vst.msk [vmem:[#allocation2 + $0x1e0] sm:$0xff] %vm702_vm0, %v21971_v0  ;;  %835 = vst.msk [vmem:[#allocation2 + $0x1e8] sm:$0xff] %vm702_vm0, %v21971_v0 }
  0xb7   : > { %836 = vst.msk [vmem:[#allocation2 + $0x1f0] sm:$0xff] %vm702_vm0, %v21971_v0  ;;  %837 = vst.msk [vmem:[#allocation2 + $0x1f8] sm:$0xff] %vm702_vm0, %v21971_v0 }
  0xb8   : > { %838 = vst.msk [vmem:[#allocation2 + $0x200] sm:$0xff] %vm702_vm0, %v21971_v0  ;;  %839 = vst.msk [vmem:[#allocation2 + $0x208] sm:$0xff] %vm702_vm0, %v21971_v0 }
  0xb9   : > { %840 = vst.msk [vmem:[#allocation2 + $0x210] sm:$0xff] %vm702_vm0, %v21971_v0  ;;  %841 = vst.msk [vmem:[#allocation2 + $0x218] sm:$0xff] %vm702_vm0, %v21971_v0 }
  0xba   : > { %842 = vst.msk [vmem:[#allocation2 + $0x220] sm:$0xff] %vm702_vm0, %v21971_v0  ;;  %843 = vst.msk [vmem:[#allocation2 + $0x228] sm:$0xff] %vm702_vm0, %v21971_v0 }
  0xbb   : > { %844 = vst.msk [vmem:[#allocation2 + $0x230] sm:$0xff] %vm702_vm0, %v21971_v0  ;;  %845 = vst.msk [vmem:[#allocation2 + $0x238] sm:$0xff] %vm702_vm0, %v21971_v0 }
  0xbc   : > { %8088 = vst.msk [vmem:[#allocation4] sm:$0xff] %vm702_vm0, %v21971_v0  ;;  %8089 = vst.msk [vmem:[#allocation4 + $0x8] sm:$0xff] %vm702_vm0, %v21971_v0 }
  0xbd   : > { %8090 = vst.msk [vmem:[#allocation4 + $0x10] sm:$0xff] %vm702_vm0, %v21971_v0  ;;  %8091 = vst.msk [vmem:[#allocation4 + $0x18] sm:$0xff] %vm702_vm0, %v21971_v0 }
  0xbe   : > { %8092 = vst.msk [vmem:[#allocation4 + $0x20] sm:$0xff] %vm702_vm0, %v21971_v0  ;;  %8093 = vst.msk [vmem:[#allocation4 + $0x28] sm:$0xff] %vm702_vm0, %v21971_v0 }
  0xbf   : > { %8094 = vst.msk [vmem:[#allocation4 + $0x30] sm:$0xff] %vm702_vm0, %v21971_v0  ;;  %8095 = vst.msk [vmem:[#allocation4 + $0x38] sm:$0xff] %vm702_vm0, %v21971_v0 }
  0xc0   : > { %8096 = vst.msk [vmem:[#allocation4 + $0x40] sm:$0xff] %vm702_vm0, %v21971_v0  ;;  %8097 = vst.msk [vmem:[#allocation4 + $0x48] sm:$0xff] %vm702_vm0, %v21971_v0 }
  0xc1   : > { %8098 = vst.msk [vmem:[#allocation4 + $0x50] sm:$0xff] %vm702_vm0, %v21971_v0  ;;  %8099 = vst.msk [vmem:[#allocation4 + $0x58] sm:$0xff] %vm702_vm0, %v21971_v0 }
  0xc2   : > { %8100 = vst.msk [vmem:[#allocation4 + $0x60] sm:$0xff] %vm702_vm0, %v21971_v0  ;;  %8101 = vst.msk [vmem:[#allocation4 + $0x68] sm:$0xff] %vm702_vm0, %v21971_v0 }
  0xc3   : > { %8102 = vst.msk [vmem:[#allocation4 + $0x70] sm:$0xff] %vm702_vm0, %v21971_v0  ;;  %8103 = vst.msk [vmem:[#allocation4 + $0x78] sm:$0xff] %vm702_vm0, %v21971_v0 }
  0xc4   : > { %8104 = vst.msk [vmem:[#allocation4 + $0x80] sm:$0xff] %vm702_vm0, %v21971_v0  ;;  %8105 = vst.msk [vmem:[#allocation4 + $0x88] sm:$0xff] %vm702_vm0, %v21971_v0 }
  0xc5   : > { %8106 = vst.msk [vmem:[#allocation4 + $0x90] sm:$0xff] %vm702_vm0, %v21971_v0  ;;  %8107 = vst.msk [vmem:[#allocation4 + $0x98] sm:$0xff] %vm702_vm0, %v21971_v0 }
  0xc6   : > { %8108 = vst.msk [vmem:[#allocation4 + $0xa0] sm:$0xff] %vm702_vm0, %v21971_v0  ;;  %8109 = vst.msk [vmem:[#allocation4 + $0xa8] sm:$0xff] %vm702_vm0, %v21971_v0 }
  0xc7   : > { %8110 = vst.msk [vmem:[#allocation4 + $0xb0] sm:$0xff] %vm702_vm0, %v21971_v0  ;;  %8111 = vst.msk [vmem:[#allocation4 + $0xb8] sm:$0xff] %vm702_vm0, %v21971_v0 }
  0xc8   : > { %8112 = vst.msk [vmem:[#allocation4 + $0xc0] sm:$0xff] %vm702_vm0, %v21971_v0  ;;  %8113 = vst.msk [vmem:[#allocation4 + $0xc8] sm:$0xff] %vm702_vm0, %v21971_v0 }
  0xc9   : > { %8114 = vst.msk [vmem:[#allocation4 + $0xd0] sm:$0xff] %vm702_vm0, %v21971_v0  ;;  %8115 = vst.msk [vmem:[#allocation4 + $0xd8] sm:$0xff] %vm702_vm0, %v21971_v0 }
  0xca   : > { %8116 = vst.msk [vmem:[#allocation4 + $0xe0] sm:$0xff] %vm702_vm0, %v21971_v0  ;;  %8117 = vst.msk [vmem:[#allocation4 + $0xe8] sm:$0xff] %vm702_vm0, %v21971_v0  ;;  %v8061_v0 = vsel %vm702_vm0, %v22553_v37, -inf }
  0xcb   : > { %847 = vst.msk [vmem:[#allocation2 + $0x28] sm:$0xff] %vm702_vm0, %v22481_v8  ;;  %848 = vst.msk [vmem:[#allocation2 + $0x30] sm:$0xff] %vm702_vm0, %v22484_v9  ;;  %v22633_v8 = vmax.f32 %v8040_v52, %v8041_v55  ;;  %v22643_v12 = vmax.f32 %v8061_v0, %v8062_v7  ;;  %v22726_v55 = vld [vmem:[%s22463_s26 + $0xe8] sm:$0xff]  ;;  %v22756_v7 = vmax.f32 %v8045_v13, %v8194_v50  ;;  %v8080_v13 = vsel %vm702_vm0, %v22718_v53, -inf }
  0xcc   : > { %849 = vst.msk [vmem:[#allocation2 + $0x48] sm:$0xff] %vm702_vm0, %v22487_v10  ;;  %850 = vst.msk [vmem:[#allocation2 + $0x50] sm:$0xff] %vm702_vm0, %v22501_v14  ;;  %v720_v10 = vsel %vm702_vm0, %v22528_v28, 0.0  ;;  %v736_v50 = vsel %vm702_vm0, %v22576_v44, 0.0 }
  0xcd   : > { %851 = vst.msk [vmem:[#allocation2 + $0x68] sm:$0xff] %vm702_vm0, %v674_v15  ;;  %852 = vst.msk [vmem:[#allocation2 + $0x70] sm:$0xff] %vm702_vm0, %v675_v18  ;;  %v719_v15 = vadd.f32 %v718_v3, %v717_v5  ;;  %v22652_v18 = vld [vmem:[%s22463_s26 + $0x90] sm:$0xff]  ;;  %v8126_v49 = vrot.slane %v22633_v8, 1  ;;  %v8076_v3 = vsel %vm702_vm0, %v22702_v39, -inf  ;;  %v8079_v5 = vsel %vm702_vm0, %v22705_v48, -inf }
  0xce   : > { %853 = vst.msk [vmem:[#allocation2 + $0x88] sm:$0xff] %vm702_vm0, %v676_v19  ;;  %854 = vst.msk [vmem:[#allocation2 + $0x90] sm:$0xff] %vm702_vm0, %v677_v20  ;;  %v722_v20 = vsel %vm702_vm0, %v22537_v31, 0.0  ;;  %v8065_v22 = vsel %vm702_vm0, %v22652_v18, -inf }
  0xcf   : > { %855 = vst.msk [vmem:[#allocation2 + $0xa8] sm:$0xff] %vm702_vm0, %v678_v27  ;;  %856 = vst.msk [vmem:[#allocation2 + $0xb0] sm:$0xff] %vm702_vm0, %v22528_v28  ;;  %v721_v25 = vadd.f32 %v720_v10, %v719_v15  ;;  %v22672_v26 = vmax.f32 %v8064_v16, %v8065_v22  ;;  %v8068_v27 = vsel %vm702_vm0, %v22659_v21, -inf  ;;  %v22677_v28 = vld [vmem:[%s22463_s26 + $0xa8] sm:$0xff]  ;;  %v22754_v6 = vmax.f32 %v22633_v8, %v8126_v49  ;;  %v15826_v16 = vld [vmem:[%s26190_s12 + $0x40] sm:$0xff] }
  0xd0   : > { %26191 = vst [vmem:[#allocation22_spill] sm:$0xff] %v22542_v34  ;;  %857 = vst.msk [vmem:[#allocation2 + $0xc8] sm:$0xff] %vm702_vm0, %v22537_v31  ;;  %v724_v31 = vsel %vm702_vm0, %v22540_v32, 0.0  ;;  %v22691_v33 = vmax.f32 %v8067_v17, %v8068_v27  ;;  %v8073_v52 = vsel %vm702_vm0, %v22677_v28, -inf  ;;  %v730_v17 = vsel %vm702_vm0, %v22556_v38, 0.0  ;;  %v15894_v34 = vld [vmem:[%s26190_s12 + $0x60] sm:$0xff] }
  0xd1   : > { %858 = vst.msk [vmem:[#allocation2 + $0xd0] sm:$0xff] %vm702_vm0, %v22540_v32  ;;  %26192 = vst [vmem:[#allocation23_spill] sm:$0xff] %v22559_v40  ;;  %v22708_v32 = vld [vmem:[%s22463_s26 + $0xd0] sm:$0xff]  ;;  %v723_v51 = vadd.f32 %v722_v20, %v721_v25  ;;  %v22744_v0 = vmax.f32 %v8073_v52, %v8074_v61 }
  0xd2   : > { %859 = vst.msk [vmem:[#allocation2 + $0xe8] sm:$0xff] %vm702_vm0, %v22550_v36  ;;  %860 = vst.msk [vmem:[#allocation2 + $0xf0] sm:$0xff] %vm702_vm0, %v22553_v37  ;;  %v22578_v45 = vld [vmem:[#allocation2 + $0x27] sm:$0xff]  ;;  %v22580_v46 = vld [vmem:[#allocation2 + $0x2f] sm:$0xff]  ;;  %v22742_v36 = vmax.f32 %v8070_v35, %v8071_v59  ;;  %v8077_v8 = vsel %vm702_vm0, %v22708_v32, -inf  ;;  %v8085_v59 = vsel %vm702_vm0, %v22726_v55, -inf }
  0xd3   : > { %861 = vst.msk [vmem:[#allocation2 + $0x108] sm:$0xff] %vm702_vm0, %v22556_v38  ;;  %v22582_v47 = vld [vmem:[#allocation2 + $0x47] sm:$0xff]  ;;  %862 = vst.msk [vmem:[#allocation2 + $0x110] sm:$0xff] %vm702_vm0, %v22568_v42  ;;  %17978 = vmatprep.mubr.msk.f32.mxu0 %vm702_vm0, %v22578_v45  ;;  %v22607_v56 = vld [vmem:[#allocation2 + $0x4f] sm:$0xff]  ;;  %v725_v63 = vadd.f32 %v724_v31, %v723_v51  ;;  %v22773_v22 = vmax.f32 %v8076_v3, %v8077_v8  ;;  %v732_v38 = vsel %vm702_vm0, %v22568_v42, 0.0 }
  0xd4   : > { %26193 = vst [vmem:[#allocation24_spill] sm:$0xff] %v22582_v47  ;;  %863 = vst.msk [vmem:[#allocation2 + $0x128] sm:$0xff] %vm702_vm0, %v22573_v43  ;;  %17979 = vmatmul.mubr.msk.f32.gmra.mrb[2].mxu0 %vm702_vm0, %v22580_v46  ;;  %v22614_v60 = vld [vmem:[#allocation2 + $0x67] sm:$0xff]  ;;  %v22637_v9 = vld [vmem:[#allocation2 + $0x6f] sm:$0xff] }
  0xd5   : > { %864 = vst.msk [vmem:[#allocation2 + $0x130] sm:$0xff] %vm702_vm0, %v22576_v44  ;;  %17981 = vmatprep.mubr.msk.f32.mxu0 %vm702_vm0, %v22582_v47  ;;  %26194 = vst [vmem:[#allocation25_spill] sm:$0xff] %v22607_v56  ;;  %v22645_v14 = vld [vmem:[#allocation2 + $0x87] sm:$0xff]  ;;  %v22654_v19 = vld [vmem:[#allocation2 + $0x8f] sm:$0xff]  ;;  %v727_v15 = vadd.f32 %v726_v57, %v725_v63  ;;  %v8082_v57 = vsel %vm702_vm0, %v22723_v54, -inf }
  0xd6   : > { %26195 = vst [vmem:[#allocation26_spill] sm:$0xff] %v22610_v58  ;;  %26196 = vst [vmem:[#allocation27_spill] sm:$0xff] %v22614_v60  ;;  %v22758_v10 = vld [vmem:[#allocation2 + $0x29] sm:$0xff]  ;;  %v22780_v25 = vld [vmem:[#allocation2 + $0x31] sm:$0xff] }
  0xd7   : > { %26197 = vst [vmem:[#allocation28_spill] sm:$0xff] %v22616_v62  ;;  %26198 = vst [vmem:[#allocation29_spill] sm:$0xff] %v22637_v9  ;;  %v15827_v37 = vld [vmem:[%s26190_s12 + $0x48] sm:$0xff]  ;;  %v729_v20 = vadd.f32 %v728_v2, %v727_v15  ;;  %v22799_v49 = vld [vmem:[#allocation2 + $0x51] sm:$0xff] }
  0xd8   : > { %17982 = vmatmul.mubr.msk.f32.gmra.mrb[4].mxu0 %vm702_vm0, %v22607_v56  ;;  %26199 = vst [vmem:[#allocation30_spill] sm:$0xff] %v22641_v11  ;;  %26200 = vst [vmem:[#allocation31_spill] sm:$0xff] %v22643_v12  ;;  %v22784_v27 = vpack.c.bf16 %v15827_v37, %v15826_v16  ;;  %v22786_v31 = vld [vmem:[#allocation2 + $0x49] sm:$0xff]  ;;  %v22817_v44 = vld [vmem:[#allocation2 + $0x71] sm:$0xff] }
  0xd9   : > { %17984 = vmatprep.mubr.msk.f32.mxu0 %vm702_vm0, %v22614_v60  ;;  %26201 = vst [vmem:[#allocation32_spill] sm:$0xff] %v22645_v14  ;;  %26202 = vst [vmem:[#allocation33_spill] sm:$0xff] %v22654_v19  ;;  %v731_v35 = vadd.f32 %v730_v17, %v729_v20  ;;  %v22803_v51 = vld [vmem:[#allocation2 + $0x69] sm:$0xff]  ;;  %v742_v17 = vsel %vm702_vm0, %v22666_v23, 0.0  ;;  %v744_v20 = vsel %vm702_vm0, %v22677_v28, 0.0 }
  0xda   : > { %865 = vst.msk [vmem:[#allocation2 + $0x148] sm:$0xff] %vm702_vm0, %v22652_v18  ;;  %866 = vst.msk [vmem:[#allocation2 + $0x150] sm:$0xff] %vm702_vm0, %v22659_v21  ;;  %v700_v63 = vld [vmem:[%s22463_s26 + $0xf0] sm:$0xff]  ;;  %v2366_v40 = vld [vmem:[#allocation2 + $0x28] sm:$0xff] }
  0xdb   : > { %26203 = vst [vmem:[#allocation34_spill] sm:$0xff] %v22672_v26  ;;  %867 = vst.msk [vmem:[#allocation2 + $0x168] sm:$0xff] %vm702_vm0, %v22666_v23  ;;  %v733_v42 = vadd.f32 %v732_v38, %v731_v35  ;;  %v8083_v2 = vsel %vm702_vm0, %v700_v63, -inf  ;;  %v746_v35 = vsel %vm702_vm0, %v22682_v29, 0.0 }
  0xdc   : > { %17985 = vmatmul.mubr.msk.f32.gmra.mrb[6].mxu0 %vm702_vm0, %v22637_v9  ;;  %26204 = vst [vmem:[#allocation35_spill] sm:$0xff] %v22691_v33  ;;  %868 = vst.msk [vmem:[#allocation2 + $0x170] sm:$0xff] %vm702_vm0, %v22677_v28  ;;  %v22827_v16 = vmax.f32 %v8082_v57, %v8083_v2  ;;  %v750_v28 = vsel %vm702_vm0, %v22702_v39, 0.0  ;;  %v752_v57 = vsel %vm702_vm0, %v22705_v48, 0.0  ;;  %v756_v2 = vsel %vm702_vm0, %v22718_v53, 0.0 }
  0xdd   : > { %17987 = vmatprep.mubr.msk.f32.mxu0 %vm702_vm0, %v22645_v14  ;;  %869 = vst.msk [vmem:[#allocation2 + $0x188] sm:$0xff] %vm702_vm0, %v22682_v29  ;;  %870 = vst.msk [vmem:[#allocation2 + $0x190] sm:$0xff] %vm702_vm0, %v22685_v30 }
  0xde   : > { %871 = vst.msk [vmem:[#allocation2 + $0x1a8] sm:$0xff] %vm702_vm0, %v22702_v39  ;;  %872 = vst.msk [vmem:[#allocation2 + $0x1b0] sm:$0xff] %vm702_vm0, %v22705_v48 }
  0xdf   : > { %873 = vst.msk [vmem:[#allocation2 + $0x1c8] sm:$0xff] %vm702_vm0, %v22708_v32  ;;  %874 = vst.msk [vmem:[#allocation2 + $0x1d0] sm:$0xff] %vm702_vm0, %v22718_v53 }
  0xe0   : > { %875 = vst.msk [vmem:[#allocation2 + $0x1e8] sm:$0xff] %vm702_vm0, %v22723_v54  ;;  %876 = vst.msk [vmem:[#allocation2 + $0x1f0] sm:$0xff] %vm702_vm0, %v22726_v55  ;;  %17988 = vmatmul.mubr.msk.f32.gmra.mrb[8].mxu0 %vm702_vm0, %v22654_v19 }
  0xe1   : > { %26205 = vst [vmem:[#allocation36_spill] sm:$0xff] %v22742_v36  ;;  %26206 = vst [vmem:[#allocation37_spill] sm:$0xff] %v22744_v0  ;;  %18027 = vmatprep.mubr.msk.f32.mxu0 %vm702_vm0, %v1590_v24  ;;  %v22775_v24 = vmax.f32 %v8079_v5, %v8080_v13  ;;  %v22825_v5 = vld [vmem:[#allocation2 + $0x89] sm:$0xff] }
  0xe2   : > { %26207 = vst [vmem:[#allocation38_spill] sm:$0xff] %v22754_v6  ;;  %26208 = vst [vmem:[#allocation39_spill] sm:$0xff] %v22756_v7  ;;  %v22839_v13 = vld [vmem:[#allocation2 + $0xa9] sm:$0xff] }
  0xe3   : > { %26209 = vst [vmem:[#allocation40_spill] sm:$0xff] %v22773_v22  ;;  %26210 = vst [vmem:[#allocation41_spill] sm:$0xff] %v22775_v24 }
  0xe4   : > { %18028 = vmatmul.mubr.msk.f32.vlgmr.msra.gmra.mrb[0].mxu0 %vm702_vm0, %v1591_v1  ;;  %8151 = vst.msk [vmem:[#allocation4 + $0x20] sm:$0x1] %vm772_vm1, %v22754_v6  ;;  %8218 = vst.msk [vmem:[#allocation4 + $0x24] sm:$0x1] %vm772_vm1, %v22756_v7  ;;  %v701_v1 = vld [vmem:[%s22463_s26 + $0xf8] sm:$0xff]  ;;  %v23018_v7 = vld [vmem:[#allocation2 + $0x147] sm:$0xff] }
  0xe5   : > { %20067 = vmatpush3.bf16.msra.mxu0 %v22561_v41  ;;  %18030 = vmatprep.mubr.msk.f32.mxu0 %vm702_vm0, %v22758_v10  ;;  %v734_v41 = vsel %vm702_vm0, %v22573_v43, 0.0  ;;  %v738_v43 = vsel %vm702_vm0, %v22652_v18, 0.0  ;;  %v740_v18 = vsel %vm702_vm0, %v22659_v21, 0.0  ;;  %877 = vst.msk [vmem:[#allocation2 + $0x208] sm:$0xff] %vm702_vm0, %v700_v63  ;;  %878 = vst.msk [vmem:[#allocation2 + $0x210] sm:$0xff] %vm702_vm0, %v701_v1  ;;  %v8086_v3 = vsel %vm702_vm0, %v701_v1, -inf }
  0xe6   : > { %20069 = vmatprep.subr.bf16.mxu0 %v22784_v27  ;;  %v735_v52 = vadd.f32 %v734_v41, %v733_v42  ;;  %26211 = vst [vmem:[#allocation42_spill] sm:$0xff] %v22827_v16  ;;  %v22829_v37 = vmax.f32 %v8085_v59, %v8086_v3  ;;  %v22835_v21 = vld [vmem:[#allocation2 + $0x91] sm:$0xff]  ;;  %v748_v42 = vsel %vm702_vm0, %v22685_v30, 0.0  ;;  %v22865_v59 = vld [vmem:[#allocation2 + $0xe9] sm:$0xff]  ;;  %26219 = vst [vmem:[#allocation50_spill] sm:$0xff] %v23018_v7 }
  0xe7   : > { %v22849_v41 = vld [vmem:[#allocation2 + $0xb1] sm:$0xff]  ;;  %v22877_v3 = vld [vmem:[#allocation2 + $0x109] sm:$0xff] }
  0xe8   : > { %18031 = vmatmul.mubr.msk.f32.gmra.mrb[2].mxu0 %vm702_vm0, %v22780_v25  ;;  %v737_v61 = vadd.f32 %v736_v50, %v735_v52  ;;  %26212 = vst [vmem:[#allocation43_spill] sm:$0xff] %v22829_v37  ;;  %v22853_v50 = vld [vmem:[#allocation2 + $0xc9] sm:$0xff] }
  0xe9   : > { %18033 = vmatprep.mubr.msk.f32.mxu0 %vm702_vm0, %v22786_v31  ;;  %v23024_v6 = vld [vmem:[#allocation2 + $0x14f] sm:$0xff]  ;;  %v23026_v37 = vld [vmem:[#allocation2 + $0x167] sm:$0xff] }
  0xea   : > { %v739_v15 = vadd.f32 %v738_v43, %v737_v61  ;;  %v22861_v43 = vld [vmem:[#allocation2 + $0xd1] sm:$0xff]  ;;  %v754_v61 = vsel %vm702_vm0, %v22708_v32, 0.0  ;;  %26220 = vst [vmem:[#allocation51_spill] sm:$0xff] %v23024_v6  ;;  %26221 = vst [vmem:[#allocation52_spill] sm:$0xff] %v23026_v37  ;;  %v23034_v24 = vld [vmem:[#allocation2 + $0x187] sm:$0xff] }
  0xeb   : > { %v23032_v16 = vld [vmem:[#allocation2 + $0x16f] sm:$0xff]  ;;  %26223 = vst [vmem:[#allocation54_spill] sm:$0xff] %v23034_v24  ;;  %v23042_v0 = vld [vmem:[#allocation2 + $0x1a7] sm:$0xff] }
  0xec   : > { %18034 = vmatmul.mubr.msk.f32.gmra.mrb[4].mxu0 %vm702_vm0, %v22799_v49  ;;  %v741_v8 = vadd.f32 %v740_v18, %v739_v15  ;;  %v22873_v18 = vld [vmem:[#allocation2 + $0xf1] sm:$0xff]  ;;  %v758_v15 = vsel %vm702_vm0, %v22723_v54, 0.0  ;;  %26222 = vst [vmem:[#allocation53_spill] sm:$0xff] %v23032_v16  ;;  %26225 = vst [vmem:[#allocation56_spill] sm:$0xff] %v23042_v0  ;;  %v23050_v33 = vld [vmem:[#allocation2 + $0x1c7] sm:$0xff] }
  0xed   : > { %18036 = vmatprep.mubr.msk.f32.mxu0 %vm702_vm0, %v22803_v51  ;;  %v23040_v22 = vld [vmem:[#allocation2 + $0x18f] sm:$0xff]  ;;  %26227 = vst [vmem:[#allocation58_spill] sm:$0xff] %v23050_v33  ;;  %v23058_v12 = vld [vmem:[#allocation2 + $0x1e7] sm:$0xff] }
  0xee   : > { %v743_v38 = vadd.f32 %v742_v17, %v741_v8  ;;  %v22885_v17 = vld [vmem:[#allocation2 + $0x111] sm:$0xff]  ;;  %v760_v8 = vsel %vm702_vm0, %v22726_v55, 0.0  ;;  %26224 = vst [vmem:[#allocation55_spill] sm:$0xff] %v23040_v22  ;;  %26229 = vst [vmem:[#allocation60_spill] sm:$0xff] %v23058_v12  ;;  %v23066_v62 = vld [vmem:[#allocation2 + $0x207] sm:$0xff] }
  0xef   : > { %v23048_v36 = vld [vmem:[#allocation2 + $0x1af] sm:$0xff]  ;;  %26231 = vst [vmem:[#allocation62_spill] sm:$0xff] %v23066_v62 }
  0xf0   : > { %18037 = vmatmul.mubr.msk.f32.gmra.mrb[6].mxu0 %vm702_vm0, %v22817_v44  ;;  %v745_v23 = vadd.f32 %v744_v20, %v743_v38  ;;  %v22889_v20 = vld [vmem:[#allocation2 + $0x129] sm:$0xff]  ;;  %v762_v38 = vsel %vm702_vm0, %v700_v63, 0.0  ;;  %v22905_v63 = vld [vmem:[#allocation2 + $0x151] sm:$0xff]  ;;  %26226 = vst [vmem:[#allocation57_spill] sm:$0xff] %v23048_v36 }
  0xf1   : > { %18039 = vmatprep.mubr.msk.f32.mxu0 %vm702_vm0, %v22825_v5  ;;  %v23056_v26 = vld [vmem:[#allocation2 + $0x1cf] sm:$0xff] }
  0xf2   : > { %v747_v52 = vadd.f32 %v746_v35, %v745_v23  ;;  %v22896_v35 = vld [vmem:[#allocation2 + $0x131] sm:$0xff]  ;;  %v764_v23 = vsel %vm702_vm0, %v701_v1, 0.0  ;;  %26228 = vst [vmem:[#allocation59_spill] sm:$0xff] %v23056_v26 }
  0xf3   : > { %v23064_v11 = vld [vmem:[#allocation2 + $0x1ef] sm:$0xff] }
  0xf4   : > { %18040 = vmatmul.mubr.msk.f32.gmra.mrb[8].mxu0 %vm702_vm0, %v22835_v21  ;;  %v749_v29 = vadd.f32 %v748_v42, %v747_v52  ;;  %v22899_v42 = vld [vmem:[#allocation2 + $0x149] sm:$0xff]  ;;  %26230 = vst [vmem:[#allocation61_spill] sm:$0xff] %v23064_v11 }
  0xf5   : > { %18042 = vmatprep.mubr.msk.f32.mxu0 %vm702_vm0, %v22839_v13  ;;  %v23072_v58 = vld [vmem:[#allocation2 + $0x20f] sm:$0xff] }
  0xf6   : > { %v751_v30 = vadd.f32 %v750_v28, %v749_v29  ;;  %v22907_v28 = vld [vmem:[#allocation2 + $0x169] sm:$0xff]  ;;  %26232 = vst [vmem:[#allocation63_spill] sm:$0xff] %v23072_v58 }
  0xf8   : > { %18043 = vmatmul.mubr.msk.f32.gmra.mrb[10].mxu0 %vm702_vm0, %v22849_v41  ;;  %v753_v39 = vadd.f32 %v752_v57, %v751_v30  ;;  %v22913_v57 = vld [vmem:[#allocation2 + $0x171] sm:$0xff]  ;;  %v22915_v30 = vld [vmem:[#allocation2 + $0x189] sm:$0xff] }
  0xf9   : > { %18045 = vmatprep.mubr.msk.f32.mxu0 %vm702_vm0, %v22853_v50 }
  0xfa   : > { %v755_v48 = vadd.f32 %v754_v61, %v753_v39 }
  0xfc   : > { %18046 = vmatmul.mubr.msk.f32.gmra.mrb[12].mxu0 %vm702_vm0, %v22861_v43  ;;  %v757_v32 = vadd.f32 %v756_v2, %v755_v48  ;;  %v22921_v2 = vld [vmem:[#allocation2 + $0x191] sm:$0xff]  ;;  %v22923_v48 = vld [vmem:[#allocation2 + $0x1a9] sm:$0xff] }
  0xfd   : > { %18048 = vmatprep.mubr.msk.f32.mxu0 %vm702_vm0, %v22865_v59 }
  0xfe   : > { %v759_v53 = vadd.f32 %v758_v15, %v757_v32 }
 0x100   : > { %18049 = vmatmul.mubr.msk.f32.gmra.mrb[14].mxu0 %vm702_vm0, %v22873_v18  ;;  %v761_v54 = vadd.f32 %v760_v8, %v759_v53  ;;  %v22933_v8 = vld [vmem:[#allocation2 + $0x1b1] sm:$0xff]  ;;  %v22935_v53 = vld [vmem:[#allocation2 + $0x1c9] sm:$0xff] }
 0x101   : > { %18051 = vmatprep.mubr.msk.f32.mxu0 %vm702_vm0, %v22877_v3 }
 0x102   : > { %v763_v52 = vadd.f32 %v762_v38, %v761_v54  ;;  %v22942_v38 = vld [vmem:[#allocation2 + $0x1d1] sm:$0xff]  ;;  %v22944_v54 = vld [vmem:[#allocation2 + $0x1e9] sm:$0xff] }
 0x103   : > { %26213 = vst [vmem:[#allocation44_spill] sm:$0xff] %v22942_v38  ;;  %26214 = vst [vmem:[#allocation45_spill] sm:$0xff] %v22944_v54 }
 0x104   : > { %18052 = vmatmul.mubr.msk.f32.gmra.mrb[16].mxu0 %vm702_vm0, %v22885_v17  ;;  %v765_v55 = vadd.f32 %v764_v23, %v763_v52  ;;  %v22950_v23 = vld [vmem:[#allocation2 + $0x1f1] sm:$0xff] }
 0x105   : > { %18054 = vmatprep.mubr.msk.f32.mxu0 %vm702_vm0, %v22889_v20  ;;  %26215 = vst [vmem:[#allocation46_spill] sm:$0xff] %v22950_v23  ;;  %v15860_v52 = vld [vmem:[%s26190_s12 + $0x50] sm:$0xff] }
 0x106   : > { %v766_v29 = vrot.slane %v765_v55, 4 }
 0x108   : > { %18055 = vmatmul.mubr.msk.f32.gmra.mrb[18].mxu0 %vm702_vm0, %v22896_v35  ;;  %v767_v1 = vadd.f32 %v766_v29, %v765_v55  ;;  %v15861_v55 = vld [vmem:[%s26190_s12 + $0x58] sm:$0xff] }
 0x109   : > { %18057 = vmatprep.mubr.msk.f32.mxu0 %vm702_vm0, %v22899_v42  ;;  %v22962_v29 = vpack.c.bf16 %v15861_v55, %v15860_v52  ;;  %v23010_v52 = vld [vmem:[#allocation2 + $0x127] sm:$0xff]  ;;  %v23016_v55 = vld [vmem:[#allocation2 + $0x12f] sm:$0xff] }
 0x10a   : > { %v768_v61 = vrot.slane %v767_v1, 2  ;;  %26217 = vst [vmem:[#allocation48_spill] sm:$0xff] %v23010_v52  ;;  %26218 = vst [vmem:[#allocation49_spill] sm:$0xff] %v23016_v55 }
 0x10c   : > { %18058 = vmatmul.mubr.msk.f32.gmra.mrb[20].mxu0 %vm702_vm0, %v22905_v63  ;;  %v769_v39 = vadd.f32 %v768_v61, %v767_v1  ;;  %v22992_v1 = vld [vmem:[#allocation2 + $0xcf] sm:$0xff]  ;;  %v22994_v61 = vld [vmem:[#allocation2 + $0xe7] sm:$0xff] }
 0x10d   : > { %18060 = vmatprep.mubr.msk.f32.mxu0 %vm702_vm0, %v22907_v28 }
 0x10e   : > { %v770_v15 = vrot.slane %v769_v39, 1 }
 0x110   : > { %18061 = vmatmul.mubr.msk.f32.gmra.mrb[22].mxu0 %vm702_vm0, %v22913_v57  ;;  %v771_v32 = vadd.f32 %v770_v15, %v769_v39  ;;  %v23000_v39 = vld [vmem:[#allocation2 + $0xef] sm:$0xff]  ;;  %v23002_v15 = vld [vmem:[#allocation2 + $0x107] sm:$0xff] }
 0x111   : > { %18063 = vmatprep.mubr.msk.f32.mxu0 %vm702_vm0, %v22915_v30 }
 0x112   : > { %773 = vst.msk [vmem:[%s660_s0] sm:$0x1] %vm772_vm1, %v771_v32  ;;  %v23008_v32 = vld [vmem:[#allocation2 + $0x10f] sm:$0xff]  ;;  %s26361_s0 = sld [smem:[#allocation74_spill]] }
 0x113   : > { %26216 = vst [vmem:[#allocation47_spill] sm:$0xff] %v23008_v32 }
 0x114   : > { %18064 = vmatmul.mubr.msk.f32.gmra.mrb[24].mxu0 %vm702_vm0, %v22921_v2 }
 0x115   : > { %18066 = vmatprep.mubr.msk.f32.mxu0 %vm702_vm0, %v22923_v48 }
 0x118   : > { %18067 = vmatmul.mubr.msk.f32.gmra.mrb[26].mxu0 %vm702_vm0, %v22933_v8 }
 0x119   : > { %18069 = vmatprep.mubr.msk.f32.mxu0 %vm702_vm0, %v22935_v53 }
 0x11c   : > { %18070 = vmatmul.mubr.msk.f32.gmra.mrb[28].mxu0 %vm702_vm0, %v22942_v38  ;;  %v23170_v38 = vld [vmem:[#allocation2 + $0x170] sm:$0xff] }
 0x11d   : > { %18072 = vmatprep.mubr.msk.f32.mxu0 %vm702_vm0, %v22944_v54  ;;  %v913_v54 = vld [vmem:[#allocation2 + $0x8] sm:$0xff] }
 0x11e   : > { %17923 = vmatprep.mubr.msk.f32.mxu1 %vm702_vm0, %v913_v54  ;;  %v23196_v54 = vld [vmem:[#allocation2 + $0x1c8] sm:$0xff] }
 0x120   : > { %18073 = vmatmul.mubr.msk.f32.gmra.mrb[30].mxu0 %vm702_vm0, %v22950_v23 }
 0x121   : > { %18079 = vmatprep.mubr.msk.f32.mxu0 %vm702_vm0, %v22578_v45  ;;  %v22978_v45 = vld [vmem:[#allocation2 + $0xa7] sm:$0xff] }
 0x124   : > { %18080 = vmatmul.mubr.msk.f32.vlgmr.msra.gmra.mrb[0].mxu0 %vm702_vm0, %v22580_v46  ;;  %v22984_v46 = vld [vmem:[#allocation2 + $0xaf] sm:$0xff] }
 0x125   : > { %20071 = vmatpush3.bf16.msra.mxu0 %v22784_v27  ;;  %18082 = vmatprep.mubr.msk.f32.mxu0 %vm702_vm0, %v22582_v47  ;;  %v22986_v27 = vld [vmem:[#allocation2 + $0xc7] sm:$0xff] }
 0x126   : > { %20073 = vmatprep.subr.bf16.mxu0 %v22962_v29  ;;  %v23150_v47 = vld [vmem:[#allocation2 + $0x148] sm:$0xff] }
 0x128   : > { %18083 = vmatmul.mubr.msk.f32.gmra.mrb[2].mxu0 %vm702_vm0, %v22607_v56  ;;  %v23142_v56 = vld [vmem:[#allocation2 + $0x128] sm:$0xff] }
 0x129   : > { %18085 = vmatprep.mubr.msk.f32.mxu0 %vm702_vm0, %v22614_v60  ;;  %v23134_v60 = vld [vmem:[#allocation2 + $0x108] sm:$0xff] }
 0x12c   : > { %18086 = vmatmul.mubr.msk.f32.gmra.mrb[4].mxu0 %vm702_vm0, %v22637_v9  ;;  %v23126_v9 = vld [vmem:[#allocation2 + $0xe8] sm:$0xff] }
 0x12d   : > { %18088 = vmatprep.mubr.msk.f32.mxu0 %vm702_vm0, %v22645_v14  ;;  %v23118_v14 = vld [vmem:[#allocation2 + $0xc8] sm:$0xff] }
 0x130   : > { %18089 = vmatmul.mubr.msk.f32.gmra.mrb[6].mxu0 %vm702_vm0, %v22654_v19  ;;  %v23093_v19 = vld [vmem:[#allocation2 + $0x68] sm:$0xff] }
 0x131   : > { %18091 = vmatprep.mubr.msk.f32.mxu0 %vm702_vm0, %v22978_v45  ;;  %26233 = vst [vmem:[#allocation64_spill] sm:$0xff] %v23093_v19 }
 0x134   : > { %18092 = vmatmul.mubr.msk.f32.gmra.mrb[8].mxu0 %vm702_vm0, %v22984_v46 }
 0x135   : > { %18094 = vmatprep.mubr.msk.f32.mxu0 %vm702_vm0, %v22986_v27 }
 0x138   : > { %18095 = vmatmul.mubr.msk.f32.gmra.mrb[10].mxu0 %vm702_vm0, %v22992_v1 }
 0x139   : > { %18097 = vmatprep.mubr.msk.f32.mxu0 %vm702_vm0, %v22994_v61 }
 0x13c   : > { %18098 = vmatmul.mubr.msk.f32.gmra.mrb[12].mxu0 %vm702_vm0, %v23000_v39 }
 0x13d   : > { %18100 = vmatprep.mubr.msk.f32.mxu0 %vm702_vm0, %v23002_v15 }
 0x140   : > { %18101 = vmatmul.mubr.msk.f32.gmra.mrb[14].mxu0 %vm702_vm0, %v23008_v32  ;;  %v23173_v32 = vld [vmem:[#allocation2 + $0x188] sm:$0xff] }
 0x141   : > { %18103 = vmatprep.mubr.msk.f32.mxu0 %vm702_vm0, %v23010_v52  ;;  %v914_v52 = vld [vmem:[#allocation2 + $0x10] sm:$0xff] }
 0x144   : > { %18104 = vmatmul.mubr.msk.f32.gmra.mrb[16].mxu0 %vm702_vm0, %v23016_v55  ;;  %v23164_v55 = vld [vmem:[#allocation2 + $0x168] sm:$0xff] }
 0x145   : > { %18106 = vmatprep.mubr.msk.f32.mxu0 %vm702_vm0, %v23018_v7  ;;  %v23162_v7 = vld [vmem:[#allocation2 + $0x150] sm:$0xff] }
 0x148   : > { %18107 = vmatmul.mubr.msk.f32.gmra.mrb[18].mxu0 %vm702_vm0, %v23024_v6  ;;  %v15693_v6 = vld [vmem:[%s26190_s12 + $0x18] sm:$0xff] }
 0x149   : > { %18109 = vmatprep.mubr.msk.f32.mxu0 %vm702_vm0, %v23026_v37  ;;  %v15692_v37 = vld [vmem:[%s26190_s12 + $0x10] sm:$0xff] }
 0x14a   : > { %v20052_v23 = vpack.c.bf16 %v15693_v6, %v15692_v37  ;;  %v23182_v6 = vld [vmem:[#allocation2 + $0x190] sm:$0xff]  ;;  %v23185_v37 = vld [vmem:[#allocation2 + $0x1a8] sm:$0xff] }
 0x14c   : > { %18110 = vmatmul.mubr.msk.f32.gmra.mrb[20].mxu0 %vm702_vm0, %v23032_v16  ;;  %v23148_v16 = vld [vmem:[#allocation2 + $0x130] sm:$0xff]  ;;  %20053 = vmatprep.subr.bf16.mxu1 %v20052_v23 }
 0x14d   : > { %18112 = vmatprep.mubr.msk.f32.mxu0 %vm702_vm0, %v23034_v24  ;;  %v23140_v24 = vld [vmem:[#allocation2 + $0x110] sm:$0xff]  ;;  %20055 = vmatpush3.bf16.msra.mxu1 %v20052_v23 }
 0x14e   : > { %20916 = vmatprep.subr.bf16.mxu1 %v22474_v4  ;;  %v23218_v23 = vld [vmem:[#allocation2 + $0x1f0] sm:$0xff] }
 0x150   : > { %18113 = vmatmul.mubr.msk.f32.gmra.mrb[22].mxu0 %vm702_vm0, %v23040_v22  ;;  %v23132_v22 = vld [vmem:[#allocation2 + $0xf0] sm:$0xff]  ;;  %17924 = vmatmul.mubr.msk.f32.vlgmr.msra.gmra.mrb[0].mxu1 %vm702_vm0, %v914_v52  ;;  %v23220_v52 = vld [vmem:[#allocation2 + $0x208] sm:$0xff] }
 0x151   : > { %18115 = vmatprep.mubr.msk.f32.mxu0 %vm702_vm0, %v23042_v0  ;;  %v23124_v0 = vld [vmem:[#allocation2 + $0xd0] sm:$0xff]  ;;  %17926 = vmatprep.mubr.msk.f32.mxu1 %vm702_vm0, %v2366_v40  ;;  %26236 = vst [vmem:[#allocation67_spill] sm:$0xff] %v23220_v52 }
 0x152   : > { %20917 = vmatpush3.bf16.msra.mxu1 %v22474_v4  ;;  %v23206_v4 = vld [vmem:[#allocation2 + $0x1d0] sm:$0xff] }
 0x154   : > { %18116 = vmatmul.mubr.msk.f32.gmra.mrb[24].mxu0 %vm702_vm0, %v23048_v36  ;;  %v23116_v36 = vld [vmem:[#allocation2 + $0xb0] sm:$0xff] }
 0x155   : > { %18118 = vmatprep.mubr.msk.f32.mxu0 %vm702_vm0, %v23050_v33  ;;  %v23091_v33 = vld [vmem:[#allocation2 + $0x50] sm:$0xff] }
 0x158   : > { %18119 = vmatmul.mubr.msk.f32.gmra.mrb[26].mxu0 %vm702_vm0, %v23056_v26  ;;  %v23083_v26 = vld [vmem:[#allocation2 + $0x48] sm:$0xff] }
 0x159   : > { %18121 = vmatprep.mubr.msk.f32.mxu0 %vm702_vm0, %v23058_v12  ;;  %v15895_v12 = vld [vmem:[%s26190_s12 + $0x68] sm:$0xff] }
 0x15c   : > { %18122 = vmatmul.mubr.msk.f32.gmra.mrb[28].mxu0 %vm702_vm0, %v23064_v11  ;;  %v2367_v11 = vld [vmem:[#allocation2 + $0x30] sm:$0xff] }
 0x15d   : > { %18124 = vmatprep.mubr.msk.f32.mxu0 %vm702_vm0, %v23066_v62  ;;  %v23085_v62 = vpack.c.bf16 %v15895_v12, %v15894_v34  ;;  %v23100_v34 = vld [vmem:[#allocation2 + $0x70] sm:$0xff]  ;;  %v23102_v12 = vld [vmem:[#allocation2 + $0x88] sm:$0xff]  ;;  %17927 = vmatmul.mubr.msk.f32.gmra.mrb[2].mxu1 %vm702_vm0, %v2367_v11 }
 0x15e   : > { %26234 = vst [vmem:[#allocation65_spill] sm:$0xff] %v23100_v34  ;;  %26235 = vst [vmem:[#allocation66_spill] sm:$0xff] %v23102_v12  ;;  %17929 = vmatprep.mubr.msk.f32.mxu1 %vm702_vm0, %v23083_v26 }
 0x160   : > { %18125 = vmatmul.mubr.msk.f32.gmra.mrb[30].mxu0 %vm702_vm0, %v23072_v58  ;;  %v23110_v58 = vld [vmem:[#allocation2 + $0xa8] sm:$0xff] }
 0x161   : > { %18131 = vmatprep.mubr.msk.f32.mxu0 %vm702_vm0, %v2366_v40  ;;  %v23194_v40 = vld [vmem:[#allocation2 + $0x1b0] sm:$0xff]  ;;  %17930 = vmatmul.mubr.msk.f32.gmra.mrb[4].mxu1 %vm702_vm0, %v23091_v33 }
 0x162   : > { %17932 = vmatprep.mubr.msk.f32.mxu1 %vm702_vm0, %v23093_v19 }
 0x164   : > { %18132 = vmatmul.mubr.msk.f32.vlgmr.msra.gmra.mrb[0].mxu0 %vm702_vm0, %v2367_v11  ;;  %v23208_v11 = vld [vmem:[#allocation2 + $0x1e8] sm:$0xff] }
 0x165   : > { %20075 = vmatpush3.bf16.msra.mxu0 %v22962_v29  ;;  %18134 = vmatprep.mubr.msk.f32.mxu0 %vm702_vm0, %v23083_v26  ;;  %v23108_v29 = vld [vmem:[#allocation2 + $0x90] sm:$0xff] }
 0x166   : > { %20077 = vmatprep.subr.bf16.mxu0 %v23085_v62  ;;  %17933 = vmatmul.mubr.msk.f32.gmra.mrb[6].mxu1 %vm702_vm0, %v23100_v34 }
 0x167   : > { %17935 = vmatprep.mubr.msk.f32.mxu1 %vm702_vm0, %v23102_v12 }
 0x168   : > { %18135 = vmatmul.mubr.msk.f32.gmra.mrb[2].mxu0 %vm702_vm0, %v23091_v33 }
 0x169   : > { %18137 = vmatprep.mubr.msk.f32.mxu0 %vm702_vm0, %v23093_v19  ;;  %v15929_v19 = vld [vmem:[%s26190_s12 + $0x78] sm:$0xff] }
 0x16a   : > { %17936 = vmatmul.mubr.msk.f32.gmra.mrb[8].mxu1 %vm702_vm0, %v23108_v29 }
 0x16b   : > { %17938 = vmatprep.mubr.msk.f32.mxu1 %vm702_vm0, %v23110_v58 }
 0x16c   : > { %18138 = vmatmul.mubr.msk.f32.gmra.mrb[4].mxu0 %vm702_vm0, %v23100_v34  ;;  %v15928_v34 = vld [vmem:[%s26190_s12 + $0x70] sm:$0xff] }
 0x16d   : > { %18140 = vmatprep.mubr.msk.f32.mxu0 %vm702_vm0, %v23102_v12  ;;  %v23230_v12 = vld [vmem:[#allocation2 + $0x210] sm:$0xff] }
 0x16e   : > { %17939 = vmatmul.mubr.msk.f32.gmra.mrb[10].mxu1 %vm702_vm0, %v23116_v36 }
 0x16f   : > { %17941 = vmatprep.mubr.msk.f32.mxu1 %vm702_vm0, %v23118_v14 }
 0x170   : > { %18141 = vmatmul.mubr.msk.f32.gmra.mrb[6].mxu0 %vm702_vm0, %v23108_v29 }
 0x171   : > { %18143 = vmatprep.mubr.msk.f32.mxu0 %vm702_vm0, %v23110_v58 }
 0x172   : > { %17942 = vmatmul.mubr.msk.f32.gmra.mrb[12].mxu1 %vm702_vm0, %v23124_v0 }
 0x173   : > { %17944 = vmatprep.mubr.msk.f32.mxu1 %vm702_vm0, %v23126_v9 }
 0x174   : > { %18144 = vmatmul.mubr.msk.f32.gmra.mrb[8].mxu0 %vm702_vm0, %v23116_v36 }
 0x175   : > { %18146 = vmatprep.mubr.msk.f32.mxu0 %vm702_vm0, %v23118_v14 }
 0x176   : > { %17945 = vmatmul.mubr.msk.f32.gmra.mrb[14].mxu1 %vm702_vm0, %v23132_v22 }
 0x177   : > { %17947 = vmatprep.mubr.msk.f32.mxu1 %vm702_vm0, %v23134_v60 }
 0x178   : > { %18147 = vmatmul.mubr.msk.f32.gmra.mrb[10].mxu0 %vm702_vm0, %v23124_v0 }
 0x179   : > { %18149 = vmatprep.mubr.msk.f32.mxu0 %vm702_vm0, %v23126_v9 }
 0x17a   : > { %17948 = vmatmul.mubr.msk.f32.gmra.mrb[16].mxu1 %vm702_vm0, %v23140_v24 }
 0x17b   : > { %17950 = vmatprep.mubr.msk.f32.mxu1 %vm702_vm0, %v23142_v56 }
 0x17c   : > { %18150 = vmatmul.mubr.msk.f32.gmra.mrb[12].mxu0 %vm702_vm0, %v23132_v22 }
 0x17d   : > { %18152 = vmatprep.mubr.msk.f32.mxu0 %vm702_vm0, %v23134_v60 }
 0x17e   : > { %17951 = vmatmul.mubr.msk.f32.gmra.mrb[18].mxu1 %vm702_vm0, %v23148_v16 }
 0x17f   : > { %17953 = vmatprep.mubr.msk.f32.mxu1 %vm702_vm0, %v23150_v47 }
 0x180   : > { %18153 = vmatmul.mubr.msk.f32.gmra.mrb[14].mxu0 %vm702_vm0, %v23140_v24 }
 0x181   : > { %18155 = vmatprep.mubr.msk.f32.mxu0 %vm702_vm0, %v23142_v56 }
 0x182   : > { %17954 = vmatmul.mubr.msk.f32.gmra.mrb[20].mxu1 %vm702_vm0, %v23162_v7 }
 0x183   : > { %17956 = vmatprep.mubr.msk.f32.mxu1 %vm702_vm0, %v23164_v55 }
 0x184   : > { %18156 = vmatmul.mubr.msk.f32.gmra.mrb[16].mxu0 %vm702_vm0, %v23148_v16 }
 0x185   : > { %18158 = vmatprep.mubr.msk.f32.mxu0 %vm702_vm0, %v23150_v47 }
 0x186   : > { %17957 = vmatmul.mubr.msk.f32.gmra.mrb[22].mxu1 %vm702_vm0, %v23170_v38 }
 0x187   : > { %17959 = vmatprep.mubr.msk.f32.mxu1 %vm702_vm0, %v23173_v32 }
 0x188   : > { %18159 = vmatmul.mubr.msk.f32.gmra.mrb[18].mxu0 %vm702_vm0, %v23162_v7 }
 0x189   : > { %18161 = vmatprep.mubr.msk.f32.mxu0 %vm702_vm0, %v23164_v55 }
 0x18a   : > { %17960 = vmatmul.mubr.msk.f32.gmra.mrb[24].mxu1 %vm702_vm0, %v23182_v6 }
 0x18b   : > { %17962 = vmatprep.mubr.msk.f32.mxu1 %vm702_vm0, %v23185_v37 }
 0x18c   : > { %18162 = vmatmul.mubr.msk.f32.gmra.mrb[20].mxu0 %vm702_vm0, %v23170_v38 }
 0x18d   : > { %18164 = vmatprep.mubr.msk.f32.mxu0 %vm702_vm0, %v23173_v32 }
 0x18e   : > { %17963 = vmatmul.mubr.msk.f32.gmra.mrb[26].mxu1 %vm702_vm0, %v23194_v40 }
 0x18f   : > { %17965 = vmatprep.mubr.msk.f32.mxu1 %vm702_vm0, %v23196_v54 }
 0x190   : > { %18165 = vmatmul.mubr.msk.f32.gmra.mrb[22].mxu0 %vm702_vm0, %v23182_v6 }
 0x191   : > { %18167 = vmatprep.mubr.msk.f32.mxu0 %vm702_vm0, %v23185_v37 }
 0x192   : > { %17966 = vmatmul.mubr.msk.f32.gmra.mrb[28].mxu1 %vm702_vm0, %v23206_v4 }
 0x193   : > { %17968 = vmatprep.mubr.msk.f32.mxu1 %vm702_vm0, %v23208_v11 }
 0x194   : > { %18168 = vmatmul.mubr.msk.f32.gmra.mrb[24].mxu0 %vm702_vm0, %v23194_v40 }
 0x195   : > { %18170 = vmatprep.mubr.msk.f32.mxu0 %vm702_vm0, %v23196_v54 }
 0x196   : > { %17969 = vmatmul.mubr.msk.f32.gmra.mrb[30].mxu1 %vm702_vm0, %v23218_v23 }
 0x197   : > { %17990 = vmatprep.mubr.msk.f32.mxu1 %vm702_vm0, %v22978_v45 }
 0x198   : > { %18171 = vmatmul.mubr.msk.f32.gmra.mrb[26].mxu0 %vm702_vm0, %v23206_v4 }
 0x199   : > { %18173 = vmatprep.mubr.msk.f32.mxu0 %vm702_vm0, %v23208_v11 }
 0x19a   : > { %17991 = vmatmul.mubr.msk.f32.vlgmr.msra.gmra.mrb[10].mxu1 %vm702_vm0, %v22984_v46 }
 0x19b   : > { %17993 = vmatprep.mubr.msk.f32.mxu1 %vm702_vm0, %v22986_v27 }
 0x19c   : > { %18174 = vmatmul.mubr.msk.f32.gmra.mrb[28].mxu0 %vm702_vm0, %v23218_v23 }
 0x19d   : > { %18176 = vmatprep.mubr.msk.f32.mxu0 %vm702_vm0, %v23220_v52  ;;  %v23246_v52 = vpack.c.bf16 %v15929_v19, %v15928_v34  ;;  %v26238_v19 = vld [vmem:[#allocation44_spill] sm:$0xff] }
 0x19e   : > { %17994 = vmatmul.mubr.msk.f32.gmra.mrb[12].mxu1 %vm702_vm0, %v22992_v1  ;;  %v26263_v34 = vld [vmem:[#allocation64_spill] sm:$0xff] }
 0x19f   : > { %17996 = vmatprep.mubr.msk.f32.mxu1 %vm702_vm0, %v22994_v61 }
 0x1a0   : > { %18177 = vmatmul.mubr.msk.f32.gmra.mrb[30].mxu0 %vm702_vm0, %v23230_v12 }
 0x1a1   : > { %18183 = vmatprep.mubr.msk.f32.mxu0 %vm702_vm0, %v22758_v10  ;;  %v26239_v10 = vld [vmem:[#allocation48_spill] sm:$0xff] }
 0x1a2   : > { %17997 = vmatmul.mubr.msk.f32.gmra.mrb[14].mxu1 %vm702_vm0, %v23000_v39 }
 0x1a3   : > { %17999 = vmatprep.mubr.msk.f32.mxu1 %vm702_vm0, %v23002_v15 }
 0x1a4   : > { %18184 = vmatmul.mubr.msk.f32.vlgmr.msra.gmra.mrb[0].mxu0 %vm702_vm0, %v22780_v25  ;;  %v26240_v25 = vld [vmem:[#allocation45_spill] sm:$0xff] }
 0x1a5   : > { %20079 = vmatpush3.bf16.msra.mxu0 %v23085_v62  ;;  %18186 = vmatprep.mubr.msk.f32.mxu0 %vm702_vm0, %v22786_v31  ;;  %v26237_v62 = vld [vmem:[#allocation47_spill] sm:$0xff]  ;;  %v23362_v31 = vld [vmem:[#allocation2 + $0x209] sm:$0xff] }
 0x1a6   : > { %20081 = vmatprep.subr.bf16.mxu0 %v23246_v52  ;;  %18000 = vmatmul.mubr.msk.f32.gmra.mrb[16].mxu1 %vm702_vm0, %v26237_v62 }
 0x1a7   : > { %18002 = vmatprep.mubr.msk.f32.mxu1 %vm702_vm0, %v26239_v10 }
 0x1a8   : > { %18187 = vmatmul.mubr.msk.f32.gmra.mrb[2].mxu0 %vm702_vm0, %v22799_v49  ;;  %v26241_v49 = vld [vmem:[#allocation49_spill] sm:$0xff] }
 0x1a9   : > { %18189 = vmatprep.mubr.msk.f32.mxu0 %vm702_vm0, %v22803_v51  ;;  %v26242_v51 = vld [vmem:[#allocation46_spill] sm:$0xff] }
 0x1aa   : > { %18003 = vmatmul.mubr.msk.f32.gmra.mrb[18].mxu1 %vm702_vm0, %v26241_v49 }
 0x1ac   : > { %18190 = vmatmul.mubr.msk.f32.gmra.mrb[4].mxu0 %vm702_vm0, %v22817_v44  ;;  %v26243_v44 = vld [vmem:[#allocation50_spill] sm:$0xff] }
 0x1ad   : > { %18192 = vmatprep.mubr.msk.f32.mxu0 %vm702_vm0, %v22825_v5  ;;  %18005 = vmatprep.mubr.msk.f32.mxu1 %vm702_vm0, %v26243_v44  ;;  %v23372_v5 = vld [vmem:[#allocation2 + $0x211] sm:$0xff] }
 0x1b0   : > { %18193 = vmatmul.mubr.msk.f32.gmra.mrb[6].mxu0 %vm702_vm0, %v22835_v21  ;;  %v15962_v21 = vld [vmem:[%s26190_s12 + $0x80] sm:$0xff] }
 0x1b1   : > { %18195 = vmatprep.mubr.msk.f32.mxu0 %vm702_vm0, %v22839_v13  ;;  %v15963_v13 = vld [vmem:[%s26190_s12 + $0x88] sm:$0xff] }
 0x1b4   : > { %18196 = vmatmul.mubr.msk.f32.gmra.mrb[8].mxu0 %vm702_vm0, %v22849_v41  ;;  %v26244_v41 = vld [vmem:[#allocation51_spill] sm:$0xff] }
 0x1b5   : > { %18198 = vmatprep.mubr.msk.f32.mxu0 %vm702_vm0, %v22853_v50  ;;  %18006 = vmatmul.mubr.msk.f32.gmra.mrb[20].mxu1 %vm702_vm0, %v26244_v41  ;;  %v26245_v50 = vld [vmem:[#allocation52_spill] sm:$0xff] }
 0x1b6   : > { %18008 = vmatprep.mubr.msk.f32.mxu1 %vm702_vm0, %v26245_v50 }
 0x1b8   : > { %18199 = vmatmul.mubr.msk.f32.gmra.mrb[10].mxu0 %vm702_vm0, %v22861_v43  ;;  %v26246_v43 = vld [vmem:[#allocation24_spill] sm:$0xff] }
 0x1b9   : > { %18201 = vmatprep.mubr.msk.f32.mxu0 %vm702_vm0, %v22865_v59  ;;  %v20084_v59 = vpack.c.bf16 %v15963_v13, %v15962_v21  ;;  %v3935_v21 = vld [vmem:[#allocation2 + $0x149] sm:$0xff]  ;;  %v3936_v13 = vld [vmem:[#allocation2 + $0x151] sm:$0xff] }
 0x1bc   : > { %18202 = vmatmul.mubr.msk.f32.gmra.mrb[12].mxu0 %vm702_vm0, %v22873_v18  ;;  %v26247_v18 = vld [vmem:[#allocation53_spill] sm:$0xff] }
 0x1bd   : > { %18204 = vmatprep.mubr.msk.f32.mxu0 %vm702_vm0, %v22877_v3  ;;  %18009 = vmatmul.mubr.msk.f32.gmra.mrb[22].mxu1 %vm702_vm0, %v26247_v18  ;;  %v26248_v3 = vld [vmem:[#allocation25_spill] sm:$0xff] }
 0x1c0   : > { %18205 = vmatmul.mubr.msk.f32.gmra.mrb[14].mxu0 %vm702_vm0, %v22885_v17  ;;  %v26249_v17 = vld [vmem:[#allocation54_spill] sm:$0xff] }
 0x1c1   : > { %18207 = vmatprep.mubr.msk.f32.mxu0 %vm702_vm0, %v22889_v20  ;;  %18011 = vmatprep.mubr.msk.f32.mxu1 %vm702_vm0, %v26249_v17  ;;  %v26250_v20 = vld [vmem:[#allocation27_spill] sm:$0xff] }
 0x1c4   : > { %18208 = vmatmul.mubr.msk.f32.gmra.mrb[16].mxu0 %vm702_vm0, %v22896_v35  ;;  %v26251_v35 = vld [vmem:[#allocation55_spill] sm:$0xff] }
 0x1c5   : > { %18210 = vmatprep.mubr.msk.f32.mxu0 %vm702_vm0, %v22899_v42  ;;  %18012 = vmatmul.mubr.msk.f32.gmra.mrb[24].mxu1 %vm702_vm0, %v26251_v35  ;;  %v26252_v42 = vld [vmem:[#allocation29_spill] sm:$0xff] }
 0x1c8   : > { %18211 = vmatmul.mubr.msk.f32.gmra.mrb[18].mxu0 %vm702_vm0, %v22905_v63  ;;  %v26253_v63 = vld [vmem:[#allocation56_spill] sm:$0xff] }
 0x1c9   : > { %18213 = vmatprep.mubr.msk.f32.mxu0 %vm702_vm0, %v22907_v28  ;;  %18014 = vmatprep.mubr.msk.f32.mxu1 %vm702_vm0, %v26253_v63  ;;  %v26254_v28 = vld [vmem:[#allocation32_spill] sm:$0xff] }
 0x1cc   : > { %18214 = vmatmul.mubr.msk.f32.gmra.mrb[20].mxu0 %vm702_vm0, %v22913_v57  ;;  %v26255_v57 = vld [vmem:[#allocation57_spill] sm:$0xff] }
 0x1cd   : > { %18216 = vmatprep.mubr.msk.f32.mxu0 %vm702_vm0, %v22915_v30  ;;  %18015 = vmatmul.mubr.msk.f32.gmra.mrb[26].mxu1 %vm702_vm0, %v26255_v57  ;;  %v26256_v30 = vld [vmem:[#allocation33_spill] sm:$0xff] }
 0x1d0   : > { %18217 = vmatmul.mubr.msk.f32.gmra.mrb[22].mxu0 %vm702_vm0, %v22921_v2  ;;  %v26257_v2 = vld [vmem:[#allocation58_spill] sm:$0xff] }
 0x1d1   : > { %18219 = vmatprep.mubr.msk.f32.mxu0 %vm702_vm0, %v22923_v48  ;;  %18017 = vmatprep.mubr.msk.f32.mxu1 %vm702_vm0, %v26257_v2  ;;  %v26258_v48 = vld [vmem:[#allocation59_spill] sm:$0xff] }
 0x1d2   : > { %18018 = vmatmul.mubr.msk.f32.gmra.mrb[28].mxu1 %vm702_vm0, %v26258_v48 }
 0x1d4   : > { %18220 = vmatmul.mubr.msk.f32.gmra.mrb[24].mxu0 %vm702_vm0, %v22933_v8  ;;  %v26259_v8 = vld [vmem:[#allocation60_spill] sm:$0xff] }
 0x1d5   : > { %18222 = vmatprep.mubr.msk.f32.mxu0 %vm702_vm0, %v22935_v53  ;;  %18020 = vmatprep.mubr.msk.f32.mxu1 %vm702_vm0, %v26259_v8  ;;  %v26260_v53 = vld [vmem:[#allocation61_spill] sm:$0xff] }
 0x1d6   : > { %18021 = vmatmul.mubr.msk.f32.gmra.mrb[30].mxu1 %vm702_vm0, %v26260_v53 }
 0x1d8   : > { %18223 = vmatmul.mubr.msk.f32.gmra.mrb[26].mxu0 %vm702_vm0, %v26238_v19  ;;  %v16000_v19 = vld [vmem:[%s26025_s3 + $0x38] sm:$0xff] }
 0x1d9   : > { %18225 = vmatprep.mubr.msk.f32.mxu0 %vm702_vm0, %v26240_v25  ;;  %v3931_v25 = vld [vmem:[#allocation2 + $0x109] sm:$0xff] }
 0x1dc   : > { %18226 = vmatmul.mubr.msk.f32.gmra.mrb[28].mxu0 %vm702_vm0, %v26242_v51  ;;  %v3933_v51 = vld [vmem:[#allocation2 + $0x129] sm:$0xff] }
 0x1dd   : > { %18228 = vmatprep.mubr.msk.f32.mxu0 %vm702_vm0, %v23362_v31 }
 0x1e0   : > { %18229 = vmatmul.mubr.msk.f32.gmra.mrb[30].mxu0 %vm702_vm0, %v23372_v5 }
 0x1e1   : > { %18235 = vmatprep.mubr.msk.f32.mxu0 %vm702_vm0, %v26246_v43  ;;  %v3939_v43 = vld [vmem:[#allocation2 + $0x189] sm:$0xff] }
 0x1e4   : > { %18236 = vmatmul.mubr.msk.f32.vlgmr.msra.gmra.mrb[0].mxu0 %vm702_vm0, %v26248_v3  ;;  %v3942_v3 = vld [vmem:[#allocation2 + $0x1b1] sm:$0xff] }
 0x1e5   : > { %20083 = vmatpush3.bf16.msra.mxu0 %v23246_v52  ;;  %18238 = vmatprep.mubr.msk.f32.mxu0 %vm702_vm0, %v26250_v20  ;;  %v26264_v52 = vld [vmem:[#allocation65_spill] sm:$0xff]  ;;  %v3944_v20 = vld [vmem:[#allocation2 + $0x1d1] sm:$0xff] }
 0x1e6   : > { %20085 = vmatprep.subr.bf16.mxu0 %v20084_v59 }
 0x1e8   : > { %18239 = vmatmul.mubr.msk.f32.gmra.mrb[2].mxu0 %vm702_vm0, %v26252_v42  ;;  %v3946_v42 = vld [vmem:[#allocation2 + $0x1f1] sm:$0xff] }
 0x1e9   : > { %18241 = vmatprep.mubr.msk.f32.mxu0 %vm702_vm0, %v26254_v28  ;;  %v3950_v28 = vld [vmem:[#allocation2 + $0x231] sm:$0xff] }
 0x1ec   : > { %18242 = vmatmul.mubr.msk.f32.gmra.mrb[4].mxu0 %vm702_vm0, %v26256_v30 }
 0x1ed   : > { %18244 = vmatprep.mubr.msk.f32.mxu0 %vm702_vm0, %v22978_v45  ;;  %v26261_v45 = vld [vmem:[#allocation62_spill] sm:$0xff] }
 0x1f0   : > { %18245 = vmatmul.mubr.msk.f32.gmra.mrb[6].mxu0 %vm702_vm0, %v22984_v46  ;;  %v3173_v46 = vld [vmem:[#allocation2 + $0x227] sm:$0xff] }
 0x1f1   : > { %18247 = vmatprep.mubr.msk.f32.mxu0 %vm702_vm0, %v22986_v27  ;;  %v26262_v27 = vld [vmem:[#allocation63_spill] sm:$0xff] }
 0x1f4   : > { %18248 = vmatmul.mubr.msk.f32.gmra.mrb[8].mxu0 %vm702_vm0, %v22992_v1  ;;  %v3174_v1 = vld [vmem:[#allocation2 + $0x22f] sm:$0xff] }
 0x1f5   : > { %18250 = vmatprep.mubr.msk.f32.mxu0 %vm702_vm0, %v22994_v61  ;;  %v15997_v61 = vld [vmem:[%s26025_s3 + $0x20] sm:$0xff] }
 0x1f8   : > { %18251 = vmatmul.mubr.msk.f32.gmra.mrb[10].mxu0 %vm702_vm0, %v23000_v39  ;;  %v15998_v39 = vld [vmem:[%s26025_s3 + $0x28] sm:$0xff] }
 0x1f9   : > { %18253 = vmatprep.mubr.msk.f32.mxu0 %vm702_vm0, %v23002_v15  ;;  %v20088_v15 = vpack.c.bf16 %v15998_v39, %v15997_v61 }
 0x1fb   : > { %20089 = vmatprep.subr.bf16.mxu1 %v20088_v15 }
 0x1fc   : > { %18254 = vmatmul.mubr.msk.f32.gmra.mrb[12].mxu0 %vm702_vm0, %v26237_v62  ;;  %20091 = vmatpush3.bf16.msra.mxu1 %v20088_v15  ;;  %v26265_v62 = vld [vmem:[#allocation66_spill] sm:$0xff] }
 0x1fd   : > { %18256 = vmatprep.mubr.msk.f32.mxu0 %vm702_vm0, %v26239_v10  ;;  %v3930_v10 = vld [vmem:[#allocation2 + $0xf1] sm:$0xff] }
 0x1fe   : > { %v23623_v15 = vld [vmem:[#allocation9] sm:$0xff] }
 0x1ff   : > { %4353 = vst.msk [vmem:[#allocation3 + $0x30] sm:$0xff] %vm4346_vm2, %v23623_v15  ;;  %4347 = vst.msk [vmem:[#allocation3] sm:$0xff] %vm4346_vm2, %v23623_v15 }
 0x200   : > { %18257 = vmatmul.mubr.msk.f32.gmra.mrb[14].mxu0 %vm702_vm0, %v26241_v49  ;;  %v3932_v49 = vld [vmem:[#allocation2 + $0x111] sm:$0xff]  ;;  %4348 = vst.msk [vmem:[#allocation3 + $0x8] sm:$0xff] %vm4346_vm2, %v23623_v15  ;;  %4349 = vst.msk [vmem:[#allocation3 + $0x10] sm:$0xff] %vm4346_vm2, %v23623_v15 }
 0x201   : > { %18259 = vmatprep.mubr.msk.f32.mxu0 %vm702_vm0, %v26243_v44  ;;  %v3934_v44 = vld [vmem:[#allocation2 + $0x131] sm:$0xff]  ;;  %4350 = vst.msk [vmem:[#allocation3 + $0x18] sm:$0xff] %vm4346_vm2, %v23623_v15  ;;  %4351 = vst.msk [vmem:[#allocation3 + $0x20] sm:$0xff] %vm4346_vm2, %v23623_v15 }
 0x202   : > { %4352 = vst.msk [vmem:[#allocation3 + $0x28] sm:$0xff] %vm4346_vm2, %v23623_v15  ;;  %4354 = vst.msk [vmem:[#allocation3 + $0x38] sm:$0xff] %vm4346_vm2, %v23623_v15 }
 0x203   : > { %4355 = vst.msk [vmem:[#allocation3 + $0x40] sm:$0xff] %vm4346_vm2, %v23623_v15  ;;  %4356 = vst.msk [vmem:[#allocation3 + $0x48] sm:$0xff] %vm4346_vm2, %v23623_v15 }
 0x204   : > { %18260 = vmatmul.mubr.msk.f32.gmra.mrb[16].mxu0 %vm702_vm0, %v26244_v41  ;;  %v3937_v41 = vld [vmem:[#allocation2 + $0x169] sm:$0xff]  ;;  %4357 = vst.msk [vmem:[#allocation3 + $0x50] sm:$0xff] %vm4346_vm2, %v23623_v15  ;;  %4358 = vst.msk [vmem:[#allocation3 + $0x58] sm:$0xff] %vm4346_vm2, %v23623_v15 }
 0x205   : > { %18262 = vmatprep.mubr.msk.f32.mxu0 %vm702_vm0, %v26245_v50  ;;  %v3938_v50 = vld [vmem:[#allocation2 + $0x171] sm:$0xff]  ;;  %4359 = vst.msk [vmem:[#allocation3 + $0x60] sm:$0xff] %vm4346_vm2, %v23623_v15  ;;  %4360 = vst.msk [vmem:[#allocation3 + $0x68] sm:$0xff] %vm4346_vm2, %v23623_v15 }
 0x206   : > { %4361 = vst.msk [vmem:[#allocation3 + $0x70] sm:$0xff] %vm4346_vm2, %v23623_v15  ;;  %4362 = vst.msk [vmem:[#allocation3 + $0x78] sm:$0xff] %vm4346_vm2, %v23623_v15 }
 0x207   : > { %4363 = vst.msk [vmem:[#allocation3 + $0x80] sm:$0xff] %vm4346_vm2, %v23623_v15  ;;  %4364 = vst.msk [vmem:[#allocation3 + $0x88] sm:$0xff] %vm4346_vm2, %v23623_v15 }
 0x208   : > { %18263 = vmatmul.mubr.msk.f32.gmra.mrb[18].mxu0 %vm702_vm0, %v26247_v18  ;;  %v3941_v18 = vld [vmem:[#allocation2 + $0x1a9] sm:$0xff]  ;;  %4365 = vst.msk [vmem:[#allocation3 + $0x90] sm:$0xff] %vm4346_vm2, %v23623_v15  ;;  %4366 = vst.msk [vmem:[#allocation3 + $0x98] sm:$0xff] %vm4346_vm2, %v23623_v15 }
 0x209   : > { %18265 = vmatprep.mubr.msk.f32.mxu0 %vm702_vm0, %v26249_v17  ;;  %v3943_v17 = vld [vmem:[#allocation2 + $0x1c9] sm:$0xff]  ;;  %4367 = vst.msk [vmem:[#allocation3 + $0xa0] sm:$0xff] %vm4346_vm2, %v23623_v15  ;;  %4368 = vst.msk [vmem:[#allocation3 + $0xa8] sm:$0xff] %vm4346_vm2, %v23623_v15 }
 0x20a   : > { %4369 = vst.msk [vmem:[#allocation3 + $0xb0] sm:$0xff] %vm4346_vm2, %v23623_v15  ;;  %4370 = vst.msk [vmem:[#allocation3 + $0xb8] sm:$0xff] %vm4346_vm2, %v23623_v15 }
 0x20b   : > { %4371 = vst.msk [vmem:[#allocation3 + $0xc0] sm:$0xff] %vm4346_vm2, %v23623_v15  ;;  %4372 = vst.msk [vmem:[#allocation3 + $0xc8] sm:$0xff] %vm4346_vm2, %v23623_v15 }
 0x20c   : > { %18266 = vmatmul.mubr.msk.f32.gmra.mrb[20].mxu0 %vm702_vm0, %v26251_v35  ;;  %v3945_v35 = vld [vmem:[#allocation2 + $0x1e9] sm:$0xff]  ;;  %4373 = vst.msk [vmem:[#allocation3 + $0xd0] sm:$0xff] %vm4346_vm2, %v23623_v15  ;;  %4374 = vst.msk [vmem:[#allocation3 + $0xd8] sm:$0xff] %vm4346_vm2, %v23623_v15 }
 0x20d   : > { %18268 = vmatprep.mubr.msk.f32.mxu0 %vm702_vm0, %v26253_v63  ;;  %v3949_v63 = vld [vmem:[#allocation2 + $0x229] sm:$0xff]  ;;  %4375 = vst.msk [vmem:[#allocation3 + $0xe0] sm:$0xff] %vm4346_vm2, %v23623_v15  ;;  %4376 = vst.msk [vmem:[#allocation3 + $0xe8] sm:$0xff] %vm4346_vm2, %v23623_v15 }
 0x20e   : > { %4377 = vst.msk [vmem:[#allocation3 + $0xf0] sm:$0xff] %vm4346_vm2, %v23623_v15  ;;  %4378 = vst.msk [vmem:[#allocation3 + $0xf8] sm:$0xff] %vm4346_vm2, %v23623_v15 }
 0x20f   : > { %4379 = vst.msk [vmem:[#allocation3 + $0x100] sm:$0xff] %vm4346_vm2, %v23623_v15  ;;  %4380 = vst.msk [vmem:[#allocation3 + $0x108] sm:$0xff] %vm4346_vm2, %v23623_v15 }
 0x210   : > { %18269 = vmatmul.mubr.msk.f32.gmra.mrb[22].mxu0 %vm702_vm0, %v26255_v57  ;;  %4381 = vst.msk [vmem:[#allocation3 + $0x110] sm:$0xff] %vm4346_vm2, %v23623_v15  ;;  %4382 = vst.msk [vmem:[#allocation3 + $0x118] sm:$0xff] %vm4346_vm2, %v23623_v15 }
 0x211   : > { %18271 = vmatprep.mubr.msk.f32.mxu0 %vm702_vm0, %v26257_v2  ;;  %4383 = vst.msk [vmem:[#allocation3 + $0x120] sm:$0xff] %vm4346_vm2, %v23623_v15  ;;  %4384 = vst.msk [vmem:[#allocation3 + $0x128] sm:$0xff] %vm4346_vm2, %v23623_v15 }
 0x212   : > { %4385 = vst.msk [vmem:[#allocation3 + $0x130] sm:$0xff] %vm4346_vm2, %v23623_v15  ;;  %4386 = vst.msk [vmem:[#allocation3 + $0x138] sm:$0xff] %vm4346_vm2, %v23623_v15 }
 0x213   : > { %4387 = vst.msk [vmem:[#allocation3 + $0x140] sm:$0xff] %vm4346_vm2, %v23623_v15  ;;  %4388 = vst.msk [vmem:[#allocation3 + $0x148] sm:$0xff] %vm4346_vm2, %v23623_v15 }
 0x214   : > { %18272 = vmatmul.mubr.msk.f32.gmra.mrb[24].mxu0 %vm702_vm0, %v26258_v48  ;;  %4389 = vst.msk [vmem:[#allocation3 + $0x150] sm:$0xff] %vm4346_vm2, %v23623_v15  ;;  %4390 = vst.msk [vmem:[#allocation3 + $0x158] sm:$0xff] %vm4346_vm2, %v23623_v15 }
 0x215   : > { %18274 = vmatprep.mubr.msk.f32.mxu0 %vm702_vm0, %v26259_v8  ;;  %4391 = vst.msk [vmem:[#allocation3 + $0x160] sm:$0xff] %vm4346_vm2, %v23623_v15  ;;  %4392 = vst.msk [vmem:[#allocation3 + $0x168] sm:$0xff] %vm4346_vm2, %v23623_v15 }
 0x216   : > { %4393 = vst.msk [vmem:[#allocation3 + $0x170] sm:$0xff] %vm4346_vm2, %v23623_v15  ;;  %4394 = vst.msk [vmem:[#allocation3 + $0x178] sm:$0xff] %vm4346_vm2, %v23623_v15 }
 0x217   : > { %4395 = vst.msk [vmem:[#allocation3 + $0x180] sm:$0xff] %vm4346_vm2, %v23623_v15  ;;  %4396 = vst.msk [vmem:[#allocation3 + $0x188] sm:$0xff] %vm4346_vm2, %v23623_v15 }
 0x218   : > { %18275 = vmatmul.mubr.msk.f32.gmra.mrb[26].mxu0 %vm702_vm0, %v26260_v53  ;;  %4397 = vst.msk [vmem:[#allocation3 + $0x190] sm:$0xff] %vm4346_vm2, %v23623_v15  ;;  %4398 = vst.msk [vmem:[#allocation3 + $0x198] sm:$0xff] %vm4346_vm2, %v23623_v15 }
 0x219   : > { %18277 = vmatprep.mubr.msk.f32.mxu0 %vm702_vm0, %v26261_v45  ;;  %4399 = vst.msk [vmem:[#allocation3 + $0x1a0] sm:$0xff] %vm4346_vm2, %v23623_v15  ;;  %4400 = vst.msk [vmem:[#allocation3 + $0x1a8] sm:$0xff] %vm4346_vm2, %v23623_v15 }
 0x21a   : > { %4401 = vst.msk [vmem:[#allocation3 + $0x1b0] sm:$0xff] %vm4346_vm2, %v23623_v15  ;;  %4402 = vst.msk [vmem:[#allocation3 + $0x1b8] sm:$0xff] %vm4346_vm2, %v23623_v15 }
 0x21b   : > { %4403 = vst.msk [vmem:[#allocation3 + $0x1c0] sm:$0xff] %vm4346_vm2, %v23623_v15  ;;  %4404 = vst.msk [vmem:[#allocation3 + $0x1c8] sm:$0xff] %vm4346_vm2, %v23623_v15 }
 0x21c   : > { %18278 = vmatmul.mubr.msk.f32.gmra.mrb[28].mxu0 %vm702_vm0, %v26262_v27  ;;  %4405 = vst.msk [vmem:[#allocation3 + $0x1d0] sm:$0xff] %vm4346_vm2, %v23623_v15  ;;  %4406 = vst.msk [vmem:[#allocation3 + $0x1d8] sm:$0xff] %vm4346_vm2, %v23623_v15 }
 0x21d   : > { %18280 = vmatprep.mubr.msk.f32.mxu0 %vm702_vm0, %v3173_v46  ;;  %4407 = vst.msk [vmem:[#allocation3 + $0x1e0] sm:$0xff] %vm4346_vm2, %v23623_v15  ;;  %4408 = vst.msk [vmem:[#allocation3 + $0x1e8] sm:$0xff] %vm4346_vm2, %v23623_v15 }
 0x21e   : > { %4409 = vst.msk [vmem:[#allocation3 + $0x1f0] sm:$0xff] %vm4346_vm2, %v23623_v15  ;;  %4410 = vst.msk [vmem:[#allocation3 + $0x1f8] sm:$0xff] %vm4346_vm2, %v23623_v15 }
 0x21f   : > { %4411 = vst.msk [vmem:[#allocation3 + $0x200] sm:$0xff] %vm4346_vm2, %v23623_v15  ;;  %4412 = vst.msk [vmem:[#allocation3 + $0x208] sm:$0xff] %vm4346_vm2, %v23623_v15 }
 0x220   : > { %18281 = vmatmul.mubr.msk.f32.gmra.mrb[30].mxu0 %vm702_vm0, %v3174_v1  ;;  %4413 = vst.msk [vmem:[#allocation3 + $0x210] sm:$0xff] %vm4346_vm2, %v23623_v15  ;;  %4414 = vst.msk [vmem:[#allocation3 + $0x218] sm:$0xff] %vm4346_vm2, %v23623_v15 }
 0x221   : > { %18287 = vmatprep.mubr.msk.f32.mxu0 %vm702_vm0, %v23083_v26  ;;  %v15999_v26 = vld [vmem:[%s26025_s3 + $0x30] sm:$0xff]  ;;  %4415 = vst.msk [vmem:[#allocation3 + $0x220] sm:$0xff] %vm4346_vm2, %v23623_v15  ;;  %4416 = vst.msk [vmem:[#allocation3 + $0x228] sm:$0xff] %vm4346_vm2, %v23623_v15 }
 0x222   : > { %4417 = vst.msk [vmem:[#allocation3 + $0x230] sm:$0xff] %vm4346_vm2, %v23623_v15  ;;  %4418 = vst.msk [vmem:[#allocation3 + $0x238] sm:$0xff] %vm4346_vm2, %v23623_v15 }
 0x223   : > { %8298 = vst.msk [vmem:[#allocation5] sm:$0xff] %vm4346_vm2, %v23623_v15  ;;  %8299 = vst.msk [vmem:[#allocation5 + $0x8] sm:$0xff] %vm4346_vm2, %v23623_v15 }
 0x224   : > { %18288 = vmatmul.mubr.msk.f32.vlgmr.msra.gmra.mrb[0].mxu0 %vm702_vm0, %v23091_v33  ;;  %v20092_v33 = vpack.c.bf16 %v16000_v19, %v15999_v26  ;;  %8300 = vst.msk [vmem:[#allocation5 + $0x10] sm:$0xff] %vm4346_vm2, %v23623_v15  ;;  %8301 = vst.msk [vmem:[#allocation5 + $0x18] sm:$0xff] %vm4346_vm2, %v23623_v15  ;;  %v4488_v19 = vld [vmem:[#allocation3 + $0x8] sm:$0xff] }
 0x225   : > { %20087 = vmatpush3.bf16.msra.mxu0 %v20084_v59  ;;  %18290 = vmatprep.mubr.msk.f32.mxu0 %vm702_vm0, %v26263_v34  ;;  %v3940_v59 = vld [vmem:[#allocation2 + $0x191] sm:$0xff]  ;;  %8302 = vst.msk [vmem:[#allocation5 + $0x20] sm:$0xff] %vm4346_vm2, %v23623_v15  ;;  %8303 = vst.msk [vmem:[#allocation5 + $0x28] sm:$0xff] %vm4346_vm2, %v23623_v15 }
 0x226   : > { %20093 = vmatprep.subr.bf16.mxu1 %v20092_v33  ;;  %8304 = vst.msk [vmem:[#allocation5 + $0x30] sm:$0xff] %vm4346_vm2, %v23623_v15  ;;  %8305 = vst.msk [vmem:[#allocation5 + $0x38] sm:$0xff] %vm4346_vm2, %v23623_v15  ;;  %18395 = vmatprep.mubr.msk.f32.mxu1 %vm4346_vm2, %v4488_v19 }
 0x227   : > { %20095 = vmatpush3.bf16.msra.mxu1 %v20092_v33  ;;  %8306 = vst.msk [vmem:[#allocation5 + $0x40] sm:$0xff] %vm4346_vm2, %v23623_v15  ;;  %8307 = vst.msk [vmem:[#allocation5 + $0x48] sm:$0xff] %vm4346_vm2, %v23623_v15  ;;  %v4489_v33 = vld [vmem:[#allocation3 + $0x10] sm:$0xff] }
 0x228   : > { %18291 = vmatmul.mubr.msk.f32.gmra.mrb[2].mxu0 %vm702_vm0, %v26264_v52  ;;  %8308 = vst.msk [vmem:[#allocation5 + $0x50] sm:$0xff] %vm4346_vm2, %v23623_v15  ;;  %8309 = vst.msk [vmem:[#allocation5 + $0x58] sm:$0xff] %vm4346_vm2, %v23623_v15 }
 0x229   : > { %18293 = vmatprep.mubr.msk.f32.mxu0 %vm702_vm0, %v26265_v62  ;;  %8310 = vst.msk [vmem:[#allocation5 + $0x60] sm:$0xff] %vm4346_vm2, %v23623_v15  ;;  %8311 = vst.msk [vmem:[#allocation5 + $0x68] sm:$0xff] %vm4346_vm2, %v23623_v15 }
 0x22a   : > { %8312 = vst.msk [vmem:[#allocation5 + $0x70] sm:$0xff] %vm4346_vm2, %v23623_v15  ;;  %8313 = vst.msk [vmem:[#allocation5 + $0x78] sm:$0xff] %vm4346_vm2, %v23623_v15  ;;  %18396 = vmatmul.mubr.msk.f32.vlgmr.msra.gmra.mrb[32].mxu1 %vm4346_vm2, %v4489_v33 }
 0x22b   : > { %8314 = vst.msk [vmem:[#allocation5 + $0x80] sm:$0xff] %vm4346_vm2, %v23623_v15  ;;  %8315 = vst.msk [vmem:[#allocation5 + $0x88] sm:$0xff] %vm4346_vm2, %v23623_v15 }
 0x22c   : > { %18294 = vmatmul.mubr.msk.f32.gmra.mrb[4].mxu0 %vm702_vm0, %v23108_v29  ;;  %8316 = vst.msk [vmem:[#allocation5 + $0x90] sm:$0xff] %vm4346_vm2, %v23623_v15  ;;  %8317 = vst.msk [vmem:[#allocation5 + $0x98] sm:$0xff] %vm4346_vm2, %v23623_v15 }
 0x22d   : > { %18296 = vmatprep.mubr.msk.f32.mxu0 %vm702_vm0, %v23110_v58  ;;  %v3562_v58 = vld [vmem:[#allocation2 + $0x230] sm:$0xff]  ;;  %8318 = vst.msk [vmem:[#allocation5 + $0xa0] sm:$0xff] %vm4346_vm2, %v23623_v15  ;;  %8319 = vst.msk [vmem:[#allocation5 + $0xa8] sm:$0xff] %vm4346_vm2, %v23623_v15 }
 0x22e   : > { %8320 = vst.msk [vmem:[#allocation5 + $0xb0] sm:$0xff] %vm4346_vm2, %v23623_v15  ;;  %8321 = vst.msk [vmem:[#allocation5 + $0xb8] sm:$0xff] %vm4346_vm2, %v23623_v15 }
 0x22f   : > { %8322 = vst.msk [vmem:[#allocation5 + $0xc0] sm:$0xff] %vm4346_vm2, %v23623_v15  ;;  %8323 = vst.msk [vmem:[#allocation5 + $0xc8] sm:$0xff] %vm4346_vm2, %v23623_v15 }
 0x230   : > { %18297 = vmatmul.mubr.msk.f32.gmra.mrb[6].mxu0 %vm702_vm0, %v23116_v36  ;;  %v3920_v36 = vld [vmem:[#allocation2 + $0x51] sm:$0xff]  ;;  %8324 = vst.msk [vmem:[#allocation5 + $0xd0] sm:$0xff] %vm4346_vm2, %v23623_v15  ;;  %8325 = vst.msk [vmem:[#allocation5 + $0xd8] sm:$0xff] %vm4346_vm2, %v23623_v15 }
 0x231   : > { %18299 = vmatprep.mubr.msk.f32.mxu0 %vm702_vm0, %v23118_v14  ;;  %8326 = vst.msk [vmem:[#allocation5 + $0xe0] sm:$0xff] %vm4346_vm2, %v23623_v15  ;;  %8327 = vst.msk [vmem:[#allocation5 + $0xe8] sm:$0xff] %vm4346_vm2, %v23623_v15 }
 0x232   : > { %12684 = vst.msk [vmem:[#allocation8] sm:$0xff] %vm4346_vm2, %v23623_v15  ;;  %12685 = vst.msk [vmem:[#allocation8 + $0x8] sm:$0xff] %vm4346_vm2, %v23623_v15 }
 0x233   : > { %12688 = vst.msk [vmem:[#allocation8 + $0x18] sm:$0xff] %vm4346_vm2, %v23623_v15  ;;  %12689 = vst.msk [vmem:[#allocation8 + $0x20] sm:$0xff] %vm4346_vm2, %v23623_v15 }
 0x234   : > { %18300 = vmatmul.mubr.msk.f32.gmra.mrb[8].mxu0 %vm702_vm0, %v23124_v0  ;;  %v3921_v0 = vld [vmem:[#allocation2 + $0x69] sm:$0xff]  ;;  %12691 = vst.msk [vmem:[#allocation8 + $0x30] sm:$0xff] %vm4346_vm2, %v23623_v15  ;;  %12692 = vst.msk [vmem:[#allocation8 + $0x38] sm:$0xff] %vm4346_vm2, %v23623_v15 }
 0x235   : > { %18302 = vmatprep.mubr.msk.f32.mxu0 %vm702_vm0, %v23126_v9  ;;  %v23540_v9 = vpop.f32.mrb[0].mxu1  ;;  %12694 = vst.msk [vmem:[#allocation8 + $0x48] sm:$0xff] %vm4346_vm2, %v23623_v15  ;;  %12695 = vst.msk [vmem:[#allocation8 + $0x50] sm:$0xff] %vm4346_vm2, %v23623_v15 }
 0x236   : > { %v23542_v14 = vpop.f32.mrb[1].mxu1  ;;  %12697 = vst.msk [vmem:[#allocation8 + $0x60] sm:$0xff] %vm4346_vm2, %v23623_v15  ;;  %12698 = vst.msk [vmem:[#allocation8 + $0x68] sm:$0xff] %vm4346_vm2, %v23623_v15 }
 0x237   : > { %12700 = vst.msk [vmem:[#allocation8 + $0x78] sm:$0xff] %vm4346_vm2, %v23623_v15  ;;  %12701 = vst.msk [vmem:[#allocation8 + $0x80] sm:$0xff] %vm4346_vm2, %v23623_v15 }
 0x238   : > { %18303 = vmatmul.mubr.msk.f32.gmra.mrb[10].mxu0 %vm702_vm0, %v23132_v22 }
 0x239   : > { %18305 = vmatprep.mubr.msk.f32.mxu0 %vm702_vm0, %v23134_v60  ;;  %v3919_v60 = vld [vmem:[#allocation2 + $0x49] sm:$0xff] }
 0x23c   : > { %18306 = vmatmul.mubr.msk.f32.gmra.mrb[12].mxu0 %vm702_vm0, %v23140_v24  ;;  %v3922_v24 = vld [vmem:[#allocation2 + $0x71] sm:$0xff] }
 0x23d   : > { %18308 = vmatprep.mubr.msk.f32.mxu0 %vm702_vm0, %v23142_v56  ;;  %v3561_v56 = vld [vmem:[#allocation2 + $0x228] sm:$0xff] }
 0x240   : > { %18309 = vmatmul.mubr.msk.f32.gmra.mrb[14].mxu0 %vm702_vm0, %v23148_v16  ;;  %v3923_v16 = vld [vmem:[#allocation2 + $0x89] sm:$0xff] }
 0x241   : > { %18311 = vmatprep.mubr.msk.f32.mxu0 %vm702_vm0, %v23150_v47  ;;  %v26266_v47 = vld [vmem:[#allocation67_spill] sm:$0xff] }
 0x244   : > { %18312 = vmatmul.mubr.msk.f32.gmra.mrb[16].mxu0 %vm702_vm0, %v23162_v7  ;;  %v23546_v7 = vpop.f32.mrb[2].mxu1 }
 0x245   : > { %18314 = vmatprep.mubr.msk.f32.mxu0 %vm702_vm0, %v23164_v55  ;;  %v23548_v22 = vpop.f32.mrb[3].mxu1  ;;  %v3924_v55 = vld [vmem:[#allocation2 + $0x91] sm:$0xff] }
 0x248   : > { %18315 = vmatmul.mubr.msk.f32.gmra.mrb[18].mxu0 %vm702_vm0, %v23170_v38  ;;  %v23552_v38 = vpop.f32.mrb[4].mxu1 }
 0x249   : > { %18317 = vmatprep.mubr.msk.f32.mxu0 %vm702_vm0, %v23173_v32  ;;  %v23554_v32 = vpop.f32.mrb[5].mxu1 }
 0x24a   : > { %v23558_v29 = vpop.f32.mrb[6].mxu1 }
 0x24c   : > { %18318 = vmatmul.mubr.msk.f32.gmra.mrb[20].mxu0 %vm702_vm0, %v23182_v6  ;;  %v23560_v6 = vpop.f32.mrb[7].mxu1 }
 0x24d   : > { %18320 = vmatprep.mubr.msk.f32.mxu0 %vm702_vm0, %v23185_v37  ;;  %v3926_v37 = vld [vmem:[#allocation2 + $0xb1] sm:$0xff] }
 0x250   : > { %18321 = vmatmul.mubr.msk.f32.gmra.mrb[22].mxu0 %vm702_vm0, %v23194_v40  ;;  %v3927_v40 = vld [vmem:[#allocation2 + $0xc9] sm:$0xff] }
 0x251   : > { %18323 = vmatprep.mubr.msk.f32.mxu0 %vm702_vm0, %v23196_v54  ;;  %v23564_v54 = vpop.f32.mrb[8].mxu1 }
 0x254   : > { %18324 = vmatmul.mubr.msk.f32.gmra.mrb[24].mxu0 %vm702_vm0, %v23206_v4  ;;  %v23566_v4 = vpop.f32.mrb[9].mxu1 }
 0x255   : > { %18326 = vmatprep.mubr.msk.f32.mxu0 %vm702_vm0, %v23208_v11  ;;  %v3928_v11 = vld [vmem:[#allocation2 + $0xd1] sm:$0xff] }
 0x258   : > { %18327 = vmatmul.mubr.msk.f32.gmra.mrb[26].mxu0 %vm702_vm0, %v23218_v23  ;;  %v3929_v23 = vld [vmem:[#allocation2 + $0xe9] sm:$0xff] }
 0x259   : > { %18329 = vmatprep.mubr.msk.f32.mxu0 %vm702_vm0, %v26266_v47 }
 0x25c   : > { %18330 = vmatmul.mubr.msk.f32.gmra.mrb[28].mxu0 %vm702_vm0, %v23230_v12  ;;  %v3925_v12 = vld [vmem:[#allocation2 + $0xa9] sm:$0xff] }
 0x25d   : > { %18332 = vmatprep.mubr.msk.f32.mxu0 %vm702_vm0, %v3561_v56 }
 0x260   : > { %18333 = vmatmul.mubr.msk.f32.gmra.mrb[30].mxu0 %vm702_vm0, %v3562_v58  ;;  %v4484_v58 = vld [vmem:[%s26025_s3] sm:$0xff] }
 0x261   : > { %18339 = vmatprep.mubr.msk.f32.mxu0 %vm702_vm0, %v3919_v60  ;;  %v4485_v60 = vld [vmem:[%s26025_s3 + $0x8] sm:$0xff] }
 0x264   : > { %18340 = vmatmul.mubr.msk.f32.vlgmr.msra.gmra.mrb[0].mxu0 %vm702_vm0, %v3920_v36  ;;  %v20096_v36 = vpack.c.bf16 %v4485_v60, %v4484_v58 }
 0x265   : > { %18342 = vmatprep.mubr.msk.f32.mxu0 %vm702_vm0, %v3921_v0 }
 0x266   : > { %20097 = vmatprep.subr.bf16.mxu1 %v20096_v36 }
 0x267   : > { %20099 = vmatpush3.bf16.msra.mxu1 %v20096_v36 }
 0x268   : > { %18343 = vmatmul.mubr.msk.f32.gmra.mrb[2].mxu0 %vm702_vm0, %v3922_v24 }
 0x269   : > { %18345 = vmatprep.mubr.msk.f32.mxu0 %vm702_vm0, %v3923_v16  ;;  %v4486_v16 = vld [vmem:[%s26025_s3 + $0x10] sm:$0xff] }
 0x26c   : > { %18346 = vmatmul.mubr.msk.f32.gmra.mrb[4].mxu0 %vm702_vm0, %v3924_v55  ;;  %v4487_v55 = vld [vmem:[%s26025_s3 + $0x18] sm:$0xff] }
 0x26d   : > { %18348 = vmatprep.mubr.msk.f32.mxu0 %vm702_vm0, %v3925_v12  ;;  %v23594_v57 = vpop.f32.mrb[10].mxu1  ;;  %v20100_v12 = vpack.c.bf16 %v4487_v55, %v4486_v16 }
 0x26e   : > { %v23596_v30 = vpop.f32.mrb[11].mxu1 }
 0x26f   : > { %20101 = vmatprep.subr.bf16.mxu1 %v20100_v12 }
 0x270   : > { %18349 = vmatmul.mubr.msk.f32.gmra.mrb[6].mxu0 %vm702_vm0, %v3926_v37  ;;  %20103 = vmatpush3.bf16.msra.mxu1 %v20100_v12  ;;  %v16065_v37 = vld [vmem:[%s26025_s3 + $0x40] sm:$0xff] }
 0x271   : > { %18351 = vmatprep.mubr.msk.f32.mxu0 %vm702_vm0, %v3927_v40  ;;  %v23599_v2 = vpop.f32.mrb[12].mxu1  ;;  %v16066_v40 = vld [vmem:[%s26025_s3 + $0x48] sm:$0xff] }
 0x272   : > { %v23601_v48 = vpop.f32.mrb[13].mxu1 }
 0x274   : > { %18352 = vmatmul.mubr.msk.f32.gmra.mrb[8].mxu0 %vm702_vm0, %v3928_v11  ;;  %v23889_v11 = vpack.c.bf16 %v16066_v40, %v16065_v37 }
 0x275   : > { %18354 = vmatprep.mubr.msk.f32.mxu0 %vm702_vm0, %v3929_v23  ;;  %v23603_v8 = vpop.f32.mrb[14].mxu1 }
 0x276   : > { %20105 = vmatprep.subr.bf16.mxu1 %v23889_v11 }
 0x278   : > { %18355 = vmatmul.mubr.msk.f32.gmra.mrb[10].mxu0 %vm702_vm0, %v3930_v10  ;;  %v23895_v10 = vld [vmem:[%s26267_s24] ss:$0 sm:$0xff] }
 0x279   : > { %18357 = vmatprep.mubr.msk.f32.mxu0 %vm702_vm0, %v3931_v25 }
 0x27c   : > { %18358 = vmatmul.mubr.msk.f32.gmra.mrb[12].mxu0 %vm702_vm0, %v3932_v49 }
 0x27d   : > { %18360 = vmatprep.mubr.msk.f32.mxu0 %vm702_vm0, %v3933_v51 }
 0x280   : > { %18361 = vmatmul.mubr.msk.f32.gmra.mrb[14].mxu0 %vm702_vm0, %v3934_v44 }
 0x281   : > { %18363 = vmatprep.mubr.msk.f32.mxu0 %vm702_vm0, %v3935_v21 }
 0x284   : > { %18364 = vmatmul.mubr.msk.f32.gmra.mrb[16].mxu0 %vm702_vm0, %v3936_v13 }
 0x285   : > { %18366 = vmatprep.mubr.msk.f32.mxu0 %vm702_vm0, %v3937_v41 }
 0x288   : > { %18367 = vmatmul.mubr.msk.f32.gmra.mrb[18].mxu0 %vm702_vm0, %v3938_v50 }
 0x289   : > { %18369 = vmatprep.mubr.msk.f32.mxu0 %vm702_vm0, %v3939_v43 }
 0x28c   : > { %18370 = vmatmul.mubr.msk.f32.gmra.mrb[20].mxu0 %vm702_vm0, %v3940_v59 }
 0x28d   : > { %18372 = vmatprep.mubr.msk.f32.mxu0 %vm702_vm0, %v3941_v18 }
 0x290   : > { %18373 = vmatmul.mubr.msk.f32.gmra.mrb[22].mxu0 %vm702_vm0, %v3942_v3 }
 0x291   : > { %18375 = vmatprep.mubr.msk.f32.mxu0 %vm702_vm0, %v3943_v17 }
 0x294   : > { %18376 = vmatmul.mubr.msk.f32.gmra.mrb[24].mxu0 %vm702_vm0, %v3944_v20 }
 0x295   : > { %18378 = vmatprep.mubr.msk.f32.mxu0 %vm702_vm0, %v3945_v35 }
 0x298   : > { %18379 = vmatmul.mubr.msk.f32.gmra.mrb[26].mxu0 %vm702_vm0, %v3946_v42 }
 0x299   : > { %18381 = vmatprep.mubr.msk.f32.mxu0 %vm702_vm0, %v23362_v31  ;;  %v23605_v31 = vpop.f32.mrb[15].mxu1 }
 0x29a   : > { %v23607_v53 = vpop.f32.mrb[16].mxu1 }
 0x29c   : > { %18382 = vmatmul.mubr.msk.f32.gmra.mrb[28].mxu0 %vm702_vm0, %v23372_v5  ;;  %v23609_v5 = vpop.f32.mrb[17].mxu1 }
 0x29d   : > { %18384 = vmatprep.mubr.msk.f32.mxu0 %vm702_vm0, %v3949_v63  ;;  %v23611_v45 = vpop.f32.mrb[18].mxu1 }
 0x29e   : > { %v23613_v46 = vpop.f32.mrb[19].mxu1 }
 0x29f   : > { %v23615_v27 = vpop.f32.mrb[20].mxu1 }
 0x2a0   : > { %18385 = vmatmul.mubr.msk.f32.gmra.mrb[30].mxu0 %vm702_vm0, %v3950_v28  ;;  %v23617_v1 = vpop.f32.mrb[21].mxu1 }
 0x2a1   : > { %v23619_v61 = vpop.f32.mrb[22].mxu1 }
 0x2a2   : > { %v23621_v39 = vpop.f32.mrb[23].mxu1 }
 0x2a3   : > { %v23853_v34 = vpop.f32.mrb[24].mxu1 }
 0x2a4   : > { %v23855_v52 = vpop.f32.mrb[25].mxu1 }
 0x2a5   : > { %v23857_v62 = vpop.f32.mrb[26].mxu1 }
 0x2a6   : > { %v23859_v26 = vpop.f32.mrb[27].mxu1 }
 0x2a7   : > { %v23862_v47 = vpop.f32.mrb[28].mxu1 }
 0x2a8   : > { %v23865_v56 = vpop.f32.mrb[29].mxu1 }
 0x2a9   : > { %v23873_v0 = vpop.f32.mrb[30].mxu1 }
 0x2aa   : > { %v23875_v24 = vpop.f32.mrb[31].mxu1 }
 0x337   : > { %v18341_v23 = vpop.f32.mrb[0].mxu0 }
 0x338   : > { %v20918_v25 = vadd.f32 %v18341_v23, %v23540_v9  ;;  %v4116_v49 = vpop.f32.mrb[1].mxu0 }
 0x339   : > { %v20919_v51 = vadd.f32 %v4116_v49, %v23542_v14 }
 0x33a   : > { %v4315_v44 = vadd.f32 %v20918_v25, %v23895_v10 }
 0x33b   : > { %v4314_v21 = vadd.f32 %v20919_v51, %v23895_v10  ;;  %v18344_v13 = vpop.f32.mrb[2].mxu0 }
 0x33c   : > { %4421 = vst.msk [vmem:[#allocation3 + $0x30] sm:$0xff] %vm4346_vm2, %v4315_v44  ;;  %v20920_v41 = vadd.f32 %v18344_v13, %v23546_v7  ;;  %v4126_v50 = vpop.f32.mrb[3].mxu0 }
 0x33d   : > { %4420 = vst.msk [vmem:[#allocation3 + $0x28] sm:$0xff] %vm4346_vm2, %v4314_v21  ;;  %v20921_v43 = vadd.f32 %v4126_v50, %v23548_v22 }
 0x33e   : > { %v4317_v59 = vadd.f32 %v20920_v41, %v23895_v10 }
 0x33f   : > { %v4316_v9 = vadd.f32 %v20921_v43, %v23895_v10  ;;  %v18347_v18 = vpop.f32.mrb[4].mxu0 }
 0x340   : > { %4423 = vst.msk [vmem:[#allocation3 + $0x50] sm:$0xff] %vm4346_vm2, %v4317_v59  ;;  %v20922_v14 = vadd.f32 %v18347_v18, %v23552_v38  ;;  %v4136_v3 = vpop.f32.mrb[5].mxu0 }
 0x341   : > { %4422 = vst.msk [vmem:[#allocation3 + $0x48] sm:$0xff] %vm4346_vm2, %v4316_v9  ;;  %v20923_v17 = vadd.f32 %v4136_v3, %v23554_v32 }
 0x342   : > { %v4319_v7 = vadd.f32 %v20922_v14, %v23895_v10 }
 0x343   : > { %v4318_v20 = vadd.f32 %v20923_v17, %v23895_v10  ;;  %v18350_v35 = vpop.f32.mrb[6].mxu0  ;;  %v23921_v32 = vld [vmem:[#allocation3 + $0x30] sm:$0xff] }
 0x344   : > { %4425 = vst.msk [vmem:[#allocation3 + $0x70] sm:$0xff] %vm4346_vm2, %v4319_v7  ;;  %v20924_v22 = vadd.f32 %v18350_v35, %v23558_v29  ;;  %v4146_v42 = vpop.f32.mrb[7].mxu0  ;;  %v23915_v63 = vld [vmem:[#allocation3 + $0x28] sm:$0xff] }
 0x345   : > { %4424 = vst.msk [vmem:[#allocation3 + $0x68] sm:$0xff] %vm4346_vm2, %v4318_v20  ;;  %v20925_v38 = vadd.f32 %v4146_v42, %v23560_v6  ;;  %18398 = vmatprep.mubr.msk.f32.mxu1 %vm4346_vm2, %v23915_v63 }
 0x346   : > { %v4321_v28 = vadd.f32 %v20924_v22, %v23895_v10  ;;  %18399 = vmatmul.mubr.msk.f32.gmra.mrb[34].mxu1 %vm4346_vm2, %v23921_v32 }
 0x347   : > { %v4320_v15 = vadd.f32 %v20925_v38, %v23895_v10  ;;  %v18353_v29 = vpop.f32.mrb[8].mxu0  ;;  %v23935_v60 = vld [vmem:[#allocation3 + $0x50] sm:$0xff] }
 0x348   : > { %4427 = vst.msk [vmem:[#allocation3 + $0x90] sm:$0xff] %vm4346_vm2, %v4321_v28  ;;  %v20926_v19 = vadd.f32 %v18353_v29, %v23564_v54  ;;  %v4156_v33 = vpop.f32.mrb[9].mxu0  ;;  %v23929_v58 = vld [vmem:[#allocation3 + $0x48] sm:$0xff] }
 0x349   : > { %4426 = vst.msk [vmem:[#allocation3 + $0x88] sm:$0xff] %vm4346_vm2, %v4320_v15  ;;  %v20927_v6 = vadd.f32 %v4156_v33, %v23566_v4  ;;  %18401 = vmatprep.mubr.msk.f32.mxu1 %vm4346_vm2, %v23929_v58 }
 0x34a   : > { %v4323_v36 = vadd.f32 %v20926_v19, %v23895_v10  ;;  %18402 = vmatmul.mubr.msk.f32.gmra.mrb[36].mxu1 %vm4346_vm2, %v23935_v60 }
 0x34b   : > { %v4322_v16 = vadd.f32 %v20927_v6, %v23895_v10  ;;  %v18356_v54 = vpop.f32.mrb[10].mxu0  ;;  %v23949_v40 = vld [vmem:[#allocation3 + $0x70] sm:$0xff] }
 0x34c   : > { %4429 = vst.msk [vmem:[#allocation3 + $0xb0] sm:$0xff] %vm4346_vm2, %v4323_v36  ;;  %v20928_v55 = vadd.f32 %v18356_v54, %v23594_v57  ;;  %v4166_v12 = vpop.f32.mrb[11].mxu0  ;;  %v23943_v37 = vld [vmem:[#allocation3 + $0x68] sm:$0xff] }
 0x34d   : > { %4428 = vst.msk [vmem:[#allocation3 + $0xa8] sm:$0xff] %vm4346_vm2, %v4322_v16  ;;  %v20929_v4 = vadd.f32 %v4166_v12, %v23596_v30  ;;  %18404 = vmatprep.mubr.msk.f32.mxu1 %vm4346_vm2, %v23943_v37 }
 0x34e   : > { %v4325_v23 = vadd.f32 %v20928_v55, %v23895_v10  ;;  %18405 = vmatmul.mubr.msk.f32.gmra.mrb[38].mxu1 %vm4346_vm2, %v23949_v40 }
 0x34f   : > { %v4324_v25 = vadd.f32 %v20929_v4, %v23895_v10  ;;  %v18359_v57 = vpop.f32.mrb[12].mxu0  ;;  %v23963_v21 = vld [vmem:[#allocation3 + $0x90] sm:$0xff] }
 0x350   : > { %4431 = vst.msk [vmem:[#allocation3 + $0xd0] sm:$0xff] %vm4346_vm2, %v4325_v23  ;;  %v20930_v49 = vadd.f32 %v18359_v57, %v23599_v2  ;;  %v4176_v51 = vpop.f32.mrb[13].mxu0  ;;  %v23957_v44 = vld [vmem:[#allocation3 + $0x88] sm:$0xff] }
 0x351   : > { %4430 = vst.msk [vmem:[#allocation3 + $0xc8] sm:$0xff] %vm4346_vm2, %v4324_v25  ;;  %v20931_v30 = vadd.f32 %v4176_v51, %v23601_v48  ;;  %18407 = vmatprep.mubr.msk.f32.mxu1 %vm4346_vm2, %v23957_v44 }
 0x352   : > { %v4327_v13 = vadd.f32 %v20930_v49, %v23895_v10  ;;  %18408 = vmatmul.mubr.msk.f32.gmra.mrb[40].mxu1 %vm4346_vm2, %v23963_v21 }
 0x353   : > { %v4326_v41 = vadd.f32 %v20931_v30, %v23895_v10  ;;  %v18362_v2 = vpop.f32.mrb[14].mxu0  ;;  %v23977_v9 = vld [vmem:[#allocation3 + $0xb0] sm:$0xff] }
 0x354   : > { %4433 = vst.msk [vmem:[#allocation3 + $0xf0] sm:$0xff] %vm4346_vm2, %v4327_v13  ;;  %v20932_v50 = vadd.f32 %v18362_v2, %v23603_v8  ;;  %v4186_v43 = vpop.f32.mrb[15].mxu0  ;;  %v23971_v59 = vld [vmem:[#allocation3 + $0xa8] sm:$0xff] }
 0x355   : > { %4432 = vst.msk [vmem:[#allocation3 + $0xe8] sm:$0xff] %vm4346_vm2, %v4326_v41  ;;  %v20933_v48 = vadd.f32 %v4186_v43, %v23605_v31  ;;  %18410 = vmatprep.mubr.msk.f32.mxu1 %vm4346_vm2, %v23971_v59 }
 0x356   : > { %v4329_v18 = vadd.f32 %v20932_v50, %v23895_v10  ;;  %18411 = vmatmul.mubr.msk.f32.gmra.mrb[42].mxu1 %vm4346_vm2, %v23977_v9 }
 0x357   : > { %v4328_v14 = vadd.f32 %v20933_v48, %v23895_v10  ;;  %v18365_v8 = vpop.f32.mrb[16].mxu0  ;;  %v23991_v20 = vld [vmem:[#allocation3 + $0xd0] sm:$0xff] }
 0x358   : > { %4435 = vst.msk [vmem:[#allocation3 + $0x110] sm:$0xff] %vm4346_vm2, %v4329_v18  ;;  %v20934_v3 = vadd.f32 %v18365_v8, %v23607_v53  ;;  %v4196_v17 = vpop.f32.mrb[17].mxu0  ;;  %v23985_v7 = vld [vmem:[#allocation3 + $0xc8] sm:$0xff] }
 0x359   : > { %4434 = vst.msk [vmem:[#allocation3 + $0x108] sm:$0xff] %vm4346_vm2, %v4328_v14  ;;  %v20935_v31 = vadd.f32 %v4196_v17, %v23609_v5  ;;  %18413 = vmatprep.mubr.msk.f32.mxu1 %vm4346_vm2, %v23985_v7 }
 0x35a   : > { %v4331_v35 = vadd.f32 %v20934_v3, %v23895_v10  ;;  %18414 = vmatmul.mubr.msk.f32.gmra.mrb[44].mxu1 %vm4346_vm2, %v23991_v20 }
 0x35b   : > { %v4330_v22 = vadd.f32 %v20935_v31, %v23895_v10  ;;  %v18368_v53 = vpop.f32.mrb[18].mxu0  ;;  %v24005_v15 = vld [vmem:[#allocation3 + $0xf0] sm:$0xff] }
 0x35c   : > { %4437 = vst.msk [vmem:[#allocation3 + $0x130] sm:$0xff] %vm4346_vm2, %v4331_v35  ;;  %v20936_v42 = vadd.f32 %v18368_v53, %v23611_v45  ;;  %v4206_v38 = vpop.f32.mrb[19].mxu0  ;;  %v23999_v28 = vld [vmem:[#allocation3 + $0xe8] sm:$0xff] }
 0x35d   : > { %4436 = vst.msk [vmem:[#allocation3 + $0x128] sm:$0xff] %vm4346_vm2, %v4330_v22  ;;  %v20937_v5 = vadd.f32 %v4206_v38, %v23613_v46  ;;  %18416 = vmatprep.mubr.msk.f32.mxu1 %vm4346_vm2, %v23999_v28 }
 0x35e   : > { %v4333_v29 = vadd.f32 %v20936_v42, %v23895_v10  ;;  %18417 = vmatmul.mubr.msk.f32.gmra.mrb[46].mxu1 %vm4346_vm2, %v24005_v15 }
 0x35f   : > { %v4332_v19 = vadd.f32 %v20937_v5, %v23895_v10  ;;  %v18371_v45 = vpop.f32.mrb[20].mxu0  ;;  %v24019_v16 = vld [vmem:[#allocation3 + $0x110] sm:$0xff] }
 0x360   : > { %4439 = vst.msk [vmem:[#allocation3 + $0x150] sm:$0xff] %vm4346_vm2, %v4333_v29  ;;  %v20938_v33 = vadd.f32 %v18371_v45, %v23615_v27  ;;  %v4216_v6 = vpop.f32.mrb[21].mxu0  ;;  %v24013_v36 = vld [vmem:[#allocation3 + $0x108] sm:$0xff] }
 0x361   : > { %4438 = vst.msk [vmem:[#allocation3 + $0x148] sm:$0xff] %vm4346_vm2, %v4332_v19  ;;  %v20939_v46 = vadd.f32 %v4216_v6, %v23617_v1  ;;  %18419 = vmatprep.mubr.msk.f32.mxu1 %vm4346_vm2, %v24013_v36 }
 0x362   : > { %v4335_v54 = vadd.f32 %v20938_v33, %v23895_v10  ;;  %18420 = vmatmul.mubr.msk.f32.gmra.mrb[48].mxu1 %vm4346_vm2, %v24019_v16 }
 0x363   : > { %v4334_v55 = vadd.f32 %v20939_v46, %v23895_v10  ;;  %v18374_v27 = vpop.f32.mrb[22].mxu0  ;;  %v24033_v25 = vld [vmem:[#allocation3 + $0x130] sm:$0xff]  ;;  %v4452_v46 = vld [vmem:[#allocation3 + $0x7] sm:$0xff] }
 0x364   : > { %4441 = vst.msk [vmem:[#allocation3 + $0x170] sm:$0xff] %vm4346_vm2, %v4335_v54  ;;  %v20940_v12 = vadd.f32 %v18374_v27, %v23619_v61  ;;  %v4226_v4 = vpop.f32.mrb[23].mxu0  ;;  %v24027_v23 = vld [vmem:[#allocation3 + $0x128] sm:$0xff]  ;;  %v16067_v54 = vld [vmem:[%s26025_s3 + $0x50] sm:$0xff] }
 0x365   : > { %4440 = vst.msk [vmem:[#allocation3 + $0x168] sm:$0xff] %vm4346_vm2, %v4334_v55  ;;  %v20941_v1 = vadd.f32 %v4226_v4, %v23621_v39  ;;  %18422 = vmatprep.mubr.msk.f32.mxu1 %vm4346_vm2, %v24027_v23  ;;  %v16068_v55 = vld [vmem:[%s26025_s3 + $0x58] sm:$0xff]  ;;  %v4453_v27 = vld [vmem:[#allocation3 + $0xf] sm:$0xff]  ;;  %v16101_v4 = vld [vmem:[%s26025_s3 + $0x60] sm:$0xff] }
 0x366   : > { %v4337_v57 = vadd.f32 %v20940_v12, %v23895_v10  ;;  %18423 = vmatmul.mubr.msk.f32.gmra.mrb[50].mxu1 %vm4346_vm2, %v24033_v25  ;;  %v20108_v12 = vpack.c.bf16 %v16068_v55, %v16067_v54 }
 0x367   : > { %v4336_v49 = vadd.f32 %v20941_v1, %v23895_v10  ;;  %v18377_v61 = vpop.f32.mrb[24].mxu0  ;;  %v24047_v41 = vld [vmem:[#allocation3 + $0x150] sm:$0xff]  ;;  %v16102_v1 = vld [vmem:[%s26025_s3 + $0x68] sm:$0xff] }
 0x368   : > { %4443 = vst.msk [vmem:[#allocation3 + $0x190] sm:$0xff] %vm4346_vm2, %v4337_v57  ;;  %v20942_v51 = vadd.f32 %v18377_v61, %v23853_v34  ;;  %v4236_v30 = vpop.f32.mrb[25].mxu0  ;;  %v24041_v13 = vld [vmem:[#allocation3 + $0x148] sm:$0xff] }
 0x369   : > { %4442 = vst.msk [vmem:[#allocation3 + $0x188] sm:$0xff] %vm4346_vm2, %v4336_v49  ;;  %v20943_v39 = vadd.f32 %v4236_v30, %v23855_v52  ;;  %18425 = vmatprep.mubr.msk.f32.mxu1 %vm4346_vm2, %v24041_v13  ;;  %v24127_v57 = vld [vmem:[#allocation3 + $0x27] sm:$0xff]  ;;  %v24132_v49 = vpack.c.bf16 %v16102_v1, %v16101_v4  ;;  %v24134_v61 = vld [vmem:[#allocation3 + $0x2f] sm:$0xff]  ;;  %v16104_v1 = vld [vmem:[%s26025_s3 + $0x78] sm:$0xff] }
 0x36a   : > { %v4339_v2 = vadd.f32 %v20942_v51, %v23895_v10  ;;  %18426 = vmatmul.mubr.msk.f32.gmra.mrb[52].mxu1 %vm4346_vm2, %v24047_v41  ;;  %v24138_v51 = vld [vmem:[#allocation3 + $0x47] sm:$0xff]  ;;  %v24143_v30 = vld [vmem:[#allocation3 + $0x4f] sm:$0xff] }
 0x36b   : > { %v4338_v50 = vadd.f32 %v20943_v39, %v23895_v10  ;;  %v18380_v34 = vpop.f32.mrb[26].mxu0  ;;  %v24061_v14 = vld [vmem:[#allocation3 + $0x170] sm:$0xff] }
 0x36c   : > { %4445 = vst.msk [vmem:[#allocation3 + $0x1b0] sm:$0xff] %vm4346_vm2, %v4339_v2  ;;  %v20944_v43 = vadd.f32 %v18380_v34, %v23857_v62  ;;  %v4246_v48 = vpop.f32.mrb[27].mxu0  ;;  %v24055_v18 = vld [vmem:[#allocation3 + $0x168] sm:$0xff]  ;;  %v16103_v4 = vld [vmem:[%s26025_s3 + $0x70] sm:$0xff] }
 0x36d   : > { %4444 = vst.msk [vmem:[#allocation3 + $0x1a8] sm:$0xff] %vm4346_vm2, %v4338_v50  ;;  %v20945_v52 = vadd.f32 %v4246_v48, %v23859_v26  ;;  %18428 = vmatprep.mubr.msk.f32.mxu1 %vm4346_vm2, %v24055_v18  ;;  %v24151_v39 = vld [vmem:[#allocation3 + $0x6f] sm:$0xff]  ;;  %v24155_v2 = vld [vmem:[#allocation3 + $0x87] sm:$0xff] }
 0x36e   : > { %v4341_v8 = vadd.f32 %v20944_v43, %v23895_v10  ;;  %18429 = vmatmul.mubr.msk.f32.gmra.mrb[54].mxu1 %vm4346_vm2, %v24061_v14  ;;  %v24159_v50 = vld [vmem:[#allocation3 + $0x8f] sm:$0xff]  ;;  %v24163_v34 = vld [vmem:[#allocation3 + $0xa7] sm:$0xff] }
 0x36f   : > { %v4340_v3 = vadd.f32 %v20945_v52, %v23895_v10  ;;  %v18383_v62 = vpop.f32.mrb[28].mxu0  ;;  %v24075_v22 = vld [vmem:[#allocation3 + $0x190] sm:$0xff]  ;;  %v24171_v48 = vld [vmem:[#allocation3 + $0xc7] sm:$0xff] }
 0x370   : > { %4447 = vst.msk [vmem:[#allocation3 + $0x1d0] sm:$0xff] %vm4346_vm2, %v4341_v8  ;;  %v20946_v17 = vadd.f32 %v18383_v62, %v23862_v47  ;;  %v4256_v31 = vpop.f32.mrb[29].mxu0  ;;  %v24069_v35 = vld [vmem:[#allocation3 + $0x188] sm:$0xff] }
 0x371   : > { %4446 = vst.msk [vmem:[#allocation3 + $0x1c8] sm:$0xff] %vm4346_vm2, %v4340_v3  ;;  %v20947_v26 = vadd.f32 %v4256_v31, %v23865_v56  ;;  %18431 = vmatprep.mubr.msk.f32.mxu1 %vm4346_vm2, %v24069_v35  ;;  %v24167_v43 = vld [vmem:[#allocation3 + $0xaf] sm:$0xff]  ;;  %v24179_v8 = vld [vmem:[#allocation3 + $0xe7] sm:$0xff] }
 0x372   : > { %v4343_v53 = vadd.f32 %v20946_v17, %v23895_v10  ;;  %18432 = vmatmul.mubr.msk.f32.gmra.mrb[56].mxu1 %vm4346_vm2, %v24075_v22  ;;  %v24175_v52 = vld [vmem:[#allocation3 + $0xcf] sm:$0xff]  ;;  %v24187_v62 = vld [vmem:[#allocation3 + $0x107] sm:$0xff] }
 0x373   : > { %v4342_v42 = vadd.f32 %v20947_v26, %v23895_v10  ;;  %v18386_v47 = vpop.f32.mrb[30].mxu0  ;;  %v24089_v19 = vld [vmem:[#allocation3 + $0x1b0] sm:$0xff]  ;;  %v24195_v31 = vld [vmem:[#allocation3 + $0x127] sm:$0xff] }
 0x374   : > { %4449 = vst.msk [vmem:[#allocation3 + $0x1f0] sm:$0xff] %vm4346_vm2, %v4343_v53  ;;  %v20948_v38 = vadd.f32 %v18386_v47, %v23873_v0  ;;  %v4266_v5 = vpop.f32.mrb[31].mxu0  ;;  %v24083_v29 = vld [vmem:[#allocation3 + $0x1a8] sm:$0xff]  ;;  %26268 = vst [vmem:[#allocation47_spill] sm:$0xff] %v24089_v19 }
 0x375   : > { %4448 = vst.msk [vmem:[#allocation3 + $0x1e8] sm:$0xff] %vm4346_vm2, %v4342_v42  ;;  %v20949_v56 = vadd.f32 %v4266_v5, %v23875_v24  ;;  %18434 = vmatprep.mubr.msk.f32.mxu1 %vm4346_vm2, %v24083_v29  ;;  %v24183_v3 = vld [vmem:[#allocation3 + $0xef] sm:$0xff]  ;;  %v24203_v53 = vld [vmem:[#allocation3 + $0x147] sm:$0xff] }
 0x376   : > { %v4345_v45 = vadd.f32 %v20948_v38, %v23895_v10  ;;  %18435 = vmatmul.mubr.msk.f32.gmra.mrb[58].mxu1 %vm4346_vm2, %v24089_v19  ;;  %v24191_v17 = vld [vmem:[#allocation3 + $0x10f] sm:$0xff]  ;;  %v24211_v47 = vld [vmem:[#allocation3 + $0x167] sm:$0xff] }
 0x377   : > { %v4344_v33 = vadd.f32 %v20949_v56, %v23895_v10  ;;  %v24101_v24 = vld [vmem:[#allocation3 + $0x1d0] sm:$0xff]  ;;  %v24219_v5 = vld [vmem:[#allocation3 + $0x187] sm:$0xff] }
 0x378   : > { %4451 = vst.msk [vmem:[#allocation3 + $0x210] sm:$0xff] %vm4346_vm2, %v4345_v45  ;;  %v24096_v0 = vld [vmem:[#allocation3 + $0x1c8] sm:$0xff]  ;;  %26270 = vst [vmem:[#allocation48_spill] sm:$0xff] %v24101_v24 }
 0x379   : > { %26269 = vst [vmem:[#allocation44_spill] sm:$0xff] %v24096_v0  ;;  %4450 = vst.msk [vmem:[#allocation3 + $0x208] sm:$0xff] %vm4346_vm2, %v4344_v33  ;;  %18437 = vmatprep.mubr.msk.f32.mxu1 %vm4346_vm2, %v24096_v0  ;;  %v24199_v26 = vld [vmem:[#allocation3 + $0x12f] sm:$0xff]  ;;  %v24227_v45 = vld [vmem:[#allocation3 + $0x1a7] sm:$0xff] }
 0x37a   : > { %18438 = vmatmul.mubr.msk.f32.gmra.mrb[60].mxu1 %vm4346_vm2, %v24101_v24  ;;  %v24207_v42 = vld [vmem:[#allocation3 + $0x14f] sm:$0xff]  ;;  %v16137_v24 = vld [vmem:[%s26025_s3 + $0x80] sm:$0xff] }
 0x37b   : > { %v24109_v10 = vld [vmem:[#allocation3 + $0x1f0] sm:$0xff]  ;;  %v16138_v0 = vld [vmem:[%s26025_s3 + $0x88] sm:$0xff] }
 0x37c   : > { %v24105_v6 = vld [vmem:[#allocation3 + $0x1e8] sm:$0xff]  ;;  %26272 = vst [vmem:[#allocation49_spill] sm:$0xff] %v24109_v10 }
 0x37d   : > { %26271 = vst [vmem:[#allocation45_spill] sm:$0xff] %v24105_v6  ;;  %18440 = vmatprep.mubr.msk.f32.mxu1 %vm4346_vm2, %v24105_v6  ;;  %v24215_v38 = vld [vmem:[#allocation3 + $0x16f] sm:$0xff]  ;;  %v24243_v55 = vld [vmem:[#allocation3 + $0x1e7] sm:$0xff]  ;;  %v20116_v6 = vpack.c.bf16 %v16104_v1, %v16103_v4 }
 0x37e   : > { %18441 = vmatmul.mubr.msk.f32.gmra.mrb[62].mxu1 %vm4346_vm2, %v24109_v10  ;;  %v24223_v56 = vld [vmem:[#allocation3 + $0x18f] sm:$0xff] }
 0x37f   : > { %18451 = vmatprep.mubr.msk.f32.mxu1 %vm4346_vm2, %v4452_v46  ;;  %v24231_v33 = vld [vmem:[#allocation3 + $0x1af] sm:$0xff]  ;;  %v24235_v46 = vld [vmem:[#allocation3 + $0x1c7] sm:$0xff] }
 0x380   : > { %v24239_v54 = vld [vmem:[#allocation3 + $0x1cf] sm:$0xff] }
 0x381   : > { %v5168_v10 = vld [vmem:[#allocation3 + $0x11] sm:$0xff]  ;;  %v24265_v19 = vld [vmem:[#allocation3 + $0x29] sm:$0xff] }
 0x382   : > { %18452 = vmatmul.mubr.msk.f32.vlgmr.msra.gmra.mrb[32].mxu1 %vm4346_vm2, %v4453_v27  ;;  %v5167_v27 = vld [vmem:[#allocation3 + $0x9] sm:$0xff]  ;;  %v24272_v4 = vld [vmem:[#allocation3 + $0x31] sm:$0xff] }
 0x383   : > { %18454 = vmatprep.mubr.msk.f32.mxu1 %vm4346_vm2, %v24127_v57  ;;  %20107 = vmatpush3.bf16.msra.mxu1 %v23889_v11  ;;  %v24147_v11 = vld [vmem:[#allocation3 + $0x67] sm:$0xff] }
 0x384   : > { %20109 = vmatprep.subr.bf16.mxu1 %v20108_v12  ;;  %v24276_v1 = vld [vmem:[#allocation3 + $0x49] sm:$0xff] }
 0x385   : > { %26273 = vst [vmem:[#allocation46_spill] sm:$0xff] %v24276_v1 }
 0x386   : > { %18455 = vmatmul.mubr.msk.f32.gmra.mrb[34].mxu1 %vm4346_vm2, %v24134_v61 }
 0x387   : > { %18457 = vmatprep.mubr.msk.f32.mxu1 %vm4346_vm2, %v24138_v51  ;;  %20111 = vmatpush3.bf16.msra.mxu1 %v20108_v12  ;;  %v24247_v12 = vld [vmem:[#allocation3 + $0x1ef] sm:$0xff] }
 0x388   : > { %20113 = vmatprep.subr.bf16.mxu1 %v24132_v49 }
 0x38a   : > { %18458 = vmatmul.mubr.msk.f32.gmra.mrb[36].mxu1 %vm4346_vm2, %v24143_v30 }
 0x38b   : > { %18460 = vmatprep.mubr.msk.f32.mxu1 %vm4346_vm2, %v24147_v11 }
 0x38e   : > { %18461 = vmatmul.mubr.msk.f32.gmra.mrb[38].mxu1 %vm4346_vm2, %v24151_v39 }
 0x38f   : > { %18463 = vmatprep.mubr.msk.f32.mxu1 %vm4346_vm2, %v24155_v2 }
 0x392   : > { %18464 = vmatmul.mubr.msk.f32.gmra.mrb[40].mxu1 %vm4346_vm2, %v24159_v50 }
 0x393   : > { %18466 = vmatprep.mubr.msk.f32.mxu1 %vm4346_vm2, %v24163_v34 }
 0x396   : > { %18467 = vmatmul.mubr.msk.f32.gmra.mrb[42].mxu1 %vm4346_vm2, %v24167_v43 }
 0x397   : > { %18469 = vmatprep.mubr.msk.f32.mxu1 %vm4346_vm2, %v24171_v48 }
 0x39a   : > { %18470 = vmatmul.mubr.msk.f32.gmra.mrb[44].mxu1 %vm4346_vm2, %v24175_v52 }
 0x39b   : > { %18472 = vmatprep.mubr.msk.f32.mxu1 %vm4346_vm2, %v24179_v8 }
 0x39e   : > { %18473 = vmatmul.mubr.msk.f32.gmra.mrb[46].mxu1 %vm4346_vm2, %v24183_v3 }
 0x39f   : > { %18475 = vmatprep.mubr.msk.f32.mxu1 %vm4346_vm2, %v24187_v62 }
 0x3a2   : > { %18476 = vmatmul.mubr.msk.f32.gmra.mrb[48].mxu1 %vm4346_vm2, %v24191_v17 }
 0x3a3   : > { %18478 = vmatprep.mubr.msk.f32.mxu1 %vm4346_vm2, %v24195_v31 }
 0x3a6   : > { %18479 = vmatmul.mubr.msk.f32.gmra.mrb[50].mxu1 %vm4346_vm2, %v24199_v26 }
 0x3a7   : > { %18481 = vmatprep.mubr.msk.f32.mxu1 %vm4346_vm2, %v24203_v53 }
 0x3aa   : > { %18482 = vmatmul.mubr.msk.f32.gmra.mrb[52].mxu1 %vm4346_vm2, %v24207_v42 }
 0x3ab   : > { %18484 = vmatprep.mubr.msk.f32.mxu1 %vm4346_vm2, %v24211_v47 }
 0x3ae   : > { %18485 = vmatmul.mubr.msk.f32.gmra.mrb[54].mxu1 %vm4346_vm2, %v24215_v38 }
 0x3af   : > { %18487 = vmatprep.mubr.msk.f32.mxu1 %vm4346_vm2, %v24219_v5 }
 0x3b2   : > { %18488 = vmatmul.mubr.msk.f32.gmra.mrb[56].mxu1 %vm4346_vm2, %v24223_v56 }
 0x3b3   : > { %18490 = vmatprep.mubr.msk.f32.mxu1 %vm4346_vm2, %v24227_v45 }
 0x3b6   : > { %18491 = vmatmul.mubr.msk.f32.gmra.mrb[58].mxu1 %vm4346_vm2, %v24231_v33 }
 0x3b7   : > { %18493 = vmatprep.mubr.msk.f32.mxu1 %vm4346_vm2, %v24235_v46 }
 0x3ba   : > { %18494 = vmatmul.mubr.msk.f32.gmra.mrb[60].mxu1 %vm4346_vm2, %v24239_v54 }
 0x3bb   : > { %18496 = vmatprep.mubr.msk.f32.mxu1 %vm4346_vm2, %v24243_v55 }
 0x3be   : > { %18497 = vmatmul.mubr.msk.f32.gmra.mrb[62].mxu1 %vm4346_vm2, %v24247_v12 }
 0x3bf   : > { %18507 = vmatprep.mubr.msk.f32.mxu1 %vm4346_vm2, %v5167_v27  ;;  %v24270_v27 = vpack.c.bf16 %v16138_v0, %v16137_v24  ;;  %v24285_v0 = vld [vmem:[#allocation3 + $0x69] sm:$0xff]  ;;  %v24289_v24 = vld [vmem:[#allocation3 + $0x71] sm:$0xff] }
 0x3c0   : > { %26275 = vst [vmem:[#allocation51_spill] sm:$0xff] %v24285_v0  ;;  %26276 = vst [vmem:[#allocation52_spill] sm:$0xff] %v24289_v24 }
 0x3c2   : > { %18508 = vmatmul.mubr.msk.f32.vlgmr.msra.gmra.mrb[32].mxu1 %vm4346_vm2, %v5168_v10  ;;  %v24281_v10 = vld [vmem:[#allocation3 + $0x51] sm:$0xff] }
 0x3c3   : > { %18510 = vmatprep.mubr.msk.f32.mxu1 %vm4346_vm2, %v24265_v19  ;;  %20115 = vmatpush3.bf16.msra.mxu1 %v24132_v49  ;;  %26274 = vst [vmem:[#allocation50_spill] sm:$0xff] %v24281_v10  ;;  %v24293_v49 = vld [vmem:[#allocation3 + $0x89] sm:$0xff] }
 0x3c4   : > { %20117 = vmatprep.subr.bf16.mxu1 %v20116_v6  ;;  %26277 = vst [vmem:[#allocation24_spill] sm:$0xff] %v24293_v49 }
 0x3c6   : > { %18511 = vmatmul.mubr.msk.f32.gmra.mrb[34].mxu1 %vm4346_vm2, %v24272_v4 }
 0x3c7   : > { %18513 = vmatprep.mubr.msk.f32.mxu1 %vm4346_vm2, %v24276_v1  ;;  %20119 = vmatpush3.bf16.msra.mxu1 %v20116_v6  ;;  %v24297_v6 = vld [vmem:[#allocation3 + $0x91] sm:$0xff]  ;;  %v16174_v1 = vld [vmem:[%s26025_s3 + $0xa8] sm:$0xff] }
 0x3c8   : > { %20121 = vmatprep.subr.bf16.mxu1 %v24270_v27  ;;  %26278 = vst [vmem:[#allocation53_spill] sm:$0xff] %v24297_v6 }
 0x3ca   : > { %18514 = vmatmul.mubr.msk.f32.gmra.mrb[36].mxu1 %vm4346_vm2, %v24281_v10  ;;  %v24301_v10 = vld [vmem:[#allocation3 + $0xa9] sm:$0xff] }
 0x3cb   : > { %18516 = vmatprep.mubr.msk.f32.mxu1 %vm4346_vm2, %v24285_v0  ;;  %26279 = vst [vmem:[#allocation25_spill] sm:$0xff] %v24301_v10  ;;  %v24305_v0 = vld [vmem:[#allocation3 + $0xb1] sm:$0xff] }
 0x3cc   : > { %26280 = vst [vmem:[#allocation54_spill] sm:$0xff] %v24305_v0 }
 0x3ce   : > { %18517 = vmatmul.mubr.msk.f32.gmra.mrb[38].mxu1 %vm4346_vm2, %v24289_v24  ;;  %v24309_v24 = vld [vmem:[#allocation3 + $0xc9] sm:$0xff] }
 0x3cf   : > { %18519 = vmatprep.mubr.msk.f32.mxu1 %vm4346_vm2, %v24293_v49  ;;  %26281 = vst [vmem:[#allocation27_spill] sm:$0xff] %v24309_v24  ;;  %v24313_v49 = vld [vmem:[#allocation3 + $0xd1] sm:$0xff] }
 0x3d0   : > { %26282 = vst [vmem:[#allocation55_spill] sm:$0xff] %v24313_v49 }
 0x3d2   : > { %18520 = vmatmul.mubr.msk.f32.gmra.mrb[40].mxu1 %vm4346_vm2, %v24297_v6  ;;  %v24317_v6 = vld [vmem:[#allocation3 + $0xe9] sm:$0xff] }
 0x3d3   : > { %18522 = vmatprep.mubr.msk.f32.mxu1 %vm4346_vm2, %v24301_v10  ;;  %26283 = vst [vmem:[#allocation29_spill] sm:$0xff] %v24317_v6  ;;  %v24321_v10 = vld [vmem:[#allocation3 + $0xf1] sm:$0xff] }
 0x3d4   : > { %26284 = vst [vmem:[#allocation56_spill] sm:$0xff] %v24321_v10 }
 0x3d6   : > { %18523 = vmatmul.mubr.msk.f32.gmra.mrb[42].mxu1 %vm4346_vm2, %v24305_v0  ;;  %v24325_v0 = vld [vmem:[#allocation3 + $0x109] sm:$0xff] }
 0x3d7   : > { %18525 = vmatprep.mubr.msk.f32.mxu1 %vm4346_vm2, %v24309_v24  ;;  %26285 = vst [vmem:[#allocation32_spill] sm:$0xff] %v24325_v0  ;;  %v24329_v24 = vld [vmem:[#allocation3 + $0x111] sm:$0xff] }
 0x3d8   : > { %26286 = vst [vmem:[#allocation57_spill] sm:$0xff] %v24329_v24 }
 0x3da   : > { %18526 = vmatmul.mubr.msk.f32.gmra.mrb[44].mxu1 %vm4346_vm2, %v24313_v49  ;;  %v24333_v49 = vld [vmem:[#allocation3 + $0x129] sm:$0xff] }
 0x3db   : > { %18528 = vmatprep.mubr.msk.f32.mxu1 %vm4346_vm2, %v24317_v6  ;;  %26287 = vst [vmem:[#allocation33_spill] sm:$0xff] %v24333_v49  ;;  %v24337_v6 = vld [vmem:[#allocation3 + $0x131] sm:$0xff] }
 0x3dc   : > { %26288 = vst [vmem:[#allocation58_spill] sm:$0xff] %v24337_v6 }
 0x3de   : > { %18529 = vmatmul.mubr.msk.f32.gmra.mrb[46].mxu1 %vm4346_vm2, %v24321_v10  ;;  %v24341_v10 = vld [vmem:[#allocation3 + $0x149] sm:$0xff] }
 0x3df   : > { %18531 = vmatprep.mubr.msk.f32.mxu1 %vm4346_vm2, %v24325_v0  ;;  %26289 = vst [vmem:[#allocation59_spill] sm:$0xff] %v24341_v10  ;;  %v24345_v0 = vld [vmem:[#allocation3 + $0x151] sm:$0xff] }
 0x3e0   : > { %26290 = vst [vmem:[#allocation60_spill] sm:$0xff] %v24345_v0 }
 0x3e2   : > { %18532 = vmatmul.mubr.msk.f32.gmra.mrb[48].mxu1 %vm4346_vm2, %v24329_v24  ;;  %v24349_v24 = vld [vmem:[#allocation3 + $0x169] sm:$0xff] }
 0x3e3   : > { %18534 = vmatprep.mubr.msk.f32.mxu1 %vm4346_vm2, %v24333_v49  ;;  %26291 = vst [vmem:[#allocation61_spill] sm:$0xff] %v24349_v24  ;;  %v24353_v49 = vld [vmem:[#allocation3 + $0x171] sm:$0xff] }
 0x3e4   : > { %26292 = vst [vmem:[#allocation62_spill] sm:$0xff] %v24353_v49 }
 0x3e6   : > { %18535 = vmatmul.mubr.msk.f32.gmra.mrb[50].mxu1 %vm4346_vm2, %v24337_v6  ;;  %v24357_v6 = vld [vmem:[#allocation3 + $0x189] sm:$0xff] }
 0x3e7   : > { %18537 = vmatprep.mubr.msk.f32.mxu1 %vm4346_vm2, %v24341_v10  ;;  %26293 = vst [vmem:[#allocation63_spill] sm:$0xff] %v24357_v6  ;;  %v24361_v10 = vld [vmem:[#allocation3 + $0x191] sm:$0xff] }
 0x3e8   : > { %26294 = vst [vmem:[#allocation64_spill] sm:$0xff] %v24361_v10 }
 0x3ea   : > { %18538 = vmatmul.mubr.msk.f32.gmra.mrb[52].mxu1 %vm4346_vm2, %v24345_v0  ;;  %v24365_v0 = vld [vmem:[#allocation3 + $0x1a9] sm:$0xff] }
 0x3eb   : > { %18540 = vmatprep.mubr.msk.f32.mxu1 %vm4346_vm2, %v24349_v24  ;;  %26295 = vst [vmem:[#allocation65_spill] sm:$0xff] %v24365_v0  ;;  %v24369_v24 = vld [vmem:[#allocation3 + $0x1b1] sm:$0xff] }
 0x3ec   : > { %26296 = vst [vmem:[#allocation66_spill] sm:$0xff] %v24369_v24 }
 0x3ee   : > { %18541 = vmatmul.mubr.msk.f32.gmra.mrb[54].mxu1 %vm4346_vm2, %v24353_v49  ;;  %v24373_v49 = vld [vmem:[#allocation3 + $0x1c9] sm:$0xff] }
 0x3ef   : > { %18543 = vmatprep.mubr.msk.f32.mxu1 %vm4346_vm2, %v24357_v6  ;;  %26297 = vst [vmem:[#allocation67_spill] sm:$0xff] %v24373_v49  ;;  %v24377_v6 = vld [vmem:[#allocation3 + $0x1d1] sm:$0xff] }
 0x3f0   : > { %26298 = vst [vmem:[#allocation68_spill] sm:$0xff] %v24377_v6 }
 0x3f2   : > { %18544 = vmatmul.mubr.msk.f32.gmra.mrb[56].mxu1 %vm4346_vm2, %v24361_v10  ;;  %v24381_v10 = vld [vmem:[#allocation3 + $0x1e9] sm:$0xff] }
 0x3f3   : > { %18546 = vmatprep.mubr.msk.f32.mxu1 %vm4346_vm2, %v24365_v0  ;;  %26299 = vst [vmem:[#allocation69_spill] sm:$0xff] %v24381_v10  ;;  %v24385_v0 = vld [vmem:[#allocation3 + $0x1f1] sm:$0xff] }
 0x3f4   : > { %26300 = vst [vmem:[#allocation70_spill] sm:$0xff] %v24385_v0 }
 0x3f6   : > { %18547 = vmatmul.mubr.msk.f32.gmra.mrb[58].mxu1 %vm4346_vm2, %v24369_v24  ;;  %v16139_v24 = vld [vmem:[%s26025_s3 + $0x90] sm:$0xff] }
 0x3f7   : > { %18549 = vmatprep.mubr.msk.f32.mxu1 %vm4346_vm2, %v24373_v49  ;;  %v16140_v49 = vld [vmem:[%s26025_s3 + $0x98] sm:$0xff] }
 0x3fa   : > { %18550 = vmatmul.mubr.msk.f32.gmra.mrb[60].mxu1 %vm4346_vm2, %v24377_v6  ;;  %v20124_v6 = vpack.c.bf16 %v16140_v49, %v16139_v24  ;;  %v16209_v24 = vld [vmem:[%s26025_s3 + $0xc0] sm:$0xff]  ;;  %v16210_v49 = vld [vmem:[%s26025_s3 + $0xc8] sm:$0xff] }
 0x3fb   : > { %18552 = vmatprep.mubr.msk.f32.mxu1 %vm4346_vm2, %v24381_v10  ;;  %v16173_v10 = vld [vmem:[%s26025_s3 + $0xa0] sm:$0xff] }
 0x3fe   : > { %18553 = vmatmul.mubr.msk.f32.gmra.mrb[62].mxu1 %vm4346_vm2, %v24385_v0  ;;  %v20128_v0 = vpack.c.bf16 %v16174_v1, %v16173_v10  ;;  %v16176_v1 = vld [vmem:[%s26025_s3 + $0xb8] sm:$0xff] }
 0x3ff   : > { %18563 = vmatprep.mubr.msk.f32.mxu1 %vm4346_vm2, %v24127_v57  ;;  %v24462_v57 = vld [vmem:[#allocation3 + $0x207] sm:$0xff] }
 0x402   : > { %18564 = vmatmul.mubr.msk.f32.vlgmr.msra.gmra.mrb[32].mxu1 %vm4346_vm2, %v24134_v61  ;;  %v24466_v61 = vld [vmem:[#allocation3 + $0x20f] sm:$0xff] }
 0x403   : > { %18566 = vmatprep.mubr.msk.f32.mxu1 %vm4346_vm2, %v24138_v51  ;;  %20123 = vmatpush3.bf16.msra.mxu1 %v24270_v27  ;;  %v16175_v27 = vld [vmem:[%s26025_s3 + $0xb0] sm:$0xff] }
 0x404   : > { %20125 = vmatprep.subr.bf16.mxu1 %v20124_v6  ;;  %v20132_v10 = vpack.c.bf16 %v16176_v1, %v16175_v27  ;;  %v26321_v27 = vld [vmem:[#allocation58_spill] sm:$0xff]  ;;  %v26322_v1 = vld [vmem:[#allocation59_spill] sm:$0xff] }
 0x406   : > { %18567 = vmatmul.mubr.msk.f32.gmra.mrb[34].mxu1 %vm4346_vm2, %v24143_v30 }
 0x407   : > { %18569 = vmatprep.mubr.msk.f32.mxu1 %vm4346_vm2, %v24147_v11  ;;  %20127 = vmatpush3.bf16.msra.mxu1 %v20124_v6  ;;  %v20136_v6 = vpack.c.bf16 %v16210_v49, %v16209_v24  ;;  %v26324_v24 = vld [vmem:[#allocation61_spill] sm:$0xff]  ;;  %v26325_v49 = vld [vmem:[#allocation62_spill] sm:$0xff] }
 0x408   : > { %20129 = vmatprep.subr.bf16.mxu1 %v20128_v0 }
 0x40a   : > { %18570 = vmatmul.mubr.msk.f32.gmra.mrb[36].mxu1 %vm4346_vm2, %v24151_v39 }
 0x40b   : > { %18572 = vmatprep.mubr.msk.f32.mxu1 %vm4346_vm2, %v24155_v2 }
 0x40e   : > { %18573 = vmatmul.mubr.msk.f32.gmra.mrb[38].mxu1 %vm4346_vm2, %v24159_v50 }
 0x40f   : > { %18575 = vmatprep.mubr.msk.f32.mxu1 %vm4346_vm2, %v24163_v34 }
 0x412   : > { %18576 = vmatmul.mubr.msk.f32.gmra.mrb[40].mxu1 %vm4346_vm2, %v24167_v43 }
 0x413   : > { %18578 = vmatprep.mubr.msk.f32.mxu1 %vm4346_vm2, %v24171_v48 }
 0x416   : > { %18579 = vmatmul.mubr.msk.f32.gmra.mrb[42].mxu1 %vm4346_vm2, %v24175_v52 }
 0x417   : > { %18581 = vmatprep.mubr.msk.f32.mxu1 %vm4346_vm2, %v24179_v8 }
 0x41a   : > { %18582 = vmatmul.mubr.msk.f32.gmra.mrb[44].mxu1 %vm4346_vm2, %v24183_v3 }
 0x41b   : > { %18584 = vmatprep.mubr.msk.f32.mxu1 %vm4346_vm2, %v24187_v62 }
 0x41e   : > { %18585 = vmatmul.mubr.msk.f32.gmra.mrb[46].mxu1 %vm4346_vm2, %v24191_v17 }
 0x41f   : > { %18587 = vmatprep.mubr.msk.f32.mxu1 %vm4346_vm2, %v24195_v31 }
 0x422   : > { %18588 = vmatmul.mubr.msk.f32.gmra.mrb[48].mxu1 %vm4346_vm2, %v24199_v26 }
 0x423   : > { %18590 = vmatprep.mubr.msk.f32.mxu1 %vm4346_vm2, %v24203_v53 }
 0x426   : > { %18591 = vmatmul.mubr.msk.f32.gmra.mrb[50].mxu1 %vm4346_vm2, %v24207_v42 }
 0x427   : > { %18593 = vmatprep.mubr.msk.f32.mxu1 %vm4346_vm2, %v24211_v47 }
 0x42a   : > { %18594 = vmatmul.mubr.msk.f32.gmra.mrb[52].mxu1 %vm4346_vm2, %v24215_v38 }
 0x42b   : > { %18596 = vmatprep.mubr.msk.f32.mxu1 %vm4346_vm2, %v24219_v5 }
 0x42e   : > { %18597 = vmatmul.mubr.msk.f32.gmra.mrb[54].mxu1 %vm4346_vm2, %v24223_v56 }
 0x42f   : > { %18599 = vmatprep.mubr.msk.f32.mxu1 %vm4346_vm2, %v24227_v45 }
 0x432   : > { %18600 = vmatmul.mubr.msk.f32.gmra.mrb[56].mxu1 %vm4346_vm2, %v24231_v33 }
 0x433   : > { %18602 = vmatprep.mubr.msk.f32.mxu1 %vm4346_vm2, %v24235_v46 }
 0x436   : > { %18603 = vmatmul.mubr.msk.f32.gmra.mrb[58].mxu1 %vm4346_vm2, %v24239_v54 }
 0x437   : > { %18605 = vmatprep.mubr.msk.f32.mxu1 %vm4346_vm2, %v24243_v55 }
 0x43a   : > { %18606 = vmatmul.mubr.msk.f32.gmra.mrb[60].mxu1 %vm4346_vm2, %v24247_v12 }
 0x43b   : > { %18608 = vmatprep.mubr.msk.f32.mxu1 %vm4346_vm2, %v24462_v57 }
 0x43e   : > { %18609 = vmatmul.mubr.msk.f32.gmra.mrb[62].mxu1 %vm4346_vm2, %v24466_v61 }
 0x43f   : > { %18619 = vmatprep.mubr.msk.f32.mxu1 %vm4346_vm2, %v23915_v63  ;;  %v26301_v63 = vld [vmem:[#allocation47_spill] sm:$0xff] }
 0x442   : > { %18620 = vmatmul.mubr.msk.f32.vlgmr.msra.gmra.mrb[32].mxu1 %vm4346_vm2, %v23921_v32  ;;  %v26302_v32 = vld [vmem:[#allocation44_spill] sm:$0xff] }
 0x443   : > { %18622 = vmatprep.mubr.msk.f32.mxu1 %vm4346_vm2, %v23929_v58  ;;  %20131 = vmatpush3.bf16.msra.mxu1 %v20128_v0  ;;  %v26303_v58 = vld [vmem:[#allocation48_spill] sm:$0xff]  ;;  %v26320_v0 = vld [vmem:[#allocation33_spill] sm:$0xff] }
 0x444   : > { %20133 = vmatprep.subr.bf16.mxu1 %v20132_v10 }
 0x446   : > { %18623 = vmatmul.mubr.msk.f32.gmra.mrb[34].mxu1 %vm4346_vm2, %v23935_v60  ;;  %v26304_v60 = vld [vmem:[#allocation45_spill] sm:$0xff] }
 0x447   : > { %18625 = vmatprep.mubr.msk.f32.mxu1 %vm4346_vm2, %v23943_v37  ;;  %20135 = vmatpush3.bf16.msra.mxu1 %v20132_v10  ;;  %v26305_v37 = vld [vmem:[#allocation49_spill] sm:$0xff]  ;;  %v26323_v10 = vld [vmem:[#allocation60_spill] sm:$0xff] }
 0x448   : > { %20137 = vmatprep.subr.bf16.mxu1 %v20136_v6 }
 0x44a   : > { %18626 = vmatmul.mubr.msk.f32.gmra.mrb[36].mxu1 %vm4346_vm2, %v23949_v40  ;;  %v24542_v40 = vld [vmem:[#allocation3 + $0x208] sm:$0xff] }
 0x44b   : > { %18628 = vmatprep.mubr.msk.f32.mxu1 %vm4346_vm2, %v23957_v44  ;;  %v24546_v44 = vld [vmem:[#allocation3 + $0x210] sm:$0xff] }
 0x44e   : > { %18629 = vmatmul.mubr.msk.f32.gmra.mrb[38].mxu1 %vm4346_vm2, %v23963_v21  ;;  %v16211_v21 = vld [vmem:[%s26025_s3 + $0xd0] sm:$0xff] }
 0x44f   : > { %18631 = vmatprep.mubr.msk.f32.mxu1 %vm4346_vm2, %v23971_v59  ;;  %v16212_v59 = vld [vmem:[%s26025_s3 + $0xd8] sm:$0xff] }
 0x452   : > { %18632 = vmatmul.mubr.msk.f32.gmra.mrb[40].mxu1 %vm4346_vm2, %v23977_v9  ;;  %v20140_v9 = vpack.c.bf16 %v16212_v59, %v16211_v21  ;;  %v26332_v21 = vld [vmem:[#allocation69_spill] sm:$0xff]  ;;  %v26333_v59 = vld [vmem:[#allocation70_spill] sm:$0xff] }
 0x453   : > { %18634 = vmatprep.mubr.msk.f32.mxu1 %vm4346_vm2, %v23985_v7  ;;  %v16245_v7 = vld [vmem:[%s26025_s3 + $0xe0] sm:$0xff] }
 0x456   : > { %18635 = vmatmul.mubr.msk.f32.gmra.mrb[42].mxu1 %vm4346_vm2, %v23991_v20  ;;  %v16246_v20 = vld [vmem:[%s26025_s3 + $0xe8] sm:$0xff] }
 0x457   : > { %18637 = vmatprep.mubr.msk.f32.mxu1 %vm4346_vm2, %v23999_v28  ;;  %v26306_v28 = vld [vmem:[#allocation46_spill] sm:$0xff] }
 0x45a   : > { %18638 = vmatmul.mubr.msk.f32.gmra.mrb[44].mxu1 %vm4346_vm2, %v24005_v15  ;;  %v20144_v15 = vpack.c.bf16 %v16246_v20, %v16245_v7  ;;  %v24626_v7 = vld [vmem:[#allocation3 + $0x211] sm:$0xff] }
 0x45b   : > { %18640 = vmatprep.mubr.msk.f32.mxu1 %vm4346_vm2, %v24013_v36  ;;  %v26307_v36 = vld [vmem:[#allocation50_spill] sm:$0xff]  ;;  %26335 = vst [vmem:[#allocation44_spill] sm:$0xff] %v24626_v7 }
 0x45c   : > { %v16247_v20 = vld [vmem:[%s26025_s3 + $0xf0] sm:$0xff] }
 0x45e   : > { %18641 = vmatmul.mubr.msk.f32.gmra.mrb[46].mxu1 %vm4346_vm2, %v24019_v16  ;;  %v26308_v16 = vld [vmem:[#allocation51_spill] sm:$0xff] }
 0x45f   : > { %18643 = vmatprep.mubr.msk.f32.mxu1 %vm4346_vm2, %v24027_v23  ;;  %v26309_v23 = vld [vmem:[#allocation52_spill] sm:$0xff] }
 0x462   : > { %18644 = vmatmul.mubr.msk.f32.gmra.mrb[48].mxu1 %vm4346_vm2, %v24033_v25  ;;  %v26310_v25 = vld [vmem:[#allocation24_spill] sm:$0xff] }
 0x463   : > { %18646 = vmatprep.mubr.msk.f32.mxu1 %vm4346_vm2, %v24041_v13  ;;  %v26311_v13 = vld [vmem:[#allocation53_spill] sm:$0xff] }
 0x466   : > { %18647 = vmatmul.mubr.msk.f32.gmra.mrb[50].mxu1 %vm4346_vm2, %v24047_v41  ;;  %v26312_v41 = vld [vmem:[#allocation25_spill] sm:$0xff] }
 0x467   : > { %18649 = vmatprep.mubr.msk.f32.mxu1 %vm4346_vm2, %v24055_v18  ;;  %v26313_v18 = vld [vmem:[#allocation54_spill] sm:$0xff] }
 0x46a   : > { %18650 = vmatmul.mubr.msk.f32.gmra.mrb[52].mxu1 %vm4346_vm2, %v24061_v14  ;;  %v26314_v14 = vld [vmem:[#allocation27_spill] sm:$0xff] }
 0x46b   : > { %18652 = vmatprep.mubr.msk.f32.mxu1 %vm4346_vm2, %v24069_v35  ;;  %v26315_v35 = vld [vmem:[#allocation55_spill] sm:$0xff] }
 0x46e   : > { %18653 = vmatmul.mubr.msk.f32.gmra.mrb[54].mxu1 %vm4346_vm2, %v24075_v22  ;;  %v26316_v22 = vld [vmem:[#allocation29_spill] sm:$0xff] }
 0x46f   : > { %18655 = vmatprep.mubr.msk.f32.mxu1 %vm4346_vm2, %v24083_v29  ;;  %v26317_v29 = vld [vmem:[#allocation56_spill] sm:$0xff] }
 0x472   : > { %18656 = vmatmul.mubr.msk.f32.gmra.mrb[56].mxu1 %vm4346_vm2, %v26301_v63  ;;  %v26327_v63 = vld [vmem:[#allocation64_spill] sm:$0xff] }
 0x473   : > { %18658 = vmatprep.mubr.msk.f32.mxu1 %vm4346_vm2, %v26302_v32  ;;  %v26328_v32 = vld [vmem:[#allocation65_spill] sm:$0xff] }
 0x476   : > { %18659 = vmatmul.mubr.msk.f32.gmra.mrb[58].mxu1 %vm4346_vm2, %v26303_v58  ;;  %v26329_v58 = vld [vmem:[#allocation66_spill] sm:$0xff] }
 0x477   : > { %18661 = vmatprep.mubr.msk.f32.mxu1 %vm4346_vm2, %v26304_v60  ;;  %v26330_v60 = vld [vmem:[#allocation67_spill] sm:$0xff] }
 0x47a   : > { %18662 = vmatmul.mubr.msk.f32.gmra.mrb[60].mxu1 %vm4346_vm2, %v26305_v37  ;;  %v26331_v37 = vld [vmem:[#allocation68_spill] sm:$0xff] }
 0x47b   : > { %18664 = vmatprep.mubr.msk.f32.mxu1 %vm4346_vm2, %v24542_v40 }
 0x47e   : > { %18665 = vmatmul.mubr.msk.f32.gmra.mrb[62].mxu1 %vm4346_vm2, %v24546_v44 }
 0x47f   : > { %18675 = vmatprep.mubr.msk.f32.mxu1 %vm4346_vm2, %v24265_v19  ;;  %v26318_v19 = vld [vmem:[#allocation32_spill] sm:$0xff] }
 0x482   : > { %18676 = vmatmul.mubr.msk.f32.vlgmr.msra.gmra.mrb[32].mxu1 %vm4346_vm2, %v24272_v4  ;;  %v26319_v4 = vld [vmem:[#allocation57_spill] sm:$0xff] }
 0x483   : > { %18678 = vmatprep.mubr.msk.f32.mxu1 %vm4346_vm2, %v26306_v28  ;;  %20139 = vmatpush3.bf16.msra.mxu1 %v20136_v6  ;;  %v26326_v6 = vld [vmem:[#allocation63_spill] sm:$0xff] }
 0x484   : > { %20141 = vmatprep.subr.bf16.mxu1 %v20140_v9 }
 0x486   : > { %18679 = vmatmul.mubr.msk.f32.gmra.mrb[34].mxu1 %vm4346_vm2, %v26307_v36 }
 0x487   : > { %18681 = vmatprep.mubr.msk.f32.mxu1 %vm4346_vm2, %v26308_v16  ;;  %20143 = vmatpush3.bf16.msra.mxu1 %v20140_v9  ;;  %v24622_v9 = vld [vmem:[#allocation3 + $0x209] sm:$0xff] }
 0x488   : > { %20145 = vmatprep.subr.bf16.mxu1 %v20144_v15  ;;  %26334 = vst [vmem:[#allocation47_spill] sm:$0xff] %v24622_v9 }
 0x48a   : > { %18682 = vmatmul.mubr.msk.f32.gmra.mrb[36].mxu1 %vm4346_vm2, %v26309_v23 }
 0x48b   : > { %18684 = vmatprep.mubr.msk.f32.mxu1 %vm4346_vm2, %v26310_v25 }
 0x48e   : > { %18685 = vmatmul.mubr.msk.f32.gmra.mrb[38].mxu1 %vm4346_vm2, %v26311_v13 }
 0x48f   : > { %18687 = vmatprep.mubr.msk.f32.mxu1 %vm4346_vm2, %v26312_v41 }
 0x492   : > { %18688 = vmatmul.mubr.msk.f32.gmra.mrb[40].mxu1 %vm4346_vm2, %v26313_v18 }
 0x493   : > { %18690 = vmatprep.mubr.msk.f32.mxu1 %vm4346_vm2, %v26314_v14 }
 0x496   : > { %18691 = vmatmul.mubr.msk.f32.gmra.mrb[42].mxu1 %vm4346_vm2, %v26315_v35 }
 0x497   : > { %18693 = vmatprep.mubr.msk.f32.mxu1 %vm4346_vm2, %v26316_v22 }
 0x49a   : > { %18694 = vmatmul.mubr.msk.f32.gmra.mrb[44].mxu1 %vm4346_vm2, %v26317_v29 }
 0x49b   : > { %18696 = vmatprep.mubr.msk.f32.mxu1 %vm4346_vm2, %v26318_v19 }
 0x49e   : > { %18697 = vmatmul.mubr.msk.f32.gmra.mrb[46].mxu1 %vm4346_vm2, %v26319_v4 }
 0x49f   : > { %18699 = vmatprep.mubr.msk.f32.mxu1 %vm4346_vm2, %v26320_v0 }
 0x4a2   : > { %18700 = vmatmul.mubr.msk.f32.gmra.mrb[48].mxu1 %vm4346_vm2, %v26321_v27 }
 0x4a3   : > { %18702 = vmatprep.mubr.msk.f32.mxu1 %vm4346_vm2, %v26322_v1 }
 0x4a6   : > { %18703 = vmatmul.mubr.msk.f32.gmra.mrb[50].mxu1 %vm4346_vm2, %v26323_v10 }
 0x4a7   : > { %18705 = vmatprep.mubr.msk.f32.mxu1 %vm4346_vm2, %v26324_v24 }
 0x4aa   : > { %18706 = vmatmul.mubr.msk.f32.gmra.mrb[52].mxu1 %vm4346_vm2, %v26325_v49 }
 0x4ab   : > { %18708 = vmatprep.mubr.msk.f32.mxu1 %vm4346_vm2, %v26326_v6 }
 0x4ae   : > { %18709 = vmatmul.mubr.msk.f32.gmra.mrb[54].mxu1 %vm4346_vm2, %v26327_v63 }
 0x4af   : > { %18711 = vmatprep.mubr.msk.f32.mxu1 %vm4346_vm2, %v26328_v32 }
 0x4b2   : > { %18712 = vmatmul.mubr.msk.f32.gmra.mrb[56].mxu1 %vm4346_vm2, %v26329_v58 }
 0x4b3   : > { %18714 = vmatprep.mubr.msk.f32.mxu1 %vm4346_vm2, %v26330_v60 }
 0x4b6   : > { %18715 = vmatmul.mubr.msk.f32.gmra.mrb[58].mxu1 %vm4346_vm2, %v26331_v37  ;;  %v16248_v37 = vld [vmem:[%s26025_s3 + $0xf8] sm:$0xff] }
 0x4b7   : > { %18717 = vmatprep.mubr.msk.f32.mxu1 %vm4346_vm2, %v26332_v21  ;;  %v16282_v21 = vld [vmem:[%s26025_s3 + $0x108] sm:$0xff] }
 0x4ba   : > { %18718 = vmatmul.mubr.msk.f32.gmra.mrb[60].mxu1 %vm4346_vm2, %v26333_v59  ;;  %v20148_v59 = vpack.c.bf16 %v16248_v37, %v16247_v20 }
 0x4bb   : > { %18720 = vmatprep.mubr.msk.f32.mxu1 %vm4346_vm2, %v24622_v9  ;;  %v16281_v9 = vld [vmem:[%s26025_s3 + $0x100] sm:$0xff] }
 0x4be   : > { %18721 = vmatmul.mubr.msk.f32.gmra.mrb[62].mxu1 %vm4346_vm2, %v24626_v7  ;;  %v24648_v7 = vpack.c.bf16 %v16282_v21, %v16281_v9  ;;  %v8479_v21 = vld [vmem:[#allocation10 + $0x10] sm:$0xff]  ;;  %v8470_v9 = vld [vmem:[#allocation4 + $0x8] sm:$0xff] }
 0x4bf   : > { %18731 = vmatprep.mubr.msk.f32.mxu1 %vm4346_vm2, %v24138_v51  ;;  %v6758_v51 = vld [vmem:[#allocation3 + $0x227] sm:$0xff]  ;;  %18895 = vmatprep.mubr.msk.f32.mxu0 %vm702_vm0, %v8470_v9 }
 0x4c2   : > { %18732 = vmatmul.mubr.msk.f32.vlgmr.msra.gmra.mrb[32].mxu1 %vm4346_vm2, %v24143_v30  ;;  %v26336_v30 = vld [vmem:[#allocation22_spill] sm:$0xff] }
 0x4c3   : > { %18734 = vmatprep.mubr.msk.f32.mxu1 %vm4346_vm2, %v24147_v11  ;;  %20147 = vmatpush3.bf16.msra.mxu1 %v20144_v15  ;;  %v8127_v11 = vrot.slane %v26336_v30, 1  ;;  %v7118_v15 = vld [vmem:[#allocation3 + $0x48] sm:$0xff] }
 0x4c4   : > { %20149 = vmatprep.subr.bf16.mxu1 %v20148_v59 }
 0x4c5   : > { %v8143_v20 = vmax.f32 %v26336_v30, %v8127_v11 }
 0x4c6   : > { %18735 = vmatmul.mubr.msk.f32.gmra.mrb[34].mxu1 %vm4346_vm2, %v24151_v39  ;;  %v26337_v39 = vld [vmem:[#allocation23_spill] sm:$0xff] }
 0x4c7   : > { %18737 = vmatprep.mubr.msk.f32.mxu1 %vm4346_vm2, %v24155_v2  ;;  %20151 = vmatpush3.bf16.msra.mxu1 %v20148_v59  ;;  %v8195_v2 = vrot.slane %v26337_v39, 1  ;;  %v8480_v59 = vld [vmem:[#allocation10 + $0x18] sm:$0xff]  ;;  %8152 = vst.msk [vmem:[#allocation4 + $0x38] sm:$0x1] %vm772_vm1, %v8143_v20 }
 0x4c8   : > { %20153 = vmatprep.subr.bf16.mxu1 %v24648_v7  ;;  %8161 = vst.msk [vmem:[#allocation4 + $0x37] sm:$0x4] %vm8159_vm3, %v8143_v20 }
 0x4c9   : > { %v8211_v30 = vmax.f32 %v26337_v39, %v8195_v2  ;;  %8170 = vst.msk [vmem:[#allocation4 + $0x36] sm:$0x10] %vm8168_vm4, %v8143_v20  ;;  %v7119_v2 = vld [vmem:[#allocation3 + $0x50] sm:$0xff] }
 0x4ca   : > { %18738 = vmatmul.mubr.msk.f32.gmra.mrb[36].mxu1 %vm4346_vm2, %v24159_v50  ;;  %v16283_v50 = vld [vmem:[%s26025_s3 + $0x110] sm:$0xff]  ;;  %8179 = vst.msk [vmem:[#allocation4 + $0x35] sm:$0x40] %vm8177_vm5, %v8143_v20 }
 0x4cb   : > { %18740 = vmatprep.mubr.msk.f32.mxu1 %vm4346_vm2, %v24163_v34  ;;  %v16284_v34 = vld [vmem:[%s26025_s3 + $0x118] sm:$0xff]  ;;  %8219 = vst.msk [vmem:[#allocation4 + $0x3c] sm:$0x1] %vm772_vm1, %v8211_v30  ;;  %v7127_v20 = vld [vmem:[#allocation3 + $0xd0] sm:$0xff] }
 0x4cc   : > { %v24725_v37 = vpack.c.bf16 %v16284_v34, %v16283_v50  ;;  %v26351_v50 = vld [vmem:[#allocation39_spill] sm:$0xff]  ;;  %v8468_v34 = vld [vmem:[#allocation10] sm:$0xff]  ;;  %8227 = vst.msk [vmem:[#allocation4 + $0x3b] sm:$0x4] %vm8159_vm3, %v8211_v30 }
 0x4cd   : > { %8226 = vst.msk [vmem:[#allocation4 + $0x23] sm:$0x4] %vm8159_vm3, %v26351_v50 }
 0x4ce   : > { %18741 = vmatmul.mubr.msk.f32.gmra.mrb[38].mxu1 %vm4346_vm2, %v24167_v43  ;;  %v26338_v43 = vld [vmem:[#allocation26_spill] sm:$0xff]  ;;  %8234 = vst.msk [vmem:[#allocation4 + $0x22] sm:$0x10] %vm8168_vm4, %v26351_v50  ;;  %8235 = vst.msk [vmem:[#allocation4 + $0x3a] sm:$0x10] %vm8168_vm4, %v8211_v30 }
 0x4cf   : > { %18743 = vmatprep.mubr.msk.f32.mxu1 %vm4346_vm2, %v24171_v48  ;;  %v8128_v48 = vrot.slane %v26338_v43, 1  ;;  %8242 = vst.msk [vmem:[#allocation4 + $0x21] sm:$0x40] %vm8177_vm5, %v26351_v50  ;;  %8243 = vst.msk [vmem:[#allocation4 + $0x39] sm:$0x40] %vm8177_vm5, %v8211_v30  ;;  %v7128_v50 = vld [vmem:[#allocation3 + $0xe8] sm:$0xff] }
 0x4d0   : > { %v8460_v30 = vld [vmem:[#allocation4 + $0x7] sm:$0xff] }
 0x4d1   : > { %v8144_v11 = vmax.f32 %v26338_v43, %v8128_v48 }
 0x4d2   : > { %18744 = vmatmul.mubr.msk.f32.gmra.mrb[40].mxu1 %vm4346_vm2, %v24175_v52  ;;  %v26339_v52 = vld [vmem:[#allocation28_spill] sm:$0xff] }
 0x4d3   : > { %18746 = vmatprep.mubr.msk.f32.mxu1 %vm4346_vm2, %v24179_v8  ;;  %v8196_v8 = vrot.slane %v26339_v52, 1  ;;  %8153 = vst.msk [vmem:[#allocation4 + $0x50] sm:$0x1] %vm772_vm1, %v8144_v11 }
 0x4d4   : > { %8162 = vst.msk [vmem:[#allocation4 + $0x4f] sm:$0x4] %vm8159_vm3, %v8144_v11 }
 0x4d5   : > { %8171 = vst.msk [vmem:[#allocation4 + $0x4e] sm:$0x10] %vm8168_vm4, %v8144_v11 }
 0x4d6   : > { %18747 = vmatmul.mubr.msk.f32.gmra.mrb[42].mxu1 %vm4346_vm2, %v24183_v3  ;;  %v26340_v3 = vld [vmem:[#allocation30_spill] sm:$0xff]  ;;  %8180 = vst.msk [vmem:[#allocation4 + $0x4d] sm:$0x40] %vm8177_vm5, %v8144_v11 }
 0x4d7   : > { %18749 = vmatprep.mubr.msk.f32.mxu1 %vm4346_vm2, %v24187_v62  ;;  %v8129_v62 = vrot.slane %v26340_v3, 1  ;;  %v8896_v11 = vld [vmem:[#allocation10 + $0x30] sm:$0xff] }
 0x4da   : > { %18750 = vmatmul.mubr.msk.f32.gmra.mrb[44].mxu1 %vm4346_vm2, %v24191_v17  ;;  %v26341_v17 = vld [vmem:[#allocation31_spill] sm:$0xff] }
 0x4db   : > { %18752 = vmatprep.mubr.msk.f32.mxu1 %vm4346_vm2, %v24195_v31  ;;  %v8197_v31 = vrot.slane %v26341_v17, 1 }
 0x4de   : > { %18753 = vmatmul.mubr.msk.f32.gmra.mrb[46].mxu1 %vm4346_vm2, %v24199_v26  ;;  %v6759_v26 = vld [vmem:[#allocation3 + $0x22f] sm:$0xff] }
 0x4df   : > { %18755 = vmatprep.mubr.msk.f32.mxu1 %vm4346_vm2, %v24203_v53  ;;  %v26342_v53 = vld [vmem:[#allocation34_spill] sm:$0xff] }
 0x4e2   : > { %18756 = vmatmul.mubr.msk.f32.gmra.mrb[48].mxu1 %vm4346_vm2, %v24207_v42  ;;  %v8130_v42 = vrot.slane %v26342_v53, 1 }
 0x4e3   : > { %18758 = vmatprep.mubr.msk.f32.mxu1 %vm4346_vm2, %v24211_v47  ;;  %v26343_v47 = vld [vmem:[#allocation35_spill] sm:$0xff] }
 0x4e4   : > { %v8146_v39 = vmax.f32 %v26342_v53, %v8130_v42  ;;  %v8749_v53 = vld [vmem:[#allocation10 + $0x28] sm:$0xff] }
 0x4e6   : > { %18759 = vmatmul.mubr.msk.f32.gmra.mrb[50].mxu1 %vm4346_vm2, %v24215_v38  ;;  %v8198_v38 = vrot.slane %v26343_v47, 1  ;;  %8155 = vst.msk [vmem:[#allocation4 + $0x80] sm:$0x1] %vm772_vm1, %v8146_v39 }
 0x4e7   : > { %18761 = vmatprep.mubr.msk.f32.mxu1 %vm4346_vm2, %v24219_v5  ;;  %v26344_v5 = vld [vmem:[#allocation36_spill] sm:$0xff]  ;;  %8164 = vst.msk [vmem:[#allocation4 + $0x7f] sm:$0x4] %vm8159_vm3, %v8146_v39 }
 0x4e8   : > { %v8214_v43 = vmax.f32 %v26343_v47, %v8198_v38  ;;  %8173 = vst.msk [vmem:[#allocation4 + $0x7e] sm:$0x10] %vm8168_vm4, %v8146_v39 }
 0x4e9   : > { %8182 = vst.msk [vmem:[#allocation4 + $0x7d] sm:$0x40] %vm8177_vm5, %v8146_v39 }
 0x4ea   : > { %18762 = vmatmul.mubr.msk.f32.gmra.mrb[52].mxu1 %vm4346_vm2, %v24223_v56  ;;  %v8131_v56 = vrot.slane %v26344_v5, 1  ;;  %8222 = vst.msk [vmem:[#allocation4 + $0x84] sm:$0x1] %vm772_vm1, %v8214_v43 }
 0x4eb   : > { %18764 = vmatprep.mubr.msk.f32.mxu1 %vm4346_vm2, %v24227_v45  ;;  %v26345_v45 = vld [vmem:[#allocation37_spill] sm:$0xff]  ;;  %8230 = vst.msk [vmem:[#allocation4 + $0x83] sm:$0x4] %vm8159_vm3, %v8214_v43 }
 0x4ec   : > { %v8147_v48 = vmax.f32 %v26344_v5, %v8131_v56  ;;  %8238 = vst.msk [vmem:[#allocation4 + $0x82] sm:$0x10] %vm8168_vm4, %v8214_v43  ;;  %v7121_v5 = vld [vmem:[#allocation3 + $0x70] sm:$0xff] }
 0x4ed   : > { %8246 = vst.msk [vmem:[#allocation4 + $0x81] sm:$0x40] %vm8177_vm5, %v8214_v43 }
 0x4ee   : > { %18765 = vmatmul.mubr.msk.f32.gmra.mrb[54].mxu1 %vm4346_vm2, %v24231_v33  ;;  %v8199_v33 = vrot.slane %v26345_v45, 1  ;;  %8156 = vst.msk [vmem:[#allocation4 + $0x98] sm:$0x1] %vm772_vm1, %v8147_v48 }
 0x4ef   : > { %18767 = vmatprep.mubr.msk.f32.mxu1 %vm4346_vm2, %v24235_v46  ;;  %v26346_v46 = vld [vmem:[#allocation40_spill] sm:$0xff]  ;;  %8165 = vst.msk [vmem:[#allocation4 + $0x97] sm:$0x4] %vm8159_vm3, %v8147_v48 }
 0x4f0   : > { %8174 = vst.msk [vmem:[#allocation4 + $0x96] sm:$0x10] %vm8168_vm4, %v8147_v48 }
 0x4f1   : > { %8183 = vst.msk [vmem:[#allocation4 + $0x95] sm:$0x40] %vm8177_vm5, %v8147_v48  ;;  %v7132_v48 = vld [vmem:[#allocation3 + $0x128] sm:$0xff] }
 0x4f2   : > { %18768 = vmatmul.mubr.msk.f32.gmra.mrb[56].mxu1 %vm4346_vm2, %v24239_v54  ;;  %v8132_v54 = vrot.slane %v26346_v46, 1 }
 0x4f3   : > { %18770 = vmatprep.mubr.msk.f32.mxu1 %vm4346_vm2, %v24243_v55  ;;  %v26347_v55 = vld [vmem:[#allocation41_spill] sm:$0xff] }
 0x4f6   : > { %18771 = vmatmul.mubr.msk.f32.gmra.mrb[58].mxu1 %vm4346_vm2, %v24247_v12  ;;  %v20160_v12 = vpack.c.bf16 %v8480_v59, %v8479_v21  ;;  %v8213_v21 = vmax.f32 %v26341_v17, %v8197_v31  ;;  %v7126_v59 = vld [vmem:[#allocation3 + $0xc8] sm:$0xff] }
 0x4f7   : > { %18773 = vmatprep.mubr.msk.f32.mxu1 %vm4346_vm2, %v24462_v57  ;;  %v26348_v57 = vld [vmem:[#allocation42_spill] sm:$0xff] }
 0x4f8   : > { %20161 = vmatprep.subr.bf16.mxu0 %v20160_v12  ;;  %8221 = vst.msk [vmem:[#allocation4 + $0x6c] sm:$0x1] %vm772_vm1, %v8213_v21  ;;  %v26353_v42 = vrot.slane %v26348_v57, 1 }
 0x4f9   : > { %20163 = vmatpush3.bf16.msra.mxu0 %v20160_v12  ;;  %8229 = vst.msk [vmem:[#allocation4 + $0x6b] sm:$0x4] %vm8159_vm3, %v8213_v21 }
 0x4fa   : > { %18774 = vmatmul.mubr.msk.f32.gmra.mrb[60].mxu1 %vm4346_vm2, %v24466_v61  ;;  %v26350_v61 = vld [vmem:[#allocation38_spill] sm:$0xff]  ;;  %8237 = vst.msk [vmem:[#allocation4 + $0x6a] sm:$0x10] %vm8168_vm4, %v8213_v21  ;;  %v8149_v47 = vmax.f32 %v26348_v57, %v26353_v42 }
 0x4fb   : > { %18776 = vmatprep.mubr.msk.f32.mxu1 %vm4346_vm2, %v6758_v51  ;;  %v26349_v51 = vld [vmem:[#allocation43_spill] sm:$0xff]  ;;  %8160 = vst.msk [vmem:[#allocation4 + $0x1f] sm:$0x4] %vm8159_vm3, %v26350_v61  ;;  %v7125_v57 = vld [vmem:[#allocation3 + $0xb0] sm:$0xff] }
 0x4fc   : > { %v8201_v60 = vrot.slane %v26349_v51, 1  ;;  %8169 = vst.msk [vmem:[#allocation4 + $0x1e] sm:$0x10] %vm8168_vm4, %v26350_v61  ;;  %8176 = vst.msk [vmem:[#allocation4 + $0xc6] sm:$0x10] %vm8168_vm4, %v8149_v47  ;;  %v8739_v42 = vld [vmem:[#allocation4 + $0x9] sm:$0xff] }
 0x4fd   : > { %8178 = vst.msk [vmem:[#allocation4 + $0x1d] sm:$0x40] %vm8177_vm5, %v26350_v61  ;;  %v8212_v61 = vmax.f32 %v26339_v52, %v8196_v8  ;;  %v8215_v52 = vmax.f32 %v26345_v45, %v8199_v33  ;;  %v8148_v8 = vmax.f32 %v26346_v46, %v8132_v54  ;;  %8245 = vst.msk [vmem:[#allocation4 + $0x69] sm:$0x40] %vm8177_vm5, %v8213_v21  ;;  %v24830_v33 = vld [vmem:[#allocation4 + $0x38] sm:$0xff]  ;;  %v7123_v46 = vld [vmem:[#allocation3 + $0x90] sm:$0xff] }
 0x4fe   : > { %18777 = vmatmul.mubr.msk.f32.gmra.mrb[62].mxu1 %vm4346_vm2, %v6759_v26  ;;  %v8469_v26 = vld [vmem:[#allocation10 + $0x8] sm:$0xff]  ;;  %v8217_v38 = vmax.f32 %v26349_v51, %v8201_v60  ;;  %8158 = vst.msk [vmem:[#allocation4 + $0xc8] sm:$0x1] %vm772_vm1, %v8149_v47  ;;  %v24864_v21 = vld [vmem:[#allocation4 + $0x37] sm:$0xff] }
 0x4ff   : > { %18787 = vmatprep.mubr.msk.f32.mxu1 %vm4346_vm2, %v7118_v15  ;;  %v8145_v15 = vmax.f32 %v26340_v3, %v8129_v62  ;;  %v7120_v3 = vld [vmem:[#allocation3 + $0x68] sm:$0xff]  ;;  %8220 = vst.msk [vmem:[#allocation4 + $0x54] sm:$0x1] %vm772_vm1, %v8212_v61  ;;  %v26352_v62 = vrot.slane %v26347_v55, 1  ;;  %v20164_v31 = vpack.c.bf16 %v8469_v26, %v8468_v34  ;;  %8223 = vst.msk [vmem:[#allocation4 + $0x9c] sm:$0x1] %vm772_vm1, %v8215_v52 }
 0x500   : > { %8228 = vst.msk [vmem:[#allocation4 + $0x53] sm:$0x4] %vm8159_vm3, %v8212_v61  ;;  %8231 = vst.msk [vmem:[#allocation4 + $0x9b] sm:$0x4] %vm8159_vm3, %v8215_v52  ;;  %v7122_v60 = vld [vmem:[#allocation3 + $0x88] sm:$0xff]  ;;  %v8897_v34 = vld [vmem:[#allocation10 + $0x38] sm:$0xff] }
 0x501   : > { %8236 = vst.msk [vmem:[#allocation4 + $0x52] sm:$0x10] %vm8168_vm4, %v8212_v61  ;;  %8172 = vst.msk [vmem:[#allocation4 + $0x66] sm:$0x10] %vm8168_vm4, %v8145_v15  ;;  %v8216_v17 = vmax.f32 %v26347_v55, %v26352_v62  ;;  %20165 = vmatprep.subr.bf16.mxu0 %v20164_v31  ;;  %v7124_v55 = vld [vmem:[#allocation3 + $0xa8] sm:$0xff]  ;;  %v7129_v26 = vld [vmem:[#allocation3 + $0xf0] sm:$0xff]  ;;  %v20172_v39 = vpack.c.bf16 %v8897_v34, %v8896_v11 }
 0x502   : > { %18788 = vmatmul.mubr.msk.f32.vlgmr.msra.gmra.mrb[32].mxu1 %vm4346_vm2, %v7119_v2  ;;  %8244 = vst.msk [vmem:[#allocation4 + $0x51] sm:$0x40] %vm8177_vm5, %v8212_v61  ;;  %8181 = vst.msk [vmem:[#allocation4 + $0x65] sm:$0x40] %vm8177_vm5, %v8145_v15  ;;  %v7131_v2 = vld [vmem:[#allocation3 + $0x110] sm:$0xff]  ;;  %v7134_v62 = vld [vmem:[#allocation3 + $0x148] sm:$0xff] }
 0x503   : > { %8154 = vst.msk [vmem:[#allocation4 + $0x68] sm:$0x1] %vm772_vm1, %v8145_v15  ;;  %18790 = vmatprep.mubr.msk.f32.mxu1 %vm4346_vm2, %v7120_v3  ;;  %20155 = vmatpush3.bf16.msra.mxu1 %v24648_v7  ;;  %8157 = vst.msk [vmem:[#allocation4 + $0xb0] sm:$0x1] %vm772_vm1, %v8148_v8  ;;  %v8748_v7 = vld [vmem:[#allocation10 + $0x20] sm:$0xff]  ;;  %v21798_v11 = vld [vmem:[#allocation3 + $0x1b0] sm:$0xff] }
 0x504   : > { %8163 = vst.msk [vmem:[#allocation4 + $0x67] sm:$0x4] %vm8159_vm3, %v8145_v15  ;;  %8166 = vst.msk [vmem:[#allocation4 + $0xaf] sm:$0x4] %vm8159_vm3, %v8148_v8  ;;  %20157 = vmatprep.subr.bf16.mxu1 %v24725_v37  ;;  %v24824_v56 = vld [vmem:[#allocation4 + $0x20] sm:$0xff]  ;;  %v20168_v45 = vpack.c.bf16 %v8749_v53, %v8748_v7  ;;  %v7130_v15 = vld [vmem:[#allocation3 + $0x108] sm:$0xff] }
 0x505   : > { %8239 = vst.msk [vmem:[#allocation4 + $0x9a] sm:$0x10] %vm8168_vm4, %v8215_v52  ;;  %8175 = vst.msk [vmem:[#allocation4 + $0xae] sm:$0x10] %vm8168_vm4, %v8148_v8  ;;  %18896 = vmatmul.mubr.msk.f32.vlgmr.msra.gmra.mrb[32].mxu0 %vm702_vm0, %v24824_v56  ;;  %v24861_v61 = vld [vmem:[#allocation4 + $0x1f] sm:$0xff]  ;;  %v7136_v53 = vld [vmem:[#allocation3 + $0x168] sm:$0xff] }
 0x506   : > { %8247 = vst.msk [vmem:[#allocation4 + $0x99] sm:$0x40] %vm8177_vm5, %v8215_v52  ;;  %8184 = vst.msk [vmem:[#allocation4 + $0xad] sm:$0x40] %vm8177_vm5, %v8148_v8  ;;  %18791 = vmatmul.mubr.msk.f32.gmra.mrb[34].mxu1 %vm4346_vm2, %v7121_v5  ;;  %18898 = vmatprep.mubr.msk.f32.mxu0 %vm702_vm0, %v24830_v33  ;;  %v7133_v8 = vld [vmem:[#allocation3 + $0x130] sm:$0xff]  ;;  %v24881_v3 = vld [vmem:[#allocation4 + $0x7f] sm:$0xff] }
 0x507   : > { %8224 = vst.msk [vmem:[#allocation4 + $0xb4] sm:$0x1] %vm772_vm1, %v8216_v17  ;;  %8225 = vst.msk [vmem:[#allocation4 + $0xcc] sm:$0x1] %vm772_vm1, %v8217_v38  ;;  %18793 = vmatprep.mubr.msk.f32.mxu1 %vm4346_vm2, %v7122_v60  ;;  %20159 = vmatpush3.bf16.msra.mxu1 %v24725_v37  ;;  %v24844_v37 = vld [vmem:[#allocation4 + $0x80] sm:$0xff]  ;;  %v7137_v5 = vld [vmem:[#allocation3 + $0x170] sm:$0xff] }
 0x508   : > { %8232 = vst.msk [vmem:[#allocation4 + $0xb3] sm:$0x4] %vm8159_vm3, %v8216_v17  ;;  %8167 = vst.msk [vmem:[#allocation4 + $0xc7] sm:$0x4] %vm8159_vm3, %v8149_v47  ;;  %20167 = vmatpush3.bf16.msra.mxu0 %v20164_v31  ;;  %v24871_v43 = vld [vmem:[#allocation4 + $0x4f] sm:$0xff]  ;;  %v24898_v60 = vld [vmem:[#allocation4 + $0x21] sm:$0xff] }
 0x509   : > { %8240 = vst.msk [vmem:[#allocation4 + $0xb2] sm:$0x10] %vm8168_vm4, %v8216_v17  ;;  %8241 = vst.msk [vmem:[#allocation4 + $0xca] sm:$0x10] %vm8168_vm4, %v8217_v38  ;;  %v24834_v54 = vld [vmem:[#allocation4 + $0x50] sm:$0xff]  ;;  %20169 = vmatprep.subr.bf16.mxu0 %v20168_v45 }
 0x50a   : > { %8248 = vst.msk [vmem:[#allocation4 + $0xb1] sm:$0x40] %vm8177_vm5, %v8216_v17  ;;  %8185 = vst.msk [vmem:[#allocation4 + $0xc5] sm:$0x40] %vm8177_vm5, %v8149_v47  ;;  %18794 = vmatmul.mubr.msk.f32.gmra.mrb[36].mxu1 %vm4346_vm2, %v7123_v46  ;;  %18899 = vmatmul.mubr.msk.f32.gmra.mrb[34].mxu0 %vm702_vm0, %v24834_v54  ;;  %v7135_v31 = vld [vmem:[#allocation3 + $0x150] sm:$0xff]  ;;  %v9044_v47 = vld [vmem:[#allocation10 + $0x40] sm:$0xff] }
 0x50b   : > { %8233 = vst.msk [vmem:[#allocation4 + $0xcb] sm:$0x4] %vm8159_vm3, %v8217_v38  ;;  %v24837_v12 = vld [vmem:[#allocation4 + $0x68] sm:$0xff]  ;;  %18796 = vmatprep.mubr.msk.f32.mxu1 %vm4346_vm2, %v7124_v55  ;;  %v24901_v46 = vld [vmem:[#allocation4 + $0x39] sm:$0xff] }
 0x50c   : > { %8249 = vst.msk [vmem:[#allocation4 + $0xc9] sm:$0x40] %vm8177_vm5, %v8217_v38  ;;  %18901 = vmatprep.mubr.msk.f32.mxu0 %vm702_vm0, %v24837_v12  ;;  %v24874_v52 = vld [vmem:[#allocation4 + $0x67] sm:$0xff]  ;;  %v24884_v17 = vld [vmem:[#allocation4 + $0x97] sm:$0xff] }
 0x50d   : > { %v24847_v9 = vld [vmem:[#allocation4 + $0x98] sm:$0xff]  ;;  %v9045_v38 = vld [vmem:[#allocation10 + $0x48] sm:$0xff] }
 0x50e   : > { %18797 = vmatmul.mubr.msk.f32.gmra.mrb[38].mxu1 %vm4346_vm2, %v7125_v57  ;;  %18902 = vmatmul.mubr.msk.f32.gmra.mrb[36].mxu0 %vm702_vm0, %v24844_v37  ;;  %v20176_v55 = vpack.c.bf16 %v9045_v38, %v9044_v47  ;;  %v7139_v57 = vld [vmem:[#allocation3 + $0x190] sm:$0xff]  ;;  %v24921_v34 = vld [vmem:[#allocation4 + $0x99] sm:$0xff] }
 0x50f   : > { %18799 = vmatprep.mubr.msk.f32.mxu1 %vm4346_vm2, %v7126_v59  ;;  %18904 = vmatprep.mubr.msk.f32.mxu0 %vm702_vm0, %v24847_v9  ;;  %v24908_v59 = vld [vmem:[#allocation4 + $0x51] sm:$0xff] }
 0x510   : > { %v24891_v7 = vld [vmem:[#allocation4 + $0xaf] sm:$0xff] }
 0x511   : > { %v24854_v51 = vld [vmem:[#allocation4 + $0xb0] sm:$0xff] }
 0x512   : > { %18800 = vmatmul.mubr.msk.f32.gmra.mrb[40].mxu1 %vm4346_vm2, %v7127_v20  ;;  %18905 = vmatmul.mubr.msk.f32.gmra.mrb[38].mxu0 %vm702_vm0, %v24854_v51  ;;  %v24911_v20 = vld [vmem:[#allocation4 + $0x69] sm:$0xff] }
 0x513   : > { %18802 = vmatprep.mubr.msk.f32.mxu1 %vm4346_vm2, %v7128_v50  ;;  %18911 = vmatprep.mubr.msk.f32.mxu0 %vm702_vm0, %v8460_v30  ;;  %v21797_v50 = vld [vmem:[#allocation3 + $0x1a8] sm:$0xff] }
 0x514   : > { %v24918_v30 = vld [vmem:[#allocation4 + $0x81] sm:$0xff] }
 0x516   : > { %18803 = vmatmul.mubr.msk.f32.gmra.mrb[42].mxu1 %vm4346_vm2, %v7129_v26  ;;  %18912 = vmatmul.mubr.msk.f32.vlgmr.msra.gmra.mrb[32].mxu0 %vm702_vm0, %v24861_v61  ;;  %v21799_v26 = vld [vmem:[#allocation3 + $0x1c8] sm:$0xff] }
 0x517   : > { %18805 = vmatprep.mubr.msk.f32.mxu1 %vm4346_vm2, %v7130_v15  ;;  %18914 = vmatprep.mubr.msk.f32.mxu0 %vm702_vm0, %v24864_v21  ;;  %v24928_v15 = vld [vmem:[#allocation4 + $0xb1] sm:$0xff] }
 0x518   : > { %20171 = vmatpush3.bf16.msra.mxu0 %v20168_v45  ;;  %v7138_v45 = vld [vmem:[#allocation3 + $0x188] sm:$0xff] }
 0x519   : > { %20173 = vmatprep.subr.bf16.mxu0 %v20172_v39 }
 0x51a   : > { %18806 = vmatmul.mubr.msk.f32.gmra.mrb[44].mxu1 %vm4346_vm2, %v7131_v2  ;;  %18915 = vmatmul.mubr.msk.f32.gmra.mrb[34].mxu0 %vm702_vm0, %v24871_v43  ;;  %v21801_v2 = vld [vmem:[#allocation3 + $0x1e8] sm:$0xff] }
 0x51b   : > { %18808 = vmatprep.mubr.msk.f32.mxu1 %vm4346_vm2, %v7132_v48  ;;  %18917 = vmatprep.mubr.msk.f32.mxu0 %vm702_vm0, %v24874_v52  ;;  %v9192_v48 = vld [vmem:[#allocation10 + $0x50] sm:$0xff] }
 0x51e   : > { %18809 = vmatmul.mubr.msk.f32.gmra.mrb[46].mxu1 %vm4346_vm2, %v7133_v8  ;;  %18918 = vmatmul.mubr.msk.f32.gmra.mrb[36].mxu0 %vm702_vm0, %v24881_v3  ;;  %v9193_v8 = vld [vmem:[#allocation10 + $0x58] sm:$0xff] }
 0x51f   : > { %18811 = vmatprep.mubr.msk.f32.mxu1 %vm4346_vm2, %v7134_v62  ;;  %18920 = vmatprep.mubr.msk.f32.mxu0 %vm702_vm0, %v24884_v17  ;;  %v21802_v62 = vld [vmem:[#allocation3 + $0x1f0] sm:$0xff] }
 0x522   : > { %18812 = vmatmul.mubr.msk.f32.gmra.mrb[48].mxu1 %vm4346_vm2, %v7135_v31  ;;  %18921 = vmatmul.mubr.msk.f32.gmra.mrb[38].mxu0 %vm702_vm0, %v24891_v7  ;;  %v20180_v31 = vpack.c.bf16 %v9193_v8, %v9192_v48 }
 0x523   : > { %18814 = vmatprep.mubr.msk.f32.mxu1 %vm4346_vm2, %v7136_v53  ;;  %18927 = vmatprep.mubr.msk.f32.mxu0 %vm702_vm0, %v8739_v42  ;;  %v7148_v53 = vld [vmem:[#allocation3 + $0x228] sm:$0xff] }
 0x524   : > { %v9342_v42 = vld [vmem:[#allocation10 + $0x68] sm:$0xff] }
 0x526   : > { %18815 = vmatmul.mubr.msk.f32.gmra.mrb[50].mxu1 %vm4346_vm2, %v7137_v5  ;;  %18928 = vmatmul.mubr.msk.f32.vlgmr.msra.gmra.mrb[32].mxu0 %vm702_vm0, %v24898_v60 }
 0x527   : > { %18817 = vmatprep.mubr.msk.f32.mxu1 %vm4346_vm2, %v7138_v45  ;;  %18930 = vmatprep.mubr.msk.f32.mxu0 %vm702_vm0, %v24901_v46 }
 0x528   : > { %20175 = vmatpush3.bf16.msra.mxu0 %v20172_v39  ;;  %v21800_v39 = vld [vmem:[#allocation3 + $0x1d0] sm:$0xff] }
 0x529   : > { %20177 = vmatprep.subr.bf16.mxu0 %v20176_v55 }
 0x52a   : > { %18818 = vmatmul.mubr.msk.f32.gmra.mrb[52].mxu1 %vm4346_vm2, %v7139_v57  ;;  %18931 = vmatmul.mubr.msk.f32.gmra.mrb[34].mxu0 %vm702_vm0, %v24908_v59 }
 0x52b   : > { %18820 = vmatprep.mubr.msk.f32.mxu1 %vm4346_vm2, %v21797_v50  ;;  %18933 = vmatprep.mubr.msk.f32.mxu0 %vm702_vm0, %v24911_v20 }
 0x52e   : > { %18821 = vmatmul.mubr.msk.f32.gmra.mrb[54].mxu1 %vm4346_vm2, %v21798_v11  ;;  %18934 = vmatmul.mubr.msk.f32.gmra.mrb[36].mxu0 %vm702_vm0, %v24918_v30 }
 0x52f   : > { %18823 = vmatprep.mubr.msk.f32.mxu1 %vm4346_vm2, %v21799_v26  ;;  %18936 = vmatprep.mubr.msk.f32.mxu0 %vm702_vm0, %v24921_v34 }
 0x532   : > { %18824 = vmatmul.mubr.msk.f32.gmra.mrb[56].mxu1 %vm4346_vm2, %v21800_v39  ;;  %18937 = vmatmul.mubr.msk.f32.gmra.mrb[38].mxu0 %vm702_vm0, %v24928_v15 }
 0x533   : > { %18826 = vmatprep.mubr.msk.f32.mxu1 %vm4346_vm2, %v21801_v2  ;;  %18943 = vmatprep.mubr.msk.f32.mxu0 %vm702_vm0, %v24861_v61  ;;  %v7149_v61 = vld [vmem:[#allocation3 + $0x230] sm:$0xff] }
 0x536   : > { %18827 = vmatmul.mubr.msk.f32.gmra.mrb[58].mxu1 %vm4346_vm2, %v21802_v62  ;;  %18944 = vmatmul.mubr.msk.f32.vlgmr.msra.gmra.mrb[32].mxu0 %vm702_vm0, %v24864_v21 }
 0x537   : > { %18829 = vmatprep.mubr.msk.f32.mxu1 %vm4346_vm2, %v24542_v40  ;;  %18946 = vmatprep.mubr.msk.f32.mxu0 %vm702_vm0, %v24871_v43  ;;  %v8894_v40 = vld [vmem:[#allocation4 + $0xc7] sm:$0xff] }
 0x538   : > { %20179 = vmatpush3.bf16.msra.mxu0 %v20176_v55 }
 0x539   : > { %20181 = vmatprep.subr.bf16.mxu0 %v20180_v31 }
 0x53a   : > { %18830 = vmatmul.mubr.msk.f32.gmra.mrb[60].mxu1 %vm4346_vm2, %v24546_v44  ;;  %18947 = vmatmul.mubr.msk.f32.gmra.mrb[34].mxu0 %vm702_vm0, %v24874_v52  ;;  %v9341_v44 = vld [vmem:[#allocation10 + $0x60] sm:$0xff] }
 0x53b   : > { %18832 = vmatprep.mubr.msk.f32.mxu1 %vm4346_vm2, %v7148_v53  ;;  %18949 = vmatprep.mubr.msk.f32.mxu0 %vm702_vm0, %v24881_v3 }
 0x53e   : > { %18833 = vmatmul.mubr.msk.f32.gmra.mrb[62].mxu1 %vm4346_vm2, %v7149_v61  ;;  %18950 = vmatmul.mubr.msk.f32.gmra.mrb[36].mxu0 %vm702_vm0, %v24884_v17 }
 0x53f   : > { %18843 = vmatprep.mubr.msk.f32.mxu1 %vm4346_vm2, %v26306_v28  ;;  %18952 = vmatprep.mubr.msk.f32.mxu0 %vm702_vm0, %v24891_v7  ;;  %v20184_v28 = vpack.c.bf16 %v9342_v42, %v9341_v44 }
 0x542   : > { %18844 = vmatmul.mubr.msk.f32.vlgmr.msra.gmra.mrb[32].mxu1 %vm4346_vm2, %v26307_v36  ;;  %18953 = vmatmul.mubr.msk.f32.gmra.mrb[38].mxu0 %vm702_vm0, %v8894_v40  ;;  %v9042_v36 = vld [vmem:[#allocation4 + $0xc8] sm:$0xff] }
 0x543   : > { %18846 = vmatprep.mubr.msk.f32.mxu1 %vm4346_vm2, %v26308_v16  ;;  %18959 = vmatprep.mubr.msk.f32.mxu0 %vm702_vm0, %v24824_v56  ;;  %v9489_v16 = vld [vmem:[#allocation10 + $0x70] sm:$0xff] }
 0x546   : > { %18847 = vmatmul.mubr.msk.f32.gmra.mrb[34].mxu1 %vm4346_vm2, %v26309_v23  ;;  %18960 = vmatmul.mubr.msk.f32.vlgmr.msra.gmra.mrb[32].mxu0 %vm702_vm0, %v24830_v33  ;;  %v9490_v23 = vld [vmem:[#allocation10 + $0x78] sm:$0xff] }
 0x547   : > { %18849 = vmatprep.mubr.msk.f32.mxu1 %vm4346_vm2, %v26310_v25  ;;  %18962 = vmatprep.mubr.msk.f32.mxu0 %vm702_vm0, %v24834_v54  ;;  %v20188_v25 = vpack.c.bf16 %v9490_v23, %v9489_v16 }
 0x548   : > { %20183 = vmatpush3.bf16.msra.mxu0 %v20180_v31 }
 0x549   : > { %20185 = vmatprep.subr.bf16.mxu0 %v20184_v28 }
 0x54a   : > { %18850 = vmatmul.mubr.msk.f32.gmra.mrb[36].mxu1 %vm4346_vm2, %v26311_v13  ;;  %18963 = vmatmul.mubr.msk.f32.gmra.mrb[34].mxu0 %vm702_vm0, %v24837_v12  ;;  %v9190_v13 = vld [vmem:[#allocation4 + $0xc9] sm:$0xff] }
 0x54b   : > { %18852 = vmatprep.mubr.msk.f32.mxu1 %vm4346_vm2, %v26312_v41  ;;  %18965 = vmatprep.mubr.msk.f32.mxu0 %vm702_vm0, %v24844_v37  ;;  %v26354_v41 = vld [vmem:[#allocation67_spill] sm:$0xff] }
 0x54e   : > { %18853 = vmatmul.mubr.msk.f32.gmra.mrb[38].mxu1 %vm4346_vm2, %v26313_v18  ;;  %18966 = vmatmul.mubr.msk.f32.gmra.mrb[36].mxu0 %vm702_vm0, %v24847_v9  ;;  %v9339_v18 = vld [vmem:[#allocation4 + $0xdf] sm:$0xff] }
 0x54f   : > { %18855 = vmatprep.mubr.msk.f32.mxu1 %vm4346_vm2, %v26314_v14  ;;  %18968 = vmatprep.mubr.msk.f32.mxu0 %vm702_vm0, %v24854_v51  ;;  %v26355_v14 = vld [vmem:[#allocation68_spill] sm:$0xff] }
 0x552   : > { %18856 = vmatmul.mubr.msk.f32.gmra.mrb[40].mxu1 %vm4346_vm2, %v26315_v35  ;;  %18969 = vmatmul.mubr.msk.f32.gmra.mrb[38].mxu0 %vm702_vm0, %v9042_v36  ;;  %v26356_v35 = vld [vmem:[#allocation69_spill] sm:$0xff] }
 0x553   : > { %18858 = vmatprep.mubr.msk.f32.mxu1 %vm4346_vm2, %v26316_v22  ;;  %18975 = vmatprep.mubr.msk.f32.mxu0 %vm702_vm0, %v24898_v60  ;;  %v26357_v22 = vld [vmem:[#allocation70_spill] sm:$0xff] }
 0x556   : > { %18859 = vmatmul.mubr.msk.f32.gmra.mrb[42].mxu1 %vm4346_vm2, %v26317_v29  ;;  %18976 = vmatmul.mubr.msk.f32.vlgmr.msra.gmra.mrb[32].mxu0 %vm702_vm0, %v24901_v46  ;;  %v26358_v29 = vld [vmem:[#allocation47_spill] sm:$0xff] }
 0x557   : > { %18861 = vmatprep.mubr.msk.f32.mxu1 %vm4346_vm2, %v26318_v19  ;;  %18978 = vmatprep.mubr.msk.f32.mxu0 %vm702_vm0, %v24908_v59  ;;  %v7538_v19 = vld [vmem:[#allocation3 + $0x229] sm:$0xff] }
 0x558   : > { %20187 = vmatpush3.bf16.msra.mxu0 %v20184_v28 }
 0x559   : > { %20189 = vmatprep.subr.bf16.mxu0 %v20188_v25 }
 0x55a   : > { %18862 = vmatmul.mubr.msk.f32.gmra.mrb[44].mxu1 %vm4346_vm2, %v26319_v4  ;;  %18979 = vmatmul.mubr.msk.f32.gmra.mrb[34].mxu0 %vm702_vm0, %v24911_v20  ;;  %v26359_v4 = vld [vmem:[#allocation44_spill] sm:$0xff] }
 0x55b   : > { %18864 = vmatprep.mubr.msk.f32.mxu1 %vm4346_vm2, %v26320_v0  ;;  %18981 = vmatprep.mubr.msk.f32.mxu0 %vm702_vm0, %v24918_v30  ;;  %v7539_v0 = vld [vmem:[#allocation3 + $0x231] sm:$0xff] }
 0x55e   : > { %18865 = vmatmul.mubr.msk.f32.gmra.mrb[46].mxu1 %vm4346_vm2, %v26321_v27  ;;  %18982 = vmatmul.mubr.msk.f32.gmra.mrb[36].mxu0 %vm702_vm0, %v24921_v34  ;;  %v9637_v27 = vld [vmem:[#allocation10 + $0x80] sm:$0xff] }
 0x55f   : > { %18867 = vmatprep.mubr.msk.f32.mxu1 %vm4346_vm2, %v26322_v1  ;;  %18984 = vmatprep.mubr.msk.f32.mxu0 %vm702_vm0, %v24928_v15  ;;  %v9638_v1 = vld [vmem:[#allocation10 + $0x88] sm:$0xff] }
 0x562   : > { %18868 = vmatmul.mubr.msk.f32.gmra.mrb[48].mxu1 %vm4346_vm2, %v26323_v10  ;;  %18985 = vmatmul.mubr.msk.f32.gmra.mrb[38].mxu0 %vm702_vm0, %v9190_v13  ;;  %v20192_v10 = vpack.c.bf16 %v9638_v1, %v9637_v27 }
 0x563   : > { %18870 = vmatprep.mubr.msk.f32.mxu1 %vm4346_vm2, %v26324_v24  ;;  %18991 = vmatprep.mubr.msk.f32.mxu0 %vm702_vm0, %v24864_v21  ;;  %v9487_v24 = vld [vmem:[#allocation4 + $0xe0] sm:$0xff] }
 0x566   : > { %18871 = vmatmul.mubr.msk.f32.gmra.mrb[50].mxu1 %vm4346_vm2, %v26325_v49  ;;  %18992 = vmatmul.mubr.msk.f32.vlgmr.msra.gmra.mrb[32].mxu0 %vm702_vm0, %v24871_v43  ;;  %v9784_v49 = vld [vmem:[#allocation12] sm:$0xff] }
 0x567   : > { %18873 = vmatprep.mubr.msk.f32.mxu1 %vm4346_vm2, %v26326_v6  ;;  %18994 = vmatprep.mubr.msk.f32.mxu0 %vm702_vm0, %v24874_v52  ;;  %v9785_v6 = vld [vmem:[#allocation12 + $0x8] sm:$0xff] }
 0x568   : > { %20191 = vmatpush3.bf16.msra.mxu0 %v20188_v25 }
 0x569   : > { %20193 = vmatprep.subr.bf16.mxu0 %v20192_v10 }
 0x56a   : > { %18874 = vmatmul.mubr.msk.f32.gmra.mrb[52].mxu1 %vm4346_vm2, %v26327_v63  ;;  %18995 = vmatmul.mubr.msk.f32.gmra.mrb[34].mxu0 %vm702_vm0, %v24881_v3  ;;  %v20196_v63 = vpack.c.bf16 %v9785_v6, %v9784_v49 }
 0x56b   : > { %18876 = vmatprep.mubr.msk.f32.mxu1 %vm4346_vm2, %v26328_v32  ;;  %18997 = vmatprep.mubr.msk.f32.mxu0 %vm702_vm0, %v24884_v17  ;;  %v9786_v32 = vld [vmem:[#allocation12 + $0x10] sm:$0xff] }
 0x56e   : > { %18877 = vmatmul.mubr.msk.f32.gmra.mrb[54].mxu1 %vm4346_vm2, %v26329_v58  ;;  %18998 = vmatmul.mubr.msk.f32.gmra.mrb[36].mxu0 %vm702_vm0, %v24891_v7  ;;  %v9787_v58 = vld [vmem:[#allocation12 + $0x18] sm:$0xff] }
 0x56f   : > { %18879 = vmatprep.mubr.msk.f32.mxu1 %vm4346_vm2, %v26354_v41  ;;  %19000 = vmatprep.mubr.msk.f32.mxu0 %vm702_vm0, %v8894_v40  ;;  %v20200_v56 = vpack.c.bf16 %v9787_v58, %v9786_v32 }
 0x572   : > { %18880 = vmatmul.mubr.msk.f32.gmra.mrb[56].mxu1 %vm4346_vm2, %v26355_v14  ;;  %19001 = vmatmul.mubr.msk.f32.gmra.mrb[38].mxu0 %vm702_vm0, %v9339_v18 }
 0x573   : > { %18882 = vmatprep.mubr.msk.f32.mxu1 %vm4346_vm2, %v26356_v35  ;;  %19007 = vmatprep.mubr.msk.f32.mxu0 %vm702_vm0, %v24830_v33  ;;  %v9635_v33 = vld [vmem:[#allocation4 + $0xe1] sm:$0xff] }
 0x576   : > { %18883 = vmatmul.mubr.msk.f32.gmra.mrb[58].mxu1 %vm4346_vm2, %v26357_v22  ;;  %19008 = vmatmul.mubr.msk.f32.vlgmr.msra.gmra.mrb[32].mxu0 %vm702_vm0, %v24834_v54  ;;  %v9776_v54 = vld [vmem:[#allocation5 + $0x7] sm:$0xff] }
 0x577   : > { %18885 = vmatprep.mubr.msk.f32.mxu1 %vm4346_vm2, %v26358_v29  ;;  %19010 = vmatprep.mubr.msk.f32.mxu0 %vm702_vm0, %v24837_v12  ;;  %v9934_v12 = vld [vmem:[#allocation12 + $0x20] sm:$0xff] }
 0x578   : > { %20195 = vmatpush3.bf16.msra.mxu0 %v20192_v10 }
 0x579   : > { %20197 = vmatprep.subr.bf16.mxu0 %v20196_v63 }
 0x57a   : > { %18886 = vmatmul.mubr.msk.f32.gmra.mrb[60].mxu1 %vm4346_vm2, %v26359_v4  ;;  %19011 = vmatmul.mubr.msk.f32.gmra.mrb[34].mxu0 %vm702_vm0, %v24844_v37  ;;  %v9935_v37 = vld [vmem:[#allocation12 + $0x28] sm:$0xff] }
 0x57b   : > { %18888 = vmatprep.mubr.msk.f32.mxu1 %vm4346_vm2, %v7538_v19  ;;  %19013 = vmatprep.mubr.msk.f32.mxu0 %vm702_vm0, %v24847_v9  ;;  %v25091_v9 = vpack.c.bf16 %v9935_v37, %v9934_v12  ;;  %v9937_v12 = vld [vmem:[#allocation12 + $0x38] sm:$0xff] }
 0x57e   : > { %18889 = vmatmul.mubr.msk.f32.gmra.mrb[62].mxu1 %vm4346_vm2, %v7539_v0  ;;  %19014 = vmatmul.mubr.msk.f32.gmra.mrb[36].mxu0 %vm702_vm0, %v24854_v51  ;;  %v25097_v51 = vld [vmem:[%s26026_s4] ss:$0 sm:$0xff] }
 0x57f   : > { %19016 = vmatprep.mubr.msk.f32.mxu0 %vm702_vm0, %v9042_v36 }
 0x582   : > { %19017 = vmatmul.mubr.msk.f32.gmra.mrb[38].mxu0 %vm702_vm0, %v9487_v24 }
 0x583   : > { %19023 = vmatprep.mubr.msk.f32.mxu0 %vm702_vm0, %v24901_v46 }
 0x586   : > { %19024 = vmatmul.mubr.msk.f32.vlgmr.msra.gmra.mrb[32].mxu0 %vm702_vm0, %v24908_v59 }
 0x587   : > { %19026 = vmatprep.mubr.msk.f32.mxu0 %vm702_vm0, %v24911_v20  ;;  %20199 = vmatpush3.bf16.msra.mxu0 %v20196_v63 }
 0x588   : > { %20201 = vmatprep.subr.bf16.mxu0 %v20200_v56 }
 0x58a   : > { %19027 = vmatmul.mubr.msk.f32.gmra.mrb[34].mxu0 %vm702_vm0, %v24918_v30 }
 0x58b   : > { %19029 = vmatprep.mubr.msk.f32.mxu0 %vm702_vm0, %v24921_v34  ;;  %20203 = vmatpush3.bf16.msra.mxu0 %v20200_v56 }
 0x58c   : > { %20205 = vmatprep.subr.bf16.mxu0 %v25091_v9 }
 0x58e   : > { %19030 = vmatmul.mubr.msk.f32.gmra.mrb[36].mxu0 %vm702_vm0, %v24928_v15 }
 0x58f   : > { %19032 = vmatprep.mubr.msk.f32.mxu0 %vm702_vm0, %v9190_v13 }
 0x592   : > { %19033 = vmatmul.mubr.msk.f32.gmra.mrb[38].mxu0 %vm702_vm0, %v9635_v33 }
 0x593   : > { %19043 = vmatprep.mubr.msk.f32.mxu0 %vm4346_vm2, %v9776_v54  ;;  %v9936_v54 = vld [vmem:[#allocation12 + $0x30] sm:$0xff] }
 0x615   : > { %v18845_v21 = vpop.f32.mrb[32].mxu1 }
 0x616   : > { %v7906_v43 = vadd.f32 %v18845_v21, %v25097_v51  ;;  %v7707_v52 = vpop.f32.mrb[33].mxu1 }
 0x617   : > { %v7905_v3 = vadd.f32 %v25097_v51, %v7707_v52 }
 0x618   : > { %v7938_v17 = vmax.f32 %v7906_v43, 0.0 }
 0x619   : > { %v7937_v7 = vmax.f32 %v7905_v3, 0.0  ;;  %v18848_v47 = vpop.f32.mrb[34].mxu1 }
 0x61a   : > { %v7970_v38 = vsel %vm4346_vm2, %v7938_v17, 0.0  ;;  %v7908_v5 = vadd.f32 %v18848_v47, %v25097_v51  ;;  %v7717_v60 = vpop.f32.mrb[35].mxu1  ;;  %v8253_v50 = vsel %vm4346_vm2, %v7938_v17, -inf }
 0x61b   : > { %v7969_v45 = vsel %vm4346_vm2, %v7937_v7, 0.0  ;;  %v7907_v46 = vadd.f32 %v25097_v51, %v7717_v60  ;;  %v8250_v30 = vsel %vm4346_vm2, %v7937_v7, -inf }
 0x61c   : > { %v7971_v55 = vadd.f32 %v7970_v38, %v7969_v45  ;;  %v7940_v57 = vmax.f32 %v7908_v5, 0.0  ;;  %v20208_v45 = vpack.c.bf16 %v9937_v12, %v9936_v54 }
 0x61d   : > { %v7939_v59 = vmax.f32 %v7907_v46, 0.0  ;;  %v18851_v20 = vpop.f32.mrb[36].mxu1 }
 0x61e   : > { %v8254_v11 = vsel %vm4346_vm2, %v7940_v57, -inf  ;;  %v7910_v34 = vadd.f32 %v18851_v20, %v25097_v51  ;;  %v7727_v26 = vpop.f32.mrb[37].mxu1  ;;  %v7974_v31 = vsel %vm4346_vm2, %v7940_v57, 0.0  ;;  %v10084_v20 = vld [vmem:[#allocation12 + $0x40] sm:$0xff] }
 0x61f   : > { %v8255_v15 = vmax.f32 %v8253_v50, %v8254_v11  ;;  %v7972_v39 = vsel %vm4346_vm2, %v7939_v59, 0.0  ;;  %v8251_v2 = vsel %vm4346_vm2, %v7939_v59, -inf  ;;  %v7909_v48 = vadd.f32 %v25097_v51, %v7727_v26  ;;  %v10085_v50 = vld [vmem:[#allocation12 + $0x48] sm:$0xff] }
 0x620   : > { %v7973_v8 = vadd.f32 %v7972_v39, %v7971_v55  ;;  %v8252_v62 = vmax.f32 %v8250_v30, %v8251_v2  ;;  %v7942_v61 = vmax.f32 %v7910_v34, 0.0 }
 0x621   : > { %v8404_v53 = vrot.slane %v8255_v15, 1  ;;  %v7941_v40 = vmax.f32 %v7909_v48, 0.0  ;;  %v18854_v44 = vpop.f32.mrb[38].mxu1 }
 0x622   : > { %v8336_v42 = vrot.slane %v8252_v62, 1  ;;  %v7975_v28 = vadd.f32 %v7974_v31, %v7973_v8  ;;  %v7737_v36 = vpop.f32.mrb[39].mxu1  ;;  %v7912_v25 = vadd.f32 %v18854_v44, %v25097_v51  ;;  %v7978_v14 = vsel %vm4346_vm2, %v7942_v61, 0.0 }
 0x623   : > { %v8420_v16 = vmax.f32 %v8255_v15, %v8404_v53  ;;  %v7976_v23 = vsel %vm4346_vm2, %v7941_v40, 0.0  ;;  %v7911_v18 = vadd.f32 %v25097_v51, %v7737_v36  ;;  %v8259_v27 = vsel %vm4346_vm2, %v7942_v61, -inf }
 0x624   : > { %v8352_v13 = vmax.f32 %v8252_v62, %v8336_v42  ;;  %v7977_v41 = vadd.f32 %v7976_v23, %v7975_v28  ;;  %v7944_v35 = vmax.f32 %v7912_v25, 0.0  ;;  %v8256_v24 = vsel %vm4346_vm2, %v7941_v40, -inf }
 0x625   : > { %8428 = vst.msk [vmem:[#allocation5 + $0x24] sm:$0x1] %vm8038_vm6, %v8420_v16  ;;  %v18857_v22 = vpop.f32.mrb[40].mxu1  ;;  %v7943_v29 = vmax.f32 %v7911_v18, 0.0  ;;  %v25157_v61 = vpack.c.bf16 %v10085_v50, %v10084_v20 }
 0x626   : > { %8436 = vst.msk [vmem:[#allocation5 + $0x23] sm:$0x4] %vm8369_vm7, %v8420_v16  ;;  %8370 = vst.msk [vmem:[#allocation5 + $0x1f] sm:$0x4] %vm8369_vm7, %v8352_v13  ;;  %v7979_v19 = vadd.f32 %v7978_v14, %v7977_v41  ;;  %v7914_v4 = vadd.f32 %v18857_v22, %v25097_v51  ;;  %v7747_v0 = vpop.f32.mrb[41].mxu1  ;;  %v8260_v1 = vsel %vm4346_vm2, %v7944_v35, -inf }
 0x627   : > { %8444 = vst.msk [vmem:[#allocation5 + $0x22] sm:$0x10] %vm8378_vm8, %v8420_v16  ;;  %8379 = vst.msk [vmem:[#allocation5 + $0x1e] sm:$0x10] %vm8378_vm8, %v8352_v13  ;;  %v7913_v10 = vadd.f32 %v25097_v51, %v7747_v0  ;;  %v8261_v49 = vmax.f32 %v8259_v27, %v8260_v1  ;;  %v7980_v6 = vsel %vm4346_vm2, %v7943_v29, 0.0  ;;  %v8257_v63 = vsel %vm4346_vm2, %v7943_v29, -inf }
 0x628   : > { %8452 = vst.msk [vmem:[#allocation5 + $0x21] sm:$0x40] %vm8387_vm9, %v8420_v16  ;;  %8388 = vst.msk [vmem:[#allocation5 + $0x1d] sm:$0x40] %vm8387_vm9, %v8352_v13  ;;  %v7981_v32 = vadd.f32 %v7980_v6, %v7979_v19  ;;  %v8258_v58 = vmax.f32 %v8256_v24, %v8257_v63  ;;  %v7982_v37 = vsel %vm4346_vm2, %v7944_v35, 0.0  ;;  %v7946_v43 = vmax.f32 %v7914_v4, 0.0 }
 0x629   : > { %8361 = vst.msk [vmem:[#allocation5 + $0x20] sm:$0x1] %vm8038_vm6, %v8352_v13  ;;  %v7945_v56 = vmax.f32 %v7913_v10, 0.0  ;;  %v18860_v33 = vpop.f32.mrb[42].mxu1  ;;  %v8405_v21 = vrot.slane %v8261_v49, 1 }
 0x62a   : > { %v7916_v52 = vadd.f32 %v18860_v33, %v25097_v51  ;;  %v7757_v3 = vpop.f32.mrb[43].mxu1  ;;  %v8337_v17 = vrot.slane %v8258_v58, 1  ;;  %v7983_v7 = vadd.f32 %v7982_v37, %v7981_v32  ;;  %v7986_v30 = vsel %vm4346_vm2, %v7946_v43, 0.0 }
 0x62b   : > { %v7984_v47 = vsel %vm4346_vm2, %v7945_v56, 0.0  ;;  %v8421_v38 = vmax.f32 %v8261_v49, %v8405_v21  ;;  %v7915_v60 = vadd.f32 %v25097_v51, %v7757_v3  ;;  %v8265_v11 = vsel %vm4346_vm2, %v7946_v43, -inf }
 0x62c   : > { %v7948_v5 = vmax.f32 %v7916_v52, 0.0  ;;  %v8353_v46 = vmax.f32 %v8258_v58, %v8337_v17  ;;  %v7985_v55 = vadd.f32 %v7984_v47, %v7983_v7  ;;  %v8262_v62 = vsel %vm4346_vm2, %v7945_v56, -inf }
 0x62d   : > { %v18863_v57 = vpop.f32.mrb[44].mxu1  ;;  %8429 = vst.msk [vmem:[#allocation5 + $0x3c] sm:$0x1] %vm8038_vm6, %v8421_v38  ;;  %v7947_v26 = vmax.f32 %v7915_v60, 0.0 }
 0x62e   : > { %8437 = vst.msk [vmem:[#allocation5 + $0x3b] sm:$0x4] %vm8369_vm7, %v8421_v38  ;;  %v8266_v34 = vsel %vm4346_vm2, %v7948_v5, -inf  ;;  %v7767_v15 = vpop.f32.mrb[45].mxu1  ;;  %8371 = vst.msk [vmem:[#allocation5 + $0x37] sm:$0x4] %vm8369_vm7, %v8353_v46  ;;  %v7987_v2 = vadd.f32 %v7986_v30, %v7985_v55  ;;  %v7918_v48 = vadd.f32 %v18863_v57, %v25097_v51 }
 0x62f   : > { %8445 = vst.msk [vmem:[#allocation5 + $0x3a] sm:$0x10] %vm8378_vm8, %v8421_v38  ;;  %8380 = vst.msk [vmem:[#allocation5 + $0x36] sm:$0x10] %vm8378_vm8, %v8353_v46  ;;  %v8267_v39 = vmax.f32 %v8265_v11, %v8266_v34  ;;  %v7917_v8 = vadd.f32 %v25097_v51, %v7767_v15  ;;  %v7988_v31 = vsel %vm4346_vm2, %v7947_v26, 0.0  ;;  %v8263_v53 = vsel %vm4346_vm2, %v7947_v26, -inf }
 0x630   : > { %v25136_v59 = vld [vmem:[#allocation5 + $0x1f] sm:$0xff]  ;;  %8453 = vst.msk [vmem:[#allocation5 + $0x39] sm:$0x40] %vm8387_vm9, %v8421_v38  ;;  %8389 = vst.msk [vmem:[#allocation5 + $0x35] sm:$0x40] %vm8387_vm9, %v8353_v46  ;;  %v7989_v44 = vadd.f32 %v7988_v31, %v7987_v2  ;;  %v8264_v42 = vmax.f32 %v8262_v62, %v8263_v53  ;;  %v7950_v28 = vmax.f32 %v7918_v48, 0.0 }
 0x631   : > { %19044 = vmatmul.mubr.msk.f32.vlgmr.msra.gmra.mrb[32].mxu0 %vm4346_vm2, %v25136_v59  ;;  %8362 = vst.msk [vmem:[#allocation5 + $0x38] sm:$0x1] %vm8038_vm6, %v8353_v46  ;;  %v8406_v40 = vrot.slane %v8267_v39, 1  ;;  %v18866_v36 = vpop.f32.mrb[46].mxu1  ;;  %v25159_v16 = vld [vmem:[#allocation5 + $0x20] sm:$0xff]  ;;  %v7949_v23 = vmax.f32 %v7917_v8, 0.0 }
 0x632   : > { %20207 = vmatpush3.bf16.msra.mxu0 %v25091_v9  ;;  %v7920_v25 = vadd.f32 %v18866_v36, %v25097_v51  ;;  %v7777_v9 = vpop.f32.mrb[47].mxu1  ;;  %v7990_v13 = vsel %vm4346_vm2, %v7948_v5, 0.0  ;;  %v8338_v18 = vrot.slane %v8264_v42, 1  ;;  %v12672_v29 = vsel %vm4346_vm2, %v25159_v16, -inf }
 0x633   : > { %20209 = vmatprep.subr.bf16.mxu0 %v20208_v45  ;;  %v8422_v41 = vmax.f32 %v8267_v39, %v8406_v40  ;;  %v7991_v14 = vadd.f32 %v7990_v13, %v7989_v44  ;;  %v7992_v35 = vsel %vm4346_vm2, %v7949_v23, 0.0  ;;  %v7994_v4 = vsel %vm4346_vm2, %v7950_v28, 0.0 }
 0x634   : > { %v7952_v22 = vmax.f32 %v7920_v25, 0.0  ;;  %v8354_v19 = vmax.f32 %v8264_v42, %v8338_v18  ;;  %v7919_v0 = vadd.f32 %v25097_v51, %v7777_v9  ;;  %v8271_v10 = vsel %vm4346_vm2, %v7950_v28, -inf }
 0x635   : > { %8430 = vst.msk [vmem:[#allocation5 + $0x54] sm:$0x1] %vm8038_vm6, %v8422_v41  ;;  %v18869_v27 = vpop.f32.mrb[48].mxu1  ;;  %v7993_v24 = vadd.f32 %v7992_v35, %v7991_v14  ;;  %v8268_v37 = vsel %vm4346_vm2, %v7949_v23, -inf }
 0x636   : > { %20211 = vmatpush3.bf16.msra.mxu0 %v20208_v45  ;;  %8438 = vst.msk [vmem:[#allocation5 + $0x53] sm:$0x4] %vm8369_vm7, %v8422_v41  ;;  %v8272_v49 = vsel %vm4346_vm2, %v7952_v22, -inf  ;;  %v7922_v6 = vadd.f32 %v18869_v27, %v25097_v51  ;;  %v7787_v63 = vpop.f32.mrb[49].mxu1  ;;  %8372 = vst.msk [vmem:[#allocation5 + $0x4f] sm:$0x4] %vm8369_vm7, %v8354_v19 }
 0x637   : > { %20213 = vmatprep.subr.bf16.mxu0 %v25157_v61  ;;  %8446 = vst.msk [vmem:[#allocation5 + $0x52] sm:$0x10] %vm8378_vm8, %v8422_v41  ;;  %8381 = vst.msk [vmem:[#allocation5 + $0x4e] sm:$0x10] %vm8378_vm8, %v8354_v19  ;;  %v8273_v56 = vmax.f32 %v8271_v10, %v8272_v49  ;;  %v7951_v33 = vmax.f32 %v7919_v0, 0.0  ;;  %v7921_v54 = vadd.f32 %v25097_v51, %v7787_v63  ;;  %v7998_v45 = vsel %vm4346_vm2, %v7952_v22, 0.0 }
 0x638   : > { %8454 = vst.msk [vmem:[#allocation5 + $0x51] sm:$0x40] %vm8387_vm9, %v8422_v41  ;;  %v25173_v1 = vld [vmem:[#allocation5 + $0x38] sm:$0xff]  ;;  %8390 = vst.msk [vmem:[#allocation5 + $0x4d] sm:$0x40] %vm8387_vm9, %v8354_v19  ;;  %v7995_v21 = vadd.f32 %v7994_v4, %v7993_v24  ;;  %v7954_v55 = vmax.f32 %v7922_v6, 0.0 }
 0x639   : > { %v25178_v32 = vld [vmem:[#allocation5 + $0x37] sm:$0xff]  ;;  %v12673_v58 = vsel %vm4346_vm2, %v25173_v1, -inf  ;;  %8363 = vst.msk [vmem:[#allocation5 + $0x50] sm:$0x1] %vm8038_vm6, %v8354_v19  ;;  %v8407_v43 = vrot.slane %v8273_v56, 1  ;;  %v7996_v52 = vsel %vm4346_vm2, %v7951_v33, 0.0 }
 0x63a   : > { %19046 = vmatprep.mubr.msk.f32.mxu0 %vm4346_vm2, %v25178_v32  ;;  %v12674_v12 = vmax.f32 %v12672_v29, %v12673_v58  ;;  %v8269_v3 = vsel %vm4346_vm2, %v7951_v33, -inf  ;;  %v7953_v17 = vmax.f32 %v7921_v54, 0.0  ;;  %v18872_v7 = vpop.f32.mrb[50].mxu1  ;;  %v7997_v38 = vadd.f32 %v7996_v52, %v7995_v21 }
 0x63b   : > { %v8270_v5 = vmax.f32 %v8268_v37, %v8269_v3  ;;  %v7797_v60 = vpop.f32.mrb[51].mxu1  ;;  %v8423_v46 = vmax.f32 %v8273_v56, %v8407_v43  ;;  %v7924_v30 = vadd.f32 %v18872_v7, %v25097_v51  ;;  %v8002_v31 = vsel %vm4346_vm2, %v7954_v55, 0.0 }
 0x63c   : > { %v12707_v47 = vrot.slane %v12674_v12, 1  ;;  %v8000_v57 = vsel %vm4346_vm2, %v7953_v17, 0.0  ;;  %v7999_v50 = vadd.f32 %v7998_v45, %v7997_v38  ;;  %v7923_v11 = vadd.f32 %v25097_v51, %v7797_v60 }
 0x63d   : > { %v8339_v20 = vrot.slane %v8270_v5, 1  ;;  %8431 = vst.msk [vmem:[#allocation5 + $0x6c] sm:$0x1] %vm8038_vm6, %v8423_v46  ;;  %v18875_v34 = vpop.f32.mrb[52].mxu1  ;;  %v7956_v2 = vmax.f32 %v7924_v30, 0.0  ;;  %v8277_v53 = vsel %vm4346_vm2, %v7954_v55, -inf }
 0x63e   : > { %8439 = vst.msk [vmem:[#allocation5 + $0x6b] sm:$0x4] %vm8369_vm7, %v8423_v46  ;;  %v12715_v26 = vmax.f32 %v12674_v12, %v12707_v47  ;;  %v8001_v39 = vadd.f32 %v8000_v57, %v7999_v50  ;;  %v7955_v48 = vmax.f32 %v7923_v11, 0.0  ;;  %v7807_v8 = vpop.f32.mrb[53].mxu1  ;;  %v7926_v40 = vadd.f32 %v18875_v34, %v25097_v51 }
 0x63f   : > { %8447 = vst.msk [vmem:[#allocation5 + $0x6a] sm:$0x10] %vm8378_vm8, %v8423_v46  ;;  %v8355_v15 = vmax.f32 %v8270_v5, %v8339_v20  ;;  %v7925_v44 = vadd.f32 %v25097_v51, %v7807_v8  ;;  %v8274_v42 = vsel %vm4346_vm2, %v7953_v17, -inf  ;;  %v8278_v28 = vsel %vm4346_vm2, %v7956_v2, -inf }
 0x640   : > { %8455 = vst.msk [vmem:[#allocation5 + $0x69] sm:$0x40] %vm8387_vm9, %v8423_v46  ;;  %v25200_v62 = vld [vmem:[#allocation5 + $0x4f] sm:$0xff]  ;;  %12732 = vst.msk [vmem:[#allocation8 + $0x1d] sm:$0x40] %vm8387_vm9, %v12715_v26  ;;  %v8003_v36 = vadd.f32 %v8002_v31, %v8001_v39  ;;  %v8004_v23 = vsel %vm4346_vm2, %v7955_v48, 0.0  ;;  %v8279_v25 = vmax.f32 %v8277_v53, %v8278_v28 }
 0x641   : > { %19047 = vmatmul.mubr.msk.f32.gmra.mrb[34].mxu0 %vm4346_vm2, %v25200_v62  ;;  %12720 = vst.msk [vmem:[#allocation8 + $0x20] sm:$0x1] %vm8038_vm6, %v12715_v26  ;;  %8364 = vst.msk [vmem:[#allocation5 + $0x68] sm:$0x1] %vm8038_vm6, %v8355_v15  ;;  %v8275_v9 = vsel %vm4346_vm2, %v7955_v48, -inf  ;;  %v7958_v13 = vmax.f32 %v7926_v40, 0.0 }
 0x642   : > { %12724 = vst.msk [vmem:[#allocation8 + $0x1f] sm:$0x4] %vm8369_vm7, %v12715_v26  ;;  %8373 = vst.msk [vmem:[#allocation5 + $0x67] sm:$0x4] %vm8369_vm7, %v8355_v15  ;;  %v7957_v41 = vmax.f32 %v7925_v44, 0.0  ;;  %v18878_v18 = vpop.f32.mrb[54].mxu1  ;;  %v8005_v35 = vadd.f32 %v8004_v23, %v8003_v36  ;;  %v8276_v22 = vmax.f32 %v8274_v42, %v8275_v9 }
 0x643   : > { %12728 = vst.msk [vmem:[#allocation8 + $0x1e] sm:$0x10] %vm8378_vm8, %v12715_v26  ;;  %8382 = vst.msk [vmem:[#allocation5 + $0x66] sm:$0x10] %vm8378_vm8, %v8355_v15  ;;  %v25220_v14 = vld [vmem:[#allocation5 + $0x50] sm:$0xff]  ;;  %v7928_v29 = vadd.f32 %v18878_v18, %v25097_v51  ;;  %v7817_v19 = vpop.f32.mrb[55].mxu1 }
 0x644   : > { %8391 = vst.msk [vmem:[#allocation5 + $0x65] sm:$0x40] %vm8387_vm9, %v8355_v15  ;;  %v8006_v4 = vsel %vm4346_vm2, %v7956_v2, 0.0  ;;  %v8408_v0 = vrot.slane %v8279_v25, 1  ;;  %v8008_v27 = vsel %vm4346_vm2, %v7957_v41, 0.0  ;;  %v8340_v10 = vrot.slane %v8276_v22, 1 }
 0x645   : > { %v8007_v24 = vadd.f32 %v8006_v4, %v8005_v35  ;;  %v7960_v49 = vmax.f32 %v7928_v29, 0.0  ;;  %v12675_v6 = vsel %vm4346_vm2, %v25220_v14, -inf  ;;  %v8010_v58 = vsel %vm4346_vm2, %v7958_v13, 0.0  ;;  %v18881_v33 = vpop.f32.mrb[56].mxu1 }
 0x646   : > { %v8424_v63 = vmax.f32 %v8279_v25, %v8408_v0  ;;  %v7927_v56 = vadd.f32 %v25097_v51, %v7817_v19  ;;  %v8356_v54 = vmax.f32 %v8276_v22, %v8340_v10  ;;  %v8283_v12 = vsel %vm4346_vm2, %v7958_v13, -inf  ;;  %v7827_v43 = vpop.f32.mrb[57].mxu1 }
 0x647   : > { %v8009_v37 = vadd.f32 %v8008_v27, %v8007_v24  ;;  %v8284_v21 = vsel %vm4346_vm2, %v7960_v49, -inf  ;;  %v7930_v7 = vadd.f32 %v18881_v33, %v25097_v51  ;;  %v7929_v47 = vadd.f32 %v25097_v51, %v7827_v43 }
 0x648   : > { %8432 = vst.msk [vmem:[#allocation5 + $0x84] sm:$0x1] %vm8038_vm6, %v8424_v63  ;;  %v8285_v3 = vmax.f32 %v8283_v12, %v8284_v21  ;;  %v7959_v17 = vmax.f32 %v7927_v56, 0.0  ;;  %8365 = vst.msk [vmem:[#allocation5 + $0x80] sm:$0x1] %vm8038_vm6, %v8356_v54  ;;  %v8280_v60 = vsel %vm4346_vm2, %v7957_v41, -inf }
 0x649   : > { %8440 = vst.msk [vmem:[#allocation5 + $0x83] sm:$0x4] %vm8369_vm7, %v8424_v63  ;;  %8374 = vst.msk [vmem:[#allocation5 + $0x7f] sm:$0x4] %vm8369_vm7, %v8356_v54  ;;  %v8014_v45 = vsel %vm4346_vm2, %v7960_v49, 0.0  ;;  %v8011_v46 = vadd.f32 %v8010_v58, %v8009_v37  ;;  %v18884_v30 = vpop.f32.mrb[58].mxu1 }
 0x64a   : > { %8448 = vst.msk [vmem:[#allocation5 + $0x82] sm:$0x10] %vm8378_vm8, %v8424_v63  ;;  %8383 = vst.msk [vmem:[#allocation5 + $0x7e] sm:$0x10] %vm8378_vm8, %v8356_v54  ;;  %v8409_v57 = vrot.slane %v8285_v3, 1  ;;  %v8012_v20 = vsel %vm4346_vm2, %v7959_v17, 0.0  ;;  %v7932_v8 = vadd.f32 %v18884_v30, %v25097_v51 }
 0x64b   : > { %v25231_v52 = vld [vmem:[#allocation5 + $0x68] sm:$0xff]  ;;  %8456 = vst.msk [vmem:[#allocation5 + $0x81] sm:$0x40] %vm8387_vm9, %v8424_v63  ;;  %8392 = vst.msk [vmem:[#allocation5 + $0x7d] sm:$0x40] %vm8387_vm9, %v8356_v54  ;;  %v8281_v50 = vsel %vm4346_vm2, %v7959_v17, -inf  ;;  %v8013_v11 = vadd.f32 %v8012_v20, %v8011_v46 }
 0x64c   : > { %v25239_v38 = vld [vmem:[#allocation5 + $0x67] sm:$0xff]  ;;  %v12676_v5 = vsel %vm4346_vm2, %v25231_v52, -inf  ;;  %v8282_v34 = vmax.f32 %v8280_v60, %v8281_v50  ;;  %v7962_v26 = vmax.f32 %v7930_v7, 0.0  ;;  %v7961_v15 = vmax.f32 %v7929_v47, 0.0  ;;  %v7837_v39 = vpop.f32.mrb[59].mxu1 }
 0x64d   : > { %19049 = vmatprep.mubr.msk.f32.mxu0 %vm4346_vm2, %v25239_v38  ;;  %v12677_v55 = vmax.f32 %v12675_v6, %v12676_v5  ;;  %v8425_v48 = vmax.f32 %v8285_v3, %v8409_v57  ;;  %v7931_v31 = vadd.f32 %v25097_v51, %v7837_v39  ;;  %v8015_v40 = vadd.f32 %v8014_v45, %v8013_v11  ;;  %v18887_v36 = vpop.f32.mrb[60].mxu1 }
 0x64e   : > { %v8341_v53 = vrot.slane %v8282_v34, 1  ;;  %v8016_v42 = vsel %vm4346_vm2, %v7961_v15, 0.0  ;;  %v7964_v28 = vmax.f32 %v7932_v8, 0.0  ;;  %v7934_v13 = vadd.f32 %v18887_v36, %v25097_v51  ;;  %v7847_v41 = vpop.f32.mrb[61].mxu1 }
 0x64f   : > { %v12708_v2 = vrot.slane %v12677_v55, 1  ;;  %8433 = vst.msk [vmem:[#allocation5 + $0x9c] sm:$0x1] %vm8038_vm6, %v8425_v48  ;;  %v8017_v25 = vadd.f32 %v8016_v42, %v8015_v40  ;;  %v7963_v9 = vmax.f32 %v7931_v31, 0.0  ;;  %v8018_v18 = vsel %vm4346_vm2, %v7962_v26, 0.0 }
 0x650   : > { %8441 = vst.msk [vmem:[#allocation5 + $0x9b] sm:$0x4] %vm8369_vm7, %v8425_v48  ;;  %v8357_v23 = vmax.f32 %v8282_v34, %v8341_v53  ;;  %v8289_v35 = vsel %vm4346_vm2, %v7962_v26, -inf  ;;  %v8290_v22 = vsel %vm4346_vm2, %v7964_v28, -inf  ;;  %v7933_v29 = vadd.f32 %v25097_v51, %v7847_v41 }
 0x651   : > { %v12716_v44 = vmax.f32 %v12677_v55, %v12708_v2  ;;  %8449 = vst.msk [vmem:[#allocation5 + $0x9a] sm:$0x10] %vm8378_vm8, %v8425_v48  ;;  %v8291_v4 = vmax.f32 %v8289_v35, %v8290_v22  ;;  %v8019_v0 = vadd.f32 %v8018_v18, %v8017_v25  ;;  %v8020_v27 = vsel %vm4346_vm2, %v7963_v9, 0.0  ;;  %v18890_v63 = vpop.f32.mrb[62].mxu1  ;;  %v10086_v18 = vld [vmem:[#allocation12 + $0x50] sm:$0xff]  ;;  %v10087_v35 = vld [vmem:[#allocation12 + $0x58] sm:$0xff] }
 0x652   : > { %8457 = vst.msk [vmem:[#allocation5 + $0x99] sm:$0x40] %vm8387_vm9, %v8425_v48  ;;  %v25269_v19 = vld [vmem:[#allocation5 + $0x7f] sm:$0xff]  ;;  %8393 = vst.msk [vmem:[#allocation5 + $0x95] sm:$0x40] %vm8387_vm9, %v8357_v23  ;;  %v8286_v10 = vsel %vm4346_vm2, %v7961_v15, -inf  ;;  %v7936_v54 = vadd.f32 %v18890_v63, %v25097_v51 }
 0x653   : > { %12721 = vst.msk [vmem:[#allocation8 + $0x38] sm:$0x1] %vm8038_vm6, %v12716_v44  ;;  %8366 = vst.msk [vmem:[#allocation5 + $0x98] sm:$0x1] %vm8038_vm6, %v8357_v23  ;;  %19050 = vmatmul.mubr.msk.f32.gmra.mrb[36].mxu0 %vm4346_vm2, %v25269_v19  ;;  %v8287_v24 = vsel %vm4346_vm2, %v7963_v9, -inf  ;;  %v7966_v49 = vmax.f32 %v7934_v13, 0.0  ;;  %v8021_v56 = vadd.f32 %v8020_v27, %v8019_v0 }
 0x654   : > { %12725 = vst.msk [vmem:[#allocation8 + $0x37] sm:$0x4] %vm8369_vm7, %v12716_v44  ;;  %8375 = vst.msk [vmem:[#allocation5 + $0x97] sm:$0x4] %vm8369_vm7, %v8357_v23  ;;  %v7965_v6 = vmax.f32 %v7933_v29, 0.0  ;;  %v8410_v58 = vrot.slane %v8291_v4, 1  ;;  %v8288_v33 = vmax.f32 %v8286_v10, %v8287_v24 }
 0x655   : > { %12729 = vst.msk [vmem:[#allocation8 + $0x36] sm:$0x10] %vm8378_vm8, %v12716_v44  ;;  %8384 = vst.msk [vmem:[#allocation5 + $0x96] sm:$0x10] %vm8378_vm8, %v8357_v23  ;;  %v7857_v12 = vpop.f32.mrb[63].mxu1  ;;  %v8022_v37 = vsel %vm4346_vm2, %v7964_v28, 0.0 }
 0x656   : > { %12733 = vst.msk [vmem:[#allocation8 + $0x35] sm:$0x40] %vm8387_vm9, %v12716_v44  ;;  %v8024_v21 = vsel %vm4346_vm2, %v7965_v6, 0.0  ;;  %v25283_v43 = vld [vmem:[#allocation5 + $0x80] sm:$0xff]  ;;  %v8426_v3 = vmax.f32 %v8291_v4, %v8410_v58  ;;  %v8342_v17 = vrot.slane %v8288_v33, 1  ;;  %v8023_v7 = vadd.f32 %v8022_v37, %v8021_v56  ;;  %v9925_v13 = vld [vmem:[#allocation5 + $0x8] sm:$0xff] }
 0x657   : > { %v7968_v47 = vmax.f32 %v7936_v54, 0.0  ;;  %v7935_v5 = vadd.f32 %v25097_v51, %v7857_v12  ;;  %v8295_v45 = vsel %vm4346_vm2, %v7966_v49, -inf  ;;  %v12678_v57 = vsel %vm4346_vm2, %v25283_v43, -inf  ;;  %v16463_v29 = vld [vmem:[%s26030_s8 + $0x40] sm:$0xff]  ;;  %v16464_v4 = vld [vmem:[%s26030_s8 + $0x48] sm:$0xff]  ;;  %v16465_v0 = vld [vmem:[%s26030_s8 + $0x50] sm:$0xff] }
 0x658   : > { %8434 = vst.msk [vmem:[#allocation5 + $0xb4] sm:$0x1] %vm8038_vm6, %v8426_v3  ;;  %v8358_v60 = vmax.f32 %v8288_v33, %v8342_v17  ;;  %v8025_v46 = vadd.f32 %v8024_v21, %v8023_v7  ;;  %v8026_v51 = vsel %vm4346_vm2, %v7966_v49, 0.0  ;;  %v8292_v26 = vsel %vm4346_vm2, %v7965_v6, -inf  ;;  %v16466_v10 = vld [vmem:[%s26030_s8 + $0x58] sm:$0xff]  ;;  %v10234_v6 = vld [vmem:[#allocation12 + $0x60] sm:$0xff] }
 0x659   : > { %8442 = vst.msk [vmem:[#allocation5 + $0xb3] sm:$0x4] %vm8369_vm7, %v8426_v3  ;;  %v8296_v55 = vsel %vm4346_vm2, %v7968_v47, -inf  ;;  %v7967_v30 = vmax.f32 %v7935_v5, 0.0  ;;  %v8030_v44 = vsel %vm4346_vm2, %v7968_v47, 0.0  ;;  %v20268_v27 = vpack.c.bf16 %v16464_v4, %v16463_v29  ;;  %v10235_v58 = vld [vmem:[#allocation12 + $0x68] sm:$0xff] }
 0x65a   : > { %8450 = vst.msk [vmem:[#allocation5 + $0xb2] sm:$0x10] %vm8378_vm8, %v8426_v3  ;;  %v8297_v50 = vmax.f32 %v8295_v45, %v8296_v55  ;;  %8385 = vst.msk [vmem:[#allocation5 + $0xae] sm:$0x10] %vm8378_vm8, %v8358_v60  ;;  %v8027_v15 = vadd.f32 %v8026_v51, %v8025_v46  ;;  %v20216_v49 = vpack.c.bf16 %v10087_v35, %v10086_v18  ;;  %v16467_v56 = vld [vmem:[%s26030_s8 + $0x60] sm:$0xff]  ;;  %v16468_v33 = vld [vmem:[%s26030_s8 + $0x68] sm:$0xff] }
 0x65b   : > { %8458 = vst.msk [vmem:[#allocation5 + $0xb1] sm:$0x40] %vm8387_vm9, %v8426_v3  ;;  %8394 = vst.msk [vmem:[#allocation5 + $0xad] sm:$0x40] %vm8387_vm9, %v8358_v60  ;;  %v8028_v48 = vsel %vm4346_vm2, %v7967_v30, 0.0  ;;  %v8293_v8 = vsel %vm4346_vm2, %v7967_v30, -inf  ;;  %v20272_v63 = vpack.c.bf16 %v16466_v10, %v16465_v0  ;;  %20269 = vmatprep.subr.bf16.mxu1 %v20268_v27  ;;  %v20220_v21 = vpack.c.bf16 %v10235_v58, %v10234_v6 }
 0x65c   : > { %v25294_v20 = vld [vmem:[#allocation5 + $0x98] sm:$0xff]  ;;  %8367 = vst.msk [vmem:[#allocation5 + $0xb0] sm:$0x1] %vm8038_vm6, %v8358_v60  ;;  %v8411_v2 = vrot.slane %v8297_v50, 1  ;;  %v8029_v31 = vadd.f32 %v8028_v48, %v8027_v15  ;;  %v8294_v53 = vmax.f32 %v8292_v26, %v8293_v8  ;;  %20271 = vmatpush3.bf16.msra.mxu1 %v20268_v27  ;;  %v20276_v3 = vpack.c.bf16 %v16468_v33, %v16467_v56  ;;  %v16469_v17 = vld [vmem:[%s26030_s8 + $0x70] sm:$0xff]  ;;  %v16470_v7 = vld [vmem:[%s26030_s8 + $0x78] sm:$0xff] }
 0x65d   : > { %v25297_v11 = vld [vmem:[#allocation5 + $0x97] sm:$0xff]  ;;  %v12679_v34 = vsel %vm4346_vm2, %v25294_v20, -inf  ;;  %8376 = vst.msk [vmem:[#allocation5 + $0xaf] sm:$0x4] %vm8369_vm7, %v8358_v60  ;;  %20273 = vmatprep.subr.bf16.mxu1 %v20272_v63  ;;  %v20280_v46 = vpack.c.bf16 %v16470_v7, %v16469_v17  ;;  %v10075_v51 = vld [vmem:[#allocation5 + $0x9] sm:$0xff]  ;;  %v10076_v26 = vld [vmem:[#allocation5 + $0x21] sm:$0xff] }
 0x65e   : > { %19052 = vmatprep.mubr.msk.f32.mxu0 %vm4346_vm2, %v25297_v11  ;;  %v12680_v39 = vmax.f32 %v12678_v57, %v12679_v34  ;;  %v8427_v42 = vmax.f32 %v8297_v50, %v8411_v2  ;;  %v8031_v28 = vadd.f32 %v8030_v44, %v8029_v31  ;;  %v8343_v36 = vrot.slane %v8294_v53, 1  ;;  %v10236_v50 = vld [vmem:[#allocation12 + $0x70] sm:$0xff]  ;;  %v10237_v30 = vld [vmem:[#allocation12 + $0x78] sm:$0xff]  ;;  %v10384_v15 = vld [vmem:[#allocation12 + $0x80] sm:$0xff] }
 0x65f   : > { %v20224_v34 = vpack.c.bf16 %v10237_v30, %v10236_v50  ;;  %v25386_v2 = vld [vmem:[#allocation5 + $0x39] sm:$0xff]  ;;  %v25390_v8 = vld [vmem:[#allocation5 + $0x51] sm:$0xff]  ;;  %v25394_v31 = vld [vmem:[#allocation5 + $0x69] sm:$0xff] }
 0x660   : > { %v12709_v40 = vrot.slane %v12680_v39, 1  ;;  %8435 = vst.msk [vmem:[#allocation5 + $0xcc] sm:$0x1] %vm8038_vm6, %v8427_v42  ;;  %v8032_v25 = vrot.slane %v8031_v28, 4  ;;  %v8359_v9 = vmax.f32 %v8294_v53, %v8343_v36  ;;  %20275 = vmatpush3.bf16.msra.mxu1 %v20272_v63  ;;  %v25398_v53 = vld [vmem:[#allocation5 + $0x81] sm:$0xff]  ;;  %v10537_v18 = vld [vmem:[#allocation12 + $0xb8] sm:$0xff] }
 0x661   : > { %8443 = vst.msk [vmem:[#allocation5 + $0xcb] sm:$0x4] %vm8369_vm7, %v8427_v42  ;;  %20277 = vmatprep.subr.bf16.mxu1 %v20276_v3  ;;  %v10686_v29 = vld [vmem:[#allocation12 + $0xc8] sm:$0xff]  ;;  %v10688_v0 = vld [vmem:[#allocation12 + $0xd8] sm:$0xff]  ;;  %v10835_v10 = vld [vmem:[#allocation12 + $0xe0] sm:$0xff] }
 0x662   : > { %v12717_v23 = vmax.f32 %v12680_v39, %v12709_v40  ;;  %8451 = vst.msk [vmem:[#allocation5 + $0xca] sm:$0x10] %vm8378_vm8, %v8427_v42  ;;  %v8033_v22 = vadd.f32 %v8032_v25, %v8031_v28  ;;  %8386 = vst.msk [vmem:[#allocation5 + $0xc6] sm:$0x10] %vm8378_vm8, %v8359_v9  ;;  %v10385_v39 = vld [vmem:[#allocation12 + $0x88] sm:$0xff]  ;;  %v25402_v40 = vld [vmem:[#allocation5 + $0x99] sm:$0xff] }
 0x663   : > { %8459 = vst.msk [vmem:[#allocation5 + $0xc9] sm:$0x40] %vm8387_vm9, %v8427_v42  ;;  %8395 = vst.msk [vmem:[#allocation5 + $0xc5] sm:$0x40] %vm8387_vm9, %v8359_v9  ;;  %v20228_v48 = vpack.c.bf16 %v10385_v39, %v10384_v15  ;;  %v10386_v42 = vld [vmem:[#allocation12 + $0x90] sm:$0xff]  ;;  %v10387_v28 = vld [vmem:[#allocation12 + $0x98] sm:$0xff] }
 0x664   : > { %12722 = vst.msk [vmem:[#allocation8 + $0x50] sm:$0x1] %vm8038_vm6, %v12717_v23  ;;  %v25319_v41 = vld [vmem:[#allocation5 + $0xaf] sm:$0xff]  ;;  %8368 = vst.msk [vmem:[#allocation5 + $0xc8] sm:$0x1] %vm8038_vm6, %v8359_v9  ;;  %v8034_v24 = vrot.slane %v8033_v22, 2  ;;  %20279 = vmatpush3.bf16.msra.mxu1 %v20276_v3  ;;  %v20232_v36 = vpack.c.bf16 %v10387_v28, %v10386_v42 }
 0x665   : > { %12726 = vst.msk [vmem:[#allocation8 + $0x4f] sm:$0x4] %vm8369_vm7, %v12717_v23  ;;  %8377 = vst.msk [vmem:[#allocation5 + $0xc7] sm:$0x4] %vm8369_vm7, %v8359_v9  ;;  %19053 = vmatmul.mubr.msk.f32.gmra.mrb[38].mxu0 %vm4346_vm2, %v25319_v41  ;;  %v25348_v12 = vld [vmem:[#allocation5 + $0xb0] sm:$0xff]  ;;  %20281 = vmatprep.subr.bf16.mxu1 %v20280_v46  ;;  %v10535_v25 = vld [vmem:[#allocation12 + $0xa8] sm:$0xff] }
 0x666   : > { %12730 = vst.msk [vmem:[#allocation8 + $0x4e] sm:$0x10] %vm8378_vm8, %v12717_v23  ;;  %19063 = vmatprep.mubr.msk.f32.mxu0 %vm4346_vm2, %v9925_v13  ;;  %v8035_v54 = vadd.f32 %v8034_v24, %v8033_v22  ;;  %v25406_v44 = vld [vmem:[#allocation5 + $0xb1] sm:$0xff]  ;;  %v10685_v22 = vld [vmem:[#allocation12 + $0xc0] sm:$0xff]  ;;  %v10836_v24 = vld [vmem:[#allocation12 + $0xe8] sm:$0xff] }
 0x667   : > { %12734 = vst.msk [vmem:[#allocation8 + $0x4d] sm:$0x40] %vm8387_vm9, %v12717_v23  ;;  %v10534_v23 = vld [vmem:[#allocation12 + $0xa0] sm:$0xff]  ;;  %v10536_v13 = vld [vmem:[#allocation12 + $0xb0] sm:$0xff]  ;;  %v20244_v4 = vpack.c.bf16 %v10686_v29, %v10685_v22  ;;  %v10838_v58 = vld [vmem:[#allocation12 + $0xf8] sm:$0xff] }
 0x668   : > { %v8036_v37 = vrot.slane %v8035_v54, 1  ;;  %20283 = vmatpush3.bf16.msra.mxu1 %v20280_v46  ;;  %v20236_v9 = vpack.c.bf16 %v10535_v25, %v10534_v23  ;;  %v20240_v35 = vpack.c.bf16 %v10537_v18, %v10536_v13  ;;  %v10837_v63 = vld [vmem:[#allocation12 + $0xf0] sm:$0xff]  ;;  %v10985_v33 = vld [vmem:[#allocation12 + $0x100] sm:$0xff]  ;;  %v11192_v46 = vld [vmem:[%s26030_s8 + $0x18] sm:$0xff] }
 0x669   : > { %19064 = vmatmul.mubr.msk.f32.vlgmr.msra.gmra.mrb[32].mxu0 %vm4346_vm2, %v25159_v16  ;;  %v20256_v56 = vpack.c.bf16 %v10838_v58, %v10837_v63  ;;  %v11194_v15 = vld [vmem:[%s26030_s8 + $0x28] sm:$0xff]  ;;  %v11196_v42 = vld [vmem:[%s26030_s8 + $0x38] sm:$0xff]  ;;  %v16487_v25 = vld [vmem:[%s26030_s8 + $0x80] sm:$0xff] }
 0x66a   : > { %19066 = vmatprep.mubr.msk.f32.mxu0 %vm4346_vm2, %v25173_v1  ;;  %20215 = vmatpush3.bf16.msra.mxu0 %v25157_v61  ;;  %v12681_v61 = vsel %vm4346_vm2, %v25348_v12, -inf  ;;  %v8037_v5 = vadd.f32 %v8036_v37, %v8035_v54  ;;  %v10986_v54 = vld [vmem:[#allocation12 + $0x108] sm:$0xff]  ;;  %v16489_v22 = vld [vmem:[%s26030_s8 + $0x90] sm:$0xff] }
 0x66b   : > { %20217 = vmatprep.subr.bf16.mxu0 %v20216_v49  ;;  %v20260_v37 = vpack.c.bf16 %v10986_v54, %v10985_v33  ;;  %v16490_v29 = vld [vmem:[%s26030_s8 + $0x98] sm:$0xff]  ;;  %v16503_v54 = vld [vmem:[%s26030_s8 + $0xc0] sm:$0xff] }
 0x66c   : > { %v25363_v47 = vld [vmem:[#allocation5 + $0xc8] sm:$0xff]  ;;  %8039 = vst.msk [vmem:[%s663_s25] sm:$0x1] %vm8038_vm6, %v8037_v5  ;;  %s666_s25 = scalar_lea.vmem %s26360_s20, %s26366_s28 }
 0x66d   : > { %v12682_v60 = vsel %vm4346_vm2, %v25363_v47, -inf  ;;  %19067 = vmatmul.mubr.msk.f32.gmra.mrb[34].mxu0 %vm4346_vm2, %v25220_v14  ;;  %v10532_v6 = vld [vmem:[#allocation5 + $0xc9] sm:$0xff] }
 0x66e   : > { %v12683_v45 = vmax.f32 %v12681_v61, %v12682_v60  ;;  %19069 = vmatprep.mubr.msk.f32.mxu0 %vm4346_vm2, %v25231_v52  ;;  %20219 = vmatpush3.bf16.msra.mxu0 %v20216_v49  ;;  %v20252_v49 = vpack.c.bf16 %v10836_v24, %v10835_v10  ;;  %v16494_v63 = vld [vmem:[%s26030_s8 + $0xb8] sm:$0xff] }
 0x66f   : > { %20221 = vmatprep.subr.bf16.mxu0 %v20220_v21 }
 0x670   : > { %v12710_v55 = vrot.slane %v12683_v45, 1 }
 0x671   : > { %19070 = vmatmul.mubr.msk.f32.gmra.mrb[36].mxu0 %vm4346_vm2, %v25283_v43 }
 0x672   : > { %v12718_v57 = vmax.f32 %v12683_v45, %v12710_v55  ;;  %19072 = vmatprep.mubr.msk.f32.mxu0 %vm4346_vm2, %v25294_v20  ;;  %v11191_v45 = vld [vmem:[%s26030_s8 + $0x10] sm:$0xff] }
 0x673   : > { %v20288_v30 = vpack.c.bf16 %v11192_v46, %v11191_v45 }
 0x674   : > { %12723 = vst.msk [vmem:[#allocation8 + $0x68] sm:$0x1] %vm8038_vm6, %v12718_v57 }
 0x675   : > { %12727 = vst.msk [vmem:[#allocation8 + $0x67] sm:$0x4] %vm8369_vm7, %v12718_v57  ;;  %19073 = vmatmul.mubr.msk.f32.gmra.mrb[38].mxu0 %vm4346_vm2, %v25348_v12 }
 0x676   : > { %12731 = vst.msk [vmem:[#allocation8 + $0x66] sm:$0x10] %vm8378_vm8, %v12718_v57  ;;  %19083 = vmatprep.mubr.msk.f32.mxu0 %vm4346_vm2, %v10075_v51 }
 0x677   : > { %12735 = vst.msk [vmem:[#allocation8 + $0x65] sm:$0x40] %vm8387_vm9, %v12718_v57 }
 0x679   : > { %19084 = vmatmul.mubr.msk.f32.vlgmr.msra.gmra.mrb[32].mxu0 %vm4346_vm2, %v10076_v26 }
 0x67a   : > { %19086 = vmatprep.mubr.msk.f32.mxu0 %vm4346_vm2, %v25386_v2  ;;  %20223 = vmatpush3.bf16.msra.mxu0 %v20220_v21  ;;  %v10988_v21 = vld [vmem:[#allocation12 + $0x118] sm:$0xff] }
 0x67b   : > { %20225 = vmatprep.subr.bf16.mxu0 %v20224_v34 }
 0x67d   : > { %19087 = vmatmul.mubr.msk.f32.gmra.mrb[34].mxu0 %vm4346_vm2, %v25390_v8 }
 0x67e   : > { %19089 = vmatprep.mubr.msk.f32.mxu0 %vm4346_vm2, %v25394_v31  ;;  %20227 = vmatpush3.bf16.msra.mxu0 %v20224_v34 }
 0x67f   : > { %20229 = vmatprep.subr.bf16.mxu0 %v20228_v48 }
 0x681   : > { %19090 = vmatmul.mubr.msk.f32.gmra.mrb[36].mxu0 %vm4346_vm2, %v25398_v53 }
 0x682   : > { %19092 = vmatprep.mubr.msk.f32.mxu0 %vm4346_vm2, %v25402_v40 }
 0x685   : > { %19093 = vmatmul.mubr.msk.f32.gmra.mrb[38].mxu0 %vm4346_vm2, %v25406_v44 }
 0x686   : > { %19103 = vmatprep.mubr.msk.f32.mxu0 %vm4346_vm2, %v25136_v59  ;;  %v10232_v59 = vld [vmem:[#allocation5 + $0xc7] sm:$0xff] }
 0x689   : > { %19104 = vmatmul.mubr.msk.f32.vlgmr.msra.gmra.mrb[32].mxu0 %vm4346_vm2, %v25178_v32 }
 0x68a   : > { %19106 = vmatprep.mubr.msk.f32.mxu0 %vm4346_vm2, %v25200_v62  ;;  %20231 = vmatpush3.bf16.msra.mxu0 %v20228_v48 }
 0x68b   : > { %20233 = vmatprep.subr.bf16.mxu0 %v20232_v36 }
 0x68d   : > { %19107 = vmatmul.mubr.msk.f32.gmra.mrb[34].mxu0 %vm4346_vm2, %v25239_v38 }
 0x68e   : > { %19109 = vmatprep.mubr.msk.f32.mxu0 %vm4346_vm2, %v25269_v19  ;;  %20235 = vmatpush3.bf16.msra.mxu0 %v20232_v36 }
 0x68f   : > { %20237 = vmatprep.subr.bf16.mxu0 %v20236_v9 }
 0x691   : > { %19110 = vmatmul.mubr.msk.f32.gmra.mrb[36].mxu0 %vm4346_vm2, %v25297_v11 }
 0x692   : > { %19112 = vmatprep.mubr.msk.f32.mxu0 %vm4346_vm2, %v25319_v41 }
 0x695   : > { %19113 = vmatmul.mubr.msk.f32.gmra.mrb[38].mxu0 %vm4346_vm2, %v10232_v59 }
 0x696   : > { %19123 = vmatprep.mubr.msk.f32.mxu0 %vm4346_vm2, %v25159_v16  ;;  %v10687_v16 = vld [vmem:[#allocation12 + $0xd0] sm:$0xff] }
 0x697   : > { %v20248_v27 = vpack.c.bf16 %v10688_v0, %v10687_v16  ;;  %v16491_v0 = vld [vmem:[%s26030_s8 + $0xa0] sm:$0xff] }
 0x699   : > { %19124 = vmatmul.mubr.msk.f32.vlgmr.msra.gmra.mrb[32].mxu0 %vm4346_vm2, %v25173_v1 }
 0x69a   : > { %19126 = vmatprep.mubr.msk.f32.mxu0 %vm4346_vm2, %v25220_v14  ;;  %20239 = vmatpush3.bf16.msra.mxu0 %v20236_v9  ;;  %v16488_v9 = vld [vmem:[%s26030_s8 + $0x88] sm:$0xff] }
 0x69b   : > { %20241 = vmatprep.subr.bf16.mxu0 %v20240_v35  ;;  %v20300_v18 = vpack.c.bf16 %v16488_v9, %v16487_v25  ;;  %v16538_v25 = vld [vmem:[%s26030_s8 + $0x158] sm:$0xff] }
 0x69d   : > { %19127 = vmatmul.mubr.msk.f32.gmra.mrb[34].mxu0 %vm4346_vm2, %v25231_v52 }
 0x69e   : > { %19129 = vmatprep.mubr.msk.f32.mxu0 %vm4346_vm2, %v25283_v43  ;;  %20243 = vmatpush3.bf16.msra.mxu0 %v20240_v35 }
 0x69f   : > { %20245 = vmatprep.subr.bf16.mxu0 %v20244_v4 }
 0x6a1   : > { %19130 = vmatmul.mubr.msk.f32.gmra.mrb[36].mxu0 %vm4346_vm2, %v25294_v20 }
 0x6a2   : > { %19132 = vmatprep.mubr.msk.f32.mxu0 %vm4346_vm2, %v25348_v12 }
 0x6a5   : > { %19133 = vmatmul.mubr.msk.f32.gmra.mrb[38].mxu0 %vm4346_vm2, %v25363_v47 }
 0x6a6   : > { %19143 = vmatprep.mubr.msk.f32.mxu0 %vm4346_vm2, %v10076_v26  ;;  %v11193_v26 = vld [vmem:[%s26030_s8 + $0x20] sm:$0xff] }
 0x6a9   : > { %19144 = vmatmul.mubr.msk.f32.vlgmr.msra.gmra.mrb[32].mxu0 %vm4346_vm2, %v25386_v2 }
 0x6aa   : > { %19146 = vmatprep.mubr.msk.f32.mxu0 %vm4346_vm2, %v25390_v8  ;;  %20247 = vmatpush3.bf16.msra.mxu0 %v20244_v4  ;;  %v20304_v4 = vpack.c.bf16 %v16490_v29, %v16489_v22  ;;  %v16542_v29 = vld [vmem:[%s26030_s8 + $0x178] sm:$0xff] }
 0x6ab   : > { %20249 = vmatprep.subr.bf16.mxu0 %v20248_v27 }
 0x6ad   : > { %19147 = vmatmul.mubr.msk.f32.gmra.mrb[34].mxu0 %vm4346_vm2, %v25394_v31 }
 0x6ae   : > { %19149 = vmatprep.mubr.msk.f32.mxu0 %vm4346_vm2, %v25398_v53  ;;  %20251 = vmatpush3.bf16.msra.mxu0 %v20248_v27  ;;  %v16492_v27 = vld [vmem:[%s26030_s8 + $0xa8] sm:$0xff] }
 0x6af   : > { %20253 = vmatprep.subr.bf16.mxu0 %v20252_v49  ;;  %v20308_v24 = vpack.c.bf16 %v16492_v27, %v16491_v0  ;;  %v16552_v0 = vld [vmem:[%s26030_s8 + $0x188] sm:$0xff] }
 0x6b1   : > { %19150 = vmatmul.mubr.msk.f32.gmra.mrb[36].mxu0 %vm4346_vm2, %v25402_v40 }
 0x6b2   : > { %19152 = vmatprep.mubr.msk.f32.mxu0 %vm4346_vm2, %v25406_v44 }
 0x6b5   : > { %19153 = vmatmul.mubr.msk.f32.gmra.mrb[38].mxu0 %vm4346_vm2, %v10532_v6 }
 0x6b6   : > { %19163 = vmatprep.mubr.msk.f32.mxu0 %vm4346_vm2, %v25178_v32  ;;  %v10683_v32 = vld [vmem:[#allocation5 + $0xdf] sm:$0xff] }
 0x6b9   : > { %19164 = vmatmul.mubr.msk.f32.vlgmr.msra.gmra.mrb[32].mxu0 %vm4346_vm2, %v25200_v62  ;;  %v10987_v62 = vld [vmem:[#allocation12 + $0x110] sm:$0xff] }
 0x6ba   : > { %19166 = vmatprep.mubr.msk.f32.mxu0 %vm4346_vm2, %v25239_v38  ;;  %20255 = vmatpush3.bf16.msra.mxu0 %v20252_v49  ;;  %v20264_v38 = vpack.c.bf16 %v10988_v21, %v10987_v62 }
 0x6bb   : > { %20257 = vmatprep.subr.bf16.mxu0 %v20256_v56 }
 0x6bd   : > { %19167 = vmatmul.mubr.msk.f32.gmra.mrb[34].mxu0 %vm4346_vm2, %v25269_v19  ;;  %v11189_v19 = vld [vmem:[%s26030_s8] sm:$0xff] }
 0x6be   : > { %19169 = vmatprep.mubr.msk.f32.mxu0 %vm4346_vm2, %v25297_v11  ;;  %20259 = vmatpush3.bf16.msra.mxu0 %v20256_v56 }
 0x6bf   : > { %20261 = vmatprep.subr.bf16.mxu0 %v20260_v37 }
 0x6c1   : > { %19170 = vmatmul.mubr.msk.f32.gmra.mrb[36].mxu0 %vm4346_vm2, %v25319_v41  ;;  %v16462_v41 = vld [vmem:[%s26029_s7] ss:$0 sm:$0xff] }
 0x6c2   : > { %19172 = vmatprep.mubr.msk.f32.mxu0 %vm4346_vm2, %v10232_v59 }
 0x6c5   : > { %19173 = vmatmul.mubr.msk.f32.gmra.mrb[38].mxu0 %vm4346_vm2, %v10683_v32 }
 0x6c6   : > { %19183 = vmatprep.mubr.msk.f32.mxu0 %vm4346_vm2, %v25173_v1  ;;  %v10833_v1 = vld [vmem:[#allocation5 + $0xe0] sm:$0xff] }
 0x6c9   : > { %19184 = vmatmul.mubr.msk.f32.vlgmr.msra.gmra.mrb[32].mxu0 %vm4346_vm2, %v25220_v14  ;;  %v10983_v14 = vld [vmem:[#allocation5 + $0xe1] sm:$0xff] }
 0x6ca   : > { %19186 = vmatprep.mubr.msk.f32.mxu0 %vm4346_vm2, %v25231_v52  ;;  %20263 = vmatpush3.bf16.msra.mxu0 %v20260_v37  ;;  %v21803_v52 = vld [vmem:[#allocation9] sm:$0xff]  ;;  %v16504_v37 = vld [vmem:[%s26030_s8 + $0xc8] sm:$0xff] }
 0x6cb   : > { %20265 = vmatprep.subr.bf16.mxu0 %v20264_v38  ;;  %11149 = vst.msk [vmem:[#allocation6 + $0x38] sm:$0xff] %vm11141_vm10, %v21803_v52  ;;  %11142 = vst.msk [vmem:[#allocation6] sm:$0xff] %vm11141_vm10, %v21803_v52  ;;  %v20316_v21 = vpack.c.bf16 %v16504_v37, %v16503_v54  ;;  %v16555_v54 = vld [vmem:[%s26030_s8 + $0x1a0] sm:$0xff]  ;;  %v16556_v37 = vld [vmem:[%s26030_s8 + $0x1a8] sm:$0xff] }
 0x6cc   : > { %11143 = vst.msk [vmem:[#allocation6 + $0x8] sm:$0xff] %vm11141_vm10, %v21803_v52  ;;  %11144 = vst.msk [vmem:[#allocation6 + $0x10] sm:$0xff] %vm11141_vm10, %v21803_v52 }
 0x6cd   : > { %19187 = vmatmul.mubr.msk.f32.gmra.mrb[34].mxu0 %vm4346_vm2, %v25283_v43  ;;  %11145 = vst.msk [vmem:[#allocation6 + $0x18] sm:$0xff] %vm11141_vm10, %v21803_v52  ;;  %11146 = vst.msk [vmem:[#allocation6 + $0x20] sm:$0xff] %vm11141_vm10, %v21803_v52  ;;  %v11190_v43 = vld [vmem:[%s26030_s8 + $0x8] sm:$0xff] }
 0x6ce   : > { %19189 = vmatprep.mubr.msk.f32.mxu0 %vm4346_vm2, %v25294_v20  ;;  %20267 = vmatpush3.bf16.msra.mxu0 %v20264_v38  ;;  %11147 = vst.msk [vmem:[#allocation6 + $0x28] sm:$0xff] %vm11141_vm10, %v21803_v52  ;;  %11148 = vst.msk [vmem:[#allocation6 + $0x30] sm:$0xff] %vm11141_vm10, %v21803_v52  ;;  %v20284_v11 = vpack.c.bf16 %v11190_v43, %v11189_v19  ;;  %v16507_v43 = vld [vmem:[%s26030_s8 + $0xe0] sm:$0xff] }
 0x6cf   : > { %11150 = vst.msk [vmem:[#allocation6 + $0x40] sm:$0xff] %vm11141_vm10, %v21803_v52  ;;  %11151 = vst.msk [vmem:[#allocation6 + $0x48] sm:$0xff] %vm11141_vm10, %v21803_v52 }
 0x6d0   : > { %11152 = vst.msk [vmem:[#allocation6 + $0x50] sm:$0xff] %vm11141_vm10, %v21803_v52  ;;  %11153 = vst.msk [vmem:[#allocation6 + $0x58] sm:$0xff] %vm11141_vm10, %v21803_v52  ;;  %20285 = vmatprep.subr.bf16.mxu1 %v20284_v11 }
 0x6d1   : > { %19190 = vmatmul.mubr.msk.f32.gmra.mrb[36].mxu0 %vm4346_vm2, %v25348_v12  ;;  %11154 = vst.msk [vmem:[#allocation6 + $0x60] sm:$0xff] %vm11141_vm10, %v21803_v52  ;;  %11155 = vst.msk [vmem:[#allocation6 + $0x68] sm:$0xff] %vm11141_vm10, %v21803_v52 }
 0x6d2   : > { %19192 = vmatprep.mubr.msk.f32.mxu0 %vm4346_vm2, %v25363_v47  ;;  %11156 = vst.msk [vmem:[#allocation6 + $0x70] sm:$0xff] %vm11141_vm10, %v21803_v52  ;;  %11157 = vst.msk [vmem:[#allocation6 + $0x78] sm:$0xff] %vm11141_vm10, %v21803_v52 }
 0x6d3   : > { %11158 = vst.msk [vmem:[#allocation6 + $0x80] sm:$0xff] %vm11141_vm10, %v21803_v52  ;;  %11159 = vst.msk [vmem:[#allocation6 + $0x88] sm:$0xff] %vm11141_vm10, %v21803_v52  ;;  %v11197_v20 = vld [vmem:[#allocation6 + $0x8] sm:$0xff] }
 0x6d4   : > { %11160 = vst.msk [vmem:[#allocation6 + $0x90] sm:$0xff] %vm11141_vm10, %v21803_v52  ;;  %11161 = vst.msk [vmem:[#allocation6 + $0x98] sm:$0xff] %vm11141_vm10, %v21803_v52  ;;  %19231 = vmatprep.mubr.msk.f32.mxu1 %vm11141_vm10, %v11197_v20  ;;  %v11181_v13 = vld [vmem:[#allocation6 + $0x7] sm:$0xff] }
 0x6d5   : > { %19193 = vmatmul.mubr.msk.f32.gmra.mrb[38].mxu0 %vm4346_vm2, %v10833_v1  ;;  %11162 = vst.msk [vmem:[#allocation6 + $0xa0] sm:$0xff] %vm11141_vm10, %v21803_v52  ;;  %11163 = vst.msk [vmem:[#allocation6 + $0xa8] sm:$0xff] %vm11141_vm10, %v21803_v52  ;;  %v11472_v62 = vld [vmem:[#allocation6 + $0x9] sm:$0xff] }
 0x6d6   : > { %19203 = vmatprep.mubr.msk.f32.mxu0 %vm4346_vm2, %v25386_v2  ;;  %11164 = vst.msk [vmem:[#allocation6 + $0xb0] sm:$0xff] %vm11141_vm10, %v21803_v52  ;;  %11165 = vst.msk [vmem:[#allocation6 + $0xb8] sm:$0xff] %vm11141_vm10, %v21803_v52  ;;  %v16505_v1 = vld [vmem:[%s26030_s8 + $0xd0] sm:$0xff]  ;;  %v16508_v20 = vld [vmem:[%s26030_s8 + $0xe8] sm:$0xff] }
 0x6d7   : > { %11166 = vst.msk [vmem:[#allocation6 + $0xc0] sm:$0xff] %vm11141_vm10, %v21803_v52  ;;  %11167 = vst.msk [vmem:[#allocation6 + $0xc8] sm:$0xff] %vm11141_vm10, %v21803_v52 }
 0x6d8   : > { %11168 = vst.msk [vmem:[#allocation6 + $0xd0] sm:$0xff] %vm11141_vm10, %v21803_v52  ;;  %11169 = vst.msk [vmem:[#allocation6 + $0xd8] sm:$0xff] %vm11141_vm10, %v21803_v52 }
 0x6d9   : > { %19204 = vmatmul.mubr.msk.f32.vlgmr.msra.gmra.mrb[32].mxu0 %vm4346_vm2, %v25390_v8  ;;  %11170 = vst.msk [vmem:[#allocation6 + $0xe0] sm:$0xff] %vm11141_vm10, %v21803_v52  ;;  %11171 = vst.msk [vmem:[#allocation6 + $0xe8] sm:$0xff] %vm11141_vm10, %v21803_v52 }
 0x6da   : > { %19206 = vmatprep.mubr.msk.f32.mxu0 %vm4346_vm2, %v25394_v31  ;;  %12609 = vst.msk [vmem:[#allocation7] sm:$0xff] %vm11141_vm10, %v21803_v52  ;;  %12610 = vst.msk [vmem:[#allocation7 + $0x8] sm:$0xff] %vm11141_vm10, %v21803_v52 }
 0x6db   : > { %12613 = vst.msk [vmem:[#allocation7 + $0x18] sm:$0xff] %vm11141_vm10, %v21803_v52  ;;  %12614 = vst.msk [vmem:[#allocation7 + $0x20] sm:$0xff] %vm11141_vm10, %v21803_v52 }
 0x6dc   : > { %12616 = vst.msk [vmem:[#allocation7 + $0x30] sm:$0xff] %vm11141_vm10, %v21803_v52  ;;  %12617 = vst.msk [vmem:[#allocation7 + $0x38] sm:$0xff] %vm11141_vm10, %v21803_v52 }
 0x6dd   : > { %19207 = vmatmul.mubr.msk.f32.gmra.mrb[34].mxu0 %vm4346_vm2, %v25398_v53  ;;  %12619 = vst.msk [vmem:[#allocation7 + $0x48] sm:$0xff] %vm11141_vm10, %v21803_v52  ;;  %12620 = vst.msk [vmem:[#allocation7 + $0x50] sm:$0xff] %vm11141_vm10, %v21803_v52  ;;  %v20292_v53 = vpack.c.bf16 %v11194_v15, %v11193_v26  ;;  %v16524_v26 = vld [vmem:[%s26030_s8 + $0x128] sm:$0xff] }
 0x6de   : > { %19209 = vmatprep.mubr.msk.f32.mxu0 %vm4346_vm2, %v25402_v40  ;;  %12622 = vst.msk [vmem:[#allocation7 + $0x60] sm:$0xff] %vm11141_vm10, %v21803_v52  ;;  %12623 = vst.msk [vmem:[#allocation7 + $0x68] sm:$0xff] %vm11141_vm10, %v21803_v52 }
 0x6df   : > { %12625 = vst.msk [vmem:[#allocation7 + $0x78] sm:$0xff] %vm11141_vm10, %v21803_v52  ;;  %12626 = vst.msk [vmem:[#allocation7 + $0x80] sm:$0xff] %vm11141_vm10, %v21803_v52 }
 0x6e1   : > { %19210 = vmatmul.mubr.msk.f32.gmra.mrb[36].mxu0 %vm4346_vm2, %v25406_v44  ;;  %v11195_v44 = vld [vmem:[%s26030_s8 + $0x30] sm:$0xff] }
 0x6e2   : > { %19212 = vmatprep.mubr.msk.f32.mxu0 %vm4346_vm2, %v10532_v6  ;;  %v20296_v36 = vpack.c.bf16 %v11196_v42, %v11195_v44  ;;  %v16493_v6 = vld [vmem:[%s26030_s8 + $0xb0] sm:$0xff] }
 0x6e3   : > { %v20312_v56 = vpack.c.bf16 %v16494_v63, %v16493_v6  ;;  %v16553_v6 = vld [vmem:[%s26030_s8 + $0x190] sm:$0xff]  ;;  %v16554_v63 = vld [vmem:[%s26030_s8 + $0x198] sm:$0xff] }
 0x6e5   : > { %19213 = vmatmul.mubr.msk.f32.gmra.mrb[38].mxu0 %vm4346_vm2, %v10983_v14  ;;  %v16506_v14 = vld [vmem:[%s26030_s8 + $0xd8] sm:$0xff] }
 0x6e6   : > { %v20320_v52 = vpack.c.bf16 %v16506_v14, %v16505_v1  ;;  %v16558_v1 = vld [vmem:[%s26030_s8 + $0x1b8] sm:$0xff] }
 0x7ac   : > { %v19205_v12 = vpop.f32.mrb[32].mxu0 }
 0x7ad   : > { %v11134_v3 = vadd.f32 %v19205_v12, %v16462_v41  ;;  %v11079_v17 = vpop.f32.mrb[33].mxu0 }
 0x7ae   : > { %v11133_v7 = vadd.f32 %v16462_v41, %v11079_v17  ;;  %v16510_v17 = vld [vmem:[%s26030_s8 + $0xf8] sm:$0xff] }
 0x7af   : > { %11174 = vst.msk [vmem:[#allocation6 + $0x38] sm:$0xff] %vm11141_vm10, %v11134_v3  ;;  %v16509_v3 = vld [vmem:[%s26030_s8 + $0xf0] sm:$0xff] }
 0x7b0   : > { %11173 = vst.msk [vmem:[#allocation6 + $0x20] sm:$0xff] %vm11141_vm10, %v11133_v7  ;;  %v19208_v47 = vpop.f32.mrb[34].mxu0 }
 0x7b1   : > { %v11136_v61 = vadd.f32 %v19208_v47, %v16462_v41  ;;  %v11089_v5 = vpop.f32.mrb[35].mxu0  ;;  %v20328_v47 = vpack.c.bf16 %v16510_v17, %v16509_v3  ;;  %v16570_v3 = vld [vmem:[%s26030_s8 + $0x1d8] sm:$0xff] }
 0x7b2   : > { %v11135_v60 = vadd.f32 %v16462_v41, %v11089_v5  ;;  %v16519_v5 = vld [vmem:[%s26030_s8 + $0x100] sm:$0xff] }
 0x7b3   : > { %11176 = vst.msk [vmem:[#allocation6 + $0x68] sm:$0xff] %vm11141_vm10, %v11136_v61 }
 0x7b4   : > { %11175 = vst.msk [vmem:[#allocation6 + $0x50] sm:$0xff] %vm11141_vm10, %v11135_v60  ;;  %v19211_v55 = vpop.f32.mrb[36].mxu0  ;;  %v16520_v60 = vld [vmem:[%s26030_s8 + $0x108] sm:$0xff] }
 0x7b5   : > { %v11138_v57 = vadd.f32 %v19211_v55, %v16462_v41  ;;  %v11099_v51 = vpop.f32.mrb[37].mxu0  ;;  %v20332_v46 = vpack.c.bf16 %v16520_v60, %v16519_v5  ;;  %v16572_v5 = vld [vmem:[%s26030_s8 + $0x1e8] sm:$0xff] }
 0x7b6   : > { %v11137_v50 = vadd.f32 %v16462_v41, %v11099_v51  ;;  %v25572_v2 = vld [vmem:[#allocation6 + $0x38] sm:$0xff] }
 0x7b7   : > { %11178 = vst.msk [vmem:[#allocation6 + $0x98] sm:$0xff] %vm11141_vm10, %v11138_v57  ;;  %v25561_v34 = vld [vmem:[#allocation6 + $0x20] sm:$0xff]  ;;  %v25627_v10 = vld [vmem:[#allocation6 + $0x37] sm:$0xff] }
 0x7b8   : > { %11177 = vst.msk [vmem:[#allocation6 + $0x80] sm:$0xff] %vm11141_vm10, %v11137_v50  ;;  %v19214_v39 = vpop.f32.mrb[38].mxu0  ;;  %19232 = vmatmul.mubr.msk.f32.vlgmr.msra.gmra.mrb[64].mxu1 %vm11141_vm10, %v25561_v34  ;;  %v25617_v16 = vld [vmem:[#allocation6 + $0x1f] sm:$0xff]  ;;  %v16521_v57 = vld [vmem:[%s26030_s8 + $0x110] sm:$0xff] }
 0x7b9   : > { %v11140_v48 = vadd.f32 %v19214_v39, %v16462_v41  ;;  %v11109_v8 = vpop.f32.mrb[39].mxu0  ;;  %19234 = vmatprep.mubr.msk.f32.mxu1 %vm11141_vm10, %v25572_v2  ;;  %20287 = vmatpush3.bf16.msra.mxu1 %v20284_v11  ;;  %v25670_v19 = vld [vmem:[#allocation6 + $0x21] sm:$0xff]  ;;  %v25680_v11 = vld [vmem:[#allocation6 + $0x39] sm:$0xff]  ;;  %v16525_v39 = vld [vmem:[%s26030_s8 + $0x130] sm:$0xff] }
 0x7ba   : > { %v11139_v31 = vadd.f32 %v16462_v41, %v11109_v8  ;;  %20289 = vmatprep.subr.bf16.mxu1 %v20288_v30  ;;  %v25588_v28 = vld [vmem:[#allocation6 + $0x68] sm:$0xff]  ;;  %v20324_v41 = vpack.c.bf16 %v16508_v20, %v16507_v43  ;;  %v16522_v51 = vld [vmem:[%s26030_s8 + $0x118] sm:$0xff] }
 0x7bb   : > { %11180 = vst.msk [vmem:[#allocation6 + $0xc8] sm:$0xff] %vm11141_vm10, %v11140_v48  ;;  %v25577_v40 = vld [vmem:[#allocation6 + $0x50] sm:$0xff]  ;;  %v25641_v58 = vld [vmem:[#allocation6 + $0x67] sm:$0xff]  ;;  %v20336_v50 = vpack.c.bf16 %v16522_v51, %v16521_v57  ;;  %v16526_v48 = vld [vmem:[%s26030_s8 + $0x138] sm:$0xff] }
 0x7bc   : > { %11179 = vst.msk [vmem:[#allocation6 + $0xb0] sm:$0xff] %vm11141_vm10, %v11139_v31  ;;  %19235 = vmatmul.mubr.msk.f32.gmra.mrb[66].mxu1 %vm11141_vm10, %v25577_v40  ;;  %v25631_v49 = vld [vmem:[#allocation6 + $0x4f] sm:$0xff]  ;;  %v20344_v8 = vpack.c.bf16 %v16526_v48, %v16525_v39  ;;  %v16535_v31 = vld [vmem:[%s26030_s8 + $0x140] sm:$0xff]  ;;  %v16590_v39 = vld [vmem:[%s26030_s8 + $0x238] sm:$0xff] }
 0x7bd   : > { %19237 = vmatprep.mubr.msk.f32.mxu1 %vm11141_vm10, %v25588_v28  ;;  %20291 = vmatpush3.bf16.msra.mxu1 %v20288_v30  ;;  %v25684_v12 = vld [vmem:[#allocation6 + $0x51] sm:$0xff]  ;;  %v25694_v7 = vld [vmem:[#allocation6 + $0x69] sm:$0xff]  ;;  %v16523_v30 = vld [vmem:[%s26030_s8 + $0x120] sm:$0xff] }
 0x7be   : > { %20293 = vmatprep.subr.bf16.mxu1 %v20292_v53  ;;  %v25602_v59 = vld [vmem:[#allocation6 + $0x98] sm:$0xff]  ;;  %v20340_v15 = vpack.c.bf16 %v16524_v26, %v16523_v30  ;;  %v16584_v57 = vld [vmem:[%s26030_s8 + $0x208] sm:$0xff]  ;;  %v16585_v51 = vld [vmem:[%s26030_s8 + $0x210] sm:$0xff] }
 0x7bf   : > { %v25592_v23 = vld [vmem:[#allocation6 + $0x80] sm:$0xff]  ;;  %v25655_v32 = vld [vmem:[#allocation6 + $0x97] sm:$0xff]  ;;  %v16588_v26 = vld [vmem:[%s26030_s8 + $0x228] sm:$0xff] }
 0x7c0   : > { %19238 = vmatmul.mubr.msk.f32.gmra.mrb[68].mxu1 %vm11141_vm10, %v25592_v23  ;;  %v25645_v33 = vld [vmem:[#allocation6 + $0x7f] sm:$0xff] }
 0x7c1   : > { %19240 = vmatprep.mubr.msk.f32.mxu1 %vm11141_vm10, %v25602_v59  ;;  %20295 = vmatpush3.bf16.msra.mxu1 %v20292_v53  ;;  %v25698_v61 = vld [vmem:[#allocation6 + $0x81] sm:$0xff]  ;;  %v25708_v45 = vld [vmem:[#allocation6 + $0x99] sm:$0xff] }
 0x7c2   : > { %20297 = vmatprep.subr.bf16.mxu1 %v20296_v36  ;;  %v16536_v53 = vld [vmem:[%s26030_s8 + $0x148] sm:$0xff]  ;;  %v16587_v30 = vld [vmem:[%s26030_s8 + $0x220] sm:$0xff]  ;;  %v12758_v48 = vld [vmem:[#allocation14 + $0x68] sm:$0xff] }
 0x7c3   : > { %v25606_v35 = vld [vmem:[#allocation6 + $0xb0] sm:$0xff]  ;;  %v20348_v44 = vpack.c.bf16 %v16536_v53, %v16535_v31  ;;  %v25754_v42 = vld [vmem:[#allocation6 + $0xc7] sm:$0xff] }
 0x7c4   : > { %19241 = vmatmul.mubr.msk.f32.gmra.mrb[70].mxu1 %vm11141_vm10, %v25606_v35  ;;  %v25659_v38 = vld [vmem:[#allocation6 + $0xaf] sm:$0xff] }
 0x7c5   : > { %20299 = vmatpush3.bf16.msra.mxu1 %v20296_v36  ;;  %19259 = vmatprep.mubr.msk.f32.mxu1 %vm11141_vm10, %v11181_v13  ;;  %v25712_v55 = vld [vmem:[#allocation6 + $0xb1] sm:$0xff]  ;;  %v16539_v13 = vld [vmem:[%s26030_s8 + $0x160] sm:$0xff]  ;;  %v25838_v20 = vld [vmem:[#allocation6 + $0xc9] sm:$0xff] }
 0x7c6   : > { %20301 = vmatprep.subr.bf16.mxu1 %v20300_v18  ;;  %v16537_v36 = vld [vmem:[%s26030_s8 + $0x150] sm:$0xff]  ;;  %v12760_v31 = vld [vmem:[#allocation14 + $0x78] sm:$0xff] }
 0x7c7   : > { %v20352_v9 = vpack.c.bf16 %v16538_v25, %v16537_v36  ;;  %v16599_v25 = vld [vmem:[%s26031_s9] ss:$0 sm:$0xff] }
 0x7c8   : > { %19260 = vmatmul.mubr.msk.f32.vlgmr.msra.gmra.mrb[64].mxu1 %vm11141_vm10, %v25617_v16 }
 0x7c9   : > { %19262 = vmatprep.mubr.msk.f32.mxu1 %vm11141_vm10, %v25627_v10  ;;  %20303 = vmatpush3.bf16.msra.mxu1 %v20300_v18  ;;  %v16540_v18 = vld [vmem:[%s26030_s8 + $0x168] sm:$0xff] }
 0x7ca   : > { %20305 = vmatprep.subr.bf16.mxu1 %v20304_v4  ;;  %v20356_v22 = vpack.c.bf16 %v16540_v18, %v16539_v13 }
 0x7cc   : > { %19263 = vmatmul.mubr.msk.f32.gmra.mrb[66].mxu1 %vm11141_vm10, %v25631_v49 }
 0x7cd   : > { %19265 = vmatprep.mubr.msk.f32.mxu1 %vm11141_vm10, %v25641_v58  ;;  %20307 = vmatpush3.bf16.msra.mxu1 %v20304_v4 }
 0x7ce   : > { %20309 = vmatprep.subr.bf16.mxu1 %v20308_v24 }
 0x7d0   : > { %19266 = vmatmul.mubr.msk.f32.gmra.mrb[68].mxu1 %vm11141_vm10, %v25645_v33 }
 0x7d1   : > { %19268 = vmatprep.mubr.msk.f32.mxu1 %vm11141_vm10, %v25655_v32  ;;  %20311 = vmatpush3.bf16.msra.mxu1 %v20308_v24  ;;  %v25796_v24 = vld [vmem:[#allocation6 + $0xc8] sm:$0xff] }
 0x7d2   : > { %20313 = vmatprep.subr.bf16.mxu1 %v20312_v56 }
 0x7d4   : > { %19269 = vmatmul.mubr.msk.f32.gmra.mrb[70].mxu1 %vm11141_vm10, %v25659_v38 }
 0x7d5   : > { %20315 = vmatpush3.bf16.msra.mxu1 %v20312_v56  ;;  %19287 = vmatprep.mubr.msk.f32.mxu1 %vm11141_vm10, %v11472_v62  ;;  %v20368_v56 = vpack.c.bf16 %v16554_v63, %v16553_v6  ;;  %v20372_v62 = vpack.c.bf16 %v16556_v37, %v16555_v54 }
 0x7d6   : > { %20317 = vmatprep.subr.bf16.mxu1 %v20316_v21 }
 0x7d8   : > { %19288 = vmatmul.mubr.msk.f32.vlgmr.msra.gmra.mrb[64].mxu1 %vm11141_vm10, %v25670_v19 }
 0x7d9   : > { %19290 = vmatprep.mubr.msk.f32.mxu1 %vm11141_vm10, %v25680_v11  ;;  %20319 = vmatpush3.bf16.msra.mxu1 %v20316_v21  ;;  %v16557_v21 = vld [vmem:[%s26030_s8 + $0x1b0] sm:$0xff] }
 0x7da   : > { %20321 = vmatprep.subr.bf16.mxu1 %v20320_v52  ;;  %v20376_v14 = vpack.c.bf16 %v16558_v1, %v16557_v21 }
 0x7dc   : > { %19291 = vmatmul.mubr.msk.f32.gmra.mrb[66].mxu1 %vm11141_vm10, %v25684_v12 }
 0x7dd   : > { %19293 = vmatprep.mubr.msk.f32.mxu1 %vm11141_vm10, %v25694_v7  ;;  %20323 = vmatpush3.bf16.msra.mxu1 %v20320_v52  ;;  %v16567_v52 = vld [vmem:[%s26030_s8 + $0x1c0] sm:$0xff] }
 0x7de   : > { %20325 = vmatprep.subr.bf16.mxu1 %v20324_v41 }
 0x7e0   : > { %19294 = vmatmul.mubr.msk.f32.gmra.mrb[68].mxu1 %vm11141_vm10, %v25698_v61 }
 0x7e1   : > { %19296 = vmatprep.mubr.msk.f32.mxu1 %vm11141_vm10, %v25708_v45  ;;  %20327 = vmatpush3.bf16.msra.mxu1 %v20324_v41  ;;  %v16569_v41 = vld [vmem:[%s26030_s8 + $0x1d0] sm:$0xff] }
 0x7e2   : > { %20329 = vmatprep.subr.bf16.mxu1 %v20328_v47  ;;  %v20384_v17 = vpack.c.bf16 %v16570_v3, %v16569_v41 }
 0x7e4   : > { %19297 = vmatmul.mubr.msk.f32.gmra.mrb[70].mxu1 %vm11141_vm10, %v25712_v55 }
 0x7e5   : > { %20331 = vmatpush3.bf16.msra.mxu1 %v20328_v47  ;;  %19315 = vmatprep.mubr.msk.f32.mxu1 %vm11141_vm10, %v25617_v16  ;;  %v16551_v16 = vld [vmem:[%s26030_s8 + $0x180] sm:$0xff] }
 0x7e6   : > { %20333 = vmatprep.subr.bf16.mxu1 %v20332_v46  ;;  %v20364_v27 = vpack.c.bf16 %v16552_v0, %v16551_v16  ;;  %v16571_v47 = vld [vmem:[%s26030_s8 + $0x1e0] sm:$0xff] }
 0x7e7   : > { %v20388_v60 = vpack.c.bf16 %v16572_v5, %v16571_v47 }
 0x7e8   : > { %19316 = vmatmul.mubr.msk.f32.vlgmr.msra.gmra.mrb[64].mxu1 %vm11141_vm10, %v25627_v10 }
 0x7e9   : > { %19318 = vmatprep.mubr.msk.f32.mxu1 %vm11141_vm10, %v25631_v49  ;;  %20335 = vmatpush3.bf16.msra.mxu1 %v20332_v46  ;;  %v16574_v46 = vld [vmem:[%s26030_s8 + $0x1f8] sm:$0xff] }
 0x7ea   : > { %20337 = vmatprep.subr.bf16.mxu1 %v20336_v50 }
 0x7ec   : > { %19319 = vmatmul.mubr.msk.f32.gmra.mrb[66].mxu1 %vm11141_vm10, %v25641_v58 }
 0x7ed   : > { %19321 = vmatprep.mubr.msk.f32.mxu1 %vm11141_vm10, %v25645_v33  ;;  %20339 = vmatpush3.bf16.msra.mxu1 %v20336_v50  ;;  %v16586_v50 = vld [vmem:[%s26030_s8 + $0x218] sm:$0xff] }
 0x7ee   : > { %20341 = vmatprep.subr.bf16.mxu1 %v20340_v15 }
 0x7f0   : > { %19322 = vmatmul.mubr.msk.f32.gmra.mrb[68].mxu1 %vm11141_vm10, %v25655_v32 }
 0x7f1   : > { %19324 = vmatprep.mubr.msk.f32.mxu1 %vm11141_vm10, %v25659_v38  ;;  %20343 = vmatpush3.bf16.msra.mxu1 %v20340_v15  ;;  %v20404_v15 = vpack.c.bf16 %v16588_v26, %v16587_v30 }
 0x7f2   : > { %20345 = vmatprep.subr.bf16.mxu1 %v20344_v8 }
 0x7f4   : > { %19325 = vmatmul.mubr.msk.f32.gmra.mrb[70].mxu1 %vm11141_vm10, %v25754_v42 }
 0x7f5   : > { %20347 = vmatpush3.bf16.msra.mxu1 %v20344_v8  ;;  %19343 = vmatprep.mubr.msk.f32.mxu1 %vm11141_vm10, %v25561_v34  ;;  %v16541_v34 = vld [vmem:[%s26030_s8 + $0x170] sm:$0xff] }
 0x7f6   : > { %20349 = vmatprep.subr.bf16.mxu1 %v20348_v44  ;;  %v20360_v4 = vpack.c.bf16 %v16542_v29, %v16541_v34 }
 0x7f8   : > { %19344 = vmatmul.mubr.msk.f32.vlgmr.msra.gmra.mrb[64].mxu1 %vm11141_vm10, %v25572_v2 }
 0x7f9   : > { %19346 = vmatprep.mubr.msk.f32.mxu1 %vm11141_vm10, %v25577_v40  ;;  %20351 = vmatpush3.bf16.msra.mxu1 %v20348_v44  ;;  %v12740_v44 = vld [vmem:[#allocation14] sm:$0xff] }
 0x7fa   : > { %20353 = vmatprep.subr.bf16.mxu1 %v20352_v9 }
 0x7fc   : > { %19347 = vmatmul.mubr.msk.f32.gmra.mrb[66].mxu1 %vm11141_vm10, %v25588_v28 }
 0x7fd   : > { %19349 = vmatprep.mubr.msk.f32.mxu1 %vm11141_vm10, %v25592_v23  ;;  %20355 = vmatpush3.bf16.msra.mxu1 %v20352_v9 }
 0x7fe   : > { %20357 = vmatprep.subr.bf16.mxu1 %v20356_v22 }
 0x800   : > { %19350 = vmatmul.mubr.msk.f32.gmra.mrb[68].mxu1 %vm11141_vm10, %v25602_v59 }
 0x801   : > { %19352 = vmatprep.mubr.msk.f32.mxu1 %vm11141_vm10, %v25606_v35  ;;  %20359 = vmatpush3.bf16.msra.mxu1 %v20356_v22 }
 0x802   : > { %20361 = vmatprep.subr.bf16.mxu1 %v20360_v4 }
 0x804   : > { %19353 = vmatmul.mubr.msk.f32.gmra.mrb[70].mxu1 %vm11141_vm10, %v25796_v24 }
 0x805   : > { %20363 = vmatpush3.bf16.msra.mxu1 %v20360_v4  ;;  %19371 = vmatprep.mubr.msk.f32.mxu1 %vm11141_vm10, %v25670_v19  ;;  %v16568_v19 = vld [vmem:[%s26030_s8 + $0x1c8] sm:$0xff] }
 0x806   : > { %20365 = vmatprep.subr.bf16.mxu1 %v20364_v27  ;;  %v20380_v43 = vpack.c.bf16 %v16568_v19, %v16567_v52 }
 0x808   : > { %19372 = vmatmul.mubr.msk.f32.vlgmr.msra.gmra.mrb[64].mxu1 %vm11141_vm10, %v25680_v11 }
 0x809   : > { %19374 = vmatprep.mubr.msk.f32.mxu1 %vm11141_vm10, %v25684_v12  ;;  %20367 = vmatpush3.bf16.msra.mxu1 %v20364_v27 }
 0x80a   : > { %20369 = vmatprep.subr.bf16.mxu1 %v20368_v56 }
 0x80c   : > { %19375 = vmatmul.mubr.msk.f32.gmra.mrb[66].mxu1 %vm11141_vm10, %v25694_v7 }
 0x80d   : > { %19377 = vmatprep.mubr.msk.f32.mxu1 %vm11141_vm10, %v25698_v61  ;;  %20371 = vmatpush3.bf16.msra.mxu1 %v20368_v56 }
 0x80e   : > { %20373 = vmatprep.subr.bf16.mxu1 %v20372_v62 }
 0x810   : > { %19378 = vmatmul.mubr.msk.f32.gmra.mrb[68].mxu1 %vm11141_vm10, %v25708_v45 }
 0x811   : > { %19380 = vmatprep.mubr.msk.f32.mxu1 %vm11141_vm10, %v25712_v55  ;;  %20375 = vmatpush3.bf16.msra.mxu1 %v20372_v62 }
 0x812   : > { %20377 = vmatprep.subr.bf16.mxu1 %v20376_v14 }
 0x814   : > { %19381 = vmatmul.mubr.msk.f32.gmra.mrb[70].mxu1 %vm11141_vm10, %v25838_v20 }
 0x815   : > { %20379 = vmatpush3.bf16.msra.mxu1 %v20376_v14  ;;  %19399 = vmatprep.mubr.msk.f32.mxu1 %vm11141_vm10, %v25627_v10  ;;  %v16573_v10 = vld [vmem:[%s26030_s8 + $0x1f0] sm:$0xff] }
 0x816   : > { %20381 = vmatprep.subr.bf16.mxu1 %v20380_v43 }
 0x818   : > { %19400 = vmatmul.mubr.msk.f32.vlgmr.msra.gmra.mrb[64].mxu1 %vm11141_vm10, %v25631_v49  ;;  %v20392_v49 = vpack.c.bf16 %v16574_v46, %v16573_v10 }
 0x819   : > { %19402 = vmatprep.mubr.msk.f32.mxu1 %vm11141_vm10, %v25641_v58  ;;  %20383 = vmatpush3.bf16.msra.mxu1 %v20380_v43  ;;  %v16583_v58 = vld [vmem:[%s26030_s8 + $0x200] sm:$0xff] }
 0x81a   : > { %20385 = vmatprep.subr.bf16.mxu1 %v20384_v17 }
 0x81c   : > { %19403 = vmatmul.mubr.msk.f32.gmra.mrb[66].mxu1 %vm11141_vm10, %v25645_v33  ;;  %v12096_v33 = vld [vmem:[#allocation6 + $0xdf] sm:$0xff] }
 0x81d   : > { %19405 = vmatprep.mubr.msk.f32.mxu1 %vm11141_vm10, %v25655_v32  ;;  %20387 = vmatpush3.bf16.msra.mxu1 %v20384_v17  ;;  %v20396_v32 = vpack.c.bf16 %v16584_v57, %v16583_v58 }
 0x81e   : > { %20389 = vmatprep.subr.bf16.mxu1 %v20388_v60 }
 0x820   : > { %19406 = vmatmul.mubr.msk.f32.gmra.mrb[68].mxu1 %vm11141_vm10, %v25659_v38  ;;  %v20400_v38 = vpack.c.bf16 %v16586_v50, %v16585_v51 }
 0x821   : > { %19408 = vmatprep.mubr.msk.f32.mxu1 %vm11141_vm10, %v25754_v42  ;;  %20391 = vmatpush3.bf16.msra.mxu1 %v20388_v60  ;;  %v12741_v42 = vld [vmem:[#allocation14 + $0x8] sm:$0xff] }
 0x822   : > { %20393 = vmatprep.subr.bf16.mxu1 %v20392_v49  ;;  %v25929_v36 = vpack.c.bf16 %v12741_v42, %v12740_v44  ;;  %v12742_v42 = vld [vmem:[#allocation14 + $0x10] sm:$0xff] }
 0x824   : > { %19409 = vmatmul.mubr.msk.f32.gmra.mrb[70].mxu1 %vm11141_vm10, %v12096_v33 }
 0x825   : > { %20395 = vmatpush3.bf16.msra.mxu1 %v20392_v49  ;;  %19427 = vmatprep.mubr.msk.f32.mxu1 %vm11141_vm10, %v25572_v2  ;;  %v16589_v2 = vld [vmem:[%s26030_s8 + $0x230] sm:$0xff] }
 0x826   : > { %20397 = vmatprep.subr.bf16.mxu1 %v20396_v32 }
 0x828   : > { %19428 = vmatmul.mubr.msk.f32.vlgmr.msra.gmra.mrb[64].mxu1 %vm11141_vm10, %v25577_v40  ;;  %v20408_v40 = vpack.c.bf16 %v16590_v39, %v16589_v2 }
 0x829   : > { %19430 = vmatprep.mubr.msk.f32.mxu1 %vm11141_vm10, %v25588_v28  ;;  %20399 = vmatpush3.bf16.msra.mxu1 %v20396_v32  ;;  %v12250_v28 = vld [vmem:[#allocation6 + $0xe0] sm:$0xff] }
 0x82a   : > { %20401 = vmatprep.subr.bf16.mxu1 %v20400_v38 }
 0x82c   : > { %19431 = vmatmul.mubr.msk.f32.gmra.mrb[66].mxu1 %vm11141_vm10, %v25592_v23  ;;  %v12404_v23 = vld [vmem:[#allocation6 + $0xe1] sm:$0xff] }
 0x82d   : > { %19433 = vmatprep.mubr.msk.f32.mxu1 %vm11141_vm10, %v25602_v59  ;;  %20403 = vmatpush3.bf16.msra.mxu1 %v20400_v38  ;;  %v12753_v59 = vld [vmem:[#allocation14 + $0x40] sm:$0xff] }
 0x82e   : > { %20405 = vmatprep.subr.bf16.mxu1 %v20404_v15 }
 0x830   : > { %19434 = vmatmul.mubr.msk.f32.gmra.mrb[68].mxu1 %vm11141_vm10, %v25606_v35  ;;  %v12754_v35 = vld [vmem:[#allocation14 + $0x48] sm:$0xff] }
 0x831   : > { %19436 = vmatprep.mubr.msk.f32.mxu1 %vm11141_vm10, %v25796_v24  ;;  %20407 = vmatpush3.bf16.msra.mxu1 %v20404_v15 }
 0x832   : > { %20409 = vmatprep.subr.bf16.mxu1 %v20408_v40 }
 0x834   : > { %19437 = vmatmul.mubr.msk.f32.gmra.mrb[70].mxu1 %vm11141_vm10, %v12250_v28 }
 0x835   : > { %20411 = vmatpush3.bf16.msra.mxu1 %v20408_v40  ;;  %19455 = vmatprep.mubr.msk.f32.mxu1 %vm11141_vm10, %v25680_v11  ;;  %v20412_v11 = vpack.c.bf16 %v12754_v35, %v12753_v59 }
 0x837   : > { %20413 = vmatprep.subr.bf16.mxu1 %v20412_v11 }
 0x838   : > { %19456 = vmatmul.mubr.msk.f32.vlgmr.msra.gmra.mrb[64].mxu1 %vm11141_vm10, %v25684_v12  ;;  %v12755_v12 = vld [vmem:[#allocation14 + $0x50] sm:$0xff] }
 0x839   : > { %19458 = vmatprep.mubr.msk.f32.mxu1 %vm11141_vm10, %v25694_v7  ;;  %20415 = vmatpush3.bf16.msra.mxu1 %v20412_v11  ;;  %v12756_v7 = vld [vmem:[#allocation14 + $0x58] sm:$0xff] }
 0x83c   : > { %19459 = vmatmul.mubr.msk.f32.gmra.mrb[66].mxu1 %vm11141_vm10, %v25698_v61  ;;  %v20416_v61 = vpack.c.bf16 %v12756_v7, %v12755_v12 }
 0x83d   : > { %19461 = vmatprep.mubr.msk.f32.mxu1 %vm11141_vm10, %v25708_v45  ;;  %v12757_v45 = vld [vmem:[#allocation14 + $0x60] sm:$0xff] }
 0x83e   : > { %20417 = vmatprep.subr.bf16.mxu1 %v20416_v61  ;;  %v20420_v8 = vpack.c.bf16 %v12758_v48, %v12757_v45 }
 0x83f   : > { %20419 = vmatpush3.bf16.msra.mxu1 %v20416_v61 }
 0x840   : > { %19462 = vmatmul.mubr.msk.f32.gmra.mrb[68].mxu1 %vm11141_vm10, %v25712_v55  ;;  %20421 = vmatprep.subr.bf16.mxu1 %v20420_v8  ;;  %v12759_v55 = vld [vmem:[#allocation14 + $0x70] sm:$0xff] }
 0x841   : > { %19464 = vmatprep.mubr.msk.f32.mxu1 %vm11141_vm10, %v25838_v20  ;;  %v20424_v53 = vpack.c.bf16 %v12760_v31, %v12759_v55 }
 0x843   : > { %20423 = vmatpush3.bf16.msra.mxu1 %v20420_v8 }
 0x844   : > { %19465 = vmatmul.mubr.msk.f32.gmra.mrb[70].mxu1 %vm11141_vm10, %v12404_v23  ;;  %20425 = vmatprep.subr.bf16.mxu1 %v20424_v53 }
 0x847   : > { %20427 = vmatpush3.bf16.msra.mxu1 %v20424_v53 }
 0x848   : > { %20429 = vmatprep.subr.bf16.mxu1 %v25929_v36 }
 0x90b   : > { %v19457_v9 = vpop.f32.mrb[64].mxu1 }
 0x90c   : > { %v12559_v13 = vadd.f32 %v19457_v9, %v16599_v25  ;;  %v12504_v18 = vpop.f32.mrb[65].mxu1  ;;  %v12743_v9 = vld [vmem:[#allocation14 + $0x18] sm:$0xff] }
 0x90d   : > { %v12558_v22 = vadd.f32 %v16599_v25, %v12504_v18  ;;  %v12744_v18 = vld [vmem:[#allocation14 + $0x20] sm:$0xff] }
 0x90e   : > { %v12567_v34 = vmax.f32 %v12559_v13, 0.0 }
 0x90f   : > { %v12566_v29 = vmax.f32 %v12558_v22, 0.0  ;;  %v19460_v4 = vpop.f32.mrb[66].mxu1 }
 0x910   : > { %v12575_v16 = vsel %vm11141_vm10, %v12567_v34, 0.0  ;;  %v12598_v0 = vsel %vm11141_vm10, %v12567_v34, -inf  ;;  %v12561_v27 = vadd.f32 %v19460_v4, %v16599_v25  ;;  %v12514_v24 = vpop.f32.mrb[67].mxu1  ;;  %v20432_v34 = vpack.c.bf16 %v12743_v9, %v12742_v42  ;;  %v13240_v9 = vld [vmem:[#allocation14 + $0x160] sm:$0xff] }
 0x911   : > { %v12574_v6 = vsel %vm11141_vm10, %v12566_v29, 0.0  ;;  %v12597_v63 = vsel %vm11141_vm10, %v12566_v29, -inf  ;;  %v12560_v56 = vadd.f32 %v16599_v25, %v12514_v24 }
 0x912   : > { %v12576_v54 = vadd.f32 %v12575_v16, %v12574_v6  ;;  %v12599_v37 = vmax.f32 %v12597_v63, %v12598_v0  ;;  %v12569_v62 = vmax.f32 %v12561_v27, 0.0  ;;  %v12745_v16 = vld [vmem:[#allocation14 + $0x28] sm:$0xff]  ;;  %v12746_v6 = vld [vmem:[#allocation14 + $0x30] sm:$0xff]  ;;  %v12747_v63 = vld [vmem:[#allocation14 + $0x38] sm:$0xff] }
 0x913   : > { %v12568_v21 = vmax.f32 %v12560_v56, 0.0  ;;  %v19463_v1 = vpop.f32.mrb[68].mxu1  ;;  %v20436_v27 = vpack.c.bf16 %v12745_v16, %v12744_v18  ;;  %v20440_v56 = vpack.c.bf16 %v12747_v63, %v12746_v6  ;;  %v13338_v16 = vld [vmem:[#allocation14 + $0x188] sm:$0xff]  ;;  %v14562_v63 = vld [vmem:[#allocation17 + $0x98] sm:$0xff] }
 0x914   : > { %v12632_v14 = vrot.slane %v12599_v37, 1  ;;  %v12601_v52 = vsel %vm11141_vm10, %v12569_v62, -inf  ;;  %v12563_v19 = vadd.f32 %v19463_v1, %v16599_v25  ;;  %v12524_v43 = vpop.f32.mrb[69].mxu1  ;;  %v12579_v10 = vsel %vm11141_vm10, %v12569_v62, 0.0  ;;  %v12938_v62 = vld [vmem:[#allocation14 + $0x90] sm:$0xff] }
 0x915   : > { %v12577_v20 = vsel %vm11141_vm10, %v12568_v21, 0.0  ;;  %v12600_v41 = vsel %vm11141_vm10, %v12568_v21, -inf  ;;  %v12562_v3 = vadd.f32 %v16599_v25, %v12524_v43  ;;  %v12939_v21 = vld [vmem:[#allocation14 + $0x98] sm:$0xff]  ;;  %v12941_v43 = vld [vmem:[#allocation14 + $0xa8] sm:$0xff] }
 0x916   : > { %v12640_v17 = vmax.f32 %v12599_v37, %v12632_v14  ;;  %v12578_v47 = vadd.f32 %v12577_v20, %v12576_v54  ;;  %v12602_v5 = vmax.f32 %v12600_v41, %v12601_v52  ;;  %v12571_v60 = vmax.f32 %v12563_v19, 0.0  ;;  %v12936_v54 = vld [vmem:[#allocation14 + $0x80] sm:$0xff]  ;;  %v12937_v37 = vld [vmem:[#allocation14 + $0x88] sm:$0xff]  ;;  %v12942_v41 = vld [vmem:[#allocation14 + $0xb0] sm:$0xff] }
 0x917   : > { %v12570_v46 = vmax.f32 %v12562_v3, 0.0  ;;  %v19466_v49 = vpop.f32.mrb[70].mxu1  ;;  %v20448_v14 = vpack.c.bf16 %v12939_v21, %v12938_v62  ;;  %v12940_v19 = vld [vmem:[#allocation14 + $0xa0] sm:$0xff]  ;;  %v12943_v3 = vld [vmem:[#allocation14 + $0xb8] sm:$0xff]  ;;  %v14564_v21 = vld [vmem:[#allocation17 + $0xa8] sm:$0xff] }
 0x918   : > { %12645 = vst.msk [vmem:[#allocation7 + $0x20] sm:$0x1] %vm12595_vm11, %v12640_v17  ;;  %v12633_v58 = vrot.slane %v12602_v5, 1  ;;  %v12604_v57 = vsel %vm11141_vm10, %v12571_v60, -inf  ;;  %v12580_v33 = vadd.f32 %v12579_v10, %v12578_v47  ;;  %v12534_v32 = vpop.f32.mrb[71].mxu1  ;;  %v12565_v38 = vadd.f32 %v19466_v49, %v16599_v25  ;;  %v13036_v47 = vld [vmem:[#allocation14 + $0xc0] sm:$0xff] }
 0x919   : > { %12650 = vst.msk [vmem:[#allocation7 + $0x1f] sm:$0x4] %vm12649_vm12, %v12640_v17  ;;  %v12581_v51 = vsel %vm11141_vm10, %v12570_v46, 0.0  ;;  %v12603_v50 = vsel %vm11141_vm10, %v12570_v46, -inf  ;;  %v12564_v30 = vadd.f32 %v16599_v25, %v12534_v32  ;;  %v12583_v39 = vsel %vm11141_vm10, %v12571_v60, 0.0  ;;  %v13038_v10 = vld [vmem:[#allocation14 + $0xd0] sm:$0xff] }
 0x91a   : > { %12655 = vst.msk [vmem:[#allocation7 + $0x1e] sm:$0x10] %vm12654_vm13, %v12640_v17  ;;  %v12641_v26 = vmax.f32 %v12602_v5, %v12633_v58  ;;  %v12582_v15 = vadd.f32 %v12581_v51, %v12580_v33  ;;  %v12605_v2 = vmax.f32 %v12603_v50, %v12604_v57  ;;  %v12573_v40 = vmax.f32 %v12565_v38, 0.0  ;;  %v13037_v5 = vld [vmem:[#allocation14 + $0xc8] sm:$0xff]  ;;  %v13039_v46 = vld [vmem:[#allocation14 + $0xd8] sm:$0xff]  ;;  %v13040_v33 = vld [vmem:[#allocation14 + $0xe0] sm:$0xff] }
 0x91b   : > { %12660 = vst.msk [vmem:[#allocation7 + $0x1d] sm:$0x40] %vm12659_vm14, %v12640_v17  ;;  %v12572_v28 = vmax.f32 %v12564_v30, 0.0  ;;  %v20452_v20 = vpack.c.bf16 %v12941_v43, %v12940_v19  ;;  %v20456_v17 = vpack.c.bf16 %v12943_v3, %v12942_v41  ;;  %v20460_v60 = vpack.c.bf16 %v13037_v5, %v13036_v47  ;;  %v13041_v32 = vld [vmem:[#allocation14 + $0xe8] sm:$0xff]  ;;  %v13042_v50 = vld [vmem:[#allocation14 + $0xf0] sm:$0xff]  ;;  %v13043_v38 = vld [vmem:[#allocation14 + $0xf8] sm:$0xff] }
 0x91c   : > { %12646 = vst.msk [vmem:[#allocation7 + $0x38] sm:$0x1] %vm12595_vm11, %v12641_v26  ;;  %v12634_v23 = vrot.slane %v12605_v2, 1  ;;  %v12584_v59 = vadd.f32 %v12583_v39, %v12582_v15  ;;  %v12607_v35 = vsel %vm11141_vm10, %v12573_v40, -inf  ;;  %v12587_v61 = vsel %vm11141_vm10, %v12573_v40, 0.0  ;;  %v13137_v15 = vld [vmem:[#allocation14 + $0x108] sm:$0xff] }
 0x91d   : > { %12651 = vst.msk [vmem:[#allocation7 + $0x37] sm:$0x4] %vm12649_vm12, %v12641_v26  ;;  %v12585_v11 = vsel %vm11141_vm10, %v12572_v28, 0.0  ;;  %v12606_v12 = vsel %vm11141_vm10, %v12572_v28, -inf  ;;  %v20464_v58 = vpack.c.bf16 %v13039_v46, %v13038_v10  ;;  %v20468_v51 = vpack.c.bf16 %v13041_v32, %v13040_v33  ;;  %v13138_v39 = vld [vmem:[#allocation14 + $0x110] sm:$0xff]  ;;  %v13139_v40 = vld [vmem:[#allocation14 + $0x118] sm:$0xff] }
 0x91e   : > { %12656 = vst.msk [vmem:[#allocation7 + $0x36] sm:$0x10] %vm12654_vm13, %v12641_v26  ;;  %v12642_v7 = vmax.f32 %v12605_v2, %v12634_v23  ;;  %v12586_v45 = vadd.f32 %v12585_v11, %v12584_v59  ;;  %v12608_v48 = vmax.f32 %v12606_v12, %v12607_v35  ;;  %v20472_v30 = vpack.c.bf16 %v13043_v38, %v13042_v50  ;;  %v13140_v35 = vld [vmem:[#allocation14 + $0x120] sm:$0xff]  ;;  %v13141_v11 = vld [vmem:[#allocation14 + $0x128] sm:$0xff]  ;;  %v14565_v19 = vld [vmem:[#allocation17 + $0xb0] sm:$0xff] }
 0x91f   : > { %12661 = vst.msk [vmem:[#allocation7 + $0x35] sm:$0x40] %vm12659_vm14, %v12641_v26  ;;  %v13136_v26 = vld [vmem:[#allocation14 + $0x100] sm:$0xff]  ;;  %v20480_v23 = vpack.c.bf16 %v13139_v40, %v13138_v39  ;;  %v20484_v12 = vpack.c.bf16 %v13141_v11, %v13140_v35  ;;  %v14566_v43 = vld [vmem:[#allocation17 + $0xb8] sm:$0xff]  ;;  %v13342_v3 = vld [vmem:[#allocation14 + $0x1a8] sm:$0xff] }
 0x920   : > { %12647 = vst.msk [vmem:[#allocation7 + $0x50] sm:$0x1] %vm12595_vm11, %v12642_v7  ;;  %v12588_v55 = vadd.f32 %v12587_v61, %v12586_v45  ;;  %v12635_v31 = vrot.slane %v12608_v48, 1  ;;  %v20476_v2 = vpack.c.bf16 %v13137_v15, %v13136_v26  ;;  %v13143_v61 = vld [vmem:[#allocation14 + $0x138] sm:$0xff]  ;;  %v14563_v62 = vld [vmem:[#allocation17 + $0xa0] sm:$0xff]  ;;  %v13343_v10 = vld [vmem:[#allocation14 + $0x1b0] sm:$0xff] }
 0x921   : > { %12652 = vst.msk [vmem:[#allocation7 + $0x4f] sm:$0x4] %vm12649_vm12, %v12642_v7  ;;  %v21744_v4 = vld [vmem:[#allocation7 + $0x7] ss:$24 sps:$4 sm:$0xff]   ;;  %v13443_v40 = vld [vmem:[#allocation14 + $0x1f0] sm:$0xff] }
 0x922   : > { %v21742_v8 = vld [vmem:[#allocation7 + $0x8] ss:$24 sps:$4 sm:$0xff]   ;;  %12657 = vst.msk [vmem:[#allocation7 + $0x4e] sm:$0x10] %vm12654_vm13, %v12642_v7  ;;  %v12589_v53 = vrot.slane %v12588_v55, 4  ;;  %v12643_v44 = vmax.f32 %v12608_v48, %v12635_v31  ;;  %v13238_v31 = vld [vmem:[#allocation14 + $0x150] sm:$0xff] }
 0x923   : > { %12662 = vst.msk [vmem:[#allocation7 + $0x4d] sm:$0x40] %vm12659_vm14, %v12642_v7  ;;  %19483 = vmatprep.mubr.msk.f32.mxu1 %vm11141_vm10, %v21742_v8  ;;  %v21746_v52 = vld [vmem:[#allocation7 + $0x9] ss:$24 sps:$4 sm:$0xff]   ;;  %v13142_v7 = vld [vmem:[#allocation14 + $0x130] sm:$0xff]  ;;  %v13344_v46 = vld [vmem:[#allocation14 + $0x1b8] sm:$0xff] }
 0x924   : > { %v12590_v25 = vadd.f32 %v12589_v53, %v12588_v55  ;;  %12648 = vst.msk [vmem:[#allocation7 + $0x68] sm:$0x1] %vm12595_vm11, %v12643_v44  ;;  %v20488_v45 = vpack.c.bf16 %v13143_v61, %v13142_v7  ;;  %v13236_v48 = vld [vmem:[#allocation14 + $0x140] sm:$0xff]  ;;  %v13237_v8 = vld [vmem:[#allocation14 + $0x148] sm:$0xff]  ;;  %v13239_v53 = vld [vmem:[#allocation14 + $0x158] sm:$0xff] }
 0x925   : > { %12653 = vst.msk [vmem:[#allocation7 + $0x67] sm:$0x4] %vm12649_vm12, %v12643_v44  ;;  %v21748_v57 = vld [vmem:[#allocation7 + $0x1f] ss:$24 sps:$4 sm:$0xff]   ;;  %v20492_v55 = vpack.c.bf16 %v13237_v8, %v13236_v48  ;;  %v20496_v42 = vpack.c.bf16 %v13239_v53, %v13238_v31  ;;  %v13438_v33 = vld [vmem:[#allocation14 + $0x1c8] sm:$0xff] }
 0x926   : > { %12658 = vst.msk [vmem:[#allocation7 + $0x66] sm:$0x10] %vm12654_vm13, %v12643_v44  ;;  %v12591_v13 = vrot.slane %v12590_v25, 2  ;;  %v21750_v59 = vld [vmem:[#allocation7 + $0x20] ss:$24 sps:$4 sm:$0xff]   ;;  %v13538_v35 = vld [vmem:[#allocation14 + $0x208] sm:$0xff] }
 0x927   : > { %12663 = vst.msk [vmem:[#allocation7 + $0x65] sm:$0x40] %vm12659_vm14, %v12643_v44  ;;  %v13341_v41 = vld [vmem:[#allocation14 + $0x1a0] sm:$0xff]  ;;  %v13440_v50 = vld [vmem:[#allocation14 + $0x1d8] sm:$0xff]  ;;  %v13543_v53 = vld [vmem:[#allocation14 + $0x230] sm:$0xff] }
 0x928   : > { %v12592_v29 = vadd.f32 %v12591_v13, %v12590_v25  ;;  %v21752_v25 = vld [vmem:[#allocation7 + $0x21] ss:$24 sps:$4 sm:$0xff]   ;;  %v13241_v13 = vld [vmem:[#allocation14 + $0x168] sm:$0xff]  ;;  %v20516_v47 = vpack.c.bf16 %v13342_v3, %v13341_v41  ;;  %v13926_v3 = vld [vmem:[#allocation15 + $0x70] sm:$0xff] }
 0x929   : > { %v21745_v1 = vld [vmem:[#allocation7 + $0x37] ss:$24 sps:$4 sm:$0xff]   ;;  %v20500_v18 = vpack.c.bf16 %v13241_v13, %v13240_v9  ;;  %v14567_v5 = vld [vmem:[#allocation17 + $0xc0] sm:$0xff] }
 0x92a   : > { %v21743_v22 = vld [vmem:[#allocation7 + $0x38] ss:$24 sps:$4 sm:$0xff]   ;;  %v12593_v0 = vrot.slane %v12592_v29, 1  ;;  %v13441_v15 = vld [vmem:[#allocation14 + $0x1e0] sm:$0xff]  ;;  %v13637_v9 = vld [vmem:[#allocation15 + $0x8] sm:$0xff] }
 0x92b   : > { %19484 = vmatmul.mubr.msk.f32.vlgmr.msra.gmra.mrb[72].mxu1 %vm11141_vm10, %v21743_v22  ;;  %v21747_v49 = vld [vmem:[#allocation7 + $0x39] ss:$24 sps:$4 sm:$0xff]   ;;  %v13541_v8 = vld [vmem:[#allocation14 + $0x220] sm:$0xff] }
 0x92c   : > { %20431 = vmatpush3.bf16.msra.mxu1 %v25929_v36  ;;  %19502 = vmatprep.mubr.msk.f32.mxu1 %vm11141_vm10, %v21744_v4  ;;  %v12594_v24 = vadd.f32 %v12593_v0, %v12592_v29  ;;  %v20444_v36 = vpack.c.bf16 %v12937_v37, %v12936_v54  ;;  %v13242_v22 = vld [vmem:[#allocation14 + $0x170] sm:$0xff]  ;;  %v13337_v4 = vld [vmem:[#allocation14 + $0x180] sm:$0xff]  ;;  %v13540_v7 = vld [vmem:[#allocation14 + $0x218] sm:$0xff] }
 0x92d   : > { %20433 = vmatprep.subr.bf16.mxu1 %v20432_v34  ;;  %v21749_v28 = vld [vmem:[#allocation7 + $0x4f] ss:$24 sps:$4 sm:$0xff]  }
 0x92e   : > { %12596 = vst.msk [vmem:[%s666_s25] sm:$0x1] %vm12595_vm11, %v12594_v24  ;;  %v21751_v44 = vld [vmem:[#allocation7 + $0x50] ss:$24 sps:$4 sm:$0xff]   ;;  %v14559_v0 = vld [vmem:[#allocation17 + $0x80] sm:$0xff] }
 0x92f   : > { %v14561_v24 = vld [vmem:[#allocation17 + $0x90] sm:$0xff]  ;;  %v21755_v38 = vld [vmem:[#allocation7 + $0x67] ss:$24 sps:$4 sm:$0xff]  }
 0x930   : > { %20435 = vmatpush3.bf16.msra.mxu1 %v20432_v34  ;;  %v13243_v34 = vld [vmem:[#allocation14 + $0x178] sm:$0xff]  ;;  %v13339_v54 = vld [vmem:[#allocation14 + $0x190] sm:$0xff]  ;;  %v20632_v37 = vpack.c.bf16 %v14562_v63, %v14561_v24  ;;  %v21757_v61 = vld [vmem:[#allocation7 + $0x68] ss:$24 sps:$4 sm:$0xff]  }
 0x931   : > { %20437 = vmatprep.subr.bf16.mxu1 %v20436_v27  ;;  %v20504_v29 = vpack.c.bf16 %v13243_v34, %v13242_v22  ;;  %v21756_v26 = vld [vmem:[#allocation7 + $0x38] ss:$24 sps:$4 sm:$0xff]   ;;  %v21759_v34 = vld [vmem:[#allocation7 + $0x69] ss:$24 sps:$4 sm:$0xff]  }
 0x932   : > { %v21758_v48 = vld [vmem:[#allocation7 + $0x39] ss:$24 sps:$4 sm:$0xff]   ;;  %v21761_v63 = vld [vmem:[#allocation8 + $0x37] ss:$24 sps:$4 sm:$0xff]  }
 0x933   : > { %v13639_v22 = vld [vmem:[#allocation15 + $0x18] sm:$0xff]  ;;  %v13734_v24 = vld [vmem:[#allocation15 + $0x30] sm:$0xff] }
 0x934   : > { %20439 = vmatpush3.bf16.msra.mxu1 %v20436_v27  ;;  %v14560_v27 = vld [vmem:[#allocation17 + $0x88] sm:$0xff] }
 0x935   : > { %20441 = vmatprep.subr.bf16.mxu1 %v20440_v56  ;;  %v20628_v6 = vpack.c.bf16 %v14560_v27, %v14559_v0  ;;  %v13733_v0 = vld [vmem:[#allocation15 + $0x28] sm:$0xff] }
 0x937   : > { %20629 = vmatprep.subr.bf16.mxu0 %v20628_v6 }
 0x938   : > { %20443 = vmatpush3.bf16.msra.mxu1 %v20440_v56  ;;  %v20508_v56 = vpack.c.bf16 %v13338_v16, %v13337_v4  ;;  %20631 = vmatpush3.bf16.msra.mxu0 %v20628_v6  ;;  %v21760_v4 = vld [vmem:[#allocation8 + $0x7] ss:$24 sps:$4 sm:$0xff]   ;;  %v13732_v16 = vld [vmem:[#allocation15 + $0x20] sm:$0xff] }
 0x939   : > { %20445 = vmatprep.subr.bf16.mxu1 %v20444_v36  ;;  %20633 = vmatprep.subr.bf16.mxu0 %v20632_v37  ;;  %v20564_v27 = vpack.c.bf16 %v13733_v0, %v13732_v16  ;;  %v13735_v6 = vld [vmem:[#allocation15 + $0x38] sm:$0xff]  ;;  %v14569_v0 = vld [vmem:[#allocation17 + $0xd0] sm:$0xff] }
 0x93a   : > { %v21777_v16 = vld [vmem:[#allocation8 + $0x69] ss:$24 sps:$4 sm:$0xff]  }
 0x93b   : > { %19503 = vmatmul.mubr.msk.f32.vlgmr.msra.gmra.mrb[72].mxu1 %vm11141_vm10, %v21745_v1  ;;  %v21753_v1 = vld [vmem:[#allocation7 + $0x51] ss:$24 sps:$4 sm:$0xff]  }
 0x93c   : > { %20447 = vmatpush3.bf16.msra.mxu1 %v20444_v36  ;;  %19521 = vmatprep.mubr.msk.f32.mxu1 %vm11141_vm10, %v21746_v52  ;;  %v13340_v36 = vld [vmem:[#allocation14 + $0x198] sm:$0xff]  ;;  %v20636_v52 = vpack.c.bf16 %v14564_v21, %v14563_v62  ;;  %v13830_v21 = vld [vmem:[#allocation15 + $0x50] sm:$0xff] }
 0x93d   : > { %20449 = vmatprep.subr.bf16.mxu1 %v20448_v14  ;;  %20635 = vmatpush3.bf16.msra.mxu0 %v20632_v37  ;;  %v13828_v37 = vld [vmem:[#allocation15 + $0x40] sm:$0xff] }
 0x93e   : > { %20637 = vmatprep.subr.bf16.mxu0 %v20636_v52 }
 0x940   : > { %20451 = vmatpush3.bf16.msra.mxu1 %v20448_v14  ;;  %v20512_v14 = vpack.c.bf16 %v13340_v36, %v13339_v54  ;;  %v21762_v54 = vld [vmem:[#allocation8 + $0x8] ss:$24 sps:$4 sm:$0xff]   ;;  %v13829_v36 = vld [vmem:[#allocation15 + $0x48] sm:$0xff] }
 0x941   : > { %20453 = vmatprep.subr.bf16.mxu1 %v20452_v20  ;;  %20639 = vmatpush3.bf16.msra.mxu0 %v20636_v52  ;;  %v20572_v62 = vpack.c.bf16 %v13829_v36, %v13828_v37  ;;  %v14574_v37 = vld [vmem:[#allocation17 + $0xf8] sm:$0xff] }
 0x944   : > { %20455 = vmatpush3.bf16.msra.mxu1 %v20452_v20  ;;  %v21754_v20 = vld [vmem:[#allocation7 + $0x37] ss:$24 sps:$4 sm:$0xff]  }
 0x945   : > { %20457 = vmatprep.subr.bf16.mxu1 %v20456_v17 }
 0x948   : > { %20459 = vmatpush3.bf16.msra.mxu1 %v20456_v17  ;;  %v20640_v17 = vpack.c.bf16 %v14566_v43, %v14565_v19  ;;  %v21764_v19 = vld [vmem:[#allocation8 + $0x9] ss:$24 sps:$4 sm:$0xff]   ;;  %v13924_v43 = vld [vmem:[#allocation15 + $0x60] sm:$0xff] }
 0x949   : > { %20461 = vmatprep.subr.bf16.mxu1 %v20460_v60 }
 0x94a   : > { %20641 = vmatprep.subr.bf16.mxu0 %v20640_v17 }
 0x94b   : > { %19522 = vmatmul.mubr.msk.f32.vlgmr.msra.gmra.mrb[72].mxu1 %vm11141_vm10, %v21747_v49  ;;  %20643 = vmatpush3.bf16.msra.mxu0 %v20640_v17  ;;  %v13927_v17 = vld [vmem:[#allocation15 + $0x78] sm:$0xff] }
 0x94c   : > { %20463 = vmatpush3.bf16.msra.mxu1 %v20460_v60  ;;  %19540 = vmatprep.mubr.msk.f32.mxu1 %vm11141_vm10, %v21748_v57  ;;  %v14568_v60 = vld [vmem:[#allocation17 + $0xc8] sm:$0xff]  ;;  %v13437_v57 = vld [vmem:[#allocation14 + $0x1c0] sm:$0xff] }
 0x94d   : > { %20465 = vmatprep.subr.bf16.mxu1 %v20464_v58  ;;  %v20644_v49 = vpack.c.bf16 %v14568_v60, %v14567_v5  ;;  %v20524_v32 = vpack.c.bf16 %v13438_v33, %v13437_v57  ;;  %v20584_v5 = vpack.c.bf16 %v13927_v17, %v13926_v3  ;;  %v21766_v60 = vld [vmem:[#allocation8 + $0x1f] ss:$24 sps:$4 sm:$0xff]   ;;  %v14023_v57 = vld [vmem:[#allocation15 + $0x98] sm:$0xff] }
 0x94e   : > { %v21767_v33 = vld [vmem:[#allocation8 + $0x4f] ss:$24 sps:$4 sm:$0xff]  }
 0x94f   : > { %20645 = vmatprep.subr.bf16.mxu0 %v20644_v49  ;;  %v14540_v17 = vld [vmem:[#allocation17 + $0x10] sm:$0xff] }
 0x950   : > { %20467 = vmatpush3.bf16.msra.mxu1 %v20464_v58  ;;  %v20520_v58 = vpack.c.bf16 %v13344_v46, %v13343_v10  ;;  %20647 = vmatpush3.bf16.msra.mxu0 %v20644_v49  ;;  %v14020_v10 = vld [vmem:[#allocation15 + $0x80] sm:$0xff]  ;;  %v14021_v46 = vld [vmem:[#allocation15 + $0x88] sm:$0xff] }
 0x951   : > { %20469 = vmatprep.subr.bf16.mxu1 %v20468_v51  ;;  %v20588_v49 = vpack.c.bf16 %v14021_v46, %v14020_v10 }
 0x954   : > { %20471 = vmatpush3.bf16.msra.mxu1 %v20468_v51  ;;  %v13439_v51 = vld [vmem:[#allocation14 + $0x1d0] sm:$0xff] }
 0x955   : > { %20473 = vmatprep.subr.bf16.mxu1 %v20472_v30 }
 0x958   : > { %20475 = vmatpush3.bf16.msra.mxu1 %v20472_v30  ;;  %v20528_v30 = vpack.c.bf16 %v13440_v50, %v13439_v51  ;;  %v21768_v51 = vld [vmem:[#allocation8 + $0x20] ss:$24 sps:$4 sm:$0xff]   ;;  %v14116_v50 = vld [vmem:[#allocation15 + $0xa0] sm:$0xff] }
 0x959   : > { %20477 = vmatprep.subr.bf16.mxu1 %v20476_v2 }
 0x95b   : > { %19541 = vmatmul.mubr.msk.f32.vlgmr.msra.gmra.mrb[72].mxu1 %vm11141_vm10, %v21749_v28  ;;  %v13444_v28 = vld [vmem:[#allocation14 + $0x1f8] sm:$0xff] }
 0x95c   : > { %20479 = vmatpush3.bf16.msra.mxu1 %v20476_v2  ;;  %19559 = vmatprep.mubr.msk.f32.mxu1 %vm11141_vm10, %v21750_v59  ;;  %v13442_v2 = vld [vmem:[#allocation14 + $0x1e8] sm:$0xff]  ;;  %v13537_v59 = vld [vmem:[#allocation14 + $0x200] sm:$0xff] }
 0x95d   : > { %20481 = vmatprep.subr.bf16.mxu1 %v20480_v23  ;;  %v20532_v39 = vpack.c.bf16 %v13442_v2, %v13441_v15  ;;  %v20540_v11 = vpack.c.bf16 %v13538_v35, %v13537_v59  ;;  %v14119_v15 = vld [vmem:[#allocation15 + $0xb8] sm:$0xff]  ;;  %v14215_v35 = vld [vmem:[#allocation15 + $0xd0] sm:$0xff] }
 0x95e   : > { %v21769_v2 = vld [vmem:[#allocation8 + $0x50] ss:$24 sps:$4 sm:$0xff]  }
 0x960   : > { %20483 = vmatpush3.bf16.msra.mxu1 %v20480_v23  ;;  %v20536_v23 = vpack.c.bf16 %v13444_v28, %v13443_v40  ;;  %v21770_v40 = vld [vmem:[#allocation8 + $0x21] ss:$24 sps:$4 sm:$0xff]   ;;  %v14213_v28 = vld [vmem:[#allocation15 + $0xc0] sm:$0xff] }
 0x961   : > { %20485 = vmatprep.subr.bf16.mxu1 %v20484_v12 }
 0x964   : > { %20487 = vmatpush3.bf16.msra.mxu1 %v20484_v12  ;;  %v13539_v12 = vld [vmem:[#allocation14 + $0x210] sm:$0xff] }
 0x965   : > { %20489 = vmatprep.subr.bf16.mxu1 %v20488_v45 }
 0x968   : > { %20491 = vmatpush3.bf16.msra.mxu1 %v20488_v45  ;;  %v20544_v45 = vpack.c.bf16 %v13540_v7, %v13539_v12  ;;  %v21771_v12 = vld [vmem:[#allocation8 + $0x51] ss:$24 sps:$4 sm:$0xff]  }
 0x969   : > { %20493 = vmatprep.subr.bf16.mxu1 %v20492_v55 }
 0x96b   : > { %19560 = vmatmul.mubr.msk.f32.vlgmr.msra.gmra.mrb[72].mxu1 %vm11141_vm10, %v21751_v44  ;;  %v13544_v44 = vld [vmem:[#allocation14 + $0x238] sm:$0xff] }
 0x96c   : > { %20495 = vmatpush3.bf16.msra.mxu1 %v20492_v55  ;;  %19578 = vmatprep.mubr.msk.f32.mxu1 %vm11141_vm10, %v21752_v25  ;;  %v13542_v55 = vld [vmem:[#allocation14 + $0x228] sm:$0xff]  ;;  %v13636_v25 = vld [vmem:[#allocation15] sm:$0xff] }
 0x96d   : > { %20497 = vmatprep.subr.bf16.mxu1 %v20496_v42  ;;  %v20548_v31 = vpack.c.bf16 %v13542_v55, %v13541_v8  ;;  %v20556_v13 = vpack.c.bf16 %v13637_v9, %v13636_v25  ;;  %v14311_v55 = vld [vmem:[#allocation15 + $0xf0] sm:$0xff]  ;;  %v14405_v25 = vld [vmem:[#allocation15 + $0x100] sm:$0xff]  ;;  %v14406_v9 = vld [vmem:[#allocation15 + $0x108] sm:$0xff] }
 0x970   : > { %20499 = vmatpush3.bf16.msra.mxu1 %v20496_v42  ;;  %v20552_v42 = vpack.c.bf16 %v13544_v44, %v13543_v53  ;;  %v21773_v53 = vld [vmem:[#allocation8 + $0x67] ss:$24 sps:$4 sm:$0xff]  }
 0x971   : > { %20501 = vmatprep.subr.bf16.mxu1 %v20500_v18 }
 0x974   : > { %20503 = vmatpush3.bf16.msra.mxu1 %v20500_v18  ;;  %v13638_v18 = vld [vmem:[#allocation15 + $0x10] sm:$0xff] }
 0x975   : > { %20505 = vmatprep.subr.bf16.mxu1 %v20504_v29 }
 0x978   : > { %20507 = vmatpush3.bf16.msra.mxu1 %v20504_v29  ;;  %v20560_v29 = vpack.c.bf16 %v13639_v22, %v13638_v18  ;;  %v14407_v18 = vld [vmem:[#allocation15 + $0x110] sm:$0xff]  ;;  %v14408_v22 = vld [vmem:[#allocation15 + $0x118] sm:$0xff] }
 0x979   : > { %20509 = vmatprep.subr.bf16.mxu1 %v20508_v56 }
 0x97b   : > { %19579 = vmatmul.mubr.msk.f32.vlgmr.msra.gmra.mrb[72].mxu1 %vm11141_vm10, %v21753_v1  ;;  %v13831_v1 = vld [vmem:[#allocation15 + $0x58] sm:$0xff] }
 0x97c   : > { %20511 = vmatpush3.bf16.msra.mxu1 %v20508_v56  ;;  %19597 = vmatprep.mubr.msk.f32.mxu1 %vm11141_vm10, %v21754_v20  ;;  %v20568_v56 = vpack.c.bf16 %v13735_v6, %v13734_v24  ;;  %v20576_v52 = vpack.c.bf16 %v13831_v1, %v13830_v21  ;;  %v13925_v20 = vld [vmem:[#allocation15 + $0x68] sm:$0xff]  ;;  %v14571_v24 = vld [vmem:[#allocation17 + $0xe0] sm:$0xff] }
 0x97d   : > { %20513 = vmatprep.subr.bf16.mxu1 %v20512_v14  ;;  %v20580_v41 = vpack.c.bf16 %v13925_v20, %v13924_v43  ;;  %v14539_v21 = vld [vmem:[#allocation17 + $0x8] sm:$0xff] }
 0x980   : > { %20515 = vmatpush3.bf16.msra.mxu1 %v20512_v14  ;;  %v21763_v14 = vld [vmem:[#allocation8 + $0x38] ss:$24 sps:$4 sm:$0xff]  }
 0x981   : > { %20517 = vmatprep.subr.bf16.mxu1 %v20516_v47 }
 0x984   : > { %20519 = vmatpush3.bf16.msra.mxu1 %v20516_v47  ;;  %v21765_v47 = vld [vmem:[#allocation8 + $0x39] ss:$24 sps:$4 sm:$0xff]  }
 0x985   : > { %20521 = vmatprep.subr.bf16.mxu1 %v20520_v58 }
 0x988   : > { %20523 = vmatpush3.bf16.msra.mxu1 %v20520_v58  ;;  %v14022_v58 = vld [vmem:[#allocation15 + $0x90] sm:$0xff] }
 0x989   : > { %20525 = vmatprep.subr.bf16.mxu1 %v20524_v32 }
 0x98b   : > { %19598 = vmatmul.mubr.msk.f32.vlgmr.msra.gmra.mrb[72].mxu1 %vm11141_vm10, %v21755_v38  ;;  %v14117_v38 = vld [vmem:[#allocation15 + $0xa8] sm:$0xff] }
 0x98c   : > { %20527 = vmatpush3.bf16.msra.mxu1 %v20524_v32  ;;  %19616 = vmatprep.mubr.msk.f32.mxu1 %vm11141_vm10, %v21756_v26  ;;  %v20592_v32 = vpack.c.bf16 %v14023_v57, %v14022_v58  ;;  %v14118_v26 = vld [vmem:[#allocation15 + $0xb0] sm:$0xff]  ;;  %v14543_v58 = vld [vmem:[#allocation17 + $0x28] sm:$0xff] }
 0x98d   : > { %20529 = vmatprep.subr.bf16.mxu1 %v20528_v30 }
 0x990   : > { %20531 = vmatpush3.bf16.msra.mxu1 %v20528_v30  ;;  %v20596_v30 = vpack.c.bf16 %v14117_v38, %v14116_v50  ;;  %v14546_v50 = vld [vmem:[#allocation17 + $0x40] sm:$0xff]  ;;  %v14547_v38 = vld [vmem:[#allocation17 + $0x48] sm:$0xff] }
 0x991   : > { %20533 = vmatprep.subr.bf16.mxu1 %v20532_v39 }
 0x994   : > { %20535 = vmatpush3.bf16.msra.mxu1 %v20532_v39  ;;  %v20600_v39 = vpack.c.bf16 %v14119_v15, %v14118_v26  ;;  %v14548_v26 = vld [vmem:[#allocation17 + $0x50] sm:$0xff]  ;;  %v14549_v15 = vld [vmem:[#allocation17 + $0x58] sm:$0xff] }
 0x995   : > { %20537 = vmatprep.subr.bf16.mxu1 %v20536_v23 }
 0x998   : > { %20539 = vmatpush3.bf16.msra.mxu1 %v20536_v23  ;;  %v14214_v23 = vld [vmem:[#allocation15 + $0xc8] sm:$0xff] }
 0x999   : > { %20541 = vmatprep.subr.bf16.mxu1 %v20540_v11  ;;  %v20604_v59 = vpack.c.bf16 %v14214_v23, %v14213_v28  ;;  %v14552_v23 = vld [vmem:[#allocation17 + $0x70] sm:$0xff] }
 0x99b   : > { %19617 = vmatmul.mubr.msk.f32.vlgmr.msra.gmra.mrb[72].mxu1 %vm11141_vm10, %v21757_v61  ;;  %v21772_v61 = vld [vmem:[#allocation8 + $0x37] ss:$24 sps:$4 sm:$0xff]  }
 0x99c   : > { %20543 = vmatpush3.bf16.msra.mxu1 %v20540_v11  ;;  %19635 = vmatprep.mubr.msk.f32.mxu1 %vm11141_vm10, %v21758_v48  ;;  %v14216_v11 = vld [vmem:[#allocation15 + $0xd8] sm:$0xff]  ;;  %v14310_v48 = vld [vmem:[#allocation15 + $0xe8] sm:$0xff] }
 0x99d   : > { %20545 = vmatprep.subr.bf16.mxu1 %v20544_v45  ;;  %v20608_v7 = vpack.c.bf16 %v14216_v11, %v14215_v35  ;;  %v14746_v11 = vld [vmem:[#allocation17 + $0x100] sm:$0xff] }
 0x9a0   : > { %20547 = vmatpush3.bf16.msra.mxu1 %v20544_v45  ;;  %v14309_v45 = vld [vmem:[#allocation15 + $0xe0] sm:$0xff] }
 0x9a1   : > { %20549 = vmatprep.subr.bf16.mxu1 %v20548_v31  ;;  %v20612_v8 = vpack.c.bf16 %v14310_v48, %v14309_v45  ;;  %v14749_v45 = vld [vmem:[#allocation17 + $0x118] sm:$0xff] }
 0x9a4   : > { %20551 = vmatpush3.bf16.msra.mxu1 %v20548_v31  ;;  %v14312_v31 = vld [vmem:[#allocation15 + $0xf8] sm:$0xff] }
 0x9a5   : > { %20553 = vmatprep.subr.bf16.mxu1 %v20552_v42  ;;  %v20616_v44 = vpack.c.bf16 %v14312_v31, %v14311_v55  ;;  %v14750_v31 = vld [vmem:[#allocation17 + $0x120] sm:$0xff] }
 0x9a8   : > { %20555 = vmatpush3.bf16.msra.mxu1 %v20552_v42  ;;  %v21774_v42 = vld [vmem:[#allocation8 + $0x38] ss:$24 sps:$4 sm:$0xff]  }
 0x9a9   : > { %20557 = vmatprep.subr.bf16.mxu1 %v20556_v13 }
 0x9ab   : > { %19636 = vmatmul.mubr.msk.f32.vlgmr.msra.gmra.mrb[72].mxu1 %vm11141_vm10, %v21759_v34  ;;  %v21775_v34 = vld [vmem:[#allocation8 + $0x68] ss:$24 sps:$4 sm:$0xff]  }
 0x9ac   : > { %20559 = vmatpush3.bf16.msra.mxu1 %v20556_v13  ;;  %19646 = vmatprep.mubr.msk.f32.mxu1 %vm4346_vm2, %v21760_v4  ;;  %v20620_v13 = vpack.c.bf16 %v14406_v9, %v14405_v25  ;;  %v21776_v4 = vld [vmem:[#allocation8 + $0x39] ss:$24 sps:$4 sm:$0xff]   ;;  %v14753_v25 = vld [vmem:[#allocation17 + $0x138] sm:$0xff] }
 0x9ad   : > { %20561 = vmatprep.subr.bf16.mxu1 %v20560_v29 }
 0x9b0   : > { %20563 = vmatpush3.bf16.msra.mxu1 %v20560_v29  ;;  %v20624_v29 = vpack.c.bf16 %v14408_v22, %v14407_v18  ;;  %v14755_v18 = vld [vmem:[#allocation17 + $0x148] sm:$0xff] }
 0x9b1   : > { %20565 = vmatprep.subr.bf16.mxu1 %v20564_v27 }
 0x9b3   : > { %19647 = vmatmul.mubr.msk.f32.vlgmr.msra.gmra.mrb[72].mxu1 %vm4346_vm2, %v21761_v63  ;;  %v14572_v63 = vld [vmem:[#allocation17 + $0xe8] sm:$0xff] }
 0x9b4   : > { %20567 = vmatpush3.bf16.msra.mxu1 %v20564_v27  ;;  %19657 = vmatprep.mubr.msk.f32.mxu1 %vm4346_vm2, %v21762_v54  ;;  %v14570_v27 = vld [vmem:[#allocation17 + $0xd8] sm:$0xff]  ;;  %v14573_v54 = vld [vmem:[#allocation17 + $0xf0] sm:$0xff] }
 0x9b5   : > { %20569 = vmatprep.subr.bf16.mxu1 %v20568_v56  ;;  %v20648_v6 = vpack.c.bf16 %v14570_v27, %v14569_v0  ;;  %v20656_v36 = vpack.c.bf16 %v14574_v37, %v14573_v54  ;;  %v14759_v0 = vld [vmem:[#allocation17 + $0x168] sm:$0xff] }
 0x9b6   : > { %v14853_v54 = vld [vmem:[#allocation17 + $0x188] sm:$0xff] }
 0x9b7   : > { %20649 = vmatprep.subr.bf16.mxu0 %v20648_v6 }
 0x9b8   : > { %20571 = vmatpush3.bf16.msra.mxu1 %v20568_v56  ;;  %v20652_v56 = vpack.c.bf16 %v14572_v63, %v14571_v24  ;;  %20651 = vmatpush3.bf16.msra.mxu0 %v20648_v6  ;;  %v14760_v24 = vld [vmem:[#allocation17 + $0x170] sm:$0xff]  ;;  %v14761_v6 = vld [vmem:[#allocation17 + $0x178] sm:$0xff] }
 0x9b9   : > { %20573 = vmatprep.subr.bf16.mxu1 %v20572_v62  ;;  %v20720_v63 = vpack.c.bf16 %v14761_v6, %v14760_v24  ;;  %v15069_v24 = vld [vmem:[#allocation17 + $0x2a8] sm:$0xff] }
 0x9ba   : > { %20653 = vmatprep.subr.bf16.mxu0 %v20652_v56 }
 0x9bb   : > { %19658 = vmatmul.mubr.msk.f32.vlgmr.msra.gmra.mrb[72].mxu1 %vm4346_vm2, %v21763_v14  ;;  %v16636_v14 = vld [vmem:[%s26361_s0] ss:$0 sm:$0xff] }
 0x9bc   : > { %20575 = vmatpush3.bf16.msra.mxu1 %v20572_v62  ;;  %19668 = vmatprep.mubr.msk.f32.mxu1 %vm4346_vm2, %v21764_v19  ;;  %v14538_v62 = vld [vmem:[#allocation17] sm:$0xff] }
 0x9bd   : > { %20577 = vmatprep.subr.bf16.mxu1 %v20576_v52  ;;  %20655 = vmatpush3.bf16.msra.mxu0 %v20652_v56  ;;  %v20660_v1 = vpack.c.bf16 %v14539_v21, %v14538_v62  ;;  %v14852_v56 = vld [vmem:[#allocation17 + $0x180] sm:$0xff]  ;;  %v14855_v62 = vld [vmem:[#allocation17 + $0x198] sm:$0xff] }
 0x9be   : > { %20657 = vmatprep.subr.bf16.mxu0 %v20656_v36  ;;  %v20724_v37 = vpack.c.bf16 %v14853_v54, %v14852_v56  ;;  %v15071_v56 = vld [vmem:[#allocation17 + $0x2b8] sm:$0xff] }
 0x9c0   : > { %20579 = vmatpush3.bf16.msra.mxu1 %v20576_v52 }
 0x9c1   : > { %20581 = vmatprep.subr.bf16.mxu1 %v20580_v41  ;;  %20659 = vmatpush3.bf16.msra.mxu0 %v20656_v36  ;;  %v14854_v36 = vld [vmem:[#allocation17 + $0x190] sm:$0xff] }
 0x9c2   : > { %20661 = vmatprep.subr.bf16.mxu0 %v20660_v1 }
 0x9c3   : > { %19669 = vmatmul.mubr.msk.f32.vlgmr.msra.gmra.mrb[72].mxu1 %vm4346_vm2, %v21765_v47  ;;  %v14541_v47 = vld [vmem:[#allocation17 + $0x18] sm:$0xff] }
 0x9c4   : > { %20583 = vmatpush3.bf16.msra.mxu1 %v20580_v41  ;;  %19679 = vmatprep.mubr.msk.f32.mxu1 %vm4346_vm2, %v21766_v60  ;;  %v14542_v60 = vld [vmem:[#allocation17 + $0x20] sm:$0xff]  ;;  %v20664_v46 = vpack.c.bf16 %v14541_v47, %v14540_v17  ;;  %v14861_v47 = vld [vmem:[#allocation17 + $0x1c8] sm:$0xff] }
 0x9c5   : > { %20585 = vmatprep.subr.bf16.mxu1 %v20584_v5  ;;  %v20668_v57 = vpack.c.bf16 %v14543_v58, %v14542_v60  ;;  %v14860_v17 = vld [vmem:[#allocation17 + $0x1c0] sm:$0xff]  ;;  %v14862_v60 = vld [vmem:[#allocation17 + $0x1d0] sm:$0xff]  ;;  %v14865_v58 = vld [vmem:[#allocation17 + $0x1e8] sm:$0xff] }
 0x9c8   : > { %20587 = vmatpush3.bf16.msra.mxu1 %v20584_v5 }
 0x9c9   : > { %20589 = vmatprep.subr.bf16.mxu1 %v20588_v49 }
 0x9cb   : > { %19680 = vmatmul.mubr.msk.f32.vlgmr.msra.gmra.mrb[72].mxu1 %vm4346_vm2, %v21767_v33  ;;  %v14544_v33 = vld [vmem:[#allocation17 + $0x30] sm:$0xff] }
 0x9cc   : > { %20591 = vmatpush3.bf16.msra.mxu1 %v20588_v49  ;;  %19690 = vmatprep.mubr.msk.f32.mxu1 %vm4346_vm2, %v21768_v51 }
 0x9cd   : > { %20593 = vmatprep.subr.bf16.mxu1 %v20592_v32 }
 0x9d0   : > { %20595 = vmatpush3.bf16.msra.mxu1 %v20592_v32  ;;  %v14545_v32 = vld [vmem:[#allocation17 + $0x38] sm:$0xff] }
 0x9d1   : > { %20597 = vmatprep.subr.bf16.mxu1 %v20596_v30  ;;  %v20672_v51 = vpack.c.bf16 %v14545_v32, %v14544_v33  ;;  %v14866_v33 = vld [vmem:[#allocation17 + $0x1f0] sm:$0xff]  ;;  %v14867_v32 = vld [vmem:[#allocation17 + $0x1f8] sm:$0xff] }
 0x9d3   : > { %19691 = vmatmul.mubr.msk.f32.vlgmr.msra.gmra.mrb[72].mxu1 %vm4346_vm2, %v21769_v2  ;;  %v20680_v2 = vpack.c.bf16 %v14549_v15, %v14548_v26  ;;  %v14960_v26 = vld [vmem:[#allocation17 + $0x210] sm:$0xff]  ;;  %v14961_v15 = vld [vmem:[#allocation17 + $0x218] sm:$0xff] }
 0x9d4   : > { %20599 = vmatpush3.bf16.msra.mxu1 %v20596_v30  ;;  %19701 = vmatprep.mubr.msk.f32.mxu1 %vm4346_vm2, %v21770_v40  ;;  %v20676_v30 = vpack.c.bf16 %v14547_v38, %v14546_v50  ;;  %v14551_v40 = vld [vmem:[#allocation17 + $0x68] sm:$0xff]  ;;  %v14958_v50 = vld [vmem:[#allocation17 + $0x200] sm:$0xff] }
 0x9d5   : > { %20601 = vmatprep.subr.bf16.mxu1 %v20600_v39  ;;  %v14959_v38 = vld [vmem:[#allocation17 + $0x208] sm:$0xff] }
 0x9d8   : > { %20603 = vmatpush3.bf16.msra.mxu1 %v20600_v39  ;;  %v14550_v39 = vld [vmem:[#allocation17 + $0x60] sm:$0xff] }
 0x9d9   : > { %20605 = vmatprep.subr.bf16.mxu1 %v20604_v59  ;;  %v20684_v28 = vpack.c.bf16 %v14551_v40, %v14550_v39  ;;  %v20760_v39 = vpack.c.bf16 %v14961_v15, %v14960_v26  ;;  %v15180_v26 = vld [vmem:[#allocation17 + $0x348] sm:$0xff] }
 0x9db   : > { %19702 = vmatmul.mubr.msk.f32.vlgmr.msra.gmra.mrb[72].mxu1 %vm4346_vm2, %v21771_v12  ;;  %v14747_v12 = vld [vmem:[#allocation17 + $0x108] sm:$0xff] }
 0x9dc   : > { %20607 = vmatpush3.bf16.msra.mxu1 %v20604_v59  ;;  %19712 = vmatprep.mubr.msk.f32.mxu1 %vm4346_vm2, %v21772_v61  ;;  %v14553_v59 = vld [vmem:[#allocation17 + $0x78] sm:$0xff]  ;;  %v14748_v61 = vld [vmem:[#allocation17 + $0x110] sm:$0xff] }
 0x9dd   : > { %20609 = vmatprep.subr.bf16.mxu1 %v20608_v7  ;;  %v20688_v35 = vpack.c.bf16 %v14553_v59, %v14552_v23  ;;  %v14963_v23 = vld [vmem:[#allocation17 + $0x228] sm:$0xff] }
 0x9e0   : > { %20611 = vmatpush3.bf16.msra.mxu1 %v20608_v7  ;;  %v20692_v7 = vpack.c.bf16 %v14747_v12, %v14746_v11  ;;  %v14965_v11 = vld [vmem:[#allocation17 + $0x238] sm:$0xff] }
 0x9e1   : > { %20613 = vmatprep.subr.bf16.mxu1 %v20612_v8 }
 0x9e3   : > { %19713 = vmatmul.mubr.msk.f32.vlgmr.msra.gmra.mrb[72].mxu1 %vm4346_vm2, %v21773_v53  ;;  %v14751_v53 = vld [vmem:[#allocation17 + $0x128] sm:$0xff] }
 0x9e4   : > { %20615 = vmatpush3.bf16.msra.mxu1 %v20612_v8  ;;  %19723 = vmatprep.mubr.msk.f32.mxu1 %vm4346_vm2, %v21774_v42  ;;  %v20696_v8 = vpack.c.bf16 %v14749_v45, %v14748_v61  ;;  %v14752_v42 = vld [vmem:[#allocation17 + $0x130] sm:$0xff]  ;;  %v14967_v61 = vld [vmem:[#allocation17 + $0x248] sm:$0xff] }
 0x9e5   : > { %20617 = vmatprep.subr.bf16.mxu1 %v20616_v44  ;;  %v20704_v9 = vpack.c.bf16 %v14753_v25, %v14752_v42  ;;  %v14972_v42 = vld [vmem:[#allocation17 + $0x270] sm:$0xff]  ;;  %v14973_v25 = vld [vmem:[#allocation17 + $0x278] sm:$0xff] }
 0x9e8   : > { %20619 = vmatpush3.bf16.msra.mxu1 %v20616_v44  ;;  %v20700_v44 = vpack.c.bf16 %v14751_v53, %v14750_v31  ;;  %v14970_v31 = vld [vmem:[#allocation17 + $0x260] sm:$0xff]  ;;  %v14971_v53 = vld [vmem:[#allocation17 + $0x268] sm:$0xff] }
 0x9e9   : > { %20621 = vmatprep.subr.bf16.mxu1 %v20620_v13 }
 0x9eb   : > { %19724 = vmatmul.mubr.msk.f32.vlgmr.msra.gmra.mrb[72].mxu1 %vm4346_vm2, %v21775_v34  ;;  %v14756_v34 = vld [vmem:[#allocation17 + $0x150] sm:$0xff] }
 0x9ec   : > { %20623 = vmatpush3.bf16.msra.mxu1 %v20620_v13  ;;  %19734 = vmatprep.mubr.msk.f32.mxu1 %vm4346_vm2, %v21776_v4  ;;  %v14754_v13 = vld [vmem:[#allocation17 + $0x140] sm:$0xff] }
 0x9ed   : > { %20625 = vmatprep.subr.bf16.mxu1 %v20624_v29  ;;  %v20708_v22 = vpack.c.bf16 %v14755_v18, %v14754_v13  ;;  %v15064_v13 = vld [vmem:[#allocation17 + $0x280] sm:$0xff]  ;;  %v15065_v18 = vld [vmem:[#allocation17 + $0x288] sm:$0xff] }
 0x9f0   : > { %20627 = vmatpush3.bf16.msra.mxu1 %v20624_v29  ;;  %v14757_v29 = vld [vmem:[#allocation17 + $0x158] sm:$0xff] }
 0x9f1   : > { %v20712_v4 = vpack.c.bf16 %v14757_v29, %v14756_v34  ;;  %v15066_v34 = vld [vmem:[#allocation17 + $0x290] sm:$0xff]  ;;  %v15067_v29 = vld [vmem:[#allocation17 + $0x298] sm:$0xff] }
 0x9f3   : > { %19735 = vmatmul.mubr.msk.f32.vlgmr.msra.gmra.mrb[72].mxu1 %vm4346_vm2, %v21777_v16  ;;  %v14758_v16 = vld [vmem:[#allocation17 + $0x160] sm:$0xff] }
 0x9f4   : > { %v20716_v27 = vpack.c.bf16 %v14759_v0, %v14758_v16  ;;  %v20792_v16 = vpack.c.bf16 %v15067_v29, %v15066_v34  ;;  %v15286_v34 = vld [vmem:[#allocation17 + $0x3c8] sm:$0xff] }
 0xac6   : > { %v19736_v52 = vpop.f32.mrb[72].mxu1 }
 0xac7   : > { %v14504_v19 = vadd.f32 %v19736_v52, %v16636_v14  ;;  %v14485_v43 = vpop.f32.mrb[73].mxu1  ;;  %v14856_v52 = vld [vmem:[#allocation17 + $0x1a0] sm:$0xff] }
 0xac8   : > { %v14503_v20 = vadd.f32 %v16636_v14, %v14485_v43 }
 0xac9   : > { %v14508_v41 = vcombine.high %v14504_v19, %v14504_v19  ;;  %14532 = vst [vmem:[#allocation9 + $0x50] sm:$0xf] %v14504_v19  ;;  %v14857_v19 = vld [vmem:[#allocation17 + $0x1a8] sm:$0xff] }
 0xaca   : > { %v14507_v3 = vcombine.high %v14503_v20, %v14503_v20  ;;  %14530 = vst [vmem:[#allocation9 + $0x20] sm:$0xf] %v14503_v20  ;;  %v20732_v43 = vpack.c.bf16 %v14857_v19, %v14856_v52  ;;  %v14858_v20 = vld [vmem:[#allocation17 + $0x1b0] sm:$0xff]  ;;  %v15076_v52 = vld [vmem:[#allocation17 + $0x2e0] sm:$0xff]  ;;  %v15077_v19 = vld [vmem:[#allocation17 + $0x2e8] sm:$0xff] }
 0xacb   : > { %14533 = vst [vmem:[#allocation9 + $0x68] sm:$0xf] %v14508_v41  ;;  %v14859_v41 = vld [vmem:[#allocation17 + $0x1b8] sm:$0xff] }
 0xacc   : > { %14531 = vst [vmem:[#allocation9 + $0x38] sm:$0xf] %v14507_v3  ;;  %v20736_v3 = vpack.c.bf16 %v14859_v41, %v14858_v20  ;;  %v15078_v20 = vld [vmem:[#allocation17 + $0x2f0] sm:$0xff]  ;;  %v15079_v41 = vld [vmem:[#allocation17 + $0x2f8] sm:$0xff] }
 0xad1   : > { %v21778_v5 = vld [vmem:[#allocation9 + $0x8] ss:$24 sps:$4 sm:$0xff]  }
 0xad2   : > { %19769 = vmatprep.mubr.f32.mxu0 %v21778_v5  ;;  %v21780_v49 = vld [vmem:[#allocation9 + $0x7] ss:$24 sps:$4 sm:$0xff]   ;;  %v20740_v5 = vpack.c.bf16 %v14861_v47, %v14860_v17 }
 0xad3   : > { %v21779_v10 = vld [vmem:[#allocation9 + $0x38] ss:$24 sps:$4 sm:$0xff]   ;;  %v21782_v55 = vld [vmem:[#allocation9 + $0x9] ss:$24 sps:$4 sm:$0xff]  }
 0xad4   : > { %19770 = vmatmul.mubr.f32.vlgmr.msra.gmra.mrb[40].mxu0 %v21779_v10  ;;  %v21781_v48 = vld [vmem:[#allocation9 + $0x37] ss:$24 sps:$4 sm:$0xff]   ;;  %v15171_v17 = vld [vmem:[#allocation17 + $0x300] sm:$0xff] }
 0xad5   : > { %20663 = vmatpush3.bf16.msra.mxu0 %v20660_v1  ;;  %19804 = vmatprep.mubr.f32.mxu0 %v21780_v49  ;;  %v21783_v21 = vld [vmem:[#allocation9 + $0x39] ss:$24 sps:$4 sm:$0xff]   ;;  %v20728_v1 = vpack.c.bf16 %v14855_v62, %v14854_v36  ;;  %v14864_v49 = vld [vmem:[#allocation17 + $0x1e0] sm:$0xff]  ;;  %v15073_v36 = vld [vmem:[#allocation17 + $0x2c8] sm:$0xff] }
 0xad6   : > { %20665 = vmatprep.subr.bf16.mxu0 %v20664_v46  ;;  %v21784_v14 = vld [vmem:[#allocation9 + $0x1f] ss:$24 sps:$4 sm:$0xff]   ;;  %v15172_v47 = vld [vmem:[#allocation17 + $0x308] sm:$0xff] }
 0xad7   : > { %v14863_v10 = vld [vmem:[#allocation17 + $0x1d8] sm:$0xff] }
 0xad8   : > { %v21786_v40 = vld [vmem:[#allocation9 + $0x20] ss:$24 sps:$4 sm:$0xff]  }
 0xad9   : > { %20667 = vmatpush3.bf16.msra.mxu0 %v20664_v46  ;;  %v20744_v46 = vpack.c.bf16 %v14863_v10, %v14862_v60  ;;  %v21788_v0 = vld [vmem:[#allocation9 + $0x21] ss:$24 sps:$4 sm:$0xff]   ;;  %v15173_v60 = vld [vmem:[#allocation17 + $0x310] sm:$0xff] }
 0xada   : > { %20669 = vmatprep.subr.bf16.mxu0 %v20668_v57  ;;  %v15174_v10 = vld [vmem:[#allocation17 + $0x318] sm:$0xff] }
 0xadd   : > { %20671 = vmatpush3.bf16.msra.mxu0 %v20668_v57  ;;  %v20748_v57 = vpack.c.bf16 %v14865_v58, %v14864_v49  ;;  %v20824_v49 = vpack.c.bf16 %v15174_v10, %v15173_v60  ;;  %v21790_v58 = vld [vmem:[#allocation9 + $0x37] ss:$24 sps:$4 sm:$0xff]  }
 0xade   : > { %20673 = vmatprep.subr.bf16.mxu0 %v20672_v51  ;;  %v15392_v60 = vld [vmem:[#allocation17 + $0x448] sm:$0xff] }
 0xae1   : > { %20675 = vmatpush3.bf16.msra.mxu0 %v20672_v51  ;;  %v20752_v51 = vpack.c.bf16 %v14867_v32, %v14866_v33  ;;  %v15176_v33 = vld [vmem:[#allocation17 + $0x328] sm:$0xff] }
 0xae2   : > { %20677 = vmatprep.subr.bf16.mxu0 %v20676_v30 }
 0xae5   : > { %20679 = vmatpush3.bf16.msra.mxu0 %v20676_v30  ;;  %v20756_v30 = vpack.c.bf16 %v14959_v38, %v14958_v50  ;;  %v15178_v50 = vld [vmem:[#allocation17 + $0x338] sm:$0xff] }
 0xae6   : > { %20681 = vmatprep.subr.bf16.mxu0 %v20680_v2 }
 0xae9   : > { %20683 = vmatpush3.bf16.msra.mxu0 %v20680_v2  ;;  %v21785_v2 = vld [vmem:[#allocation9 + $0x4f] ss:$24 sps:$4 sm:$0xff]  }
 0xaea   : > { %20685 = vmatprep.subr.bf16.mxu0 %v20684_v28 }
 0xaed   : > { %20687 = vmatpush3.bf16.msra.mxu0 %v20684_v28  ;;  %v14962_v28 = vld [vmem:[#allocation17 + $0x220] sm:$0xff] }
 0xaee   : > { %20689 = vmatprep.subr.bf16.mxu0 %v20688_v35  ;;  %v20764_v59 = vpack.c.bf16 %v14963_v23, %v14962_v28  ;;  %v15183_v28 = vld [vmem:[#allocation17 + $0x360] sm:$0xff]  ;;  %v15184_v23 = vld [vmem:[#allocation17 + $0x368] sm:$0xff] }
 0xaf1   : > { %20691 = vmatpush3.bf16.msra.mxu0 %v20688_v35  ;;  %v14964_v35 = vld [vmem:[#allocation17 + $0x230] sm:$0xff] }
 0xaf2   : > { %20693 = vmatprep.subr.bf16.mxu0 %v20692_v7  ;;  %v20768_v12 = vpack.c.bf16 %v14965_v11, %v14964_v35  ;;  %v15185_v35 = vld [vmem:[#allocation17 + $0x370] sm:$0xff]  ;;  %v15186_v11 = vld [vmem:[#allocation17 + $0x378] sm:$0xff] }
 0xaf4   : > { %19805 = vmatmul.mubr.f32.vlgmr.msra.gmra.mrb[40].mxu0 %v21781_v48  ;;  %v14968_v48 = vld [vmem:[#allocation17 + $0x250] sm:$0xff] }
 0xaf5   : > { %20695 = vmatpush3.bf16.msra.mxu0 %v20692_v7  ;;  %19839 = vmatprep.mubr.f32.mxu0 %v21782_v55  ;;  %v14966_v7 = vld [vmem:[#allocation17 + $0x240] sm:$0xff] }
 0xaf6   : > { %20697 = vmatprep.subr.bf16.mxu0 %v20696_v8  ;;  %v20772_v45 = vpack.c.bf16 %v14967_v61, %v14966_v7  ;;  %v15277_v7 = vld [vmem:[#allocation17 + $0x380] sm:$0xff]  ;;  %v15278_v61 = vld [vmem:[#allocation17 + $0x388] sm:$0xff] }
 0xaf9   : > { %20699 = vmatpush3.bf16.msra.mxu0 %v20696_v8  ;;  %v14969_v8 = vld [vmem:[#allocation17 + $0x258] sm:$0xff] }
 0xafa   : > { %20701 = vmatprep.subr.bf16.mxu0 %v20700_v44  ;;  %v20776_v55 = vpack.c.bf16 %v14969_v8, %v14968_v48  ;;  %v15279_v48 = vld [vmem:[#allocation17 + $0x390] sm:$0xff]  ;;  %v15280_v8 = vld [vmem:[#allocation17 + $0x398] sm:$0xff] }
 0xafd   : > { %20703 = vmatpush3.bf16.msra.mxu0 %v20700_v44  ;;  %v20780_v44 = vpack.c.bf16 %v14971_v53, %v14970_v31  ;;  %v20856_v31 = vpack.c.bf16 %v15280_v8, %v15279_v48  ;;  %v21792_v53 = vld [vmem:[#allocation9 + $0x38] ss:$24 sps:$4 sm:$0xff]  }
 0xafe   : > { %20705 = vmatprep.subr.bf16.mxu0 %v20704_v9 }
 0xb01   : > { %20707 = vmatpush3.bf16.msra.mxu0 %v20704_v9  ;;  %v20784_v9 = vpack.c.bf16 %v14973_v25, %v14972_v42  ;;  %v15282_v42 = vld [vmem:[#allocation17 + $0x3a8] sm:$0xff] }
 0xb02   : > { %20709 = vmatprep.subr.bf16.mxu0 %v20708_v22 }
 0xb05   : > { %20711 = vmatpush3.bf16.msra.mxu0 %v20708_v22  ;;  %v20788_v22 = vpack.c.bf16 %v15065_v18, %v15064_v13  ;;  %v15284_v13 = vld [vmem:[#allocation17 + $0x3b8] sm:$0xff] }
 0xb06   : > { %20713 = vmatprep.subr.bf16.mxu0 %v20712_v4 }
 0xb09   : > { %20715 = vmatpush3.bf16.msra.mxu0 %v20712_v4  ;;  %v21787_v4 = vld [vmem:[#allocation9 + $0x50] ss:$24 sps:$4 sm:$0xff]  }
 0xb0a   : > { %20717 = vmatprep.subr.bf16.mxu0 %v20716_v27 }
 0xb0d   : > { %20719 = vmatpush3.bf16.msra.mxu0 %v20716_v27  ;;  %v15068_v27 = vld [vmem:[#allocation17 + $0x2a0] sm:$0xff] }
 0xb0e   : > { %20721 = vmatprep.subr.bf16.mxu0 %v20720_v63  ;;  %v20796_v6 = vpack.c.bf16 %v15069_v24, %v15068_v27  ;;  %v15289_v27 = vld [vmem:[#allocation17 + $0x3e0] sm:$0xff]  ;;  %v15290_v24 = vld [vmem:[#allocation17 + $0x3e8] sm:$0xff] }
 0xb11   : > { %20723 = vmatpush3.bf16.msra.mxu0 %v20720_v63  ;;  %v15070_v63 = vld [vmem:[#allocation17 + $0x2b0] sm:$0xff] }
 0xb12   : > { %20725 = vmatprep.subr.bf16.mxu0 %v20724_v37  ;;  %v20800_v54 = vpack.c.bf16 %v15071_v56, %v15070_v63  ;;  %v15291_v63 = vld [vmem:[#allocation17 + $0x3f0] sm:$0xff]  ;;  %v15292_v56 = vld [vmem:[#allocation17 + $0x3f8] sm:$0xff] }
 0xb14   : > { %19840 = vmatmul.mubr.f32.vlgmr.msra.gmra.mrb[40].mxu0 %v21783_v21  ;;  %v15074_v21 = vld [vmem:[#allocation17 + $0x2d0] sm:$0xff] }
 0xb15   : > { %20727 = vmatpush3.bf16.msra.mxu0 %v20724_v37  ;;  %19874 = vmatprep.mubr.f32.mxu0 %v21784_v14  ;;  %v15072_v37 = vld [vmem:[#allocation17 + $0x2c0] sm:$0xff] }
 0xb16   : > { %20729 = vmatprep.subr.bf16.mxu0 %v20728_v1  ;;  %v20804_v62 = vpack.c.bf16 %v15073_v36, %v15072_v37  ;;  %v15383_v37 = vld [vmem:[#allocation17 + $0x400] sm:$0xff]  ;;  %v15384_v36 = vld [vmem:[#allocation17 + $0x408] sm:$0xff] }
 0xb19   : > { %20731 = vmatpush3.bf16.msra.mxu0 %v20728_v1  ;;  %v15075_v1 = vld [vmem:[#allocation17 + $0x2d8] sm:$0xff] }
 0xb1a   : > { %20733 = vmatprep.subr.bf16.mxu0 %v20732_v43  ;;  %v20808_v14 = vpack.c.bf16 %v15075_v1, %v15074_v21  ;;  %v15385_v21 = vld [vmem:[#allocation17 + $0x410] sm:$0xff]  ;;  %v15386_v1 = vld [vmem:[#allocation17 + $0x418] sm:$0xff] }
 0xb1d   : > { %20735 = vmatpush3.bf16.msra.mxu0 %v20732_v43  ;;  %v20812_v43 = vpack.c.bf16 %v15077_v19, %v15076_v52  ;;  %v20888_v52 = vpack.c.bf16 %v15386_v1, %v15385_v21  ;;  %v21794_v19 = vld [vmem:[#allocation9 + $0x39] ss:$24 sps:$4 sm:$0xff]  }
 0xb1e   : > { %20737 = vmatprep.subr.bf16.mxu0 %v20736_v3 }
 0xb21   : > { %20739 = vmatpush3.bf16.msra.mxu0 %v20736_v3  ;;  %v20816_v3 = vpack.c.bf16 %v15079_v41, %v15078_v20  ;;  %v15388_v20 = vld [vmem:[#allocation17 + $0x428] sm:$0xff] }
 0xb22   : > { %20741 = vmatprep.subr.bf16.mxu0 %v20740_v5 }
 0xb25   : > { %20743 = vmatpush3.bf16.msra.mxu0 %v20740_v5  ;;  %v20820_v5 = vpack.c.bf16 %v15172_v47, %v15171_v17  ;;  %v15390_v17 = vld [vmem:[#allocation17 + $0x438] sm:$0xff] }
 0xb26   : > { %20745 = vmatprep.subr.bf16.mxu0 %v20744_v46 }
 0xb29   : > { %20747 = vmatpush3.bf16.msra.mxu0 %v20744_v46  ;;  %v21789_v46 = vld [vmem:[#allocation9 + $0x51] ss:$24 sps:$4 sm:$0xff]  }
 0xb2a   : > { %20749 = vmatprep.subr.bf16.mxu0 %v20748_v57 }
 0xb2d   : > { %20751 = vmatpush3.bf16.msra.mxu0 %v20748_v57  ;;  %v15175_v57 = vld [vmem:[#allocation17 + $0x320] sm:$0xff] }
 0xb2e   : > { %20753 = vmatprep.subr.bf16.mxu0 %v20752_v51  ;;  %v20828_v32 = vpack.c.bf16 %v15176_v33, %v15175_v57  ;;  %v15395_v57 = vld [vmem:[#allocation17 + $0x460] sm:$0xff]  ;;  %v15396_v33 = vld [vmem:[#allocation17 + $0x468] sm:$0xff] }
 0xb31   : > { %20755 = vmatpush3.bf16.msra.mxu0 %v20752_v51  ;;  %v15177_v51 = vld [vmem:[#allocation17 + $0x330] sm:$0xff] }
 0xb32   : > { %20757 = vmatprep.subr.bf16.mxu0 %v20756_v30  ;;  %v20832_v38 = vpack.c.bf16 %v15178_v50, %v15177_v51  ;;  %v15397_v51 = vld [vmem:[#allocation17 + $0x470] sm:$0xff]  ;;  %v15398_v50 = vld [vmem:[#allocation17 + $0x478] sm:$0xff] }
 0xb34   : > { %19875 = vmatmul.mubr.f32.vlgmr.msra.gmra.mrb[40].mxu0 %v21785_v2  ;;  %v15181_v2 = vld [vmem:[#allocation17 + $0x350] sm:$0xff] }
 0xb35   : > { %20759 = vmatpush3.bf16.msra.mxu0 %v20756_v30  ;;  %19909 = vmatprep.mubr.f32.mxu0 %v21786_v40  ;;  %v15179_v30 = vld [vmem:[#allocation17 + $0x340] sm:$0xff] }
 0xb36   : > { %20761 = vmatprep.subr.bf16.mxu0 %v20760_v39  ;;  %v20836_v15 = vpack.c.bf16 %v15180_v26, %v15179_v30  ;;  %v21795_v30 = vld [vmem:[#allocation9 + $0x69] ss:$24 sps:$4 sm:$0xff]   ;;  %v16637_v26 = vld [vmem:[%s26362_s18] ss:$0 sm:$0xff] }
 0xb39   : > { %20763 = vmatpush3.bf16.msra.mxu0 %v20760_v39  ;;  %v15182_v39 = vld [vmem:[#allocation17 + $0x358] sm:$0xff] }
 0xb3a   : > { %20765 = vmatprep.subr.bf16.mxu0 %v20764_v59  ;;  %v20840_v40 = vpack.c.bf16 %v15182_v39, %v15181_v2 }
 0xb3d   : > { %20767 = vmatpush3.bf16.msra.mxu0 %v20764_v59  ;;  %v20844_v59 = vpack.c.bf16 %v15184_v23, %v15183_v28 }
 0xb3e   : > { %20769 = vmatprep.subr.bf16.mxu0 %v20768_v12 }
 0xb41   : > { %20771 = vmatpush3.bf16.msra.mxu0 %v20768_v12  ;;  %v20848_v12 = vpack.c.bf16 %v15186_v11, %v15185_v35 }
 0xb42   : > { %20773 = vmatprep.subr.bf16.mxu0 %v20772_v45 }
 0xb45   : > { %20775 = vmatpush3.bf16.msra.mxu0 %v20772_v45  ;;  %v20852_v45 = vpack.c.bf16 %v15278_v61, %v15277_v7 }
 0xb46   : > { %20777 = vmatprep.subr.bf16.mxu0 %v20776_v55 }
 0xb49   : > { %20779 = vmatpush3.bf16.msra.mxu0 %v20776_v55  ;;  %v21791_v55 = vld [vmem:[#allocation9 + $0x67] ss:$24 sps:$4 sm:$0xff]  }
 0xb4a   : > { %20781 = vmatprep.subr.bf16.mxu0 %v20780_v44 }
 0xb4d   : > { %20783 = vmatpush3.bf16.msra.mxu0 %v20780_v44  ;;  %v15281_v44 = vld [vmem:[#allocation17 + $0x3a0] sm:$0xff] }
 0xb4e   : > { %20785 = vmatprep.subr.bf16.mxu0 %v20784_v9  ;;  %v20860_v25 = vpack.c.bf16 %v15282_v42, %v15281_v44 }
 0xb51   : > { %20787 = vmatpush3.bf16.msra.mxu0 %v20784_v9  ;;  %v15283_v9 = vld [vmem:[#allocation17 + $0x3b0] sm:$0xff] }
 0xb52   : > { %20789 = vmatprep.subr.bf16.mxu0 %v20788_v22  ;;  %v20864_v18 = vpack.c.bf16 %v15284_v13, %v15283_v9 }
 0xb54   : > { %19910 = vmatmul.mubr.f32.vlgmr.msra.gmra.mrb[40].mxu0 %v21787_v4  ;;  %v15287_v4 = vld [vmem:[#allocation17 + $0x3d0] sm:$0xff] }
 0xb55   : > { %20791 = vmatpush3.bf16.msra.mxu0 %v20788_v22  ;;  %19944 = vmatprep.mubr.f32.mxu0 %v21788_v0  ;;  %v15285_v22 = vld [vmem:[#allocation17 + $0x3c0] sm:$0xff] }
 0xb56   : > { %20793 = vmatprep.subr.bf16.mxu0 %v20792_v16  ;;  %v20868_v29 = vpack.c.bf16 %v15286_v34, %v15285_v22 }
 0xb59   : > { %20795 = vmatpush3.bf16.msra.mxu0 %v20792_v16  ;;  %v15288_v16 = vld [vmem:[#allocation17 + $0x3d8] sm:$0xff] }
 0xb5a   : > { %20797 = vmatprep.subr.bf16.mxu0 %v20796_v6  ;;  %v20872_v0 = vpack.c.bf16 %v15288_v16, %v15287_v4 }
 0xb5d   : > { %20799 = vmatpush3.bf16.msra.mxu0 %v20796_v6  ;;  %v20876_v6 = vpack.c.bf16 %v15290_v24, %v15289_v27 }
 0xb5e   : > { %20801 = vmatprep.subr.bf16.mxu0 %v20800_v54 }
 0xb61   : > { %20803 = vmatpush3.bf16.msra.mxu0 %v20800_v54  ;;  %v20880_v54 = vpack.c.bf16 %v15292_v56, %v15291_v63 }
 0xb62   : > { %20805 = vmatprep.subr.bf16.mxu0 %v20804_v62 }
 0xb65   : > { %20807 = vmatpush3.bf16.msra.mxu0 %v20804_v62  ;;  %v20884_v62 = vpack.c.bf16 %v15384_v36, %v15383_v37 }
 0xb66   : > { %20809 = vmatprep.subr.bf16.mxu0 %v20808_v14 }
 0xb69   : > { %20811 = vmatpush3.bf16.msra.mxu0 %v20808_v14  ;;  %v21793_v14 = vld [vmem:[#allocation9 + $0x68] ss:$24 sps:$4 sm:$0xff]  }
 0xb6a   : > { %20813 = vmatprep.subr.bf16.mxu0 %v20812_v43 }
 0xb6d   : > { %20815 = vmatpush3.bf16.msra.mxu0 %v20812_v43  ;;  %v15387_v43 = vld [vmem:[#allocation17 + $0x420] sm:$0xff] }
 0xb6e   : > { %20817 = vmatprep.subr.bf16.mxu0 %v20816_v3  ;;  %v20892_v41 = vpack.c.bf16 %v15388_v20, %v15387_v43 }
 0xb71   : > { %20819 = vmatpush3.bf16.msra.mxu0 %v20816_v3  ;;  %v15389_v3 = vld [vmem:[#allocation17 + $0x430] sm:$0xff] }
 0xb72   : > { %20821 = vmatprep.subr.bf16.mxu0 %v20820_v5  ;;  %v20896_v47 = vpack.c.bf16 %v15390_v17, %v15389_v3 }
 0xb74   : > { %19945 = vmatmul.mubr.f32.vlgmr.msra.gmra.mrb[40].mxu0 %v21789_v46  ;;  %v15393_v46 = vld [vmem:[#allocation17 + $0x450] sm:$0xff] }
 0xb75   : > { %20823 = vmatpush3.bf16.msra.mxu0 %v20820_v5  ;;  %19979 = vmatprep.mubr.f32.mxu0 %v21790_v58  ;;  %v15391_v5 = vld [vmem:[#allocation17 + $0x440] sm:$0xff] }
 0xb76   : > { %20825 = vmatprep.subr.bf16.mxu0 %v20824_v49  ;;  %v20900_v10 = vpack.c.bf16 %v15392_v60, %v15391_v5 }
 0xb79   : > { %20827 = vmatpush3.bf16.msra.mxu0 %v20824_v49  ;;  %v15394_v49 = vld [vmem:[#allocation17 + $0x458] sm:$0xff] }
 0xb7a   : > { %20829 = vmatprep.subr.bf16.mxu0 %v20828_v32  ;;  %v20904_v58 = vpack.c.bf16 %v15394_v49, %v15393_v46 }
 0xb7d   : > { %20831 = vmatpush3.bf16.msra.mxu0 %v20828_v32  ;;  %v20908_v32 = vpack.c.bf16 %v15396_v33, %v15395_v57 }
 0xb7e   : > { %20833 = vmatprep.subr.bf16.mxu0 %v20832_v38 }
 0xb81   : > { %20835 = vmatpush3.bf16.msra.mxu0 %v20832_v38  ;;  %v20912_v38 = vpack.c.bf16 %v15398_v50, %v15397_v51 }
 0xb82   : > { %20837 = vmatprep.subr.bf16.mxu0 %v20836_v15 }
 0xb85   : > { %20839 = vmatpush3.bf16.msra.mxu0 %v20836_v15 }
 0xb86   : > { %20841 = vmatprep.subr.bf16.mxu0 %v20840_v40 }
 0xb89   : > { %20843 = vmatpush3.bf16.msra.mxu0 %v20840_v40 }
 0xb8a   : > { %20845 = vmatprep.subr.bf16.mxu0 %v20844_v59 }
 0xb8d   : > { %20847 = vmatpush3.bf16.msra.mxu0 %v20844_v59 }
 0xb8e   : > { %20849 = vmatprep.subr.bf16.mxu0 %v20848_v12 }
 0xb91   : > { %20851 = vmatpush3.bf16.msra.mxu0 %v20848_v12 }
 0xb92   : > { %20853 = vmatprep.subr.bf16.mxu0 %v20852_v45 }
 0xb94   : > { %19980 = vmatmul.mubr.f32.vlgmr.msra.gmra.mrb[40].mxu0 %v21791_v55 }
 0xb95   : > { %20855 = vmatpush3.bf16.msra.mxu0 %v20852_v45  ;;  %20014 = vmatprep.mubr.f32.mxu0 %v21792_v53 }
 0xb96   : > { %20857 = vmatprep.subr.bf16.mxu0 %v20856_v31 }
 0xb99   : > { %20859 = vmatpush3.bf16.msra.mxu0 %v20856_v31 }
 0xb9a   : > { %20861 = vmatprep.subr.bf16.mxu0 %v20860_v25 }
 0xb9d   : > { %20863 = vmatpush3.bf16.msra.mxu0 %v20860_v25 }
 0xb9e   : > { %20865 = vmatprep.subr.bf16.mxu0 %v20864_v18 }
 0xba1   : > { %20867 = vmatpush3.bf16.msra.mxu0 %v20864_v18 }
 0xba2   : > { %20869 = vmatprep.subr.bf16.mxu0 %v20868_v29 }
 0xba5   : > { %20871 = vmatpush3.bf16.msra.mxu0 %v20868_v29 }
 0xba6   : > { %20873 = vmatprep.subr.bf16.mxu0 %v20872_v0 }
 0xba9   : > { %20875 = vmatpush3.bf16.msra.mxu0 %v20872_v0 }
 0xbaa   : > { %20877 = vmatprep.subr.bf16.mxu0 %v20876_v6 }
 0xbad   : > { %20879 = vmatpush3.bf16.msra.mxu0 %v20876_v6 }
 0xbae   : > { %20881 = vmatprep.subr.bf16.mxu0 %v20880_v54 }
 0xbb1   : > { %20883 = vmatpush3.bf16.msra.mxu0 %v20880_v54 }
 0xbb2   : > { %20885 = vmatprep.subr.bf16.mxu0 %v20884_v62 }
 0xbb4   : > { %20015 = vmatmul.mubr.f32.vlgmr.msra.gmra.mrb[40].mxu0 %v21793_v14 }
 0xbb5   : > { %20887 = vmatpush3.bf16.msra.mxu0 %v20884_v62  ;;  %20049 = vmatprep.mubr.f32.mxu0 %v21794_v19 }
 0xbb6   : > { %20889 = vmatprep.subr.bf16.mxu0 %v20888_v52 }
 0xbb9   : > { %20891 = vmatpush3.bf16.msra.mxu0 %v20888_v52 }
 0xbba   : > { %20893 = vmatprep.subr.bf16.mxu0 %v20892_v41 }
 0xbbd   : > { %20895 = vmatpush3.bf16.msra.mxu0 %v20892_v41 }
 0xbbe   : > { %20897 = vmatprep.subr.bf16.mxu0 %v20896_v47 }
 0xbc1   : > { %20899 = vmatpush3.bf16.msra.mxu0 %v20896_v47 }
 0xbc2   : > { %20901 = vmatprep.subr.bf16.mxu0 %v20900_v10 }
 0xbc5   : > { %20903 = vmatpush3.bf16.msra.mxu0 %v20900_v10 }
 0xbc6   : > { %20905 = vmatprep.subr.bf16.mxu0 %v20904_v58 }
 0xbc9   : > { %20907 = vmatpush3.bf16.msra.mxu0 %v20904_v58 }
 0xbca   : > { %20909 = vmatprep.subr.bf16.mxu0 %v20908_v32 }
 0xbcd   : > { %20911 = vmatpush3.bf16.msra.mxu0 %v20908_v32 }
 0xbce   : > { %20913 = vmatprep.subr.bf16.mxu0 %v20912_v38 }
 0xbd1   : > { %20915 = vmatpush3.bf16.msra.mxu0 %v20912_v38 }
 0xbd4   : > { %20050 = vmatmul.mubr.f32.vlgmr.msra.gmra.mrb[40].mxu0 %v21795_v30 }
 0xca7   : > { %v20051_v15 = vpop.f32.mrb[40].mxu0 }
 0xca8   : > { %v15492_v2 = vadd.f32 %v20051_v15, %v16637_v26  ;;  %v15473_v39 = vpop.f32.mrb[41].mxu0 }
 0xca9   : > { %v15491_v40 = vadd.f32 %v16637_v26, %v15473_v39 }
 0xcaa   : > { %v15494_v28 = vmax.f32 %v15492_v2, 0.0 }
 0xcab   : > { %v15493_v23 = vmax.f32 %v15491_v40, 0.0 }
 0xcad   : > { %v15495_v59 = vadd.f32 %v15494_v28, %v15493_v23 }
 0xcaf   : > { %v15496_v35 = vrot.slane %v15495_v59, 4 }
 0xcb1   : > { %v15497_v11 = vadd.f32 %v15496_v35, %v15495_v59 }
 0xcb3   : > { %v15498_v12 = vrot.slane %v15497_v11, 2 }
 0xcb5   : > { %v15499_v7 = vadd.f32 %v15498_v12, %v15497_v11 }
 0xcb7   : > { %v15500_v61 = vrot.slane %v15499_v7, 1 }
 0xcb9   : > { %v15501_v45 = vadd.f32 %v15500_v61, %v15499_v7 }
 0xcbb   : > { %15502 = vst [vmem:[%s669_s2] sm:$0x1] %v15501_v45 }
 0xcbc PF: > { %s26364_s23 = sld [smem:[#allocation21_spill]] }
 0xcc2   : > { %s32_s27 = sadd.s32 1, %s26364_s23  }
 0xcc3   : > { %p29_p6 = scmp.ge.s32.totalorder %s32_s27, 4  }
 0xcc5   :  { %31 = sbr.rel (!%p29_p6) target bundleno = 11 (0xb), region = 247 }
 0xccc   :  { %15556 = vsyncpa [#allocation11], 1 }
 0xccd   :  { %15558 = vsyncpa [#allocation11 + $0x1], 1 }
 0xcce   :  { %15559 = vsyncpa [#allocation13], 1 }
 0xccf   :  { %15560 = vsyncpa [#allocation16], 1 }

</bundles_post_ra>
